<compile_context>
chip_gen: v5e
topology: v5e:2x2
jax: 0.10.0
libtpu: 0.0.40
codegen_flags: <defaults>
</compile_context>

<pallas_src>
import jax
import jax.numpy as jnp
from jax import lax
from jax.experimental import pallas as pl
from jax.experimental.pallas import tpu as pltpu

BN_EPS = 1e-5
_HI = jax.lax.Precision.HIGHEST

# Set to jnp.bfloat16 on v6e/v7x for the native-throughput MXU path (halves
# operand bytes); kept f32 here so the numerical check below is tight.
MXU_DTYPE = jnp.float32


def _mxu(x):
    return x.astype(MXU_DTYPE)


# ----------------------------------------------------------------------------
# In-kernel building blocks
# ----------------------------------------------------------------------------
def _affine_relu_dot(x2d, w, shift, *, relu=True):
    """maybe_relu(x2d @ w + shift) — 1x1 conv with BN scale folded into w."""
    y = jnp.dot(_mxu(x2d), _mxu(w), preferred_element_type=jnp.float32) + shift
    return jnp.maximum(y, 0.0) if relu else y


def _dw3x3(pad_ref, x, w, shift, *, stride):
    """3x3 depthwise conv (pad=1, stride 1 or 2) + folded-BN shift.

    The 1-pixel halo lives in a zero-initialised VMEM scratch (no wrapper-side
    jnp.pad / HBM round trip).  For stride 2 the taps are read directly with
    pl.ds(..., stride=2), so the half-resolution output is computed without
    redundant stride-1 work.  x: (h, w, c) value; w: (3, 3, c); shift: (1, c).
    """
    h, wd, c = x.shape
    pad_ref[...] = jnp.zeros_like(pad_ref)
    pad_ref[1:h + 1, 1:wd + 1, :] = x
    if stride == 1:
        xp = pad_ref[...]
    else:                               # h, wd are even for every s2 layer
        ho, wo = h // 2, wd // 2
    acc = None
    for dy in range(3):
        for dx in range(3):
            if stride == 1:
                tap = xp[dy:dy + h, dx:dx + wd, :]
            else:
                tap = pad_ref[pl.ds(dy, ho, 2), pl.ds(dx, wo, 2), :]
            term = tap * w[dy:dy + 1, dx:dx + 1, :]
            acc = term if acc is None else acc + term
    return acc + shift


def _maxpool3x3_s2(pad_ref, x):
    """3x3 / stride-2 / pad-1 max-pool on an (h, w, c) value via -inf halo."""
    h, wd, _ = x.shape
    ho, wo = h // 2, wd // 2
    pad_ref[...] = jnp.full(pad_ref.shape, -jnp.inf, pad_ref.dtype)
    pad_ref[1:h + 1, 1:wd + 1, :] = x
    out = None
    for dy in range(3):
        for dx in range(3):
            tap = pad_ref[pl.ds(dy, ho, 2), pl.ds(dx, wo, 2), :]
            out = tap if out is None else jnp.maximum(out, tap)
    return out


# ----------------------------------------------------------------------------
# Kernels (one per fused stage; gridded over the batch)
# ----------------------------------------------------------------------------
def _stem_kernel(x_ref, w_ref, shift_ref, o_ref, cpad_ref, ppad_ref):
    """conv1 3x3/s2/pad1 (+BN shift +ReLU) fused with 3x3/s2/pad1 max-pool."""
    _, h, w, cin = x_ref.shape
    ho, wo = h // 2, w // 2
    c0 = o_ref.shape[-1]
    # zero halo for the stem conv
    cpad_ref[...] = jnp.zeros_like(cpad_ref)
    cpad_ref[1:h + 1, 1:w + 1, :] = x_ref[0]
    acc = None
    for dy in range(3):
        for dx in range(3):
            tap = cpad_ref[pl.ds(dy, ho, 2), pl.ds(dx, wo, 2), :]
            term = jnp.dot(_mxu(tap.reshape(ho * wo, cin)),
                           _mxu(w_ref[dy * 3 + dx]),
                           preferred_element_type=jnp.float32)
            acc = term if acc is None else acc + term
    y = jnp.maximum(acc + shift_ref[...], 0.0).reshape(ho, wo, c0)
    o_ref[0] = _maxpool3x3_s2(ppad_ref, y)


def _block_s2_kernel(x_ref, dw1_w_ref, dw1_s_ref, pw1b_w_ref, pw1b_s_ref,
                     pw21_w_ref, pw21_s_ref, dw2_w_ref, dw2_s_ref,
                     pw22_w_ref, pw22_s_ref, o_ref, padA_ref, padB_ref):
    """Stride-2 inverted residual: both branches + concat + channel_shuffle."""
    _, h, w, cin = x_ref.shape
    _, ho, wo, cout = o_ref.shape
    x = x_ref[0]
    # branch1: dw3x3/s2 (+shift) -> 1x1 (+shift, ReLU); the shuffle scatter to
    # the even output channels is folded into pw1b_w host-side.
    b1 = _dw3x3(padA_ref, x, dw1_w_ref[...], dw1_s_ref[...], stride=2)
    y1 = _affine_relu_dot(b1.reshape(ho * wo, cin), pw1b_w_ref[...],
                          pw1b_s_ref[...])
    # branch2: 1x1 (+shift, ReLU) -> dw3x3/s2 (+shift) -> 1x1 (+shift, ReLU);
    # scatter to the odd output channels folded into pw22_w host-side.
    h1 = _affine_relu_dot(x.reshape(h * w, cin), pw21_w_ref[...],
                          pw21_s_ref[...])
    bf = h1.shape[-1]
    b2 = _dw3x3(padB_ref, h1.reshape(h, w, bf), dw2_w_ref[...],
                dw2_s_ref[...], stride=2)
    y2 = _affine_relu_dot(b2.reshape(ho * wo, bf), pw22_w_ref[...],
                          pw22_s_ref[...])
    # concat + channel_shuffle(groups=2) == sum of the two scattered halves.
    o_ref[0] = (y1 + y2).reshape(ho, wo, cout)


def _block_s1_kernel(x_ref, ptop_ref, pw1_w_ref, pw1_s_ref, dw_w_ref, dw_s_ref,
                     pw2_w_ref, pw2_s_ref, o_ref, pad_ref):
    """Stride-1 inverted residual: chunk + branch2 + concat + channel_shuffle."""
    _, h, w, c = x_ref.shape
    half = c // 2
    x = x_ref[0]
    x1 = x[:, :, :half].reshape(h * w, half)
    x2 = x[:, :, half:].reshape(h * w, half)
    # passthrough half scattered to the even output channels (shuffle fold)
    y1 = jnp.dot(_mxu(x1), _mxu(ptop_ref[...]),
                 preferred_element_type=jnp.float32)
    # branch2 on the second half; odd-channel scatter folded into pw2_w
    h1 = _affine_relu_dot(x2, pw1_w_ref[...], pw1_s_ref[...])
    bf = h1.shape[-1]
    b2 = _dw3x3(pad_ref, h1.reshape(h, w, bf), dw_w_ref[...], dw_s_ref[...],
                stride=1)
    y2 = _affine_relu_dot(b2.reshape(h * w, bf), pw2_w_ref[...],
                          pw2_s_ref[...])
    o_ref[0] = (y1 + y2).reshape(h, w, c)


def _head_kernel(x_ref, w5_ref, s5_ref, wfc_ref, bfc_ref, o_ref):
    """conv5 1x1 (+shift, ReLU) + global average pool + final Linear."""
    n, h, w, c = x_ref.shape
    y = _affine_relu_dot(x_ref[...].reshape(n * h * w, c), w5_ref[...],
                         s5_ref[...])
    c5 = y.shape[-1]
    pooled = jnp.mean(y.reshape(n, h * w, c5), axis=1)
    o_ref[...] = jnp.dot(_mxu(pooled), _mxu(wfc_ref[...]),
                         preferred_element_type=jnp.float32) + bfc_ref[...]


# ----------------------------------------------------------------------------
# pallas_call wrappers
# ----------------------------------------------------------------------------
def _batch_spec(shape):
    return pl.BlockSpec((1,) + tuple(shape[1:]), lambda i: (i, 0, 0, 0))


def _const_spec(arr):
    idx = (0,) * arr.ndim
    return pl.BlockSpec(arr.shape, lambda i, _idx=idx: _idx)


def stem(x, p):
    n, h, w, cin = x.shape
    c0 = p["shift"].shape[-1]
    ho, wo = h // 2, w // 2          # after conv1
    hp, wp = ho // 2, wo // 2        # after max-pool
    out_shape = jax.ShapeDtypeStruct((n, hp, wp, c0), jnp.float32)
    return pl.pallas_call(
        _stem_kernel,
        out_shape=out_shape,
        grid=(n,),
        in_specs=[_batch_spec(x.shape), _const_spec(p["w"]),
                  _const_spec(p["shift"])],
        out_specs=_batch_spec(out_shape.shape),
        scratch_shapes=[pltpu.VMEM((h + 2, w + 2, cin), jnp.float32),
                        pltpu.VMEM((ho + 2, wo + 2, c0), jnp.float32)],
        compiler_params=pltpu.CompilerParams(dimension_semantics=("parallel",)),
    )(x, p["w"], p["shift"])


def block_s2(x, p):
    n, h, w, cin = x.shape
    ho, wo = h // 2, w // 2
    cout = p["pw1b_w"].shape[-1]
    bf = p["pw21_w"].shape[-1]
    weights = (p["dw1_w"], p["dw1_shift"], p["pw1b_w"], p["pw1b_shift"],
               p["pw21_w"], p["pw21_shift"], p["dw2_w"], p["dw2_shift"],
               p["pw22_w"], p["pw22_shift"])
    out_shape = jax.ShapeDtypeStruct((n, ho, wo, cout), jnp.float32)
    return pl.pallas_call(
        _block_s2_kernel,
        out_shape=out_shape,
        grid=(n,),
        in_specs=[_batch_spec(x.shape)] + [_const_spec(a) for a in weights],
        out_specs=_batch_spec(out_shape.shape),
        scratch_shapes=[pltpu.VMEM((h + 2, w + 2, cin), jnp.float32),
                        pltpu.VMEM((h + 2, w + 2, bf), jnp.float32)],
        compiler_params=pltpu.CompilerParams(dimension_semantics=("parallel",)),
    )(x, *weights)


def block_s1(x, p):
    n, h, w, c = x.shape
    bf = p["pw1_w"].shape[-1]
    weights = (p["ptop"], p["pw1_w"], p["pw1_shift"], p["dw_w"], p["dw_shift"],
               p["pw2_w"], p["pw2_shift"])
    out_shape = jax.ShapeDtypeStruct((n, h, w, c), jnp.float32)
    return pl.pallas_call(
        _block_s1_kernel,
        out_shape=out_shape,
        grid=(n,),
        in_specs=[_batch_spec(x.shape)] + [_const_spec(a) for a in weights],
        out_specs=_batch_spec(out_shape.shape),
        scratch_shapes=[pltpu.VMEM((h + 2, w + 2, bf), jnp.float32)],
        compiler_params=pltpu.CompilerParams(dimension_semantics=("parallel",)),
    )(x, *weights)


def head(x, p5, pfc):
    n = x.shape[0]
    out_dim = pfc["w"].shape[-1]
    args = (x, p5["w"], p5["shift"], pfc["w"], pfc["b"])
    return pl.pallas_call(
        _head_kernel,
        out_shape=jax.ShapeDtypeStruct((n, out_dim), jnp.float32),
        in_specs=[pl.BlockSpec(memory_space=pltpu.MemorySpace.VMEM)] * len(args),
        out_specs=pl.BlockSpec(memory_space=pltpu.MemorySpace.VMEM),
    )(*args)


def shufflenet_forward_pallas(x, fp):
    y = stem(x, fp["conv1"])
    for name in ("stage2", "stage3", "stage4"):
        for i, bp in enumerate(fp[name]):
            y = block_s2(y, bp) if i == 0 else block_s1(y, bp)
    return head(y, fp["conv5"], fp["fc"])


# ----------------------------------------------------------------------------
# Parameters (eval-mode BN) and host-side folding
# ----------------------------------------------------------------------------
class _KeyGen:
    def __init__(self, key):
        self._key = key

    def __call__(self):
        self._key, sub = jax.random.split(self._key)
        return sub


def _init_bn(kg, c):
    return dict(
        gamma=jax.random.uniform(kg(), (c,), jnp.float32, 0.5, 1.5),
        beta=0.1 * jax.random.normal(kg(), (c,), jnp.float32),
        mean=0.1 * jax.random.normal(kg(), (c,), jnp.float32),
        var=jax.random.uniform(kg(), (c,), jnp.float32, 0.5, 1.5),
    )


def _init_w(kg, shape, fan_in):
    return jax.random.normal(kg(), shape, jnp.float32) / jnp.sqrt(float(fan_in))


def init_params(kg, *, stages_repeats, stages_out_channels, in_channels, out_dim):
    c0, c1, c2, c3, c4 = stages_out_channels
    params = dict(
        conv1=dict(w=_init_w(kg, (3, 3, in_channels, c0), 9 * in_channels),
                   bn=_init_bn(kg, c0)))
    input_c = c0
    for name, repeats, out_c in zip(("stage2", "stage3", "stage4"),
                                    stages_repeats, (c1, c2, c3)):
        blocks = []
        for i in range(repeats):
            stride = 2 if i == 0 else 1
            inp = input_c if i == 0 else out_c
            bf = out_c // 2
            b = {}
            if stride > 1:
                b["branch1"] = dict(
                    dw_w=_init_w(kg, (3, 3, inp), 9),
                    dw_bn=_init_bn(kg, inp),
                    pw_w=_init_w(kg, (inp, bf), inp),
                    pw_bn=_init_bn(kg, bf))
            in2 = inp if stride > 1 else bf
            b["branch2"] = dict(
                pw1_w=_init_w(kg, (in2, bf), in2), pw1_bn=_init_bn(kg, bf),
                dw_w=_init_w(kg, (3, 3, bf), 9), dw_bn=_init_bn(kg, bf),
                pw2_w=_init_w(kg, (bf, bf), bf), pw2_bn=_init_bn(kg, bf))
            blocks.append(b)
        params[name] = blocks
        input_c = out_c
    params["conv5"] = dict(w=_init_w(kg, (c3, c4), c3), bn=_init_bn(kg, c4))
    params["fc"] = dict(w=_init_w(kg, (c4, out_dim), c4),
                        b=0.01 * jax.random.normal(kg(), (out_dim,), jnp.float32))
    return params


def _fold_bn(bn):
    scale = bn["gamma"] / jnp.sqrt(bn["var"] + BN_EPS)
    shift = bn["beta"] - bn["mean"] * scale
    return scale, shift


def _shuffle_mats(cout):
    """channel_shuffle(concat([a, b]), groups=2): a -> even, b -> odd channels."""
    bf = cout // 2
    eye = jnp.eye(bf, dtype=jnp.float32)
    ptop = jnp.zeros((bf, cout), jnp.float32).at[:, 0::2].set(eye)
    pbot = jnp.zeros((bf, cout), jnp.float32).at[:, 1::2].set(eye)
    return ptop, pbot


def fold_params(params):
    """Fold eval-mode BN (scale into weights, keep shift) and the channel
    shuffle (0/1 scatter matrices into the last 1x1 weight of each branch)."""
    fp = {}
    s, sh = _fold_bn(params["conv1"]["bn"])
    w1 = params["conv1"]["w"] * s                      # (3,3,cin,c0)
    cin, c0 = w1.shape[2], w1.shape[3]
    fp["conv1"] = dict(w=w1.reshape(9, cin, c0), shift=sh.reshape(1, -1))
    for name in ("stage2", "stage3", "stage4"):
        blocks = []
        for b in params[name]:
            fb = {}
            if "branch1" in b:                         # stride-2 block
                p1, p2 = b["branch1"], b["branch2"]
                bf = p1["pw_w"].shape[1]
                ptop, pbot = _shuffle_mats(2 * bf)
                s_dw, sh_dw = _fold_bn(p1["dw_bn"])
                s_pw, sh_pw = _fold_bn(p1["pw_bn"])
                fb["dw1_w"] = p1["dw_w"] * s_dw
                fb["dw1_shift"] = sh_dw.reshape(1, -1)
                fb["pw1b_w"] = (p1["pw_w"] * s_pw[None, :]) @ ptop
                fb["pw1b_shift"] = sh_pw[None, :] @ ptop
                s1, sh1 = _fold_bn(p2["pw1_bn"])
                s2, sh2 = _fold_bn(p2["dw_bn"])
                s3, sh3 = _fold_bn(p2["pw2_bn"])
                fb["pw21_w"] = p2["pw1_w"] * s1[None, :]
                fb["pw21_shift"] = sh1.reshape(1, -1)
                fb["dw2_w"] = p2["dw_w"] * s2
                fb["dw2_shift"] = sh2.reshape(1, -1)
                fb["pw22_w"] = (p2["pw2_w"] * s3[None, :]) @ pbot
                fb["pw22_shift"] = sh3[None, :] @ pbot
            else:                                      # stride-1 block
                p2 = b["branch2"]
                bf = p2["pw2_w"].shape[1]
                ptop, pbot = _shuffle_mats(2 * bf)
                s1, sh1 = _fold_bn(p2["pw1_bn"])
                s2, sh2 = _fold_bn(p2["dw_bn"])
                s3, sh3 = _fold_bn(p2["pw2_bn"])
                fb["ptop"] = ptop
                fb["pw1_w"] = p2["pw1_w"] * s1[None, :]
                fb["pw1_shift"] = sh1.reshape(1, -1)
                fb["dw_w"] = p2["dw_w"] * s2
                fb["dw_shift"] = sh2.reshape(1, -1)
                fb["pw2_w"] = (p2["pw2_w"] * s3[None, :]) @ pbot
                fb["pw2_shift"] = sh3[None, :] @ pbot
            blocks.append(fb)
        fp[name] = blocks
    s, sh = _fold_bn(params["conv5"]["bn"])
    fp["conv5"] = dict(w=params["conv5"]["w"] * s[None, :],
                       shift=sh.reshape(1, -1))
    fp["fc"] = dict(w=params["fc"]["w"], b=params["fc"]["b"].reshape(1, -1))
    return fp


# ----------------------------------------------------------------------------
# Pure-JAX reference (same eval-mode BN semantics)
# ----------------------------------------------------------------------------
def _bn_ref(x, bn):
    return ((x - bn["mean"]) / jnp.sqrt(bn["var"] + BN_EPS)) * bn["gamma"] + bn["beta"]


def _conv1x1_ref(x, w):
    return jnp.einsum("nhwc,cd->nhwd", x, w, precision=_HI)


def _dwconv_ref(x, w, stride):
    c = x.shape[-1]
    return lax.conv_general_dilated(
        x, w.reshape(3, 3, 1, c), (stride, stride), ((1, 1), (1, 1)),
        dimension_numbers=("NHWC", "HWIO", "NHWC"),
        feature_group_count=c, precision=_HI)


def _channel_shuffle(x, groups):
    n, h, wd, c = x.shape
    x = x.reshape(n, h, wd, groups, c // groups)
    x = jnp.swapaxes(x, 3, 4)
    return x.reshape(n, h, wd, c)


def _branch1_ref(x, p, stride):
    y = _bn_ref(_dwconv_ref(x, p["dw_w"], stride), p["dw_bn"])
    return jnp.maximum(_bn_ref(_conv1x1_ref(y, p["pw_w"]), p["pw_bn"]), 0.0)


def _branch2_ref(x, p, stride):
    y = jnp.maximum(_bn_ref(_conv1x1_ref(x, p["pw1_w"]), p["pw1_bn"]), 0.0)
    y = _bn_ref(_dwconv_ref(y, p["dw_w"], stride), p["dw_bn"])
    return jnp.maximum(_bn_ref(_conv1x1_ref(y, p["pw2_w"]), p["pw2_bn"]), 0.0)


def shufflenet_forward_ref(x, params):
    y = lax.conv_general_dilated(
        x, params["conv1"]["w"], (2, 2), ((1, 1), (1, 1)),
        dimension_numbers=("NHWC", "HWIO", "NHWC"), precision=_HI)
    y = jnp.maximum(_bn_ref(y, params["conv1"]["bn"]), 0.0)
    y = lax.reduce_window(y, -jnp.inf, lax.max, (1, 3, 3, 1), (1, 2, 2, 1),
                          ((0, 0), (1, 1), (1, 1), (0, 0)))
    for name in ("stage2", "stage3", "stage4"):
        for i, b in enumerate(params[name]):
            stride = 2 if i == 0 else 1
            if stride == 1:
                c = y.shape[-1]
                x1, x2 = y[..., : c // 2], y[..., c // 2:]
                y = jnp.concatenate([x1, _branch2_ref(x2, b["branch2"], 1)], axis=-1)
            else:
                y = jnp.concatenate([_branch1_ref(y, b["branch1"], stride),
                                     _branch2_ref(y, b["branch2"], stride)], axis=-1)
            y = _channel_shuffle(y, 2)
    y = jnp.maximum(_bn_ref(_conv1x1_ref(y, params["conv5"]["w"]),
                            params["conv5"]["bn"]), 0.0)
    y = jnp.mean(y, axis=(1, 2))
    return jnp.dot(y, params["fc"]["w"], precision=_HI) + params["fc"]["b"]


# ----------------------------------------------------------------------------
if __name__ == "__main__":
    BATCH, IMG, IN_CH, OUT_DIM = 2, 32, 3, 10
    REPEATS = [2, 1, 1]                 # stage2 exercises the stride-1 path
    CHANNELS = [16, 32, 64, 128, 128]

    kg = _KeyGen(jax.random.PRNGKey(0))
    params = init_params(kg, stages_repeats=REPEATS,
                         stages_out_channels=CHANNELS,
                         in_channels=IN_CH, out_dim=OUT_DIM)
    x = jax.random.normal(kg(), (BATCH, IMG, IMG, IN_CH), jnp.float32)

    fp = fold_params(params)            # host-side BN + shuffle fold (eval mode)

    out = jax.block_until_ready(jax.jit(shufflenet_forward_pallas)(x, fp))
    ref = jax.block_until_ready(jax.jit(shufflenet_forward_ref)(x, params))

    assert out.shape == (BATCH, OUT_DIM), out.shape
    err = float(jnp.max(jnp.abs(out - ref)))
    assert jnp.allclose(out, ref, atol=5e-3, rtol=5e-3), f"max abs err {err}"
    print("KERNEL_OK")
</pallas_src>

<mosaic_0001>
module attributes {stable_mosaic.version = 11 : i64} {
  func.func @_block_s1_kernel(%arg0: i32, %arg1: memref<1x4x4x32xf32, #tpu.memory_space<vmem>>, %arg2: memref<16x32xf32, #tpu.memory_space<vmem>>, %arg3: memref<16x16xf32, #tpu.memory_space<vmem>>, %arg4: memref<1x16xf32, #tpu.memory_space<vmem>>, %arg5: memref<3x3x16xf32, #tpu.memory_space<vmem>>, %arg6: memref<1x16xf32, #tpu.memory_space<vmem>>, %arg7: memref<16x32xf32, #tpu.memory_space<vmem>>, %arg8: memref<1x32xf32, #tpu.memory_space<vmem>>, %arg9: memref<1x4x4x32xf32, #tpu.memory_space<vmem>>, %arg10: memref<6x6x16xf32, #tpu.memory_space<vmem>>) attributes {dimension_semantics = [#tpu.dimension_semantics<parallel>], iteration_bounds = array<i64: 2>, scalar_prefetch = 0 : i64, scratch_operands = 1 : i64, tpu.core_type = #tpu.core_type<tc>, window_params = [{transform_indices = @transform_0, window_bounds = array<i64: 1, 4, 4, 32>}, {pipeline_mode = #tpu.pipeline_mode<synchronous>, transform_indices = @transform_1, window_bounds = array<i64: 16, 32>}, {pipeline_mode = #tpu.pipeline_mode<synchronous>, transform_indices = @transform_2, window_bounds = array<i64: 16, 16>}, {pipeline_mode = #tpu.pipeline_mode<synchronous>, transform_indices = @transform_3, window_bounds = array<i64: 1, 16>}, {pipeline_mode = #tpu.pipeline_mode<synchronous>, transform_indices = @transform_4, window_bounds = array<i64: 3, 3, 16>}, {pipeline_mode = #tpu.pipeline_mode<synchronous>, transform_indices = @transform_5, window_bounds = array<i64: 1, 16>}, {pipeline_mode = #tpu.pipeline_mode<synchronous>, transform_indices = @transform_6, window_bounds = array<i64: 16, 32>}, {pipeline_mode = #tpu.pipeline_mode<synchronous>, transform_indices = @transform_7, window_bounds = array<i64: 1, 32>}, {transform_indices = @transform_8, window_bounds = array<i64: 1, 4, 4, 32>}]} {
    %c0 = arith.constant 0 : index
    %c0_0 = arith.constant 0 : index
    %c0_1 = arith.constant 0 : index
    %c0_2 = arith.constant 0 : index
    %0 = vector.load %arg1[%c0, %c0_0, %c0_1, %c0_2] : memref<1x4x4x32xf32, #tpu.memory_space<vmem>>, vector<1x4x4x32xf32>
    %1 = vector.shape_cast %0 : vector<1x4x4x32xf32> to vector<4x4x32xf32>
    %2 = vector.extract_strided_slice %1 {offsets = [0, 0, 0], sizes = [4, 4, 16], strides = [1, 1, 1]} : vector<4x4x32xf32> to vector<4x4x16xf32>
    %3 = vector.shape_cast %2 : vector<4x4x16xf32> to vector<16x16xf32>
    %4 = vector.extract_strided_slice %1 {offsets = [0, 0, 16], sizes = [4, 4, 16], strides = [1, 1, 1]} : vector<4x4x32xf32> to vector<4x4x16xf32>
    %5 = vector.shape_cast %4 : vector<4x4x16xf32> to vector<16x16xf32>
    %c0_3 = arith.constant 0 : index
    %c0_4 = arith.constant 0 : index
    %6 = vector.load %arg2[%c0_3, %c0_4] : memref<16x32xf32, #tpu.memory_space<vmem>>, vector<16x32xf32>
    %cst = arith.constant dense<0.000000e+00> : vector<16x32xf32>
    %7 = tpu.matmul %3, %6, %cst {dimension_numbers = #tpu.dot_dimension_numbers<[1], [0], [0], [1], [0, 0, 1, 1], [], []>} : vector<16x16xf32>, vector<16x32xf32>, vector<16x32xf32> -> vector<16x32xf32>
    %c0_5 = arith.constant 0 : index
    %c0_6 = arith.constant 0 : index
    %8 = vector.load %arg3[%c0_5, %c0_6] : memref<16x16xf32, #tpu.memory_space<vmem>>, vector<16x16xf32>
    %c0_7 = arith.constant 0 : index
    %c0_8 = arith.constant 0 : index
    %9 = vector.load %arg4[%c0_7, %c0_8] : memref<1x16xf32, #tpu.memory_space<vmem>>, vector<1x16xf32>
    %cst_9 = arith.constant dense<0.000000e+00> : vector<16x16xf32>
    %10 = tpu.matmul %5, %8, %cst_9 {dimension_numbers = #tpu.dot_dimension_numbers<[1], [0], [0], [1], [0, 0, 1, 1], [], []>} : vector<16x16xf32>, vector<16x16xf32>, vector<16x16xf32> -> vector<16x16xf32>
    %11 = vector.broadcast %9 : vector<1x16xf32> to vector<16x16xf32>
    %12 = arith.addf %10, %11 : vector<16x16xf32>
    %cst_10 = arith.constant 0.000000e+00 : f32
    %13 = vector.broadcast %cst_10 : f32 to vector<16x16xf32>
    %14 = arith.maximumf %12, %13 : vector<16x16xf32>
    %15 = vector.shape_cast %14 : vector<16x16xf32> to vector<4x4x16xf32>
    %c0_11 = arith.constant 0 : index
    %c0_12 = arith.constant 0 : index
    %c0_13 = arith.constant 0 : index
    %16 = vector.load %arg5[%c0_11, %c0_12, %c0_13] : memref<3x3x16xf32, #tpu.memory_space<vmem>>, vector<3x3x16xf32>
    %c0_14 = arith.constant 0 : index
    %c0_15 = arith.constant 0 : index
    %17 = vector.load %arg6[%c0_14, %c0_15] : memref<1x16xf32, #tpu.memory_space<vmem>>, vector<1x16xf32>
    %cst_16 = arith.constant 0.000000e+00 : f32
    %18 = vector.broadcast %cst_16 : f32 to vector<6x6x16xf32>
    %c0_17 = arith.constant 0 : index
    %c0_18 = arith.constant 0 : index
    %c0_19 = arith.constant 0 : index
    %19 = vector.load %arg10[%c0_17, %c0_18, %c0_19] : memref<6x6x16xf32, #tpu.memory_space<vmem>>, vector<6x6x16xf32>
    tpu.vector_store %arg10[%c0_17, %c0_18, %c0_19], %18 {strides = array<i32>} : memref<6x6x16xf32, #tpu.memory_space<vmem>>, vector<6x6x16xf32>,
    %c1 = arith.constant 1 : index
    %c1_20 = arith.constant 1 : index
    %c0_21 = arith.constant 0 : index
    %20 = vector.load %arg10[%c1, %c1_20, %c0_21] : memref<6x6x16xf32, #tpu.memory_space<vmem>>, vector<4x4x16xf32>
    tpu.vector_store %arg10[%c1, %c1_20, %c0_21], %15 {strides = array<i32>} : memref<6x6x16xf32, #tpu.memory_space<vmem>>, vector<4x4x16xf32>,
    %c0_22 = arith.constant 0 : index
    %c0_23 = arith.constant 0 : index
    %c0_24 = arith.constant 0 : index
    %21 = vector.load %arg10[%c0_22, %c0_23, %c0_24] : memref<6x6x16xf32, #tpu.memory_space<vmem>>, vector<6x6x16xf32>
    %22 = vector.extract_strided_slice %21 {offsets = [0, 0, 0], sizes = [4, 4, 16], strides = [1, 1, 1]} : vector<6x6x16xf32> to vector<4x4x16xf32>
    %23 = vector.extract_strided_slice %16 {offsets = [0, 0, 0], sizes = [1, 1, 16], strides = [1, 1, 1]} : vector<3x3x16xf32> to vector<1x1x16xf32>
    %24 = vector.broadcast %23 : vector<1x1x16xf32> to vector<4x4x16xf32>
    %25 = arith.mulf %22, %24 : vector<4x4x16xf32>
    %26 = vector.extract_strided_slice %21 {offsets = [0, 1, 0], sizes = [4, 4, 16], strides = [1, 1, 1]} : vector<6x6x16xf32> to vector<4x4x16xf32>
    %27 = vector.extract_strided_slice %16 {offsets = [0, 1, 0], sizes = [1, 1, 16], strides = [1, 1, 1]} : vector<3x3x16xf32> to vector<1x1x16xf32>
    %28 = vector.broadcast %27 : vector<1x1x16xf32> to vector<4x4x16xf32>
    %29 = arith.mulf %26, %28 : vector<4x4x16xf32>
    %30 = arith.addf %25, %29 : vector<4x4x16xf32>
    %31 = vector.extract_strided_slice %21 {offsets = [0, 2, 0], sizes = [4, 4, 16], strides = [1, 1, 1]} : vector<6x6x16xf32> to vector<4x4x16xf32>
    %32 = vector.extract_strided_slice %16 {offsets = [0, 2, 0], sizes = [1, 1, 16], strides = [1, 1, 1]} : vector<3x3x16xf32> to vector<1x1x16xf32>
    %33 = vector.broadcast %32 : vector<1x1x16xf32> to vector<4x4x16xf32>
    %34 = arith.mulf %31, %33 : vector<4x4x16xf32>
    %35 = arith.addf %30, %34 : vector<4x4x16xf32>
    %36 = vector.extract_strided_slice %21 {offsets = [1, 0, 0], sizes = [4, 4, 16], strides = [1, 1, 1]} : vector<6x6x16xf32> to vector<4x4x16xf32>
    %37 = vector.extract_strided_slice %16 {offsets = [1, 0, 0], sizes = [1, 1, 16], strides = [1, 1, 1]} : vector<3x3x16xf32> to vector<1x1x16xf32>
    %38 = vector.broadcast %37 : vector<1x1x16xf32> to vector<4x4x16xf32>
    %39 = arith.mulf %36, %38 : vector<4x4x16xf32>
    %40 = arith.addf %35, %39 : vector<4x4x16xf32>
    %41 = vector.extract_strided_slice %21 {offsets = [1, 1, 0], sizes = [4, 4, 16], strides = [1, 1, 1]} : vector<6x6x16xf32> to vector<4x4x16xf32>
    %42 = vector.extract_strided_slice %16 {offsets = [1, 1, 0], sizes = [1, 1, 16], strides = [1, 1, 1]} : vector<3x3x16xf32> to vector<1x1x16xf32>
    %43 = vector.broadcast %42 : vector<1x1x16xf32> to vector<4x4x16xf32>
    %44 = arith.mulf %41, %43 : vector<4x4x16xf32>
    %45 = arith.addf %40, %44 : vector<4x4x16xf32>
    %46 = vector.extract_strided_slice %21 {offsets = [1, 2, 0], sizes = [4, 4, 16], strides = [1, 1, 1]} : vector<6x6x16xf32> to vector<4x4x16xf32>
    %47 = vector.extract_strided_slice %16 {offsets = [1, 2, 0], sizes = [1, 1, 16], strides = [1, 1, 1]} : vector<3x3x16xf32> to vector<1x1x16xf32>
    %48 = vector.broadcast %47 : vector<1x1x16xf32> to vector<4x4x16xf32>
    %49 = arith.mulf %46, %48 : vector<4x4x16xf32>
    %50 = arith.addf %45, %49 : vector<4x4x16xf32>
    %51 = vector.extract_strided_slice %21 {offsets = [2, 0, 0], sizes = [4, 4, 16], strides = [1, 1, 1]} : vector<6x6x16xf32> to vector<4x4x16xf32>
    %52 = vector.extract_strided_slice %16 {offsets = [2, 0, 0], sizes = [1, 1, 16], strides = [1, 1, 1]} : vector<3x3x16xf32> to vector<1x1x16xf32>
    %53 = vector.broadcast %52 : vector<1x1x16xf32> to vector<4x4x16xf32>
    %54 = arith.mulf %51, %53 : vector<4x4x16xf32>
    %55 = arith.addf %50, %54 : vector<4x4x16xf32>
    %56 = vector.extract_strided_slice %21 {offsets = [2, 1, 0], sizes = [4, 4, 16], strides = [1, 1, 1]} : vector<6x6x16xf32> to vector<4x4x16xf32>
    %57 = vector.extract_strided_slice %16 {offsets = [2, 1, 0], sizes = [1, 1, 16], strides = [1, 1, 1]} : vector<3x3x16xf32> to vector<1x1x16xf32>
    %58 = vector.broadcast %57 : vector<1x1x16xf32> to vector<4x4x16xf32>
    %59 = arith.mulf %56, %58 : vector<4x4x16xf32>
    %60 = arith.addf %55, %59 : vector<4x4x16xf32>
    %61 = vector.extract_strided_slice %21 {offsets = [2, 2, 0], sizes = [4, 4, 16], strides = [1, 1, 1]} : vector<6x6x16xf32> to vector<4x4x16xf32>
    %62 = vector.extract_strided_slice %16 {offsets = [2, 2, 0], sizes = [1, 1, 16], strides = [1, 1, 1]} : vector<3x3x16xf32> to vector<1x1x16xf32>
    %63 = vector.broadcast %62 : vector<1x1x16xf32> to vector<4x4x16xf32>
    %64 = arith.mulf %61, %63 : vector<4x4x16xf32>
    %65 = arith.addf %60, %64 : vector<4x4x16xf32>
    %66 = vector.shape_cast %17 : vector<1x16xf32> to vector<1x1x16xf32>
    %67 = vector.broadcast %66 : vector<1x1x16xf32> to vector<4x4x16xf32>
    %68 = arith.addf %65, %67 : vector<4x4x16xf32>
    %69 = vector.shape_cast %68 : vector<4x4x16xf32> to vector<16x16xf32>
    %c0_25 = arith.constant 0 : index
    %c0_26 = arith.constant 0 : index
    %70 = vector.load %arg7[%c0_25, %c0_26] : memref<16x32xf32, #tpu.memory_space<vmem>>, vector<16x32xf32>
    %c0_27 = arith.constant 0 : index
    %c0_28 = arith.constant 0 : index
    %71 = vector.load %arg8[%c0_27, %c0_28] : memref<1x32xf32, #tpu.memory_space<vmem>>, vector<1x32xf32>
    %cst_29 = arith.constant dense<0.000000e+00> : vector<16x32xf32>
    %72 = tpu.matmul %69, %70, %cst_29 {dimension_numbers = #tpu.dot_dimension_numbers<[1], [0], [0], [1], [0, 0, 1, 1], [], []>} : vector<16x16xf32>, vector<16x32xf32>, vector<16x32xf32> -> vector<16x32xf32>
    %73 = vector.broadcast %71 : vector<1x32xf32> to vector<16x32xf32>
    %74 = arith.addf %72, %73 : vector<16x32xf32>
    %cst_30 = arith.constant 0.000000e+00 : f32
    %75 = vector.broadcast %cst_30 : f32 to vector<16x32xf32>
    %76 = arith.maximumf %74, %75 : vector<16x32xf32>
    %77 = arith.addf %7, %76 : vector<16x32xf32>
    %78 = vector.shape_cast %77 : vector<16x32xf32> to vector<4x4x32xf32>
    %c0_31 = arith.constant 0 : index
    %c0_32 = arith.constant 0 : index
    %c0_33 = arith.constant 0 : index
    %c0_34 = arith.constant 0 : index
    %79 = vector.load %arg9[%c0_31, %c0_32, %c0_33, %c0_34] : memref<1x4x4x32xf32, #tpu.memory_space<vmem>>, vector<1x4x4x32xf32>
    %80 = vector.shape_cast %79 : vector<1x4x4x32xf32> to vector<4x4x32xf32>
    %81 = vector.shape_cast %78 : vector<4x4x32xf32> to vector<1x4x4x32xf32>
    tpu.vector_store %arg9[%c0_31, %c0_32, %c0_33, %c0_34], %81 {strides = array<i32>} : memref<1x4x4x32xf32, #tpu.memory_space<vmem>>, vector<1x4x4x32xf32>,
    return
  }
  func.func @transform_0(%arg0: i32) -> (i32, i32, i32, i32) {
    %c0_i32 = arith.constant 0 : i32
    %c0_i32_0 = arith.constant 0 : i32
    %c0_i32_1 = arith.constant 0 : i32
    %c0_i32_2 = arith.constant 0 : i32
    return %arg0, %c0_i32, %c0_i32_0, %c0_i32_1 : i32, i32, i32, i32
  }
  func.func @transform_1(%arg0: i32) -> (i32, i32) {
    %c0_i32 = arith.constant 0 : i32
    %c0_i32_0 = arith.constant 0 : i32
    %c0_i32_1 = arith.constant 0 : i32
    return %c0_i32, %c0_i32_0 : i32, i32
  }
  func.func @transform_2(%arg0: i32) -> (i32, i32) {
    %c0_i32 = arith.constant 0 : i32
    %c0_i32_0 = arith.constant 0 : i32
    %c0_i32_1 = arith.constant 0 : i32
    return %c0_i32, %c0_i32_0 : i32, i32
  }
  func.func @transform_3(%arg0: i32) -> (i32, i32) {
    %c0_i32 = arith.constant 0 : i32
    %c0_i32_0 = arith.constant 0 : i32
    %c0_i32_1 = arith.constant 0 : i32
    return %c0_i32, %c0_i32_0 : i32, i32
  }
  func.func @transform_4(%arg0: i32) -> (i32, i32, i32) {
    %c0_i32 = arith.constant 0 : i32
    %c0_i32_0 = arith.constant 0 : i32
    %c0_i32_1 = arith.constant 0 : i32
    %c0_i32_2 = arith.constant 0 : i32
    return %c0_i32, %c0_i32_0, %c0_i32_1 : i32, i32, i32
  }
  func.func @transform_5(%arg0: i32) -> (i32, i32) {
    %c0_i32 = arith.constant 0 : i32
    %c0_i32_0 = arith.constant 0 : i32
    %c0_i32_1 = arith.constant 0 : i32
    return %c0_i32, %c0_i32_0 : i32, i32
  }
  func.func @transform_6(%arg0: i32) -> (i32, i32) {
    %c0_i32 = arith.constant 0 : i32
    %c0_i32_0 = arith.constant 0 : i32
    %c0_i32_1 = arith.constant 0 : i32
    return %c0_i32, %c0_i32_0 : i32, i32
  }
  func.func @transform_7(%arg0: i32) -> (i32, i32) {
    %c0_i32 = arith.constant 0 : i32
    %c0_i32_0 = arith.constant 0 : i32
    %c0_i32_1 = arith.constant 0 : i32
    return %c0_i32, %c0_i32_0 : i32, i32
  }
  func.func @transform_8(%arg0: i32) -> (i32, i32, i32, i32) {
    %c0_i32 = arith.constant 0 : i32
    %c0_i32_0 = arith.constant 0 : i32
    %c0_i32_1 = arith.constant 0 : i32
    %c0_i32_2 = arith.constant 0 : i32
    return %arg0, %c0_i32, %c0_i32_0, %c0_i32_1 : i32, i32, i32, i32
  }
}

module attributes {stable_mosaic.version = 11 : i64} {
  func.func @_stem_kernel(%arg0: i32, %arg1: memref<1x32x32x3xf32, #tpu.memory_space<vmem>>, %arg2: memref<9x3x16xf32, #tpu.memory_space<vmem>>, %arg3: memref<1x16xf32, #tpu.memory_space<vmem>>, %arg4: memref<1x8x8x16xf32, #tpu.memory_space<vmem>>, %arg5: memref<34x34x3xf32, #tpu.memory_space<vmem>>, %arg6: memref<18x18x16xf32, #tpu.memory_space<vmem>>) attributes {dimension_semantics = [#tpu.dimension_semantics<parallel>], iteration_bounds = array<i64: 2>, scalar_prefetch = 0 : i64, scratch_operands = 2 : i64, tpu.core_type = #tpu.core_type<tc>, window_params = [{transform_indices = @transform_0, window_bounds = array<i64: 1, 32, 32, 3>}, {pipeline_mode = #tpu.pipeline_mode<synchronous>, transform_indices = @transform_1, window_bounds = array<i64: 9, 3, 16>}, {pipeline_mode = #tpu.pipeline_mode<synchronous>, transform_indices = @transform_2, window_bounds = array<i64: 1, 16>}, {transform_indices = @transform_3, window_bounds = array<i64: 1, 8, 8, 16>}]} {
    %cst = arith.constant 0.000000e+00 : f32
    %0 = vector.broadcast %cst : f32 to vector<34x34x3xf32>
    %c0 = arith.constant 0 : index
    %c0_0 = arith.constant 0 : index
    %c0_1 = arith.constant 0 : index
    %1 = vector.load %arg5[%c0, %c0_0, %c0_1] : memref<34x34x3xf32, #tpu.memory_space<vmem>>, vector<34x34x3xf32>
    tpu.vector_store %arg5[%c0, %c0_0, %c0_1], %0 {strides = array<i32>} : memref<34x34x3xf32, #tpu.memory_space<vmem>>, vector<34x34x3xf32>,
    %c0_2 = arith.constant 0 : index
    %c0_3 = arith.constant 0 : index
    %c0_4 = arith.constant 0 : index
    %c0_5 = arith.constant 0 : index
    %2 = vector.load %arg1[%c0_2, %c0_3, %c0_4, %c0_5] : memref<1x32x32x3xf32, #tpu.memory_space<vmem>>, vector<1x32x32x3xf32>
    %3 = vector.shape_cast %2 : vector<1x32x32x3xf32> to vector<32x32x3xf32>
    %c1 = arith.constant 1 : index
    %c1_6 = arith.constant 1 : index
    %c0_7 = arith.constant 0 : index
    %4 = vector.load %arg5[%c1, %c1_6, %c0_7] : memref<34x34x3xf32, #tpu.memory_space<vmem>>, vector<32x32x3xf32>
    tpu.vector_store %arg5[%c1, %c1_6, %c0_7], %3 {strides = array<i32>} : memref<34x34x3xf32, #tpu.memory_space<vmem>>, vector<32x32x3xf32>,
    %c0_8 = arith.constant 0 : index
    %c0_9 = arith.constant 0 : index
    %c0_10 = arith.constant 0 : index
    %5 = tpu.strided_load %arg5[%c0_8, %c0_9, %c0_10] {strides = array<i32: 2, 2, 1>} : memref<34x34x3xf32, #tpu.memory_space<vmem>>, vector<16x16x3xf32>
    %6 = vector.shape_cast %5 : vector<16x16x3xf32> to vector<256x3xf32>
    %c0_11 = arith.constant 0 : index
    %c0_12 = arith.constant 0 : index
    %c0_13 = arith.constant 0 : index
    %7 = vector.load %arg2[%c0_11, %c0_12, %c0_13] : memref<9x3x16xf32, #tpu.memory_space<vmem>>, vector<1x3x16xf32>
    %8 = vector.shape_cast %7 : vector<1x3x16xf32> to vector<3x16xf32>
    %cst_14 = arith.constant dense<0.000000e+00> : vector<256x16xf32>
    %9 = tpu.matmul %6, %8, %cst_14 {dimension_numbers = #tpu.dot_dimension_numbers<[1], [0], [0], [1], [0, 0, 1, 1], [], []>} : vector<256x3xf32>, vector<3x16xf32>, vector<256x16xf32> -> vector<256x16xf32>
    %c0_15 = arith.constant 0 : index
    %c1_16 = arith.constant 1 : index
    %c0_17 = arith.constant 0 : index
    %10 = tpu.strided_load %arg5[%c0_15, %c1_16, %c0_17] {strides = array<i32: 2, 2, 1>} : memref<34x34x3xf32, #tpu.memory_space<vmem>>, vector<16x16x3xf32>
    %11 = vector.shape_cast %10 : vector<16x16x3xf32> to vector<256x3xf32>
    %c1_18 = arith.constant 1 : index
    %c0_19 = arith.constant 0 : index
    %c0_20 = arith.constant 0 : index
    %12 = vector.load %arg2[%c1_18, %c0_19, %c0_20] : memref<9x3x16xf32, #tpu.memory_space<vmem>>, vector<1x3x16xf32>
    %13 = vector.shape_cast %12 : vector<1x3x16xf32> to vector<3x16xf32>
    %cst_21 = arith.constant dense<0.000000e+00> : vector<256x16xf32>
    %14 = tpu.matmul %11, %13, %cst_21 {dimension_numbers = #tpu.dot_dimension_numbers<[1], [0], [0], [1], [0, 0, 1, 1], [], []>} : vector<256x3xf32>, vector<3x16xf32>, vector<256x16xf32> -> vector<256x16xf32>
    %15 = arith.addf %9, %14 : vector<256x16xf32>
    %c0_22 = arith.constant 0 : index
    %c2 = arith.constant 2 : index
    %c0_23 = arith.constant 0 : index
    %16 = tpu.strided_load %arg5[%c0_22, %c2, %c0_23] {strides = array<i32: 2, 2, 1>} : memref<34x34x3xf32, #tpu.memory_space<vmem>>, vector<16x16x3xf32>
    %17 = vector.shape_cast %16 : vector<16x16x3xf32> to vector<256x3xf32>
    %c2_24 = arith.constant 2 : index
    %c0_25 = arith.constant 0 : index
    %c0_26 = arith.constant 0 : index
    %18 = vector.load %arg2[%c2_24, %c0_25, %c0_26] : memref<9x3x16xf32, #tpu.memory_space<vmem>>, vector<1x3x16xf32>
    %19 = vector.shape_cast %18 : vector<1x3x16xf32> to vector<3x16xf32>
    %cst_27 = arith.constant dense<0.000000e+00> : vector<256x16xf32>
    %20 = tpu.matmul %17, %19, %cst_27 {dimension_numbers = #tpu.dot_dimension_numbers<[1], [0], [0], [1], [0, 0, 1, 1], [], []>} : vector<256x3xf32>, vector<3x16xf32>, vector<256x16xf32> -> vector<256x16xf32>
    %21 = arith.addf %15, %20 : vector<256x16xf32>
    %c1_28 = arith.constant 1 : index
    %c0_29 = arith.constant 0 : index
    %c0_30 = arith.constant 0 : index
    %22 = tpu.strided_load %arg5[%c1_28, %c0_29, %c0_30] {strides = array<i32: 2, 2, 1>} : memref<34x34x3xf32, #tpu.memory_space<vmem>>, vector<16x16x3xf32>
    %23 = vector.shape_cast %22 : vector<16x16x3xf32> to vector<256x3xf32>
    %c3 = arith.constant 3 : index
    %c0_31 = arith.constant 0 : index
    %c0_32 = arith.constant 0 : index
    %24 = vector.load %arg2[%c3, %c0_31, %c0_32] : memref<9x3x16xf32, #tpu.memory_space<vmem>>, vector<1x3x16xf32>
    %25 = vector.shape_cast %24 : vector<1x3x16xf32> to vector<3x16xf32>
    %cst_33 = arith.constant dense<0.000000e+00> : vector<256x16xf32>
    %26 = tpu.matmul %23, %25, %cst_33 {dimension_numbers = #tpu.dot_dimension_numbers<[1], [0], [0], [1], [0, 0, 1, 1], [], []>} : vector<256x3xf32>, vector<3x16xf32>, vector<256x16xf32> -> vector<256x16xf32>
    %27 = arith.addf %21, %26 : vector<256x16xf32>
    %c1_34 = arith.constant 1 : index
    %c1_35 = arith.constant 1 : index
    %c0_36 = arith.constant 0 : index
    %28 = tpu.strided_load %arg5[%c1_34, %c1_35, %c0_36] {strides = array<i32: 2, 2, 1>} : memref<34x34x3xf32, #tpu.memory_space<vmem>>, vector<16x16x3xf32>
    %29 = vector.shape_cast %28 : vector<16x16x3xf32> to vector<256x3xf32>
    %c4 = arith.constant 4 : index
    %c0_37 = arith.constant 0 : index
    %c0_38 = arith.constant 0 : index
    %30 = vector.load %arg2[%c4, %c0_37, %c0_38] : memref<9x3x16xf32, #tpu.memory_space<vmem>>, vector<1x3x16xf32>
    %31 = vector.shape_cast %30 : vector<1x3x16xf32> to vector<3x16xf32>
    %cst_39 = arith.constant dense<0.000000e+00> : vector<256x16xf32>
    %32 = tpu.matmul %29, %31, %cst_39 {dimension_numbers = #tpu.dot_dimension_numbers<[1], [0], [0], [1], [0, 0, 1, 1], [], []>} : vector<256x3xf32>, vector<3x16xf32>, vector<256x16xf32> -> vector<256x16xf32>
    %33 = arith.addf %27, %32 : vector<256x16xf32>
    %c1_40 = arith.constant 1 : index
    %c2_41 = arith.constant 2 : index
    %c0_42 = arith.constant 0 : index
    %34 = tpu.strided_load %arg5[%c1_40, %c2_41, %c0_42] {strides = array<i32: 2, 2, 1>} : memref<34x34x3xf32, #tpu.memory_space<vmem>>, vector<16x16x3xf32>
    %35 = vector.shape_cast %34 : vector<16x16x3xf32> to vector<256x3xf32>
    %c5 = arith.constant 5 : index
    %c0_43 = arith.constant 0 : index
    %c0_44 = arith.constant 0 : index
    %36 = vector.load %arg2[%c5, %c0_43, %c0_44] : memref<9x3x16xf32, #tpu.memory_space<vmem>>, vector<1x3x16xf32>
    %37 = vector.shape_cast %36 : vector<1x3x16xf32> to vector<3x16xf32>
    %cst_45 = arith.constant dense<0.000000e+00> : vector<256x16xf32>
    %38 = tpu.matmul %35, %37, %cst_45 {dimension_numbers = #tpu.dot_dimension_numbers<[1], [0], [0], [1], [0, 0, 1, 1], [], []>} : vector<256x3xf32>, vector<3x16xf32>, vector<256x16xf32> -> vector<256x16xf32>
    %39 = arith.addf %33, %38 : vector<256x16xf32>
    %c2_46 = arith.constant 2 : index
    %c0_47 = arith.constant 0 : index
    %c0_48 = arith.constant 0 : index
    %40 = tpu.strided_load %arg5[%c2_46, %c0_47, %c0_48] {strides = array<i32: 2, 2, 1>} : memref<34x34x3xf32, #tpu.memory_space<vmem>>, vector<16x16x3xf32>
    %41 = vector.shape_cast %40 : vector<16x16x3xf32> to vector<256x3xf32>
    %c6 = arith.constant 6 : index
    %c0_49 = arith.constant 0 : index
    %c0_50 = arith.constant 0 : index
    %42 = vector.load %arg2[%c6, %c0_49, %c0_50] : memref<9x3x16xf32, #tpu.memory_space<vmem>>, vector<1x3x16xf32>
    %43 = vector.shape_cast %42 : vector<1x3x16xf32> to vector<3x16xf32>
    %cst_51 = arith.constant dense<0.000000e+00> : vector<256x16xf32>
    %44 = tpu.matmul %41, %43, %cst_51 {dimension_numbers = #tpu.dot_dimension_numbers<[1], [0], [0], [1], [0, 0, 1, 1], [], []>} : vector<256x3xf32>, vector<3x16xf32>, vector<256x16xf32> -> vector<256x16xf32>
    %45 = arith.addf %39, %44 : vector<256x16xf32>
    %c2_52 = arith.constant 2 : index
    %c1_53 = arith.constant 1 : index
    %c0_54 = arith.constant 0 : index
    %46 = tpu.strided_load %arg5[%c2_52, %c1_53, %c0_54] {strides = array<i32: 2, 2, 1>} : memref<34x34x3xf32, #tpu.memory_space<vmem>>, vector<16x16x3xf32>
    %47 = vector.shape_cast %46 : vector<16x16x3xf32> to vector<256x3xf32>
    %c7 = arith.constant 7 : index
    %c0_55 = arith.constant 0 : index
    %c0_56 = arith.constant 0 : index
    %48 = vector.load %arg2[%c7, %c0_55, %c0_56] : memref<9x3x16xf32, #tpu.memory_space<vmem>>, vector<1x3x16xf32>
    %49 = vector.shape_cast %48 : vector<1x3x16xf32> to vector<3x16xf32>
    %cst_57 = arith.constant dense<0.000000e+00> : vector<256x16xf32>
    %50 = tpu.matmul %47, %49, %cst_57 {dimension_numbers = #tpu.dot_dimension_numbers<[1], [0], [0], [1], [0, 0, 1, 1], [], []>} : vector<256x3xf32>, vector<3x16xf32>, vector<256x16xf32> -> vector<256x16xf32>
    %51 = arith.addf %45, %50 : vector<256x16xf32>
    %c2_58 = arith.constant 2 : index
    %c2_59 = arith.constant 2 : index
    %c0_60 = arith.constant 0 : index
    %52 = tpu.strided_load %arg5[%c2_58, %c2_59, %c0_60] {strides = array<i32: 2, 2, 1>} : memref<34x34x3xf32, #tpu.memory_space<vmem>>, vector<16x16x3xf32>
    %53 = vector.shape_cast %52 : vector<16x16x3xf32> to vector<256x3xf32>
    %c8 = arith.constant 8 : index
    %c0_61 = arith.constant 0 : index
    %c0_62 = arith.constant 0 : index
    %54 = vector.load %arg2[%c8, %c0_61, %c0_62] : memref<9x3x16xf32, #tpu.memory_space<vmem>>, vector<1x3x16xf32>
    %55 = vector.shape_cast %54 : vector<1x3x16xf32> to vector<3x16xf32>
    %cst_63 = arith.constant dense<0.000000e+00> : vector<256x16xf32>
    %56 = tpu.matmul %53, %55, %cst_63 {dimension_numbers = #tpu.dot_dimension_numbers<[1], [0], [0], [1], [0, 0, 1, 1], [], []>} : vector<256x3xf32>, vector<3x16xf32>, vector<256x16xf32> -> vector<256x16xf32>
    %57 = arith.addf %51, %56 : vector<256x16xf32>
    %c0_64 = arith.constant 0 : index
    %c0_65 = arith.constant 0 : index
    %58 = vector.load %arg3[%c0_64, %c0_65] : memref<1x16xf32, #tpu.memory_space<vmem>>, vector<1x16xf32>
    %59 = vector.broadcast %58 : vector<1x16xf32> to vector<256x16xf32>
    %60 = arith.addf %57, %59 : vector<256x16xf32>
    %cst_66 = arith.constant 0.000000e+00 : f32
    %61 = vector.broadcast %cst_66 : f32 to vector<256x16xf32>
    %62 = arith.maximumf %60, %61 : vector<256x16xf32>
    %63 = vector.shape_cast %62 : vector<256x16xf32> to vector<16x16x16xf32>
    %cst_67 = arith.constant 0xFF800000 : f32
    %64 = vector.broadcast %cst_67 : f32 to vector<18x18x16xf32>
    %c0_68 = arith.constant 0 : index
    %c0_69 = arith.constant 0 : index
    %c0_70 = arith.constant 0 : index
    %65 = vector.load %arg6[%c0_68, %c0_69, %c0_70] : memref<18x18x16xf32, #tpu.memory_space<vmem>>, vector<18x18x16xf32>
    tpu.vector_store %arg6[%c0_68, %c0_69, %c0_70], %64 {strides = array<i32>} : memref<18x18x16xf32, #tpu.memory_space<vmem>>, vector<18x18x16xf32>,
    %c1_71 = arith.constant 1 : index
    %c1_72 = arith.constant 1 : index
    %c0_73 = arith.constant 0 : index
    %66 = vector.load %arg6[%c1_71, %c1_72, %c0_73] : memref<18x18x16xf32, #tpu.memory_space<vmem>>, vector<16x16x16xf32>
    tpu.vector_store %arg6[%c1_71, %c1_72, %c0_73], %63 {strides = array<i32>} : memref<18x18x16xf32, #tpu.memory_space<vmem>>, vector<16x16x16xf32>,
    %c0_74 = arith.constant 0 : index
    %c0_75 = arith.constant 0 : index
    %c0_76 = arith.constant 0 : index
    %67 = tpu.strided_load %arg6[%c0_74, %c0_75, %c0_76] {strides = array<i32: 2, 2, 1>} : memref<18x18x16xf32, #tpu.memory_space<vmem>>, vector<8x8x16xf32>
    %c0_77 = arith.constant 0 : index
    %c1_78 = arith.constant 1 : index
    %c0_79 = arith.constant 0 : index
    %68 = tpu.strided_load %arg6[%c0_77, %c1_78, %c0_79] {strides = array<i32: 2, 2, 1>} : memref<18x18x16xf32, #tpu.memory_space<vmem>>, vector<8x8x16xf32>
    %69 = arith.maximumf %67, %68 : vector<8x8x16xf32>
    %c0_80 = arith.constant 0 : index
    %c2_81 = arith.constant 2 : index
    %c0_82 = arith.constant 0 : index
    %70 = tpu.strided_load %arg6[%c0_80, %c2_81, %c0_82] {strides = array<i32: 2, 2, 1>} : memref<18x18x16xf32, #tpu.memory_space<vmem>>, vector<8x8x16xf32>
    %71 = arith.maximumf %69, %70 : vector<8x8x16xf32>
    %c1_83 = arith.constant 1 : index
    %c0_84 = arith.constant 0 : index
    %c0_85 = arith.constant 0 : index
    %72 = tpu.strided_load %arg6[%c1_83, %c0_84, %c0_85] {strides = array<i32: 2, 2, 1>} : memref<18x18x16xf32, #tpu.memory_space<vmem>>, vector<8x8x16xf32>
    %73 = arith.maximumf %71, %72 : vector<8x8x16xf32>
    %c1_86 = arith.constant 1 : index
    %c1_87 = arith.constant 1 : index
    %c0_88 = arith.constant 0 : index
    %74 = tpu.strided_load %arg6[%c1_86, %c1_87, %c0_88] {strides = array<i32: 2, 2, 1>} : memref<18x18x16xf32, #tpu.memory_space<vmem>>, vector<8x8x16xf32>
    %75 = arith.maximumf %73, %74 : vector<8x8x16xf32>
    %c1_89 = arith.constant 1 : index
    %c2_90 = arith.constant 2 : index
    %c0_91 = arith.constant 0 : index
    %76 = tpu.strided_load %arg6[%c1_89, %c2_90, %c0_91] {strides = array<i32: 2, 2, 1>} : memref<18x18x16xf32, #tpu.memory_space<vmem>>, vector<8x8x16xf32>
    %77 = arith.maximumf %75, %76 : vector<8x8x16xf32>
    %c2_92 = arith.constant 2 : index
    %c0_93 = arith.constant 0 : index
    %c0_94 = arith.constant 0 : index
    %78 = tpu.strided_load %arg6[%c2_92, %c0_93, %c0_94] {strides = array<i32: 2, 2, 1>} : memref<18x18x16xf32, #tpu.memory_space<vmem>>, vector<8x8x16xf32>
    %79 = arith.maximumf %77, %78 : vector<8x8x16xf32>
    %c2_95 = arith.constant 2 : index
    %c1_96 = arith.constant 1 : index
    %c0_97 = arith.constant 0 : index
    %80 = tpu.strided_load %arg6[%c2_95, %c1_96, %c0_97] {strides = array<i32: 2, 2, 1>} : memref<18x18x16xf32, #tpu.memory_space<vmem>>, vector<8x8x16xf32>
    %81 = arith.maximumf %79, %80 : vector<8x8x16xf32>
    %c2_98 = arith.constant 2 : index
    %c2_99 = arith.constant 2 : index
    %c0_100 = arith.constant 0 : index
    %82 = tpu.strided_load %arg6[%c2_98, %c2_99, %c0_100] {strides = array<i32: 2, 2, 1>} : memref<18x18x16xf32, #tpu.memory_space<vmem>>, vector<8x8x16xf32>
    %83 = arith.maximumf %81, %82 : vector<8x8x16xf32>
    %c0_101 = arith.constant 0 : index
    %c0_102 = arith.constant 0 : index
    %c0_103 = arith.constant 0 : index
    %c0_104 = arith.constant 0 : index
    %84 = vector.load %arg4[%c0_101, %c0_102, %c0_103, %c0_104] : memref<1x8x8x16xf32, #tpu.memory_space<vmem>>, vector<1x8x8x16xf32>
    %85 = vector.shape_cast %84 : vector<1x8x8x16xf32> to vector<8x8x16xf32>
    %86 = vector.shape_cast %83 : vector<8x8x16xf32> to vector<1x8x8x16xf32>
    tpu.vector_store %arg4[%c0_101, %c0_102, %c0_103, %c0_104], %86 {strides = array<i32>} : memref<1x8x8x16xf32, #tpu.memory_space<vmem>>, vector<1x8x8x16xf32>,
    return
  }
  func.func @transform_0(%arg0: i32) -> (i32, i32, i32, i32) {
    %c0_i32 = arith.constant 0 : i32
    %c0_i32_0 = arith.constant 0 : i32
    %c0_i32_1 = arith.constant 0 : i32
    %c0_i32_2 = arith.constant 0 : i32
    return %arg0, %c0_i32, %c0_i32_0, %c0_i32_1 : i32, i32, i32, i32
  }
  func.func @transform_1(%arg0: i32) -> (i32, i32, i32) {
    %c0_i32 = arith.constant 0 : i32
    %c0_i32_0 = arith.constant 0 : i32
    %c0_i32_1 = arith.constant 0 : i32
    %c0_i32_2 = arith.constant 0 : i32
    return %c0_i32, %c0_i32_0, %c0_i32_1 : i32, i32, i32
  }
  func.func @transform_2(%arg0: i32) -> (i32, i32) {
    %c0_i32 = arith.constant 0 : i32
    %c0_i32_0 = arith.constant 0 : i32
    %c0_i32_1 = arith.constant 0 : i32
    return %c0_i32, %c0_i32_0 : i32, i32
  }
  func.func @transform_3(%arg0: i32) -> (i32, i32, i32, i32) {
    %c0_i32 = arith.constant 0 : i32
    %c0_i32_0 = arith.constant 0 : i32
    %c0_i32_1 = arith.constant 0 : i32
    %c0_i32_2 = arith.constant 0 : i32
    return %arg0, %c0_i32, %c0_i32_0, %c0_i32_1 : i32, i32, i32, i32
  }
}

module attributes {stable_mosaic.version = 11 : i64} {
  func.func @_block_s2_kernel(%arg0: i32, %arg1: memref<1x8x8x16xf32, #tpu.memory_space<vmem>>, %arg2: memref<3x3x16xf32, #tpu.memory_space<vmem>>, %arg3: memref<1x16xf32, #tpu.memory_space<vmem>>, %arg4: memref<16x32xf32, #tpu.memory_space<vmem>>, %arg5: memref<1x32xf32, #tpu.memory_space<vmem>>, %arg6: memref<16x16xf32, #tpu.memory_space<vmem>>, %arg7: memref<1x16xf32, #tpu.memory_space<vmem>>, %arg8: memref<3x3x16xf32, #tpu.memory_space<vmem>>, %arg9: memref<1x16xf32, #tpu.memory_space<vmem>>, %arg10: memref<16x32xf32, #tpu.memory_space<vmem>>, %arg11: memref<1x32xf32, #tpu.memory_space<vmem>>, %arg12: memref<1x4x4x32xf32, #tpu.memory_space<vmem>>, %arg13: memref<10x10x16xf32, #tpu.memory_space<vmem>>, %arg14: memref<10x10x16xf32, #tpu.memory_space<vmem>>) attributes {dimension_semantics = [#tpu.dimension_semantics<parallel>], iteration_bounds = array<i64: 2>, scalar_prefetch = 0 : i64, scratch_operands = 2 : i64, tpu.core_type = #tpu.core_type<tc>, window_params = [{transform_indices = @transform_0, window_bounds = array<i64: 1, 8, 8, 16>}, {pipeline_mode = #tpu.pipeline_mode<synchronous>, transform_indices = @transform_1, window_bounds = array<i64: 3, 3, 16>}, {pipeline_mode = #tpu.pipeline_mode<synchronous>, transform_indices = @transform_2, window_bounds = array<i64: 1, 16>}, {pipeline_mode = #tpu.pipeline_mode<synchronous>, transform_indices = @transform_3, window_bounds = array<i64: 16, 32>}, {pipeline_mode = #tpu.pipeline_mode<synchronous>, transform_indices = @transform_4, window_bounds = array<i64: 1, 32>}, {pipeline_mode = #tpu.pipeline_mode<synchronous>, transform_indices = @transform_5, window_bounds = array<i64: 16, 16>}, {pipeline_mode = #tpu.pipeline_mode<synchronous>, transform_indices = @transform_6, window_bounds = array<i64: 1, 16>}, {pipeline_mode = #tpu.pipeline_mode<synchronous>, transform_indices = @transform_7, window_bounds = array<i64: 3, 3, 16>}, {pipeline_mode = #tpu.pipeline_mode<synchronous>, transform_indices = @transform_8, window_bounds = array<i64: 1, 16>}, {pipeline_mode = #tpu.pipeline_mode<synchronous>, transform_indices = @transform_9, window_bounds = array<i64: 16, 32>}, {pipeline_mode = #tpu.pipeline_mode<synchronous>, transform_indices = @transform_10, window_bounds = array<i64: 1, 32>}, {transform_indices = @transform_11, window_bounds = array<i64: 1, 4, 4, 32>}]} {
    %c0 = arith.constant 0 : index
    %c0_0 = arith.constant 0 : index
    %c0_1 = arith.constant 0 : index
    %c0_2 = arith.constant 0 : index
    %0 = vector.load %arg1[%c0, %c0_0, %c0_1, %c0_2] : memref<1x8x8x16xf32, #tpu.memory_space<vmem>>, vector<1x8x8x16xf32>
    %1 = vector.shape_cast %0 : vector<1x8x8x16xf32> to vector<8x8x16xf32>
    %c0_3 = arith.constant 0 : index
    %c0_4 = arith.constant 0 : index
    %c0_5 = arith.constant 0 : index
    %2 = vector.load %arg2[%c0_3, %c0_4, %c0_5] : memref<3x3x16xf32, #tpu.memory_space<vmem>>, vector<3x3x16xf32>
    %c0_6 = arith.constant 0 : index
    %c0_7 = arith.constant 0 : index
    %3 = vector.load %arg3[%c0_6, %c0_7] : memref<1x16xf32, #tpu.memory_space<vmem>>, vector<1x16xf32>
    %cst = arith.constant 0.000000e+00 : f32
    %4 = vector.broadcast %cst : f32 to vector<10x10x16xf32>
    %c0_8 = arith.constant 0 : index
    %c0_9 = arith.constant 0 : index
    %c0_10 = arith.constant 0 : index
    %5 = vector.load %arg13[%c0_8, %c0_9, %c0_10] : memref<10x10x16xf32, #tpu.memory_space<vmem>>, vector<10x10x16xf32>
    tpu.vector_store %arg13[%c0_8, %c0_9, %c0_10], %4 {strides = array<i32>} : memref<10x10x16xf32, #tpu.memory_space<vmem>>, vector<10x10x16xf32>,
    %c1 = arith.constant 1 : index
    %c1_11 = arith.constant 1 : index
    %c0_12 = arith.constant 0 : index
    %6 = vector.load %arg13[%c1, %c1_11, %c0_12] : memref<10x10x16xf32, #tpu.memory_space<vmem>>, vector<8x8x16xf32>
    tpu.vector_store %arg13[%c1, %c1_11, %c0_12], %1 {strides = array<i32>} : memref<10x10x16xf32, #tpu.memory_space<vmem>>, vector<8x8x16xf32>,
    %c0_13 = arith.constant 0 : index
    %c0_14 = arith.constant 0 : index
    %c0_15 = arith.constant 0 : index
    %7 = tpu.strided_load %arg13[%c0_13, %c0_14, %c0_15] {strides = array<i32: 2, 2, 1>} : memref<10x10x16xf32, #tpu.memory_space<vmem>>, vector<4x4x16xf32>
    %8 = vector.extract_strided_slice %2 {offsets = [0, 0, 0], sizes = [1, 1, 16], strides = [1, 1, 1]} : vector<3x3x16xf32> to vector<1x1x16xf32>
    %9 = vector.broadcast %8 : vector<1x1x16xf32> to vector<4x4x16xf32>
    %10 = arith.mulf %7, %9 : vector<4x4x16xf32>
    %c0_16 = arith.constant 0 : index
    %c1_17 = arith.constant 1 : index
    %c0_18 = arith.constant 0 : index
    %11 = tpu.strided_load %arg13[%c0_16, %c1_17, %c0_18] {strides = array<i32: 2, 2, 1>} : memref<10x10x16xf32, #tpu.memory_space<vmem>>, vector<4x4x16xf32>
    %12 = vector.extract_strided_slice %2 {offsets = [0, 1, 0], sizes = [1, 1, 16], strides = [1, 1, 1]} : vector<3x3x16xf32> to vector<1x1x16xf32>
    %13 = vector.broadcast %12 : vector<1x1x16xf32> to vector<4x4x16xf32>
    %14 = arith.mulf %11, %13 : vector<4x4x16xf32>
    %15 = arith.addf %10, %14 : vector<4x4x16xf32>
    %c0_19 = arith.constant 0 : index
    %c2 = arith.constant 2 : index
    %c0_20 = arith.constant 0 : index
    %16 = tpu.strided_load %arg13[%c0_19, %c2, %c0_20] {strides = array<i32: 2, 2, 1>} : memref<10x10x16xf32, #tpu.memory_space<vmem>>, vector<4x4x16xf32>
    %17 = vector.extract_strided_slice %2 {offsets = [0, 2, 0], sizes = [1, 1, 16], strides = [1, 1, 1]} : vector<3x3x16xf32> to vector<1x1x16xf32>
    %18 = vector.broadcast %17 : vector<1x1x16xf32> to vector<4x4x16xf32>
    %19 = arith.mulf %16, %18 : vector<4x4x16xf32>
    %20 = arith.addf %15, %19 : vector<4x4x16xf32>
    %c1_21 = arith.constant 1 : index
    %c0_22 = arith.constant 0 : index
    %c0_23 = arith.constant 0 : index
    %21 = tpu.strided_load %arg13[%c1_21, %c0_22, %c0_23] {strides = array<i32: 2, 2, 1>} : memref<10x10x16xf32, #tpu.memory_space<vmem>>, vector<4x4x16xf32>
    %22 = vector.extract_strided_slice %2 {offsets = [1, 0, 0], sizes = [1, 1, 16], strides = [1, 1, 1]} : vector<3x3x16xf32> to vector<1x1x16xf32>
    %23 = vector.broadcast %22 : vector<1x1x16xf32> to vector<4x4x16xf32>
    %24 = arith.mulf %21, %23 : vector<4x4x16xf32>
    %25 = arith.addf %20, %24 : vector<4x4x16xf32>
    %c1_24 = arith.constant 1 : index
    %c1_25 = arith.constant 1 : index
    %c0_26 = arith.constant 0 : index
    %26 = tpu.strided_load %arg13[%c1_24, %c1_25, %c0_26] {strides = array<i32: 2, 2, 1>} : memref<10x10x16xf32, #tpu.memory_space<vmem>>, vector<4x4x16xf32>
    %27 = vector.extract_strided_slice %2 {offsets = [1, 1, 0], sizes = [1, 1, 16], strides = [1, 1, 1]} : vector<3x3x16xf32> to vector<1x1x16xf32>
    %28 = vector.broadcast %27 : vector<1x1x16xf32> to vector<4x4x16xf32>
    %29 = arith.mulf %26, %28 : vector<4x4x16xf32>
    %30 = arith.addf %25, %29 : vector<4x4x16xf32>
    %c1_27 = arith.constant 1 : index
    %c2_28 = arith.constant 2 : index
    %c0_29 = arith.constant 0 : index
    %31 = tpu.strided_load %arg13[%c1_27, %c2_28, %c0_29] {strides = array<i32: 2, 2, 1>} : memref<10x10x16xf32, #tpu.memory_space<vmem>>, vector<4x4x16xf32>
    %32 = vector.extract_strided_slice %2 {offsets = [1, 2, 0], sizes = [1, 1, 16], strides = [1, 1, 1]} : vector<3x3x16xf32> to vector<1x1x16xf32>
    %33 = vector.broadcast %32 : vector<1x1x16xf32> to vector<4x4x16xf32>
    %34 = arith.mulf %31, %33 : vector<4x4x16xf32>
    %35 = arith.addf %30, %34 : vector<4x4x16xf32>
    %c2_30 = arith.constant 2 : index
    %c0_31 = arith.constant 0 : index
    %c0_32 = arith.constant 0 : index
    %36 = tpu.strided_load %arg13[%c2_30, %c0_31, %c0_32] {strides = array<i32: 2, 2, 1>} : memref<10x10x16xf32, #tpu.memory_space<vmem>>, vector<4x4x16xf32>
    %37 = vector.extract_strided_slice %2 {offsets = [2, 0, 0], sizes = [1, 1, 16], strides = [1, 1, 1]} : vector<3x3x16xf32> to vector<1x1x16xf32>
    %38 = vector.broadcast %37 : vector<1x1x16xf32> to vector<4x4x16xf32>
    %39 = arith.mulf %36, %38 : vector<4x4x16xf32>
    %40 = arith.addf %35, %39 : vector<4x4x16xf32>
    %c2_33 = arith.constant 2 : index
    %c1_34 = arith.constant 1 : index
    %c0_35 = arith.constant 0 : index
    %41 = tpu.strided_load %arg13[%c2_33, %c1_34, %c0_35] {strides = array<i32: 2, 2, 1>} : memref<10x10x16xf32, #tpu.memory_space<vmem>>, vector<4x4x16xf32>
    %42 = vector.extract_strided_slice %2 {offsets = [2, 1, 0], sizes = [1, 1, 16], strides = [1, 1, 1]} : vector<3x3x16xf32> to vector<1x1x16xf32>
    %43 = vector.broadcast %42 : vector<1x1x16xf32> to vector<4x4x16xf32>
    %44 = arith.mulf %41, %43 : vector<4x4x16xf32>
    %45 = arith.addf %40, %44 : vector<4x4x16xf32>
    %c2_36 = arith.constant 2 : index
    %c2_37 = arith.constant 2 : index
    %c0_38 = arith.constant 0 : index
    %46 = tpu.strided_load %arg13[%c2_36, %c2_37, %c0_38] {strides = array<i32: 2, 2, 1>} : memref<10x10x16xf32, #tpu.memory_space<vmem>>, vector<4x4x16xf32>
    %47 = vector.extract_strided_slice %2 {offsets = [2, 2, 0], sizes = [1, 1, 16], strides = [1, 1, 1]} : vector<3x3x16xf32> to vector<1x1x16xf32>
    %48 = vector.broadcast %47 : vector<1x1x16xf32> to vector<4x4x16xf32>
    %49 = arith.mulf %46, %48 : vector<4x4x16xf32>
    %50 = arith.addf %45, %49 : vector<4x4x16xf32>
    %51 = vector.shape_cast %3 : vector<1x16xf32> to vector<1x1x16xf32>
    %52 = vector.broadcast %51 : vector<1x1x16xf32> to vector<4x4x16xf32>
    %53 = arith.addf %50, %52 : vector<4x4x16xf32>
    %54 = vector.shape_cast %53 : vector<4x4x16xf32> to vector<16x16xf32>
    %c0_39 = arith.constant 0 : index
    %c0_40 = arith.constant 0 : index
    %55 = vector.load %arg4[%c0_39, %c0_40] : memref<16x32xf32, #tpu.memory_space<vmem>>, vector<16x32xf32>
    %c0_41 = arith.constant 0 : index
    %c0_42 = arith.constant 0 : index
    %56 = vector.load %arg5[%c0_41, %c0_42] : memref<1x32xf32, #tpu.memory_space<vmem>>, vector<1x32xf32>
    %cst_43 = arith.constant dense<0.000000e+00> : vector<16x32xf32>
    %57 = tpu.matmul %54, %55, %cst_43 {dimension_numbers = #tpu.dot_dimension_numbers<[1], [0], [0], [1], [0, 0, 1, 1], [], []>} : vector<16x16xf32>, vector<16x32xf32>, vector<16x32xf32> -> vector<16x32xf32>
    %58 = vector.broadcast %56 : vector<1x32xf32> to vector<16x32xf32>
    %59 = arith.addf %57, %58 : vector<16x32xf32>
    %cst_44 = arith.constant 0.000000e+00 : f32
    %60 = vector.broadcast %cst_44 : f32 to vector<16x32xf32>
    %61 = arith.maximumf %59, %60 : vector<16x32xf32>
    %62 = vector.shape_cast %1 : vector<8x8x16xf32> to vector<64x16xf32>
    %c0_45 = arith.constant 0 : index
    %c0_46 = arith.constant 0 : index
    %63 = vector.load %arg6[%c0_45, %c0_46] : memref<16x16xf32, #tpu.memory_space<vmem>>, vector<16x16xf32>
    %c0_47 = arith.constant 0 : index
    %c0_48 = arith.constant 0 : index
    %64 = vector.load %arg7[%c0_47, %c0_48] : memref<1x16xf32, #tpu.memory_space<vmem>>, vector<1x16xf32>
    %cst_49 = arith.constant dense<0.000000e+00> : vector<64x16xf32>
    %65 = tpu.matmul %62, %63, %cst_49 {dimension_numbers = #tpu.dot_dimension_numbers<[1], [0], [0], [1], [0, 0, 1, 1], [], []>} : vector<64x16xf32>, vector<16x16xf32>, vector<64x16xf32> -> vector<64x16xf32>
    %66 = vector.broadcast %64 : vector<1x16xf32> to vector<64x16xf32>
    %67 = arith.addf %65, %66 : vector<64x16xf32>
    %cst_50 = arith.constant 0.000000e+00 : f32
    %68 = vector.broadcast %cst_50 : f32 to vector<64x16xf32>
    %69 = arith.maximumf %67, %68 : vector<64x16xf32>
    %70 = vector.shape_cast %69 : vector<64x16xf32> to vector<8x8x16xf32>
    %c0_51 = arith.constant 0 : index
    %c0_52 = arith.constant 0 : index
    %c0_53 = arith.constant 0 : index
    %71 = vector.load %arg8[%c0_51, %c0_52, %c0_53] : memref<3x3x16xf32, #tpu.memory_space<vmem>>, vector<3x3x16xf32>
    %c0_54 = arith.constant 0 : index
    %c0_55 = arith.constant 0 : index
    %72 = vector.load %arg9[%c0_54, %c0_55] : memref<1x16xf32, #tpu.memory_space<vmem>>, vector<1x16xf32>
    %cst_56 = arith.constant 0.000000e+00 : f32
    %73 = vector.broadcast %cst_56 : f32 to vector<10x10x16xf32>
    %c0_57 = arith.constant 0 : index
    %c0_58 = arith.constant 0 : index
    %c0_59 = arith.constant 0 : index
    %74 = vector.load %arg14[%c0_57, %c0_58, %c0_59] : memref<10x10x16xf32, #tpu.memory_space<vmem>>, vector<10x10x16xf32>
    tpu.vector_store %arg14[%c0_57, %c0_58, %c0_59], %73 {strides = array<i32>} : memref<10x10x16xf32, #tpu.memory_space<vmem>>, vector<10x10x16xf32>,
    %c1_60 = arith.constant 1 : index
    %c1_61 = arith.constant 1 : index
    %c0_62 = arith.constant 0 : index
    %75 = vector.load %arg14[%c1_60, %c1_61, %c0_62] : memref<10x10x16xf32, #tpu.memory_space<vmem>>, vector<8x8x16xf32>
    tpu.vector_store %arg14[%c1_60, %c1_61, %c0_62], %70 {strides = array<i32>} : memref<10x10x16xf32, #tpu.memory_space<vmem>>, vector<8x8x16xf32>,
    %c0_63 = arith.constant 0 : index
    %c0_64 = arith.constant 0 : index
    %c0_65 = arith.constant 0 : index
    %76 = tpu.strided_load %arg14[%c0_63, %c0_64, %c0_65] {strides = array<i32: 2, 2, 1>} : memref<10x10x16xf32, #tpu.memory_space<vmem>>, vector<4x4x16xf32>
    %77 = vector.extract_strided_slice %71 {offsets = [0, 0, 0], sizes = [1, 1, 16], strides = [1, 1, 1]} : vector<3x3x16xf32> to vector<1x1x16xf32>
    %78 = vector.broadcast %77 : vector<1x1x16xf32> to vector<4x4x16xf32>
    %79 = arith.mulf %76, %78 : vector<4x4x16xf32>
    %c0_66 = arith.constant 0 : index
    %c1_67 = arith.constant 1 : index
    %c0_68 = arith.constant 0 : index
    %80 = tpu.strided_load %arg14[%c0_66, %c1_67, %c0_68] {strides = array<i32: 2, 2, 1>} : memref<10x10x16xf32, #tpu.memory_space<vmem>>, vector<4x4x16xf32>
    %81 = vector.extract_strided_slice %71 {offsets = [0, 1, 0], sizes = [1, 1, 16], strides = [1, 1, 1]} : vector<3x3x16xf32> to vector<1x1x16xf32>
    %82 = vector.broadcast %81 : vector<1x1x16xf32> to vector<4x4x16xf32>
    %83 = arith.mulf %80, %82 : vector<4x4x16xf32>
    %84 = arith.addf %79, %83 : vector<4x4x16xf32>
    %c0_69 = arith.constant 0 : index
    %c2_70 = arith.constant 2 : index
    %c0_71 = arith.constant 0 : index
    %85 = tpu.strided_load %arg14[%c0_69, %c2_70, %c0_71] {strides = array<i32: 2, 2, 1>} : memref<10x10x16xf32, #tpu.memory_space<vmem>>, vector<4x4x16xf32>
    %86 = vector.extract_strided_slice %71 {offsets = [0, 2, 0], sizes = [1, 1, 16], strides = [1, 1, 1]} : vector<3x3x16xf32> to vector<1x1x16xf32>
    %87 = vector.broadcast %86 : vector<1x1x16xf32> to vector<4x4x16xf32>
    %88 = arith.mulf %85, %87 : vector<4x4x16xf32>
    %89 = arith.addf %84, %88 : vector<4x4x16xf32>
    %c1_72 = arith.constant 1 : index
    %c0_73 = arith.constant 0 : index
    %c0_74 = arith.constant 0 : index
    %90 = tpu.strided_load %arg14[%c1_72, %c0_73, %c0_74] {strides = array<i32: 2, 2, 1>} : memref<10x10x16xf32, #tpu.memory_space<vmem>>, vector<4x4x16xf32>
    %91 = vector.extract_strided_slice %71 {offsets = [1, 0, 0], sizes = [1, 1, 16], strides = [1, 1, 1]} : vector<3x3x16xf32> to vector<1x1x16xf32>
    %92 = vector.broadcast %91 : vector<1x1x16xf32> to vector<4x4x16xf32>
    %93 = arith.mulf %90, %92 : vector<4x4x16xf32>
    %94 = arith.addf %89, %93 : vector<4x4x16xf32>
    %c1_75 = arith.constant 1 : index
    %c1_76 = arith.constant 1 : index
    %c0_77 = arith.constant 0 : index
    %95 = tpu.strided_load %arg14[%c1_75, %c1_76, %c0_77] {strides = array<i32: 2, 2, 1>} : memref<10x10x16xf32, #tpu.memory_space<vmem>>, vector<4x4x16xf32>
    %96 = vector.extract_strided_slice %71 {offsets = [1, 1, 0], sizes = [1, 1, 16], strides = [1, 1, 1]} : vector<3x3x16xf32> to vector<1x1x16xf32>
    %97 = vector.broadcast %96 : vector<1x1x16xf32> to vector<4x4x16xf32>
    %98 = arith.mulf %95, %97 : vector<4x4x16xf32>
    %99 = arith.addf %94, %98 : vector<4x4x16xf32>
    %c1_78 = arith.constant 1 : index
    %c2_79 = arith.constant 2 : index
    %c0_80 = arith.constant 0 : index
    %100 = tpu.strided_load %arg14[%c1_78, %c2_79, %c0_80] {strides = array<i32: 2, 2, 1>} : memref<10x10x16xf32, #tpu.memory_space<vmem>>, vector<4x4x16xf32>
    %101 = vector.extract_strided_slice %71 {offsets = [1, 2, 0], sizes = [1, 1, 16], strides = [1, 1, 1]} : vector<3x3x16xf32> to vector<1x1x16xf32>
    %102 = vector.broadcast %101 : vector<1x1x16xf32> to vector<4x4x16xf32>
    %103 = arith.mulf %100, %102 : vector<4x4x16xf32>
    %104 = arith.addf %99, %103 : vector<4x4x16xf32>
    %c2_81 = arith.constant 2 : index
    %c0_82 = arith.constant 0 : index
    %c0_83 = arith.constant 0 : index
    %105 = tpu.strided_load %arg14[%c2_81, %c0_82, %c0_83] {strides = array<i32: 2, 2, 1>} : memref<10x10x16xf32, #tpu.memory_space<vmem>>, vector<4x4x16xf32>
    %106 = vector.extract_strided_slice %71 {offsets = [2, 0, 0], sizes = [1, 1, 16], strides = [1, 1, 1]} : vector<3x3x16xf32> to vector<1x1x16xf32>
    %107 = vector.broadcast %106 : vector<1x1x16xf32> to vector<4x4x16xf32>
    %108 = arith.mulf %105, %107 : vector<4x4x16xf32>
    %109 = arith.addf %104, %108 : vector<4x4x16xf32>
    %c2_84 = arith.constant 2 : index
    %c1_85 = arith.constant 1 : index
    %c0_86 = arith.constant 0 : index
    %110 = tpu.strided_load %arg14[%c2_84, %c1_85, %c0_86] {strides = array<i32: 2, 2, 1>} : memref<10x10x16xf32, #tpu.memory_space<vmem>>, vector<4x4x16xf32>
    %111 = vector.extract_strided_slice %71 {offsets = [2, 1, 0], sizes = [1, 1, 16], strides = [1, 1, 1]} : vector<3x3x16xf32> to vector<1x1x16xf32>
    %112 = vector.broadcast %111 : vector<1x1x16xf32> to vector<4x4x16xf32>
    %113 = arith.mulf %110, %112 : vector<4x4x16xf32>
    %114 = arith.addf %109, %113 : vector<4x4x16xf32>
    %c2_87 = arith.constant 2 : index
    %c2_88 = arith.constant 2 : index
    %c0_89 = arith.constant 0 : index
    %115 = tpu.strided_load %arg14[%c2_87, %c2_88, %c0_89] {strides = array<i32: 2, 2, 1>} : memref<10x10x16xf32, #tpu.memory_space<vmem>>, vector<4x4x16xf32>
    %116 = vector.extract_strided_slice %71 {offsets = [2, 2, 0], sizes = [1, 1, 16], strides = [1, 1, 1]} : vector<3x3x16xf32> to vector<1x1x16xf32>
    %117 = vector.broadcast %116 : vector<1x1x16xf32> to vector<4x4x16xf32>
    %118 = arith.mulf %115, %117 : vector<4x4x16xf32>
    %119 = arith.addf %114, %118 : vector<4x4x16xf32>
    %120 = vector.shape_cast %72 : vector<1x16xf32> to vector<1x1x16xf32>
    %121 = vector.broadcast %120 : vector<1x1x16xf32> to vector<4x4x16xf32>
    %122 = arith.addf %119, %121 : vector<4x4x16xf32>
    %123 = vector.shape_cast %122 : vector<4x4x16xf32> to vector<16x16xf32>
    %c0_90 = arith.constant 0 : index
    %c0_91 = arith.constant 0 : index
    %124 = vector.load %arg10[%c0_90, %c0_91] : memref<16x32xf32, #tpu.memory_space<vmem>>, vector<16x32xf32>
    %c0_92 = arith.constant 0 : index
    %c0_93 = arith.constant 0 : index
    %125 = vector.load %arg11[%c0_92, %c0_93] : memref<1x32xf32, #tpu.memory_space<vmem>>, vector<1x32xf32>
    %cst_94 = arith.constant dense<0.000000e+00> : vector<16x32xf32>
    %126 = tpu.matmul %123, %124, %cst_94 {dimension_numbers = #tpu.dot_dimension_numbers<[1], [0], [0], [1], [0, 0, 1, 1], [], []>} : vector<16x16xf32>, vector<16x32xf32>, vector<16x32xf32> -> vector<16x32xf32>
    %127 = vector.broadcast %125 : vector<1x32xf32> to vector<16x32xf32>
    %128 = arith.addf %126, %127 : vector<16x32xf32>
    %cst_95 = arith.constant 0.000000e+00 : f32
    %129 = vector.broadcast %cst_95 : f32 to vector<16x32xf32>
    %130 = arith.maximumf %128, %129 : vector<16x32xf32>
    %131 = arith.addf %61, %130 : vector<16x32xf32>
    %132 = vector.shape_cast %131 : vector<16x32xf32> to vector<4x4x32xf32>
    %c0_96 = arith.constant 0 : index
    %c0_97 = arith.constant 0 : index
    %c0_98 = arith.constant 0 : index
    %c0_99 = arith.constant 0 : index
    %133 = vector.load %arg12[%c0_96, %c0_97, %c0_98, %c0_99] : memref<1x4x4x32xf32, #tpu.memory_space<vmem>>, vector<1x4x4x32xf32>
    %134 = vector.shape_cast %133 : vector<1x4x4x32xf32> to vector<4x4x32xf32>
    %135 = vector.shape_cast %132 : vector<4x4x32xf32> to vector<1x4x4x32xf32>
    tpu.vector_store %arg12[%c0_96, %c0_97, %c0_98, %c0_99], %135 {strides = array<i32>} : memref<1x4x4x32xf32, #tpu.memory_space<vmem>>, vector<1x4x4x32xf32>,
    return
  }
  func.func @transform_0(%arg0: i32) -> (i32, i32, i32, i32) {
    %c0_i32 = arith.constant 0 : i32
    %c0_i32_0 = arith.constant 0 : i32
    %c0_i32_1 = arith.constant 0 : i32
    %c0_i32_2 = arith.constant 0 : i32
    return %arg0, %c0_i32, %c0_i32_0, %c0_i32_1 : i32, i32, i32, i32
  }
  func.func @transform_1(%arg0: i32) -> (i32, i32, i32) {
    %c0_i32 = arith.constant 0 : i32
    %c0_i32_0 = arith.constant 0 : i32
    %c0_i32_1 = arith.constant 0 : i32
    %c0_i32_2 = arith.constant 0 : i32
    return %c0_i32, %c0_i32_0, %c0_i32_1 : i32, i32, i32
  }
  func.func @transform_2(%arg0: i32) -> (i32, i32) {
    %c0_i32 = arith.constant 0 : i32
    %c0_i32_0 = arith.constant 0 : i32
    %c0_i32_1 = arith.constant 0 : i32
    return %c0_i32, %c0_i32_0 : i32, i32
  }
  func.func @transform_3(%arg0: i32) -> (i32, i32) {
    %c0_i32 = arith.constant 0 : i32
    %c0_i32_0 = arith.constant 0 : i32
    %c0_i32_1 = arith.constant 0 : i32
    return %c0_i32, %c0_i32_0 : i32, i32
  }
  func.func @transform_4(%arg0: i32) -> (i32, i32) {
    %c0_i32 = arith.constant 0 : i32
    %c0_i32_0 = arith.constant 0 : i32
    %c0_i32_1 = arith.constant 0 : i32
    return %c0_i32, %c0_i32_0 : i32, i32
  }
  func.func @transform_5(%arg0: i32) -> (i32, i32) {
    %c0_i32 = arith.constant 0 : i32
    %c0_i32_0 = arith.constant 0 : i32
    %c0_i32_1 = arith.constant 0 : i32
    return %c0_i32, %c0_i32_0 : i32, i32
  }
  func.func @transform_6(%arg0: i32) -> (i32, i32) {
    %c0_i32 = arith.constant 0 : i32
    %c0_i32_0 = arith.constant 0 : i32
    %c0_i32_1 = arith.constant 0 : i32
    return %c0_i32, %c0_i32_0 : i32, i32
  }
  func.func @transform_7(%arg0: i32) -> (i32, i32, i32) {
    %c0_i32 = arith.constant 0 : i32
    %c0_i32_0 = arith.constant 0 : i32
    %c0_i32_1 = arith.constant 0 : i32
    %c0_i32_2 = arith.constant 0 : i32
    return %c0_i32, %c0_i32_0, %c0_i32_1 : i32, i32, i32
  }
  func.func @transform_8(%arg0: i32) -> (i32, i32) {
    %c0_i32 = arith.constant 0 : i32
    %c0_i32_0 = arith.constant 0 : i32
    %c0_i32_1 = arith.constant 0 : i32
    return %c0_i32, %c0_i32_0 : i32, i32
  }
  func.func @transform_9(%arg0: i32) -> (i32, i32) {
    %c0_i32 = arith.constant 0 : i32
    %c0_i32_0 = arith.constant 0 : i32
    %c0_i32_1 = arith.constant 0 : i32
    return %c0_i32, %c0_i32_0 : i32, i32
  }
  func.func @transform_10(%arg0: i32) -> (i32, i32) {
    %c0_i32 = arith.constant 0 : i32
    %c0_i32_0 = arith.constant 0 : i32
    %c0_i32_1 = arith.constant 0 : i32
    return %c0_i32, %c0_i32_0 : i32, i32
  }
  func.func @transform_11(%arg0: i32) -> (i32, i32, i32, i32) {
    %c0_i32 = arith.constant 0 : i32
    %c0_i32_0 = arith.constant 0 : i32
    %c0_i32_1 = arith.constant 0 : i32
    %c0_i32_2 = arith.constant 0 : i32
    return %arg0, %c0_i32, %c0_i32_0, %c0_i32_1 : i32, i32, i32, i32
  }
}

module attributes {stable_mosaic.version = 11 : i64} {
  func.func @_block_s2_kernel(%arg0: i32, %arg1: memref<1x4x4x32xf32, #tpu.memory_space<vmem>>, %arg2: memref<3x3x32xf32, #tpu.memory_space<vmem>>, %arg3: memref<1x32xf32, #tpu.memory_space<vmem>>, %arg4: memref<32x64xf32, #tpu.memory_space<vmem>>, %arg5: memref<1x64xf32, #tpu.memory_space<vmem>>, %arg6: memref<32x32xf32, #tpu.memory_space<vmem>>, %arg7: memref<1x32xf32, #tpu.memory_space<vmem>>, %arg8: memref<3x3x32xf32, #tpu.memory_space<vmem>>, %arg9: memref<1x32xf32, #tpu.memory_space<vmem>>, %arg10: memref<32x64xf32, #tpu.memory_space<vmem>>, %arg11: memref<1x64xf32, #tpu.memory_space<vmem>>, %arg12: memref<1x2x2x64xf32, #tpu.memory_space<vmem>>, %arg13: memref<6x6x32xf32, #tpu.memory_space<vmem>>, %arg14: memref<6x6x32xf32, #tpu.memory_space<vmem>>) attributes {dimension_semantics = [#tpu.dimension_semantics<parallel>], iteration_bounds = array<i64: 2>, scalar_prefetch = 0 : i64, scratch_operands = 2 : i64, tpu.core_type = #tpu.core_type<tc>, window_params = [{transform_indices = @transform_0, window_bounds = array<i64: 1, 4, 4, 32>}, {pipeline_mode = #tpu.pipeline_mode<synchronous>, transform_indices = @transform_1, window_bounds = array<i64: 3, 3, 32>}, {pipeline_mode = #tpu.pipeline_mode<synchronous>, transform_indices = @transform_2, window_bounds = array<i64: 1, 32>}, {pipeline_mode = #tpu.pipeline_mode<synchronous>, transform_indices = @transform_3, window_bounds = array<i64: 32, 64>}, {pipeline_mode = #tpu.pipeline_mode<synchronous>, transform_indices = @transform_4, window_bounds = array<i64: 1, 64>}, {pipeline_mode = #tpu.pipeline_mode<synchronous>, transform_indices = @transform_5, window_bounds = array<i64: 32, 32>}, {pipeline_mode = #tpu.pipeline_mode<synchronous>, transform_indices = @transform_6, window_bounds = array<i64: 1, 32>}, {pipeline_mode = #tpu.pipeline_mode<synchronous>, transform_indices = @transform_7, window_bounds = array<i64: 3, 3, 32>}, {pipeline_mode = #tpu.pipeline_mode<synchronous>, transform_indices = @transform_8, window_bounds = array<i64: 1, 32>}, {pipeline_mode = #tpu.pipeline_mode<synchronous>, transform_indices = @transform_9, window_bounds = array<i64: 32, 64>}, {pipeline_mode = #tpu.pipeline_mode<synchronous>, transform_indices = @transform_10, window_bounds = array<i64: 1, 64>}, {transform_indices = @transform_11, window_bounds = array<i64: 1, 2, 2, 64>}]} {
    %c0 = arith.constant 0 : index
    %c0_0 = arith.constant 0 : index
    %c0_1 = arith.constant 0 : index
    %c0_2 = arith.constant 0 : index
    %0 = vector.load %arg1[%c0, %c0_0, %c0_1, %c0_2] : memref<1x4x4x32xf32, #tpu.memory_space<vmem>>, vector<1x4x4x32xf32>
    %1 = vector.shape_cast %0 : vector<1x4x4x32xf32> to vector<4x4x32xf32>
    %c0_3 = arith.constant 0 : index
    %c0_4 = arith.constant 0 : index
    %c0_5 = arith.constant 0 : index
    %2 = vector.load %arg2[%c0_3, %c0_4, %c0_5] : memref<3x3x32xf32, #tpu.memory_space<vmem>>, vector<3x3x32xf32>
    %c0_6 = arith.constant 0 : index
    %c0_7 = arith.constant 0 : index
    %3 = vector.load %arg3[%c0_6, %c0_7] : memref<1x32xf32, #tpu.memory_space<vmem>>, vector<1x32xf32>
    %cst = arith.constant 0.000000e+00 : f32
    %4 = vector.broadcast %cst : f32 to vector<6x6x32xf32>
    %c0_8 = arith.constant 0 : index
    %c0_9 = arith.constant 0 : index
    %c0_10 = arith.constant 0 : index
    %5 = vector.load %arg13[%c0_8, %c0_9, %c0_10] : memref<6x6x32xf32, #tpu.memory_space<vmem>>, vector<6x6x32xf32>
    tpu.vector_store %arg13[%c0_8, %c0_9, %c0_10], %4 {strides = array<i32>} : memref<6x6x32xf32, #tpu.memory_space<vmem>>, vector<6x6x32xf32>,
    %c1 = arith.constant 1 : index
    %c1_11 = arith.constant 1 : index
    %c0_12 = arith.constant 0 : index
    %6 = vector.load %arg13[%c1, %c1_11, %c0_12] : memref<6x6x32xf32, #tpu.memory_space<vmem>>, vector<4x4x32xf32>
    tpu.vector_store %arg13[%c1, %c1_11, %c0_12], %1 {strides = array<i32>} : memref<6x6x32xf32, #tpu.memory_space<vmem>>, vector<4x4x32xf32>,
    %c0_13 = arith.constant 0 : index
    %c0_14 = arith.constant 0 : index
    %c0_15 = arith.constant 0 : index
    %7 = tpu.strided_load %arg13[%c0_13, %c0_14, %c0_15] {strides = array<i32: 2, 2, 1>} : memref<6x6x32xf32, #tpu.memory_space<vmem>>, vector<2x2x32xf32>
    %8 = vector.extract_strided_slice %2 {offsets = [0, 0, 0], sizes = [1, 1, 32], strides = [1, 1, 1]} : vector<3x3x32xf32> to vector<1x1x32xf32>
    %9 = vector.broadcast %8 : vector<1x1x32xf32> to vector<2x2x32xf32>
    %10 = arith.mulf %7, %9 : vector<2x2x32xf32>
    %c0_16 = arith.constant 0 : index
    %c1_17 = arith.constant 1 : index
    %c0_18 = arith.constant 0 : index
    %11 = tpu.strided_load %arg13[%c0_16, %c1_17, %c0_18] {strides = array<i32: 2, 2, 1>} : memref<6x6x32xf32, #tpu.memory_space<vmem>>, vector<2x2x32xf32>
    %12 = vector.extract_strided_slice %2 {offsets = [0, 1, 0], sizes = [1, 1, 32], strides = [1, 1, 1]} : vector<3x3x32xf32> to vector<1x1x32xf32>
    %13 = vector.broadcast %12 : vector<1x1x32xf32> to vector<2x2x32xf32>
    %14 = arith.mulf %11, %13 : vector<2x2x32xf32>
    %15 = arith.addf %10, %14 : vector<2x2x32xf32>
    %c0_19 = arith.constant 0 : index
    %c2 = arith.constant 2 : index
    %c0_20 = arith.constant 0 : index
    %16 = tpu.strided_load %arg13[%c0_19, %c2, %c0_20] {strides = array<i32: 2, 2, 1>} : memref<6x6x32xf32, #tpu.memory_space<vmem>>, vector<2x2x32xf32>
    %17 = vector.extract_strided_slice %2 {offsets = [0, 2, 0], sizes = [1, 1, 32], strides = [1, 1, 1]} : vector<3x3x32xf32> to vector<1x1x32xf32>
    %18 = vector.broadcast %17 : vector<1x1x32xf32> to vector<2x2x32xf32>
    %19 = arith.mulf %16, %18 : vector<2x2x32xf32>
    %20 = arith.addf %15, %19 : vector<2x2x32xf32>
    %c1_21 = arith.constant 1 : index
    %c0_22 = arith.constant 0 : index
    %c0_23 = arith.constant 0 : index
    %21 = tpu.strided_load %arg13[%c1_21, %c0_22, %c0_23] {strides = array<i32: 2, 2, 1>} : memref<6x6x32xf32, #tpu.memory_space<vmem>>, vector<2x2x32xf32>
    %22 = vector.extract_strided_slice %2 {offsets = [1, 0, 0], sizes = [1, 1, 32], strides = [1, 1, 1]} : vector<3x3x32xf32> to vector<1x1x32xf32>
    %23 = vector.broadcast %22 : vector<1x1x32xf32> to vector<2x2x32xf32>
    %24 = arith.mulf %21, %23 : vector<2x2x32xf32>
    %25 = arith.addf %20, %24 : vector<2x2x32xf32>
    %c1_24 = arith.constant 1 : index
    %c1_25 = arith.constant 1 : index
    %c0_26 = arith.constant 0 : index
    %26 = tpu.strided_load %arg13[%c1_24, %c1_25, %c0_26] {strides = array<i32: 2, 2, 1>} : memref<6x6x32xf32, #tpu.memory_space<vmem>>, vector<2x2x32xf32>
    %27 = vector.extract_strided_slice %2 {offsets = [1, 1, 0], sizes = [1, 1, 32], strides = [1, 1, 1]} : vector<3x3x32xf32> to vector<1x1x32xf32>
    %28 = vector.broadcast %27 : vector<1x1x32xf32> to vector<2x2x32xf32>
    %29 = arith.mulf %26, %28 : vector<2x2x32xf32>
    %30 = arith.addf %25, %29 : vector<2x2x32xf32>
    %c1_27 = arith.constant 1 : index
    %c2_28 = arith.constant 2 : index
    %c0_29 = arith.constant 0 : index
    %31 = tpu.strided_load %arg13[%c1_27, %c2_28, %c0_29] {strides = array<i32: 2, 2, 1>} : memref<6x6x32xf32, #tpu.memory_space<vmem>>, vector<2x2x32xf32>
    %32 = vector.extract_strided_slice %2 {offsets = [1, 2, 0], sizes = [1, 1, 32], strides = [1, 1, 1]} : vector<3x3x32xf32> to vector<1x1x32xf32>
    %33 = vector.broadcast %32 : vector<1x1x32xf32> to vector<2x2x32xf32>
    %34 = arith.mulf %31, %33 : vector<2x2x32xf32>
    %35 = arith.addf %30, %34 : vector<2x2x32xf32>
    %c2_30 = arith.constant 2 : index
    %c0_31 = arith.constant 0 : index
    %c0_32 = arith.constant 0 : index
    %36 = tpu.strided_load %arg13[%c2_30, %c0_31, %c0_32] {strides = array<i32: 2, 2, 1>} : memref<6x6x32xf32, #tpu.memory_space<vmem>>, vector<2x2x32xf32>
    %37 = vector.extract_strided_slice %2 {offsets = [2, 0, 0], sizes = [1, 1, 32], strides = [1, 1, 1]} : vector<3x3x32xf32> to vector<1x1x32xf32>
    %38 = vector.broadcast %37 : vector<1x1x32xf32> to vector<2x2x32xf32>
    %39 = arith.mulf %36, %38 : vector<2x2x32xf32>
    %40 = arith.addf %35, %39 : vector<2x2x32xf32>
    %c2_33 = arith.constant 2 : index
    %c1_34 = arith.constant 1 : index
    %c0_35 = arith.constant 0 : index
    %41 = tpu.strided_load %arg13[%c2_33, %c1_34, %c0_35] {strides = array<i32: 2, 2, 1>} : memref<6x6x32xf32, #tpu.memory_space<vmem>>, vector<2x2x32xf32>
    %42 = vector.extract_strided_slice %2 {offsets = [2, 1, 0], sizes = [1, 1, 32], strides = [1, 1, 1]} : vector<3x3x32xf32> to vector<1x1x32xf32>
    %43 = vector.broadcast %42 : vector<1x1x32xf32> to vector<2x2x32xf32>
    %44 = arith.mulf %41, %43 : vector<2x2x32xf32>
    %45 = arith.addf %40, %44 : vector<2x2x32xf32>
    %c2_36 = arith.constant 2 : index
    %c2_37 = arith.constant 2 : index
    %c0_38 = arith.constant 0 : index
    %46 = tpu.strided_load %arg13[%c2_36, %c2_37, %c0_38] {strides = array<i32: 2, 2, 1>} : memref<6x6x32xf32, #tpu.memory_space<vmem>>, vector<2x2x32xf32>
    %47 = vector.extract_strided_slice %2 {offsets = [2, 2, 0], sizes = [1, 1, 32], strides = [1, 1, 1]} : vector<3x3x32xf32> to vector<1x1x32xf32>
    %48 = vector.broadcast %47 : vector<1x1x32xf32> to vector<2x2x32xf32>
    %49 = arith.mulf %46, %48 : vector<2x2x32xf32>
    %50 = arith.addf %45, %49 : vector<2x2x32xf32>
    %51 = vector.shape_cast %3 : vector<1x32xf32> to vector<1x1x32xf32>
    %52 = vector.broadcast %51 : vector<1x1x32xf32> to vector<2x2x32xf32>
    %53 = arith.addf %50, %52 : vector<2x2x32xf32>
    %54 = vector.shape_cast %53 : vector<2x2x32xf32> to vector<4x32xf32>
    %c0_39 = arith.constant 0 : index
    %c0_40 = arith.constant 0 : index
    %55 = vector.load %arg4[%c0_39, %c0_40] : memref<32x64xf32, #tpu.memory_space<vmem>>, vector<32x64xf32>
    %c0_41 = arith.constant 0 : index
    %c0_42 = arith.constant 0 : index
    %56 = vector.load %arg5[%c0_41, %c0_42] : memref<1x64xf32, #tpu.memory_space<vmem>>, vector<1x64xf32>
    %cst_43 = arith.constant dense<0.000000e+00> : vector<4x64xf32>
    %57 = tpu.matmul %54, %55, %cst_43 {dimension_numbers = #tpu.dot_dimension_numbers<[1], [0], [0], [1], [0, 0, 1, 1], [], []>} : vector<4x32xf32>, vector<32x64xf32>, vector<4x64xf32> -> vector<4x64xf32>
    %58 = vector.broadcast %56 : vector<1x64xf32> to vector<4x64xf32>
    %59 = arith.addf %57, %58 : vector<4x64xf32>
    %cst_44 = arith.constant 0.000000e+00 : f32
    %60 = vector.broadcast %cst_44 : f32 to vector<4x64xf32>
    %61 = arith.maximumf %59, %60 : vector<4x64xf32>
    %62 = vector.shape_cast %1 : vector<4x4x32xf32> to vector<16x32xf32>
    %c0_45 = arith.constant 0 : index
    %c0_46 = arith.constant 0 : index
    %63 = vector.load %arg6[%c0_45, %c0_46] : memref<32x32xf32, #tpu.memory_space<vmem>>, vector<32x32xf32>
    %c0_47 = arith.constant 0 : index
    %c0_48 = arith.constant 0 : index
    %64 = vector.load %arg7[%c0_47, %c0_48] : memref<1x32xf32, #tpu.memory_space<vmem>>, vector<1x32xf32>
    %cst_49 = arith.constant dense<0.000000e+00> : vector<16x32xf32>
    %65 = tpu.matmul %62, %63, %cst_49 {dimension_numbers = #tpu.dot_dimension_numbers<[1], [0], [0], [1], [0, 0, 1, 1], [], []>} : vector<16x32xf32>, vector<32x32xf32>, vector<16x32xf32> -> vector<16x32xf32>
    %66 = vector.broadcast %64 : vector<1x32xf32> to vector<16x32xf32>
    %67 = arith.addf %65, %66 : vector<16x32xf32>
    %cst_50 = arith.constant 0.000000e+00 : f32
    %68 = vector.broadcast %cst_50 : f32 to vector<16x32xf32>
    %69 = arith.maximumf %67, %68 : vector<16x32xf32>
    %70 = vector.shape_cast %69 : vector<16x32xf32> to vector<4x4x32xf32>
    %c0_51 = arith.constant 0 : index
    %c0_52 = arith.constant 0 : index
    %c0_53 = arith.constant 0 : index
    %71 = vector.load %arg8[%c0_51, %c0_52, %c0_53] : memref<3x3x32xf32, #tpu.memory_space<vmem>>, vector<3x3x32xf32>
    %c0_54 = arith.constant 0 : index
    %c0_55 = arith.constant 0 : index
    %72 = vector.load %arg9[%c0_54, %c0_55] : memref<1x32xf32, #tpu.memory_space<vmem>>, vector<1x32xf32>
    %cst_56 = arith.constant 0.000000e+00 : f32
    %73 = vector.broadcast %cst_56 : f32 to vector<6x6x32xf32>
    %c0_57 = arith.constant 0 : index
    %c0_58 = arith.constant 0 : index
    %c0_59 = arith.constant 0 : index
    %74 = vector.load %arg14[%c0_57, %c0_58, %c0_59] : memref<6x6x32xf32, #tpu.memory_space<vmem>>, vector<6x6x32xf32>
    tpu.vector_store %arg14[%c0_57, %c0_58, %c0_59], %73 {strides = array<i32>} : memref<6x6x32xf32, #tpu.memory_space<vmem>>, vector<6x6x32xf32>,
    %c1_60 = arith.constant 1 : index
    %c1_61 = arith.constant 1 : index
    %c0_62 = arith.constant 0 : index
    %75 = vector.load %arg14[%c1_60, %c1_61, %c0_62] : memref<6x6x32xf32, #tpu.memory_space<vmem>>, vector<4x4x32xf32>
    tpu.vector_store %arg14[%c1_60, %c1_61, %c0_62], %70 {strides = array<i32>} : memref<6x6x32xf32, #tpu.memory_space<vmem>>, vector<4x4x32xf32>,
    %c0_63 = arith.constant 0 : index
    %c0_64 = arith.constant 0 : index
    %c0_65 = arith.constant 0 : index
    %76 = tpu.strided_load %arg14[%c0_63, %c0_64, %c0_65] {strides = array<i32: 2, 2, 1>} : memref<6x6x32xf32, #tpu.memory_space<vmem>>, vector<2x2x32xf32>
    %77 = vector.extract_strided_slice %71 {offsets = [0, 0, 0], sizes = [1, 1, 32], strides = [1, 1, 1]} : vector<3x3x32xf32> to vector<1x1x32xf32>
    %78 = vector.broadcast %77 : vector<1x1x32xf32> to vector<2x2x32xf32>
    %79 = arith.mulf %76, %78 : vector<2x2x32xf32>
    %c0_66 = arith.constant 0 : index
    %c1_67 = arith.constant 1 : index
    %c0_68 = arith.constant 0 : index
    %80 = tpu.strided_load %arg14[%c0_66, %c1_67, %c0_68] {strides = array<i32: 2, 2, 1>} : memref<6x6x32xf32, #tpu.memory_space<vmem>>, vector<2x2x32xf32>
    %81 = vector.extract_strided_slice %71 {offsets = [0, 1, 0], sizes = [1, 1, 32], strides = [1, 1, 1]} : vector<3x3x32xf32> to vector<1x1x32xf32>
    %82 = vector.broadcast %81 : vector<1x1x32xf32> to vector<2x2x32xf32>
    %83 = arith.mulf %80, %82 : vector<2x2x32xf32>
    %84 = arith.addf %79, %83 : vector<2x2x32xf32>
    %c0_69 = arith.constant 0 : index
    %c2_70 = arith.constant 2 : index
    %c0_71 = arith.constant 0 : index
    %85 = tpu.strided_load %arg14[%c0_69, %c2_70, %c0_71] {strides = array<i32: 2, 2, 1>} : memref<6x6x32xf32, #tpu.memory_space<vmem>>, vector<2x2x32xf32>
    %86 = vector.extract_strided_slice %71 {offsets = [0, 2, 0], sizes = [1, 1, 32], strides = [1, 1, 1]} : vector<3x3x32xf32> to vector<1x1x32xf32>
    %87 = vector.broadcast %86 : vector<1x1x32xf32> to vector<2x2x32xf32>
    %88 = arith.mulf %85, %87 : vector<2x2x32xf32>
    %89 = arith.addf %84, %88 : vector<2x2x32xf32>
    %c1_72 = arith.constant 1 : index
    %c0_73 = arith.constant 0 : index
    %c0_74 = arith.constant 0 : index
    %90 = tpu.strided_load %arg14[%c1_72, %c0_73, %c0_74] {strides = array<i32: 2, 2, 1>} : memref<6x6x32xf32, #tpu.memory_space<vmem>>, vector<2x2x32xf32>
    %91 = vector.extract_strided_slice %71 {offsets = [1, 0, 0], sizes = [1, 1, 32], strides = [1, 1, 1]} : vector<3x3x32xf32> to vector<1x1x32xf32>
    %92 = vector.broadcast %91 : vector<1x1x32xf32> to vector<2x2x32xf32>
    %93 = arith.mulf %90, %92 : vector<2x2x32xf32>
    %94 = arith.addf %89, %93 : vector<2x2x32xf32>
    %c1_75 = arith.constant 1 : index
    %c1_76 = arith.constant 1 : index
    %c0_77 = arith.constant 0 : index
    %95 = tpu.strided_load %arg14[%c1_75, %c1_76, %c0_77] {strides = array<i32: 2, 2, 1>} : memref<6x6x32xf32, #tpu.memory_space<vmem>>, vector<2x2x32xf32>
    %96 = vector.extract_strided_slice %71 {offsets = [1, 1, 0], sizes = [1, 1, 32], strides = [1, 1, 1]} : vector<3x3x32xf32> to vector<1x1x32xf32>
    %97 = vector.broadcast %96 : vector<1x1x32xf32> to vector<2x2x32xf32>
    %98 = arith.mulf %95, %97 : vector<2x2x32xf32>
    %99 = arith.addf %94, %98 : vector<2x2x32xf32>
    %c1_78 = arith.constant 1 : index
    %c2_79 = arith.constant 2 : index
    %c0_80 = arith.constant 0 : index
    %100 = tpu.strided_load %arg14[%c1_78, %c2_79, %c0_80] {strides = array<i32: 2, 2, 1>} : memref<6x6x32xf32, #tpu.memory_space<vmem>>, vector<2x2x32xf32>
    %101 = vector.extract_strided_slice %71 {offsets = [1, 2, 0], sizes = [1, 1, 32], strides = [1, 1, 1]} : vector<3x3x32xf32> to vector<1x1x32xf32>
    %102 = vector.broadcast %101 : vector<1x1x32xf32> to vector<2x2x32xf32>
    %103 = arith.mulf %100, %102 : vector<2x2x32xf32>
    %104 = arith.addf %99, %103 : vector<2x2x32xf32>
    %c2_81 = arith.constant 2 : index
    %c0_82 = arith.constant 0 : index
    %c0_83 = arith.constant 0 : index
    %105 = tpu.strided_load %arg14[%c2_81, %c0_82, %c0_83] {strides = array<i32: 2, 2, 1>} : memref<6x6x32xf32, #tpu.memory_space<vmem>>, vector<2x2x32xf32>
    %106 = vector.extract_strided_slice %71 {offsets = [2, 0, 0], sizes = [1, 1, 32], strides = [1, 1, 1]} : vector<3x3x32xf32> to vector<1x1x32xf32>
    %107 = vector.broadcast %106 : vector<1x1x32xf32> to vector<2x2x32xf32>
    %108 = arith.mulf %105, %107 : vector<2x2x32xf32>
    %109 = arith.addf %104, %108 : vector<2x2x32xf32>
    %c2_84 = arith.constant 2 : index
    %c1_85 = arith.constant 1 : index
    %c0_86 = arith.constant 0 : index
    %110 = tpu.strided_load %arg14[%c2_84, %c1_85, %c0_86] {strides = array<i32: 2, 2, 1>} : memref<6x6x32xf32, #tpu.memory_space<vmem>>, vector<2x2x32xf32>
    %111 = vector.extract_strided_slice %71 {offsets = [2, 1, 0], sizes = [1, 1, 32], strides = [1, 1, 1]} : vector<3x3x32xf32> to vector<1x1x32xf32>
    %112 = vector.broadcast %111 : vector<1x1x32xf32> to vector<2x2x32xf32>
    %113 = arith.mulf %110, %112 : vector<2x2x32xf32>
    %114 = arith.addf %109, %113 : vector<2x2x32xf32>
    %c2_87 = arith.constant 2 : index
    %c2_88 = arith.constant 2 : index
    %c0_89 = arith.constant 0 : index
    %115 = tpu.strided_load %arg14[%c2_87, %c2_88, %c0_89] {strides = array<i32: 2, 2, 1>} : memref<6x6x32xf32, #tpu.memory_space<vmem>>, vector<2x2x32xf32>
    %116 = vector.extract_strided_slice %71 {offsets = [2, 2, 0], sizes = [1, 1, 32], strides = [1, 1, 1]} : vector<3x3x32xf32> to vector<1x1x32xf32>
    %117 = vector.broadcast %116 : vector<1x1x32xf32> to vector<2x2x32xf32>
    %118 = arith.mulf %115, %117 : vector<2x2x32xf32>
    %119 = arith.addf %114, %118 : vector<2x2x32xf32>
    %120 = vector.shape_cast %72 : vector<1x32xf32> to vector<1x1x32xf32>
    %121 = vector.broadcast %120 : vector<1x1x32xf32> to vector<2x2x32xf32>
    %122 = arith.addf %119, %121 : vector<2x2x32xf32>
    %123 = vector.shape_cast %122 : vector<2x2x32xf32> to vector<4x32xf32>
    %c0_90 = arith.constant 0 : index
    %c0_91 = arith.constant 0 : index
    %124 = vector.load %arg10[%c0_90, %c0_91] : memref<32x64xf32, #tpu.memory_space<vmem>>, vector<32x64xf32>
    %c0_92 = arith.constant 0 : index
    %c0_93 = arith.constant 0 : index
    %125 = vector.load %arg11[%c0_92, %c0_93] : memref<1x64xf32, #tpu.memory_space<vmem>>, vector<1x64xf32>
    %cst_94 = arith.constant dense<0.000000e+00> : vector<4x64xf32>
    %126 = tpu.matmul %123, %124, %cst_94 {dimension_numbers = #tpu.dot_dimension_numbers<[1], [0], [0], [1], [0, 0, 1, 1], [], []>} : vector<4x32xf32>, vector<32x64xf32>, vector<4x64xf32> -> vector<4x64xf32>
    %127 = vector.broadcast %125 : vector<1x64xf32> to vector<4x64xf32>
    %128 = arith.addf %126, %127 : vector<4x64xf32>
    %cst_95 = arith.constant 0.000000e+00 : f32
    %129 = vector.broadcast %cst_95 : f32 to vector<4x64xf32>
    %130 = arith.maximumf %128, %129 : vector<4x64xf32>
    %131 = arith.addf %61, %130 : vector<4x64xf32>
    %132 = vector.shape_cast %131 : vector<4x64xf32> to vector<2x2x64xf32>
    %c0_96 = arith.constant 0 : index
    %c0_97 = arith.constant 0 : index
    %c0_98 = arith.constant 0 : index
    %c0_99 = arith.constant 0 : index
    %133 = vector.load %arg12[%c0_96, %c0_97, %c0_98, %c0_99] : memref<1x2x2x64xf32, #tpu.memory_space<vmem>>, vector<1x2x2x64xf32>
    %134 = vector.shape_cast %133 : vector<1x2x2x64xf32> to vector<2x2x64xf32>
    %135 = vector.shape_cast %132 : vector<2x2x64xf32> to vector<1x2x2x64xf32>
    tpu.vector_store %arg12[%c0_96, %c0_97, %c0_98, %c0_99], %135 {strides = array<i32>} : memref<1x2x2x64xf32, #tpu.memory_space<vmem>>, vector<1x2x2x64xf32>,
    return
  }
  func.func @transform_0(%arg0: i32) -> (i32, i32, i32, i32) {
    %c0_i32 = arith.constant 0 : i32
    %c0_i32_0 = arith.constant 0 : i32
    %c0_i32_1 = arith.constant 0 : i32
    %c0_i32_2 = arith.constant 0 : i32
    return %arg0, %c0_i32, %c0_i32_0, %c0_i32_1 : i32, i32, i32, i32
  }
  func.func @transform_1(%arg0: i32) -> (i32, i32, i32) {
    %c0_i32 = arith.constant 0 : i32
    %c0_i32_0 = arith.constant 0 : i32
    %c0_i32_1 = arith.constant 0 : i32
    %c0_i32_2 = arith.constant 0 : i32
    return %c0_i32, %c0_i32_0, %c0_i32_1 : i32, i32, i32
  }
  func.func @transform_2(%arg0: i32) -> (i32, i32) {
    %c0_i32 = arith.constant 0 : i32
    %c0_i32_0 = arith.constant 0 : i32
    %c0_i32_1 = arith.constant 0 : i32
    return %c0_i32, %c0_i32_0 : i32, i32
  }
  func.func @transform_3(%arg0: i32) -> (i32, i32) {
    %c0_i32 = arith.constant 0 : i32
    %c0_i32_0 = arith.constant 0 : i32
    %c0_i32_1 = arith.constant 0 : i32
    return %c0_i32, %c0_i32_0 : i32, i32
  }
  func.func @transform_4(%arg0: i32) -> (i32, i32) {
    %c0_i32 = arith.constant 0 : i32
    %c0_i32_0 = arith.constant 0 : i32
    %c0_i32_1 = arith.constant 0 : i32
    return %c0_i32, %c0_i32_0 : i32, i32
  }
  func.func @transform_5(%arg0: i32) -> (i32, i32) {
    %c0_i32 = arith.constant 0 : i32
    %c0_i32_0 = arith.constant 0 : i32
    %c0_i32_1 = arith.constant 0 : i32
    return %c0_i32, %c0_i32_0 : i32, i32
  }
  func.func @transform_6(%arg0: i32) -> (i32, i32) {
    %c0_i32 = arith.constant 0 : i32
    %c0_i32_0 = arith.constant 0 : i32
    %c0_i32_1 = arith.constant 0 : i32
    return %c0_i32, %c0_i32_0 : i32, i32
  }
  func.func @transform_7(%arg0: i32) -> (i32, i32, i32) {
    %c0_i32 = arith.constant 0 : i32
    %c0_i32_0 = arith.constant 0 : i32
    %c0_i32_1 = arith.constant 0 : i32
    %c0_i32_2 = arith.constant 0 : i32
    return %c0_i32, %c0_i32_0, %c0_i32_1 : i32, i32, i32
  }
  func.func @transform_8(%arg0: i32) -> (i32, i32) {
    %c0_i32 = arith.constant 0 : i32
    %c0_i32_0 = arith.constant 0 : i32
    %c0_i32_1 = arith.constant 0 : i32
    return %c0_i32, %c0_i32_0 : i32, i32
  }
  func.func @transform_9(%arg0: i32) -> (i32, i32) {
    %c0_i32 = arith.constant 0 : i32
    %c0_i32_0 = arith.constant 0 : i32
    %c0_i32_1 = arith.constant 0 : i32
    return %c0_i32, %c0_i32_0 : i32, i32
  }
  func.func @transform_10(%arg0: i32) -> (i32, i32) {
    %c0_i32 = arith.constant 0 : i32
    %c0_i32_0 = arith.constant 0 : i32
    %c0_i32_1 = arith.constant 0 : i32
    return %c0_i32, %c0_i32_0 : i32, i32
  }
  func.func @transform_11(%arg0: i32) -> (i32, i32, i32, i32) {
    %c0_i32 = arith.constant 0 : i32
    %c0_i32_0 = arith.constant 0 : i32
    %c0_i32_1 = arith.constant 0 : i32
    %c0_i32_2 = arith.constant 0 : i32
    return %arg0, %c0_i32, %c0_i32_0, %c0_i32_1 : i32, i32, i32, i32
  }
}

module attributes {stable_mosaic.version = 11 : i64} {
  func.func @_block_s2_kernel(%arg0: i32, %arg1: memref<1x2x2x64xf32, #tpu.memory_space<vmem>>, %arg2: memref<3x3x64xf32, #tpu.memory_space<vmem>>, %arg3: memref<1x64xf32, #tpu.memory_space<vmem>>, %arg4: memref<64x128xf32, #tpu.memory_space<vmem>>, %arg5: memref<1x128xf32, #tpu.memory_space<vmem>>, %arg6: memref<64x64xf32, #tpu.memory_space<vmem>>, %arg7: memref<1x64xf32, #tpu.memory_space<vmem>>, %arg8: memref<3x3x64xf32, #tpu.memory_space<vmem>>, %arg9: memref<1x64xf32, #tpu.memory_space<vmem>>, %arg10: memref<64x128xf32, #tpu.memory_space<vmem>>, %arg11: memref<1x128xf32, #tpu.memory_space<vmem>>, %arg12: memref<1x1x1x128xf32, #tpu.memory_space<vmem>>, %arg13: memref<4x4x64xf32, #tpu.memory_space<vmem>>, %arg14: memref<4x4x64xf32, #tpu.memory_space<vmem>>) attributes {dimension_semantics = [#tpu.dimension_semantics<parallel>], iteration_bounds = array<i64: 2>, scalar_prefetch = 0 : i64, scratch_operands = 2 : i64, tpu.core_type = #tpu.core_type<tc>, window_params = [{transform_indices = @transform_0, window_bounds = array<i64: 1, 2, 2, 64>}, {pipeline_mode = #tpu.pipeline_mode<synchronous>, transform_indices = @transform_1, window_bounds = array<i64: 3, 3, 64>}, {pipeline_mode = #tpu.pipeline_mode<synchronous>, transform_indices = @transform_2, window_bounds = array<i64: 1, 64>}, {pipeline_mode = #tpu.pipeline_mode<synchronous>, transform_indices = @transform_3, window_bounds = array<i64: 64, 128>}, {pipeline_mode = #tpu.pipeline_mode<synchronous>, transform_indices = @transform_4, window_bounds = array<i64: 1, 128>}, {pipeline_mode = #tpu.pipeline_mode<synchronous>, transform_indices = @transform_5, window_bounds = array<i64: 64, 64>}, {pipeline_mode = #tpu.pipeline_mode<synchronous>, transform_indices = @transform_6, window_bounds = array<i64: 1, 64>}, {pipeline_mode = #tpu.pipeline_mode<synchronous>, transform_indices = @transform_7, window_bounds = array<i64: 3, 3, 64>}, {pipeline_mode = #tpu.pipeline_mode<synchronous>, transform_indices = @transform_8, window_bounds = array<i64: 1, 64>}, {pipeline_mode = #tpu.pipeline_mode<synchronous>, transform_indices = @transform_9, window_bounds = array<i64: 64, 128>}, {pipeline_mode = #tpu.pipeline_mode<synchronous>, transform_indices = @transform_10, window_bounds = array<i64: 1, 128>}, {transform_indices = @transform_11, window_bounds = array<i64: 1, 1, 1, 128>}]} {
    %c0 = arith.constant 0 : index
    %c0_0 = arith.constant 0 : index
    %c0_1 = arith.constant 0 : index
    %c0_2 = arith.constant 0 : index
    %0 = vector.load %arg1[%c0, %c0_0, %c0_1, %c0_2] : memref<1x2x2x64xf32, #tpu.memory_space<vmem>>, vector<1x2x2x64xf32>
    %1 = vector.shape_cast %0 : vector<1x2x2x64xf32> to vector<2x2x64xf32>
    %c0_3 = arith.constant 0 : index
    %c0_4 = arith.constant 0 : index
    %c0_5 = arith.constant 0 : index
    %2 = vector.load %arg2[%c0_3, %c0_4, %c0_5] : memref<3x3x64xf32, #tpu.memory_space<vmem>>, vector<3x3x64xf32>
    %c0_6 = arith.constant 0 : index
    %c0_7 = arith.constant 0 : index
    %3 = vector.load %arg3[%c0_6, %c0_7] : memref<1x64xf32, #tpu.memory_space<vmem>>, vector<1x64xf32>
    %cst = arith.constant 0.000000e+00 : f32
    %4 = vector.broadcast %cst : f32 to vector<4x4x64xf32>
    %c0_8 = arith.constant 0 : index
    %c0_9 = arith.constant 0 : index
    %c0_10 = arith.constant 0 : index
    %5 = vector.load %arg13[%c0_8, %c0_9, %c0_10] : memref<4x4x64xf32, #tpu.memory_space<vmem>>, vector<4x4x64xf32>
    tpu.vector_store %arg13[%c0_8, %c0_9, %c0_10], %4 {strides = array<i32>} : memref<4x4x64xf32, #tpu.memory_space<vmem>>, vector<4x4x64xf32>,
    %c1 = arith.constant 1 : index
    %c1_11 = arith.constant 1 : index
    %c0_12 = arith.constant 0 : index
    %6 = vector.load %arg13[%c1, %c1_11, %c0_12] : memref<4x4x64xf32, #tpu.memory_space<vmem>>, vector<2x2x64xf32>
    tpu.vector_store %arg13[%c1, %c1_11, %c0_12], %1 {strides = array<i32>} : memref<4x4x64xf32, #tpu.memory_space<vmem>>, vector<2x2x64xf32>,
    %c0_13 = arith.constant 0 : index
    %c0_14 = arith.constant 0 : index
    %c0_15 = arith.constant 0 : index
    %7 = tpu.strided_load %arg13[%c0_13, %c0_14, %c0_15] {strides = array<i32: 2, 2, 1>} : memref<4x4x64xf32, #tpu.memory_space<vmem>>, vector<1x1x64xf32>
    %8 = vector.extract_strided_slice %2 {offsets = [0, 0, 0], sizes = [1, 1, 64], strides = [1, 1, 1]} : vector<3x3x64xf32> to vector<1x1x64xf32>
    %9 = arith.mulf %7, %8 : vector<1x1x64xf32>
    %c0_16 = arith.constant 0 : index
    %c1_17 = arith.constant 1 : index
    %c0_18 = arith.constant 0 : index
    %10 = tpu.strided_load %arg13[%c0_16, %c1_17, %c0_18] {strides = array<i32: 2, 2, 1>} : memref<4x4x64xf32, #tpu.memory_space<vmem>>, vector<1x1x64xf32>
    %11 = vector.extract_strided_slice %2 {offsets = [0, 1, 0], sizes = [1, 1, 64], strides = [1, 1, 1]} : vector<3x3x64xf32> to vector<1x1x64xf32>
    %12 = arith.mulf %10, %11 : vector<1x1x64xf32>
    %13 = arith.addf %9, %12 : vector<1x1x64xf32>
    %c0_19 = arith.constant 0 : index
    %c2 = arith.constant 2 : index
    %c0_20 = arith.constant 0 : index
    %14 = tpu.strided_load %arg13[%c0_19, %c2, %c0_20] {strides = array<i32: 2, 2, 1>} : memref<4x4x64xf32, #tpu.memory_space<vmem>>, vector<1x1x64xf32>
    %15 = vector.extract_strided_slice %2 {offsets = [0, 2, 0], sizes = [1, 1, 64], strides = [1, 1, 1]} : vector<3x3x64xf32> to vector<1x1x64xf32>
    %16 = arith.mulf %14, %15 : vector<1x1x64xf32>
    %17 = arith.addf %13, %16 : vector<1x1x64xf32>
    %c1_21 = arith.constant 1 : index
    %c0_22 = arith.constant 0 : index
    %c0_23 = arith.constant 0 : index
    %18 = tpu.strided_load %arg13[%c1_21, %c0_22, %c0_23] {strides = array<i32: 2, 2, 1>} : memref<4x4x64xf32, #tpu.memory_space<vmem>>, vector<1x1x64xf32>
    %19 = vector.extract_strided_slice %2 {offsets = [1, 0, 0], sizes = [1, 1, 64], strides = [1, 1, 1]} : vector<3x3x64xf32> to vector<1x1x64xf32>
    %20 = arith.mulf %18, %19 : vector<1x1x64xf32>
    %21 = arith.addf %17, %20 : vector<1x1x64xf32>
    %c1_24 = arith.constant 1 : index
    %c1_25 = arith.constant 1 : index
    %c0_26 = arith.constant 0 : index
    %22 = tpu.strided_load %arg13[%c1_24, %c1_25, %c0_26] {strides = array<i32: 2, 2, 1>} : memref<4x4x64xf32, #tpu.memory_space<vmem>>, vector<1x1x64xf32>
    %23 = vector.extract_strided_slice %2 {offsets = [1, 1, 0], sizes = [1, 1, 64], strides = [1, 1, 1]} : vector<3x3x64xf32> to vector<1x1x64xf32>
    %24 = arith.mulf %22, %23 : vector<1x1x64xf32>
    %25 = arith.addf %21, %24 : vector<1x1x64xf32>
    %c1_27 = arith.constant 1 : index
    %c2_28 = arith.constant 2 : index
    %c0_29 = arith.constant 0 : index
    %26 = tpu.strided_load %arg13[%c1_27, %c2_28, %c0_29] {strides = array<i32: 2, 2, 1>} : memref<4x4x64xf32, #tpu.memory_space<vmem>>, vector<1x1x64xf32>
    %27 = vector.extract_strided_slice %2 {offsets = [1, 2, 0], sizes = [1, 1, 64], strides = [1, 1, 1]} : vector<3x3x64xf32> to vector<1x1x64xf32>
    %28 = arith.mulf %26, %27 : vector<1x1x64xf32>
    %29 = arith.addf %25, %28 : vector<1x1x64xf32>
    %c2_30 = arith.constant 2 : index
    %c0_31 = arith.constant 0 : index
    %c0_32 = arith.constant 0 : index
    %30 = tpu.strided_load %arg13[%c2_30, %c0_31, %c0_32] {strides = array<i32: 2, 2, 1>} : memref<4x4x64xf32, #tpu.memory_space<vmem>>, vector<1x1x64xf32>
    %31 = vector.extract_strided_slice %2 {offsets = [2, 0, 0], sizes = [1, 1, 64], strides = [1, 1, 1]} : vector<3x3x64xf32> to vector<1x1x64xf32>
    %32 = arith.mulf %30, %31 : vector<1x1x64xf32>
    %33 = arith.addf %29, %32 : vector<1x1x64xf32>
    %c2_33 = arith.constant 2 : index
    %c1_34 = arith.constant 1 : index
    %c0_35 = arith.constant 0 : index
    %34 = tpu.strided_load %arg13[%c2_33, %c1_34, %c0_35] {strides = array<i32: 2, 2, 1>} : memref<4x4x64xf32, #tpu.memory_space<vmem>>, vector<1x1x64xf32>
    %35 = vector.extract_strided_slice %2 {offsets = [2, 1, 0], sizes = [1, 1, 64], strides = [1, 1, 1]} : vector<3x3x64xf32> to vector<1x1x64xf32>
    %36 = arith.mulf %34, %35 : vector<1x1x64xf32>
    %37 = arith.addf %33, %36 : vector<1x1x64xf32>
    %c2_36 = arith.constant 2 : index
    %c2_37 = arith.constant 2 : index
    %c0_38 = arith.constant 0 : index
    %38 = tpu.strided_load %arg13[%c2_36, %c2_37, %c0_38] {strides = array<i32: 2, 2, 1>} : memref<4x4x64xf32, #tpu.memory_space<vmem>>, vector<1x1x64xf32>
    %39 = vector.extract_strided_slice %2 {offsets = [2, 2, 0], sizes = [1, 1, 64], strides = [1, 1, 1]} : vector<3x3x64xf32> to vector<1x1x64xf32>
    %40 = arith.mulf %38, %39 : vector<1x1x64xf32>
    %41 = arith.addf %37, %40 : vector<1x1x64xf32>
    %42 = vector.shape_cast %3 : vector<1x64xf32> to vector<1x1x64xf32>
    %43 = arith.addf %41, %42 : vector<1x1x64xf32>
    %44 = vector.shape_cast %43 : vector<1x1x64xf32> to vector<1x64xf32>
    %c0_39 = arith.constant 0 : index
    %c0_40 = arith.constant 0 : index
    %45 = vector.load %arg4[%c0_39, %c0_40] : memref<64x128xf32, #tpu.memory_space<vmem>>, vector<64x128xf32>
    %c0_41 = arith.constant 0 : index
    %c0_42 = arith.constant 0 : index
    %46 = vector.load %arg5[%c0_41, %c0_42] : memref<1x128xf32, #tpu.memory_space<vmem>>, vector<1x128xf32>
    %cst_43 = arith.constant dense<0.000000e+00> : vector<1x128xf32>
    %47 = tpu.matmul %44, %45, %cst_43 {dimension_numbers = #tpu.dot_dimension_numbers<[1], [0], [0], [1], [0, 0, 1, 1], [], []>} : vector<1x64xf32>, vector<64x128xf32>, vector<1x128xf32> -> vector<1x128xf32>
    %48 = arith.addf %47, %46 : vector<1x128xf32>
    %cst_44 = arith.constant 0.000000e+00 : f32
    %49 = vector.broadcast %cst_44 : f32 to vector<1x128xf32>
    %50 = arith.maximumf %48, %49 : vector<1x128xf32>
    %51 = vector.shape_cast %1 : vector<2x2x64xf32> to vector<4x64xf32>
    %c0_45 = arith.constant 0 : index
    %c0_46 = arith.constant 0 : index
    %52 = vector.load %arg6[%c0_45, %c0_46] : memref<64x64xf32, #tpu.memory_space<vmem>>, vector<64x64xf32>
    %c0_47 = arith.constant 0 : index
    %c0_48 = arith.constant 0 : index
    %53 = vector.load %arg7[%c0_47, %c0_48] : memref<1x64xf32, #tpu.memory_space<vmem>>, vector<1x64xf32>
    %cst_49 = arith.constant dense<0.000000e+00> : vector<4x64xf32>
    %54 = tpu.matmul %51, %52, %cst_49 {dimension_numbers = #tpu.dot_dimension_numbers<[1], [0], [0], [1], [0, 0, 1, 1], [], []>} : vector<4x64xf32>, vector<64x64xf32>, vector<4x64xf32> -> vector<4x64xf32>
    %55 = vector.broadcast %53 : vector<1x64xf32> to vector<4x64xf32>
    %56 = arith.addf %54, %55 : vector<4x64xf32>
    %cst_50 = arith.constant 0.000000e+00 : f32
    %57 = vector.broadcast %cst_50 : f32 to vector<4x64xf32>
    %58 = arith.maximumf %56, %57 : vector<4x64xf32>
    %59 = vector.shape_cast %58 : vector<4x64xf32> to vector<2x2x64xf32>
    %c0_51 = arith.constant 0 : index
    %c0_52 = arith.constant 0 : index
    %c0_53 = arith.constant 0 : index
    %60 = vector.load %arg8[%c0_51, %c0_52, %c0_53] : memref<3x3x64xf32, #tpu.memory_space<vmem>>, vector<3x3x64xf32>
    %c0_54 = arith.constant 0 : index
    %c0_55 = arith.constant 0 : index
    %61 = vector.load %arg9[%c0_54, %c0_55] : memref<1x64xf32, #tpu.memory_space<vmem>>, vector<1x64xf32>
    %cst_56 = arith.constant 0.000000e+00 : f32
    %62 = vector.broadcast %cst_56 : f32 to vector<4x4x64xf32>
    %c0_57 = arith.constant 0 : index
    %c0_58 = arith.constant 0 : index
    %c0_59 = arith.constant 0 : index
    %63 = vector.load %arg14[%c0_57, %c0_58, %c0_59] : memref<4x4x64xf32, #tpu.memory_space<vmem>>, vector<4x4x64xf32>
    tpu.vector_store %arg14[%c0_57, %c0_58, %c0_59], %62 {strides = array<i32>} : memref<4x4x64xf32, #tpu.memory_space<vmem>>, vector<4x4x64xf32>,
    %c1_60 = arith.constant 1 : index
    %c1_61 = arith.constant 1 : index
    %c0_62 = arith.constant 0 : index
    %64 = vector.load %arg14[%c1_60, %c1_61, %c0_62] : memref<4x4x64xf32, #tpu.memory_space<vmem>>, vector<2x2x64xf32>
    tpu.vector_store %arg14[%c1_60, %c1_61, %c0_62], %59 {strides = array<i32>} : memref<4x4x64xf32, #tpu.memory_space<vmem>>, vector<2x2x64xf32>,
    %c0_63 = arith.constant 0 : index
    %c0_64 = arith.constant 0 : index
    %c0_65 = arith.constant 0 : index
    %65 = tpu.strided_load %arg14[%c0_63, %c0_64, %c0_65] {strides = array<i32: 2, 2, 1>} : memref<4x4x64xf32, #tpu.memory_space<vmem>>, vector<1x1x64xf32>
    %66 = vector.extract_strided_slice %60 {offsets = [0, 0, 0], sizes = [1, 1, 64], strides = [1, 1, 1]} : vector<3x3x64xf32> to vector<1x1x64xf32>
    %67 = arith.mulf %65, %66 : vector<1x1x64xf32>
    %c0_66 = arith.constant 0 : index
    %c1_67 = arith.constant 1 : index
    %c0_68 = arith.constant 0 : index
    %68 = tpu.strided_load %arg14[%c0_66, %c1_67, %c0_68] {strides = array<i32: 2, 2, 1>} : memref<4x4x64xf32, #tpu.memory_space<vmem>>, vector<1x1x64xf32>
    %69 = vector.extract_strided_slice %60 {offsets = [0, 1, 0], sizes = [1, 1, 64], strides = [1, 1, 1]} : vector<3x3x64xf32> to vector<1x1x64xf32>
    %70 = arith.mulf %68, %69 : vector<1x1x64xf32>
    %71 = arith.addf %67, %70 : vector<1x1x64xf32>
    %c0_69 = arith.constant 0 : index
    %c2_70 = arith.constant 2 : index
    %c0_71 = arith.constant 0 : index
    %72 = tpu.strided_load %arg14[%c0_69, %c2_70, %c0_71] {strides = array<i32: 2, 2, 1>} : memref<4x4x64xf32, #tpu.memory_space<vmem>>, vector<1x1x64xf32>
    %73 = vector.extract_strided_slice %60 {offsets = [0, 2, 0], sizes = [1, 1, 64], strides = [1, 1, 1]} : vector<3x3x64xf32> to vector<1x1x64xf32>
    %74 = arith.mulf %72, %73 : vector<1x1x64xf32>
    %75 = arith.addf %71, %74 : vector<1x1x64xf32>
    %c1_72 = arith.constant 1 : index
    %c0_73 = arith.constant 0 : index
    %c0_74 = arith.constant 0 : index
    %76 = tpu.strided_load %arg14[%c1_72, %c0_73, %c0_74] {strides = array<i32: 2, 2, 1>} : memref<4x4x64xf32, #tpu.memory_space<vmem>>, vector<1x1x64xf32>
    %77 = vector.extract_strided_slice %60 {offsets = [1, 0, 0], sizes = [1, 1, 64], strides = [1, 1, 1]} : vector<3x3x64xf32> to vector<1x1x64xf32>
    %78 = arith.mulf %76, %77 : vector<1x1x64xf32>
    %79 = arith.addf %75, %78 : vector<1x1x64xf32>
    %c1_75 = arith.constant 1 : index
    %c1_76 = arith.constant 1 : index
    %c0_77 = arith.constant 0 : index
    %80 = tpu.strided_load %arg14[%c1_75, %c1_76, %c0_77] {strides = array<i32: 2, 2, 1>} : memref<4x4x64xf32, #tpu.memory_space<vmem>>, vector<1x1x64xf32>
    %81 = vector.extract_strided_slice %60 {offsets = [1, 1, 0], sizes = [1, 1, 64], strides = [1, 1, 1]} : vector<3x3x64xf32> to vector<1x1x64xf32>
    %82 = arith.mulf %80, %81 : vector<1x1x64xf32>
    %83 = arith.addf %79, %82 : vector<1x1x64xf32>
    %c1_78 = arith.constant 1 : index
    %c2_79 = arith.constant 2 : index
    %c0_80 = arith.constant 0 : index
    %84 = tpu.strided_load %arg14[%c1_78, %c2_79, %c0_80] {strides = array<i32: 2, 2, 1>} : memref<4x4x64xf32, #tpu.memory_space<vmem>>, vector<1x1x64xf32>
    %85 = vector.extract_strided_slice %60 {offsets = [1, 2, 0], sizes = [1, 1, 64], strides = [1, 1, 1]} : vector<3x3x64xf32> to vector<1x1x64xf32>
    %86 = arith.mulf %84, %85 : vector<1x1x64xf32>
    %87 = arith.addf %83, %86 : vector<1x1x64xf32>
    %c2_81 = arith.constant 2 : index
    %c0_82 = arith.constant 0 : index
    %c0_83 = arith.constant 0 : index
    %88 = tpu.strided_load %arg14[%c2_81, %c0_82, %c0_83] {strides = array<i32: 2, 2, 1>} : memref<4x4x64xf32, #tpu.memory_space<vmem>>, vector<1x1x64xf32>
    %89 = vector.extract_strided_slice %60 {offsets = [2, 0, 0], sizes = [1, 1, 64], strides = [1, 1, 1]} : vector<3x3x64xf32> to vector<1x1x64xf32>
    %90 = arith.mulf %88, %89 : vector<1x1x64xf32>
    %91 = arith.addf %87, %90 : vector<1x1x64xf32>
    %c2_84 = arith.constant 2 : index
    %c1_85 = arith.constant 1 : index
    %c0_86 = arith.constant 0 : index
    %92 = tpu.strided_load %arg14[%c2_84, %c1_85, %c0_86] {strides = array<i32: 2, 2, 1>} : memref<4x4x64xf32, #tpu.memory_space<vmem>>, vector<1x1x64xf32>
    %93 = vector.extract_strided_slice %60 {offsets = [2, 1, 0], sizes = [1, 1, 64], strides = [1, 1, 1]} : vector<3x3x64xf32> to vector<1x1x64xf32>
    %94 = arith.mulf %92, %93 : vector<1x1x64xf32>
    %95 = arith.addf %91, %94 : vector<1x1x64xf32>
    %c2_87 = arith.constant 2 : index
    %c2_88 = arith.constant 2 : index
    %c0_89 = arith.constant 0 : index
    %96 = tpu.strided_load %arg14[%c2_87, %c2_88, %c0_89] {strides = array<i32: 2, 2, 1>} : memref<4x4x64xf32, #tpu.memory_space<vmem>>, vector<1x1x64xf32>
    %97 = vector.extract_strided_slice %60 {offsets = [2, 2, 0], sizes = [1, 1, 64], strides = [1, 1, 1]} : vector<3x3x64xf32> to vector<1x1x64xf32>
    %98 = arith.mulf %96, %97 : vector<1x1x64xf32>
    %99 = arith.addf %95, %98 : vector<1x1x64xf32>
    %100 = vector.shape_cast %61 : vector<1x64xf32> to vector<1x1x64xf32>
    %101 = arith.addf %99, %100 : vector<1x1x64xf32>
    %102 = vector.shape_cast %101 : vector<1x1x64xf32> to vector<1x64xf32>
    %c0_90 = arith.constant 0 : index
    %c0_91 = arith.constant 0 : index
    %103 = vector.load %arg10[%c0_90, %c0_91] : memref<64x128xf32, #tpu.memory_space<vmem>>, vector<64x128xf32>
    %c0_92 = arith.constant 0 : index
    %c0_93 = arith.constant 0 : index
    %104 = vector.load %arg11[%c0_92, %c0_93] : memref<1x128xf32, #tpu.memory_space<vmem>>, vector<1x128xf32>
    %cst_94 = arith.constant dense<0.000000e+00> : vector<1x128xf32>
    %105 = tpu.matmul %102, %103, %cst_94 {dimension_numbers = #tpu.dot_dimension_numbers<[1], [0], [0], [1], [0, 0, 1, 1], [], []>} : vector<1x64xf32>, vector<64x128xf32>, vector<1x128xf32> -> vector<1x128xf32>
    %106 = arith.addf %105, %104 : vector<1x128xf32>
    %cst_95 = arith.constant 0.000000e+00 : f32
    %107 = vector.broadcast %cst_95 : f32 to vector<1x128xf32>
    %108 = arith.maximumf %106, %107 : vector<1x128xf32>
    %109 = arith.addf %50, %108 : vector<1x128xf32>
    %110 = vector.shape_cast %109 : vector<1x128xf32> to vector<1x1x128xf32>
    %c0_96 = arith.constant 0 : index
    %c0_97 = arith.constant 0 : index
    %c0_98 = arith.constant 0 : index
    %c0_99 = arith.constant 0 : index
    %111 = vector.load %arg12[%c0_96, %c0_97, %c0_98, %c0_99] : memref<1x1x1x128xf32, #tpu.memory_space<vmem>>, vector<1x1x1x128xf32>
    %112 = vector.shape_cast %111 : vector<1x1x1x128xf32> to vector<1x1x128xf32>
    %113 = vector.shape_cast %110 : vector<1x1x128xf32> to vector<1x1x1x128xf32>
    tpu.vector_store %arg12[%c0_96, %c0_97, %c0_98, %c0_99], %113 {strides = array<i32>} : memref<1x1x1x128xf32, #tpu.memory_space<vmem>>, vector<1x1x1x128xf32>,
    return
  }
  func.func @transform_0(%arg0: i32) -> (i32, i32, i32, i32) {
    %c0_i32 = arith.constant 0 : i32
    %c0_i32_0 = arith.constant 0 : i32
    %c0_i32_1 = arith.constant 0 : i32
    %c0_i32_2 = arith.constant 0 : i32
    return %arg0, %c0_i32, %c0_i32_0, %c0_i32_1 : i32, i32, i32, i32
  }
  func.func @transform_1(%arg0: i32) -> (i32, i32, i32) {
    %c0_i32 = arith.constant 0 : i32
    %c0_i32_0 = arith.constant 0 : i32
    %c0_i32_1 = arith.constant 0 : i32
    %c0_i32_2 = arith.constant 0 : i32
    return %c0_i32, %c0_i32_0, %c0_i32_1 : i32, i32, i32
  }
  func.func @transform_2(%arg0: i32) -> (i32, i32) {
    %c0_i32 = arith.constant 0 : i32
    %c0_i32_0 = arith.constant 0 : i32
    %c0_i32_1 = arith.constant 0 : i32
    return %c0_i32, %c0_i32_0 : i32, i32
  }
  func.func @transform_3(%arg0: i32) -> (i32, i32) {
    %c0_i32 = arith.constant 0 : i32
    %c0_i32_0 = arith.constant 0 : i32
    %c0_i32_1 = arith.constant 0 : i32
    return %c0_i32, %c0_i32_0 : i32, i32
  }
  func.func @transform_4(%arg0: i32) -> (i32, i32) {
    %c0_i32 = arith.constant 0 : i32
    %c0_i32_0 = arith.constant 0 : i32
    %c0_i32_1 = arith.constant 0 : i32
    return %c0_i32, %c0_i32_0 : i32, i32
  }
  func.func @transform_5(%arg0: i32) -> (i32, i32) {
    %c0_i32 = arith.constant 0 : i32
    %c0_i32_0 = arith.constant 0 : i32
    %c0_i32_1 = arith.constant 0 : i32
    return %c0_i32, %c0_i32_0 : i32, i32
  }
  func.func @transform_6(%arg0: i32) -> (i32, i32) {
    %c0_i32 = arith.constant 0 : i32
    %c0_i32_0 = arith.constant 0 : i32
    %c0_i32_1 = arith.constant 0 : i32
    return %c0_i32, %c0_i32_0 : i32, i32
  }
  func.func @transform_7(%arg0: i32) -> (i32, i32, i32) {
    %c0_i32 = arith.constant 0 : i32
    %c0_i32_0 = arith.constant 0 : i32
    %c0_i32_1 = arith.constant 0 : i32
    %c0_i32_2 = arith.constant 0 : i32
    return %c0_i32, %c0_i32_0, %c0_i32_1 : i32, i32, i32
  }
  func.func @transform_8(%arg0: i32) -> (i32, i32) {
    %c0_i32 = arith.constant 0 : i32
    %c0_i32_0 = arith.constant 0 : i32
    %c0_i32_1 = arith.constant 0 : i32
    return %c0_i32, %c0_i32_0 : i32, i32
  }
  func.func @transform_9(%arg0: i32) -> (i32, i32) {
    %c0_i32 = arith.constant 0 : i32
    %c0_i32_0 = arith.constant 0 : i32
    %c0_i32_1 = arith.constant 0 : i32
    return %c0_i32, %c0_i32_0 : i32, i32
  }
  func.func @transform_10(%arg0: i32) -> (i32, i32) {
    %c0_i32 = arith.constant 0 : i32
    %c0_i32_0 = arith.constant 0 : i32
    %c0_i32_1 = arith.constant 0 : i32
    return %c0_i32, %c0_i32_0 : i32, i32
  }
  func.func @transform_11(%arg0: i32) -> (i32, i32, i32, i32) {
    %c0_i32 = arith.constant 0 : i32
    %c0_i32_0 = arith.constant 0 : i32
    %c0_i32_1 = arith.constant 0 : i32
    %c0_i32_2 = arith.constant 0 : i32
    return %arg0, %c0_i32, %c0_i32_0, %c0_i32_1 : i32, i32, i32, i32
  }
}

module attributes {stable_mosaic.version = 11 : i64} {
  func.func @_head_kernel(%arg0: memref<2x1x1x128xf32, #tpu.memory_space<vmem>>, %arg1: memref<128x128xf32, #tpu.memory_space<vmem>>, %arg2: memref<1x128xf32, #tpu.memory_space<vmem>>, %arg3: memref<128x10xf32, #tpu.memory_space<vmem>>, %arg4: memref<1x10xf32, #tpu.memory_space<vmem>>, %arg5: memref<2x10xf32, #tpu.memory_space<vmem>>) attributes {dimension_semantics = [], scalar_prefetch = 0 : i64, scratch_operands = 0 : i64, tpu.core_type = #tpu.core_type<tc>} {
    %c0 = arith.constant 0 : index
    %c0_0 = arith.constant 0 : index
    %c0_1 = arith.constant 0 : index
    %c0_2 = arith.constant 0 : index
    %0 = vector.load %arg0[%c0, %c0_0, %c0_1, %c0_2] : memref<2x1x1x128xf32, #tpu.memory_space<vmem>>, vector<2x1x1x128xf32>
    %1 = vector.shape_cast %0 : vector<2x1x1x128xf32> to vector<2x128xf32>
    %c0_3 = arith.constant 0 : index
    %c0_4 = arith.constant 0 : index
    %2 = vector.load %arg1[%c0_3, %c0_4] : memref<128x128xf32, #tpu.memory_space<vmem>>, vector<128x128xf32>
    %c0_5 = arith.constant 0 : index
    %c0_6 = arith.constant 0 : index
    %3 = vector.load %arg2[%c0_5, %c0_6] : memref<1x128xf32, #tpu.memory_space<vmem>>, vector<1x128xf32>
    %cst = arith.constant dense<0.000000e+00> : vector<2x128xf32>
    %4 = tpu.matmul %1, %2, %cst {dimension_numbers = #tpu.dot_dimension_numbers<[1], [0], [0], [1], [0, 0, 1, 1], [], []>} : vector<2x128xf32>, vector<128x128xf32>, vector<2x128xf32> -> vector<2x128xf32>
    %5 = vector.broadcast %3 : vector<1x128xf32> to vector<2x128xf32>
    %6 = arith.addf %4, %5 : vector<2x128xf32>
    %cst_7 = arith.constant 0.000000e+00 : f32
    %7 = vector.broadcast %cst_7 : f32 to vector<2x128xf32>
    %8 = arith.maximumf %6, %7 : vector<2x128xf32>
    %9 = vector.shape_cast %8 : vector<2x128xf32> to vector<2x1x128xf32>
    %cst_8 = arith.constant dense<0.000000e+00> : vector<2x128xf32>
    %10 = vector.multi_reduction <add>, %9, %cst_8 [1] : vector<2x1x128xf32> to vector<2x128xf32>
    %cst_9 = arith.constant 1.000000e+00 : f32
    %11 = vector.broadcast %cst_9 : f32 to vector<2x128xf32>
    %12 = arith.divf %10, %11 : vector<2x128xf32>
    %c0_10 = arith.constant 0 : index
    %c0_11 = arith.constant 0 : index
    %13 = vector.load %arg3[%c0_10, %c0_11] : memref<128x10xf32, #tpu.memory_space<vmem>>, vector<128x10xf32>
    %cst_12 = arith.constant dense<0.000000e+00> : vector<2x10xf32>
    %14 = tpu.matmul %12, %13, %cst_12 {dimension_numbers = #tpu.dot_dimension_numbers<[1], [0], [0], [1], [0, 0, 1, 1], [], []>} : vector<2x128xf32>, vector<128x10xf32>, vector<2x10xf32> -> vector<2x10xf32>
    %c0_13 = arith.constant 0 : index
    %c0_14 = arith.constant 0 : index
    %15 = vector.load %arg4[%c0_13, %c0_14] : memref<1x10xf32, #tpu.memory_space<vmem>>, vector<1x10xf32>
    %16 = vector.broadcast %15 : vector<1x10xf32> to vector<2x10xf32>
    %17 = arith.addf %14, %16 : vector<2x10xf32>
    %c0_15 = arith.constant 0 : index
    %c0_16 = arith.constant 0 : index
    %18 = vector.load %arg5[%c0_15, %c0_16] : memref<2x10xf32, #tpu.memory_space<vmem>>, vector<2x10xf32>
    tpu.vector_store %arg5[%c0_15, %c0_16], %17 {strides = array<i32>} : memref<2x10xf32, #tpu.memory_space<vmem>>, vector<2x10xf32>,
    return
  }
}

</mosaic_0001>

<bundles_post_ra>
// kernel: shufflenet_forward_pallas.7
= control target key start
LH: loop header
LB: loop body
LE: loop exit
PB: predicated region body
PF: predicated region fallthrough
CT: control target
= control target key end

     0   :  { %s1172_s17 = smov 0   ;;  %s1499_s0 = inlined_call_operand.vmem [shape: f32[2,8,8,16], index: 0, kind: input, shape index: {}]   ;;  %s1500_s1 = inlined_call_operand.vmem [shape: f32[3,3,16], index: 1, kind: input, shape index: {}]   ;;  %s1501_s2 = inlined_call_operand.vmem [shape: f32[1,16], index: 2, kind: input, shape index: {}]   ;;  %s1502_s3 = inlined_call_operand.vmem [shape: f32[16,32], index: 3, kind: input, shape index: {}]   ;;  %s1503_s4 = inlined_call_operand.vmem [shape: f32[1,32], index: 4, kind: input, shape index: {}]   ;;  %s1504_s5 = inlined_call_operand.vmem [shape: f32[16,16], index: 5, kind: input, shape index: {}]   ;;  %s1505_s6 = inlined_call_operand.vmem [shape: f32[1,16], index: 6, kind: input, shape index: {}]   ;;  %s1506_s7 = inlined_call_operand.vmem [shape: f32[3,3,16], index: 7, kind: input, shape index: {}]   ;;  %s1507_s8 = inlined_call_operand.vmem [shape: f32[1,16], index: 8, kind: input, shape index: {}]   ;;  %s1508_s9 = inlined_call_operand.vmem [shape: f32[16,32], index: 9, kind: input, shape index: {}]   ;;  %s1509_s10 = inlined_call_operand.vmem [shape: f32[1,32], index: 10, kind: input, shape index: {}]   ;;  %s1510_s11 = inlined_call_operand.vmem [shape: f32[2,4,4,32], index: 11, kind: output, shape index: {}]  }
   0x1 LB: > { %s1058_s18 = sadd.s32 4294967295, %s1109_s17   ;;  %p1062_p0 = scmp.ge.s32.totalorder %s1109_s17, 1  ;;  %s1109_s17 = sphi %s1172_s17, %s21_s17  }
   0x2   : > { %p337_p1 = scmp.lt.s32.totalorder %s1109_s17, 3 }
   0x4   : > { %p338_p2 = pnand %p1062_p0, %p337_p1 }
   0x5   : > { %p377_p3 = scmp.lt.s32.totalorder (!%p338_p2), %s1058_s18, 1 }
   0x6   : > { %341 = sbr.rel (%p338_p2) target bundleno = 396 (0x18c), region = 64 }
   0xb   : > { %v633_v0 = vld [vmem:[%s1504_s5 + $0x8] sm:$0xff]  ;;  %v632_v1 = vld [vmem:[%s1504_s5] sm:$0xff]  ;;  %vm399_vm0 = vcmask 130048   ;;  %s1512_s18 = smov (!%p377_p3, %s1058_s18), 1  ;;  %vm401_vm1 = vcmask 123904   ;;  %v1111_v2 = vmov 0.0  }
   0xc   : > { %1085 = vmatpush.msra.mxu1 %v633_v0  ;;  %1086 = vmatpush.msra.mxu3 %v633_v0  ;;  %403 = vst.msk [vmem:[#allocation2 + $0x10] sm:$0xff] %vm399_vm0, %v1111_v2  ;;  %s1081_s23 = sshll.u32 %s1512_s18, 6  ;;  %v395_v8 = vld [vmem:[%s1500_s1] sm:$0x7]  ;;  %v396_v9 = vld [vmem:[%s1500_s1 + $0x4] sm:$0x7] }
   0xd   : > { %404 = vst.msk [vmem:[#allocation2 + $0x18] sm:$0x3] %vm401_vm1, %v1111_v2  ;;  %s1198_s26 = scalar_lea.vmem %s1499_s0, %s1081_s23  ;;  %v585_v10 = vld [vmem:[%s1502_s3 + $0x8] sm:$0xff]  ;;  %v1241_v11 = vperm.slane %v395_v8, 0  ;;  %v1243_v12 = vperm.slane %v395_v8, 1  ;;  %v1248_v13 = vperm.slane %v395_v8, 2 }
   0xe   : > { %1087 = vmatpush.msra.mxu1 %v632_v1  ;;  %1088 = vmatpush.msra.mxu3 %v632_v1  ;;  %405 = vst.msk [vmem:[#allocation2 + $0x20] sm:$0xff] %vm399_vm0, %v1111_v2  ;;  %v389_v3 = vld [vmem:[%s1198_s26 + $0x10] sm:$0xff]  ;;  %v1206_v4 = vld [vmem:[%s1198_s26] sm:$0xff]  ;;  %v1212_v5 = vld [vmem:[%s1198_s26 + $0x8] sm:$0xff]  ;;  %v1255_v15 = vperm.slane %v396_v9, 0  ;;  %v1257_v16 = vperm.slane %v396_v9, 1 }
   0xf   : > { %406 = vst.msk [vmem:[#allocation2 + $0x28] sm:$0x3] %vm401_vm1, %v1111_v2  ;;  %1071 = vmatmul.msk.f32.vlgmr.msra.gmra.mxu1 %vm399_vm0, %v389_v3  ;;  %v1219_v6 = vld [vmem:[%s1198_s26 + $0x28] sm:$0xff]  ;;  %v390_v7 = vld [vmem:[%s1198_s26 + $0x18] sm:$0xff]  ;;  %621 = vmatpush.msra.mxu0 %v585_v10  ;;  %v584_v14 = vld [vmem:[%s1502_s3] sm:$0xff]  ;;  %v1267_v30 = vperm.slane %v396_v9, 2 }
  0x10   : > { %407 = vst.msk [vmem:[#allocation2 + $0x30] sm:$0xff] %vm399_vm0, %v1111_v2  ;;  %1074 = vmatmul.msk.f32.vlgmr.msra.gmra.mxu3 %vm399_vm0, %v1219_v6  ;;  %1083 = vmatpush.msra.mxu2 %v585_v10  ;;  %v397_v35 = vld [vmem:[%s1500_s1 + $0x8] sm:$0x7]  ;;  %v393_v45 = vld [vmem:[%s1198_s26 + $0x30] sm:$0xff]  ;;  %s1082_s23 = sshll.u32 %s1512_s18, 4  ;;  %vm954_vm2 = vcmask 257024  }
  0x11   : > { %408 = vst.msk [vmem:[#allocation2 + $0x38] sm:$0x3] %vm401_vm1, %v1111_v2  ;;  %622 = vmatpush.msra.mxu0 %v584_v14  ;;  %v1290_v50 = vperm.slane %v397_v35, 0  ;;  %v1298_v54 = vperm.slane %v397_v35, 1  ;;  %v1311_v63 = vperm.slane %v397_v35, 2 }
  0x12   : > { %409 = vst.msk [vmem:[#allocation2 + $0x40] sm:$0xff] %vm399_vm0, %v1111_v2  ;;  %1084 = vmatpush.msra.mxu2 %v584_v14 }
  0x13   : > { %410 = vst.msk [vmem:[#allocation2 + $0x48] sm:$0x3] %vm401_vm1, %v1111_v2  ;;  %676 = vmatpush.msrb.mxu0 %v633_v0  ;;  %v391_v0 = vld [vmem:[%s1198_s26 + $0x20] sm:$0xff] }
  0x14   : > { %422 = vst.msk [vmem:[#allocation2 + $0x11] sm:$0xff] %vm399_vm0, %v1206_v4 }
  0x15   : > { %423 = vst.msk [vmem:[#allocation2 + $0x21] sm:$0xff] %vm399_vm0, %v1212_v5  ;;  %677 = vmatpush.msrb.mxu0 %v632_v1  ;;  %v394_v1 = vld [vmem:[%s1198_s26 + $0x38] sm:$0xff]  ;;  %s386_s26 = scalar_lea.vmem %s1510_s11, %s1082_s23 }
  0x16   : > { %424 = vst.msk [vmem:[#allocation2 + $0x31] sm:$0xff] %vm399_vm0, %v389_v3 }
  0x17   : > { %425 = vst.msk [vmem:[#allocation2 + $0x41] sm:$0xff] %vm399_vm0, %v390_v7  ;;  %1072 = vmatmul.msk.f32.gmra.mxu1 %vm399_vm0, %v390_v7 }
  0x18   : > { %400 = vst.msk [vmem:[#allocation2] sm:$0xff] %vm399_vm0, %v1111_v2  ;;  %1075 = vmatmul.msk.f32.gmra.mxu3 %vm399_vm0, %v393_v45 }
  0x19   : > { %402 = vst.msk [vmem:[#allocation2 + $0x8] sm:$0x3] %vm401_vm1, %v1111_v2 }
  0x1a   : > { %411 = vst.msk [vmem:[#allocation2 + $0x50] sm:$0xff] %vm399_vm0, %v1111_v2 }
  0x1b   : > { %412 = vst.msk [vmem:[#allocation2 + $0x58] sm:$0x3] %vm401_vm1, %v1111_v2  ;;  %v476_v25 = vld [vmem:[#allocation2 + $0x10] ss:$2 sm:$0xf] }
  0x1c   : > { %v432_v17 = vld [vmem:[#allocation2 + $0x20] ss:$2 sm:$0xf]  ;;  %v445_v18 = vld [vmem:[#allocation2 + $0x21] ss:$2 sm:$0xf]  ;;  %v484_v42 = vmul.f32 %v1255_v15, %v476_v25 }
  0x1d   : > { %v439_v19 = vmul.f32 %v1241_v11, %v432_v17  ;;  %v452_v20 = vmul.f32 %v1243_v12, %v445_v18  ;;  %v462_v21 = vld [vmem:[#allocation2 + $0x22] ss:$2 sm:$0xf]  ;;  %v478_v22 = vld [vmem:[#allocation2 + $0x30] ss:$2 sm:$0xf] }
  0x1e   : > { %v469_v23 = vmul.f32 %v1248_v13, %v462_v21  ;;  %v495_v24 = vld [vmem:[#allocation2 + $0x31] ss:$2 sm:$0xf]  ;;  %v485_v27 = vmul.f32 %v1255_v15, %v478_v22  ;;  %v512_v28 = vld [vmem:[#allocation2 + $0x32] ss:$2 sm:$0xf] }
  0x1f   : > { %v456_v26 = vadd.f32 %v452_v20, %v439_v19  ;;  %413 = vst.msk [vmem:[#allocation2 + $0x60] sm:$0xff] %vm399_vm0, %v1111_v2  ;;  %v430_v29 = vld [vmem:[#allocation2] ss:$2 sm:$0xf]  ;;  %v502_v34 = vmul.f32 %v1257_v16, %v495_v24  ;;  %v519_v43 = vmul.f32 %v1267_v30, %v512_v28  ;;  %1073 = vmatmul.msk.f32.gmra.mxu1 %vm399_vm0, %v391_v0  ;;  %v1339_v21 = vld [vmem:[%s1501_s2] ss:$0 sm:$0xff] }
  0x20   : > { %414 = vst.msk [vmem:[#allocation2 + $0x68] sm:$0x3] %vm401_vm1, %v1111_v2  ;;  %v438_v31 = vmul.f32 %v1241_v11, %v430_v29  ;;  %v443_v32 = vld [vmem:[#allocation2 + $0x1] ss:$2 sm:$0xf]  ;;  %1076 = vmatmul.msk.f32.gmra.mxu3 %vm399_vm0, %v394_v1 }
  0x21   : > { %v473_v33 = vadd.f32 %v469_v23, %v456_v26  ;;  %415 = vst.msk [vmem:[#allocation2 + $0x70] sm:$0xff] %vm399_vm0, %v1111_v2  ;;  %v451_v36 = vmul.f32 %v1243_v12, %v443_v32  ;;  %v460_v37 = vld [vmem:[#allocation2 + $0x2] ss:$2 sm:$0xf] }
  0x22   : > { %416 = vst.msk [vmem:[#allocation2 + $0x78] sm:$0x3] %vm401_vm1, %v1111_v2  ;;  %v468_v38 = vmul.f32 %v1248_v13, %v460_v37  ;;  %v493_v39 = vld [vmem:[#allocation2 + $0x11] ss:$2 sm:$0xf] }
  0x23   : > { %v489_v40 = vadd.f32 %v485_v27, %v473_v33  ;;  %417 = vst.msk [vmem:[#allocation2 + $0x80] sm:$0xff] %vm399_vm0, %v1111_v2  ;;  %v455_v41 = vadd.f32 %v451_v36, %v438_v31  ;;  %v510_v44 = vld [vmem:[#allocation2 + $0x12] ss:$2 sm:$0xf]  ;;  %v501_v48 = vmul.f32 %v1257_v16, %v493_v39 }
  0x24   : > { %418 = vst.msk [vmem:[#allocation2 + $0x88] sm:$0x3] %vm401_vm1, %v1111_v2  ;;  %v527_v49 = vld [vmem:[#allocation2 + $0x20] ss:$2 sm:$0xf]  ;;  %v518_v53 = vmul.f32 %v1267_v30, %v510_v44 }
  0x25   : > { %v506_v46 = vadd.f32 %v502_v34, %v489_v40  ;;  %v472_v47 = vadd.f32 %v468_v38, %v455_v41  ;;  %v529_v51 = vld [vmem:[#allocation2 + $0x40] ss:$2 sm:$0xf]  ;;  %715 = vst.msk [vmem:[#allocation3] sm:$0xff] %vm399_vm0, %v1111_v2  ;;  %v535_v57 = vmul.f32 %v1290_v50, %v527_v49 }
  0x26   : > { %716 = vst.msk [vmem:[#allocation3 + $0x8] sm:$0x3] %vm401_vm1, %v1111_v2  ;;  %v536_v58 = vmul.f32 %v1290_v50, %v529_v51  ;;  %v544_v59 = vld [vmem:[#allocation2 + $0x21] ss:$2 sm:$0xf] }
  0x27   : > { %v488_v52 = vadd.f32 %v484_v42, %v472_v47  ;;  %v523_v55 = vadd.f32 %v519_v43, %v506_v46  ;;  %717 = vst.msk [vmem:[#allocation3 + $0x10] sm:$0xff] %vm399_vm0, %v1111_v2  ;;  %v546_v60 = vld [vmem:[#allocation2 + $0x41] ss:$2 sm:$0xf]  ;;  %v552_v62 = vmul.f32 %v1298_v54, %v544_v59 }
  0x28   : > { %718 = vst.msk [vmem:[#allocation3 + $0x18] sm:$0x3] %vm401_vm1, %v1111_v2  ;;  %v553_v8 = vmul.f32 %v1298_v54, %v546_v60  ;;  %v561_v9 = vld [vmem:[#allocation2 + $0x22] ss:$2 sm:$0xf] }
  0x29   : > { %v505_v56 = vadd.f32 %v501_v48, %v488_v52  ;;  %719 = vst.msk [vmem:[#allocation3 + $0x20] sm:$0xff] %vm399_vm0, %v1111_v2  ;;  %v540_v7 = vadd.f32 %v536_v58, %v523_v55  ;;  %v563_v10 = vld [vmem:[#allocation2 + $0x42] ss:$2 sm:$0xf]  ;;  %v569_v17 = vmul.f32 %v1311_v63, %v561_v9 }
  0x2a   : > { %720 = vst.msk [vmem:[#allocation3 + $0x28] sm:$0x3] %vm401_vm1, %v1111_v2  ;;  %v570_v19 = vmul.f32 %v1311_v63, %v563_v10  ;;  %v434_v38 = vld [vmem:[#allocation2 + $0x40] ss:$2 sm:$0xf] }
  0x2b   : > { %v522_v61 = vadd.f32 %v518_v53, %v505_v56  ;;  %721 = vst.msk [vmem:[#allocation3 + $0x30] sm:$0xff] %vm399_vm0, %v1111_v2  ;;  %v557_v18 = vadd.f32 %v553_v8, %v540_v7  ;;  %v440_v40 = vmul.f32 %v1241_v11, %v434_v38  ;;  %v447_v41 = vld [vmem:[#allocation2 + $0x41] ss:$2 sm:$0xf] }
  0x2c   : > { %722 = vst.msk [vmem:[#allocation3 + $0x38] sm:$0x3] %vm401_vm1, %v1111_v2  ;;  %v464_v47 = vld [vmem:[#allocation2 + $0x42] ss:$2 sm:$0xf] }
  0x2d   : > { %v539_v3 = vadd.f32 %v535_v57, %v522_v61  ;;  %723 = vst.msk [vmem:[#allocation3 + $0x40] sm:$0xff] %vm399_vm0, %v1111_v2  ;;  %v574_v22 = vadd.f32 %v570_v19, %v557_v18  ;;  %v470_v51 = vmul.f32 %v1248_v13, %v464_v47 }
  0x2e   : > { %724 = vst.msk [vmem:[#allocation3 + $0x48] sm:$0x3] %vm401_vm1, %v1111_v2 }
  0x2f   : > { %v556_v14 = vadd.f32 %v552_v62, %v539_v3  ;;  %725 = vst.msk [vmem:[#allocation3 + $0x50] sm:$0xff] %vm399_vm0, %v1111_v2  ;;  %v581_v24 = vadd.f32 %v1339_v21, %v574_v22 }
  0x30   : > { %726 = vst.msk [vmem:[#allocation3 + $0x58] sm:$0x3] %vm401_vm1, %v1111_v2 }
  0x31   : > { %727 = vst.msk [vmem:[#allocation3 + $0x60] sm:$0xff] %vm399_vm0, %v1111_v2  ;;  %v573_v20 = vadd.f32 %v569_v17, %v556_v14 }
  0x32   : > { %728 = vst.msk [vmem:[#allocation3 + $0x68] sm:$0x3] %vm401_vm1, %v1111_v2 }
  0x33   : > { %729 = vst.msk [vmem:[#allocation3 + $0x70] sm:$0xff] %vm399_vm0, %v1111_v2  ;;  %v580_v23 = vadd.f32 %v1339_v21, %v573_v20 }
  0x34   : > { %730 = vst.msk [vmem:[#allocation3 + $0x78] sm:$0x3] %vm401_vm1, %v1111_v2 }
  0x35   : > { %731 = vst.msk [vmem:[#allocation3 + $0x80] sm:$0xff] %vm399_vm0, %v1111_v2 }
  0x36   : > { %732 = vst.msk [vmem:[#allocation3 + $0x88] sm:$0x3] %vm401_vm1, %v1111_v2  ;;  %v1364_v2 = vld [vmem:[%s1505_s6] ss:$0 sm:$0xff] }
  0x37   : > { %427 = vst.msk [vmem:[#allocation2 + $0x61] sm:$0xff] %vm399_vm0, %v1219_v6 }
  0x38   : > { %594 = vst [vmem:[#allocation1] ss:$2 sm:$0xff] %v580_v23 }
  0x39   : > { %596 = vst [vmem:[#allocation1 + $0x1] ss:$2 sm:$0xff] %v581_v24 }
  0x3a   : > { %428 = vst.msk [vmem:[#allocation2 + $0x71] sm:$0xff] %vm399_vm0, %v393_v45  ;;  %v453_v45 = vmul.f32 %v1243_v12, %v447_v41 }
  0x3b   : > { %426 = vst.msk [vmem:[#allocation2 + $0x51] sm:$0xff] %vm399_vm0, %v391_v0 }
  0x3c   : > { %429 = vst.msk [vmem:[#allocation2 + $0x81] sm:$0xff] %vm399_vm0, %v394_v1  ;;  %v457_v49 = vadd.f32 %v453_v45, %v440_v40  ;;  %v712_v45 = vld [vmem:[%s1506_s7 + $0x4] sm:$0x7] }
  0x3e   : > { %v436_v39 = vld [vmem:[#allocation2 + $0x60] ss:$2 sm:$0xf]  ;;  %v449_v44 = vld [vmem:[#allocation2 + $0x61] ss:$2 sm:$0xf]  ;;  %v474_v59 = vadd.f32 %v470_v51, %v457_v49 }
  0x3f   : > { %v441_v43 = vmul.f32 %v1241_v11, %v436_v39  ;;  %v454_v46 = vmul.f32 %v1243_v12, %v449_v44  ;;  %v466_v48 = vld [vmem:[#allocation2 + $0x62] ss:$2 sm:$0xf] }
  0x40   : > { %v601_v25 = vld.sshfl [vmem:[#allocation1] sm:$0xff pattern:$0x75316420]  ;;  %v471_v52 = vmul.f32 %v1248_v13, %v466_v48  ;;  %v531_v18 = vld [vmem:[#allocation2 + $0x60] ss:$2 sm:$0xf] }
  0x41   : > { %1067 = vmatmul.msk.f32.vlgmr.msra.gmra.mxu0 %vm399_vm0, %v601_v25  ;;  %v458_v56 = vadd.f32 %v454_v46, %v441_v43  ;;  %v482_v57 = vld [vmem:[#allocation2 + $0x70] ss:$2 sm:$0xf]  ;;  %v499_v61 = vld [vmem:[#allocation2 + $0x71] ss:$2 sm:$0xf]  ;;  %v537_v23 = vmul.f32 %v1290_v50, %v531_v18 }
  0x42   : > { %v480_v53 = vld [vmem:[#allocation2 + $0x50] ss:$2 sm:$0xf]  ;;  %v487_v12 = vmul.f32 %v1255_v15, %v482_v57  ;;  %v497_v60 = vld [vmem:[#allocation2 + $0x51] ss:$2 sm:$0xf]  ;;  %v504_v1 = vmul.f32 %v1257_v16, %v499_v61 }
  0x43   : > { %v486_v11 = vmul.f32 %v1255_v15, %v480_v53  ;;  %v475_v62 = vadd.f32 %v471_v52, %v458_v56  ;;  %v503_v0 = vmul.f32 %v1257_v16, %v497_v60  ;;  %v711_v13 = vld [vmem:[%s1506_s7] sm:$0x7]  ;;  %v533_v22 = vld [vmem:[#allocation2 + $0x80] ss:$2 sm:$0xf]  ;;  %v1421_v61 = vperm.slane %v712_v45, 1 }
  0x44   : > { %v514_v8 = vld [vmem:[#allocation2 + $0x52] ss:$2 sm:$0xf]  ;;  %v1393_v19 = vperm.slane %v711_v13, 0  ;;  %v1395_v16 = vperm.slane %v711_v13, 1  ;;  %v1410_v48 = vperm.slane %v711_v13, 2 }
  0x45   : > { %v490_v7 = vadd.f32 %v486_v11, %v474_v59  ;;  %v491_v9 = vadd.f32 %v487_v12, %v475_v62  ;;  %v516_v10 = vld [vmem:[#allocation2 + $0x72] ss:$2 sm:$0xf]  ;;  %v520_v14 = vmul.f32 %v1267_v30, %v514_v8  ;;  %v713_v49 = vld [vmem:[%s1506_s7 + $0x8] sm:$0x7]  ;;  %v1423_v62 = vperm.slane %v712_v45, 2 }
  0x46   : > { %v521_v17 = vmul.f32 %v1267_v30, %v516_v10 }
  0x47   : > { %v507_v15 = vadd.f32 %v503_v0, %v490_v7  ;;  %v508_v20 = vadd.f32 %v504_v1, %v491_v9  ;;  %v1429_v7 = vperm.slane %v713_v49, 0 }
  0x49   : > { %1069 = vmatmul.msk.f32.vlgmr.msrb.gmra.mxu0 %vm399_vm0, %v1206_v4  ;;  %v524_v25 = vadd.f32 %v520_v14, %v507_v15 }
  0x51   : > { %1070 = vmatmul.msk.f32.gmra.mxu0 %vm399_vm0, %v1212_v5 }
  0x8c   : > { %v685_v6 = vpop.f32.mrf.mxu1 }
  0x8d   : > { %v686_v26 = vadd.f32 %v1364_v2, %v685_v6  ;;  %v538_v6 = vmul.f32 %v1290_v50, %v533_v22 }
  0x8f   : > { %v705_v27 = vmax.f32 %v686_v26, 0.0  ;;  %v548_v26 = vld [vmem:[#allocation2 + $0x61] ss:$2 sm:$0xf] }
  0x91   : > { %738 = vst.msk [vmem:[#allocation3 + $0x31] sm:$0xff] %vm399_vm0, %v705_v27  ;;  %v550_v27 = vld [vmem:[#allocation2 + $0x81] ss:$2 sm:$0xf] }
  0x92   : > { %v555_v30 = vmul.f32 %v1298_v54, %v550_v27  ;;  %v1437_v27 = vperm.slane %v713_v49, 1 }
  0x93   : > { %v694_v28 = vpop.f32.mrf.mxu3 }
  0x94   : > { %v695_v29 = vadd.f32 %v1364_v2, %v694_v28  ;;  %v688_v4 = vpop.f32.mrf.mxu1  ;;  %v525_v28 = vadd.f32 %v521_v17, %v508_v20 }
  0x95   : > { %v689_v5 = vadd.f32 %v1364_v2, %v688_v4  ;;  %v541_v4 = vadd.f32 %v537_v23, %v524_v25 }
  0x96   : > { %v708_v31 = vmax.f32 %v695_v29, 0.0  ;;  %v554_v29 = vmul.f32 %v1298_v54, %v548_v26 }
  0x97   : > { %v706_v32 = vmax.f32 %v689_v5, 0.0  ;;  %v565_v5 = vld [vmem:[#allocation2 + $0x62] ss:$2 sm:$0xf] }
  0x98   : > { %741 = vst.msk [vmem:[#allocation3 + $0x61] sm:$0xff] %vm399_vm0, %v708_v31  ;;  %v558_v39 = vadd.f32 %v554_v29, %v541_v4 }
  0x99   : > { %739 = vst.msk [vmem:[#allocation3 + $0x41] sm:$0xff] %vm399_vm0, %v706_v32  ;;  %v567_v32 = vld [vmem:[#allocation2 + $0x82] ss:$2 sm:$0xf] }
  0x9a   : > { %v572_v50 = vmul.f32 %v1311_v63, %v567_v32 }
  0x9b   : > { %v697_v33 = vpop.f32.mrf.mxu3 }
  0x9c   : > { %v698_v34 = vadd.f32 %v1364_v2, %v697_v33  ;;  %v691_v35 = vpop.f32.mrf.mxu1 }
  0x9d   : > { %v692_v37 = vadd.f32 %v1364_v2, %v691_v35  ;;  %v542_v35 = vadd.f32 %v538_v6, %v525_v28  ;;  %v1439_v28 = vperm.slane %v713_v49, 2 }
  0x9e   : > { %v709_v36 = vmax.f32 %v698_v34, 0.0 }
  0x9f   : > { %v707_v42 = vmax.f32 %v692_v37, 0.0  ;;  %v750_v31 = vld [vmem:[#allocation3 + $0x60] ss:$2 sm:$0xf]  ;;  %v559_v41 = vadd.f32 %v555_v30, %v542_v35 }
  0xa0   : > { %742 = vst.msk [vmem:[#allocation3 + $0x71] sm:$0xff] %vm399_vm0, %v709_v36  ;;  %v748_v24 = vld [vmem:[#allocation3 + $0x40] ss:$2 sm:$0xf]  ;;  %v755_v34 = vmul.f32 %v1393_v19, %v750_v31  ;;  %v571_v36 = vmul.f32 %v1311_v63, %v565_v5 }
  0xa1   : > { %740 = vst.msk [vmem:[#allocation3 + $0x51] sm:$0xff] %vm399_vm0, %v707_v42  ;;  %v754_v33 = vmul.f32 %v1393_v19, %v748_v24  ;;  %v761_v37 = vld [vmem:[#allocation3 + $0x41] ss:$2 sm:$0xf]  ;;  %v576_v63 = vadd.f32 %v572_v50, %v559_v41 }
  0xa2   : > { %v763_v38 = vld [vmem:[#allocation3 + $0x61] ss:$2 sm:$0xf]  ;;  %v767_v40 = vmul.f32 %v1395_v16, %v761_v37  ;;  %v778_v42 = vld [vmem:[#allocation3 + $0x42] ss:$2 sm:$0xf]  ;;  %v575_v44 = vadd.f32 %v571_v36, %v558_v39 }
  0xa3   : > { %v700_v55 = vpop.f32.mrf.mxu3  ;;  %v768_v54 = vmul.f32 %v1395_v16, %v763_v38  ;;  %v780_v43 = vld [vmem:[#allocation3 + $0x62] ss:$2 sm:$0xf]  ;;  %v784_v53 = vmul.f32 %v1410_v48, %v778_v42  ;;  %v583_v11 = vadd.f32 %v1339_v21, %v576_v63  ;;  %v862_v6 = vld [vmem:[#allocation3 + $0x61] ss:$2 sm:$0xf] }
  0xa4   : > { %v701_v58 = vadd.f32 %v1364_v2, %v700_v55  ;;  %v771_v46 = vadd.f32 %v767_v40, %v754_v33  ;;  %v582_v52 = vadd.f32 %v1339_v21, %v575_v44  ;;  %v785_v55 = vmul.f32 %v1410_v48, %v780_v43  ;;  %v845_v18 = vld [vmem:[#allocation3 + $0x60] ss:$2 sm:$0xf]  ;;  %v757_v36 = vld [vmem:[#allocation3 + $0x1] ss:$2 sm:$0xf] }
  0xa5   : > { %v772_v47 = vadd.f32 %v768_v54, %v755_v34  ;;  %600 = vst [vmem:[#allocation1 + $0x11] ss:$2 sm:$0xff] %v583_v11  ;;  %v851_v24 = vmul.f32 %v1429_v7, %v845_v18  ;;  %v879_v31 = vld [vmem:[#allocation3 + $0x62] ss:$2 sm:$0xf]  ;;  %v868_v32 = vmul.f32 %v1437_v27, %v862_v6  ;;  %v898_v11 = vld [vmem:[%s1508_s9] sm:$0xff] }
  0xa6   : > { %v710_v3 = vmax.f32 %v701_v58, 0.0  ;;  %v1419_v58 = vperm.slane %v712_v45, 0  ;;  %598 = vst [vmem:[#allocation1 + $0x10] ss:$2 sm:$0xff] %v582_v52  ;;  %v788_v12 = vadd.f32 %v784_v53, %v771_v46  ;;  %v885_v38 = vmul.f32 %v1439_v28, %v879_v31  ;;  %v1450_v42 = vld [vmem:[%s1507_s8] ss:$0 sm:$0xff] }
  0xa7   : > { %v796_v56 = vld [vmem:[#allocation3 + $0x70] ss:$2 sm:$0xf]  ;;  %v813_v59 = vld [vmem:[#allocation3 + $0x71] ss:$2 sm:$0xf]  ;;  %v789_v60 = vadd.f32 %v785_v55, %v772_v47  ;;  %v765_v45 = vmul.f32 %v1395_v16, %v757_v36 }
  0xa8   : > { %743 = vst.msk [vmem:[#allocation3 + $0x81] sm:$0xff] %vm399_vm0, %v710_v3  ;;  %v794_v51 = vld [vmem:[#allocation3 + $0x50] ss:$2 sm:$0xf]  ;;  %v801_v13 = vmul.f32 %v1419_v58, %v796_v56  ;;  %v818_v8 = vmul.f32 %v1421_v61, %v813_v59 }
  0xa9   : > { %v811_v57 = vld [vmem:[#allocation3 + $0x51] ss:$2 sm:$0xf]  ;;  %v800_v1 = vmul.f32 %v1419_v58, %v794_v51  ;;  %v828_v3 = vld [vmem:[#allocation3 + $0x52] ss:$2 sm:$0xf] }
  0xaa   : > { %v817_v21 = vmul.f32 %v1421_v61, %v811_v57  ;;  %v830_v9 = vld [vmem:[#allocation3 + $0x72] ss:$2 sm:$0xf]  ;;  %v805_v14 = vadd.f32 %v801_v13, %v789_v60  ;;  %v834_v15 = vmul.f32 %v1423_v62, %v828_v3  ;;  %v744_v35 = vld [vmem:[#allocation3] ss:$2 sm:$0xf] }
  0xab   : > { %v804_v10 = vadd.f32 %v800_v1, %v788_v12  ;;  %v835_v17 = vmul.f32 %v1423_v62, %v830_v9  ;;  %v752_v44 = vmul.f32 %v1393_v19, %v744_v35  ;;  %v774_v46 = vld [vmem:[#allocation3 + $0x2] ss:$2 sm:$0xf] }
  0xac   : > { %v822_v23 = vadd.f32 %v818_v8, %v805_v14  ;;  %v782_v53 = vmul.f32 %v1410_v48, %v774_v46  ;;  %v899_v57 = vld [vmem:[%s1508_s9 + $0x8] sm:$0xff] }
  0xad   : > { %v821_v22 = vadd.f32 %v817_v21, %v804_v10  ;;  %v602_v5 = vld.sshfl [vmem:[#allocation1 + $0x10] sm:$0xff pattern:$0x75316420]  ;;  %v769_v52 = vadd.f32 %v765_v45, %v752_v44  ;;  %935 = vmatpush.msrb.mxu2 %v899_v57  ;;  %v843_v36 = vld [vmem:[#allocation3 + $0x40] ss:$2 sm:$0xf] }
  0xae   : > { %v839_v30 = vadd.f32 %v835_v17, %v822_v23  ;;  %1068 = vmatmul.msk.f32.vlgmr.msra.gmra.mxu2 %vm399_vm0, %v602_v5 }
  0xaf   : > { %v847_v20 = vld [vmem:[#allocation3 + $0x80] ss:$2 sm:$0xf]  ;;  %v864_v26 = vld [vmem:[#allocation3 + $0x81] ss:$2 sm:$0xf]  ;;  %v838_v29 = vadd.f32 %v834_v15, %v821_v22  ;;  %v786_v12 = vadd.f32 %v782_v53, %v769_v52  ;;  %936 = vmatpush.msrb.mxu2 %v898_v11 }
  0xb0   : > { %v852_v25 = vmul.f32 %v1429_v7, %v847_v20  ;;  %v881_v4 = vld [vmem:[#allocation3 + $0x82] ss:$2 sm:$0xf]  ;;  %v869_v33 = vmul.f32 %v1437_v27, %v864_v26  ;;  %v792_v22 = vld [vmem:[#allocation3 + $0x30] ss:$2 sm:$0xf] }
  0xb1   : > { %v855_v50 = vadd.f32 %v851_v24, %v838_v29  ;;  %v886_v39 = vmul.f32 %v1439_v28, %v881_v4 }
  0xb2   : > { %v856_v37 = vadd.f32 %v852_v25, %v839_v30  ;;  %v809_v30 = vld [vmem:[#allocation3 + $0x31] ss:$2 sm:$0xf] }
  0xb3   : > { %v872_v54 = vadd.f32 %v868_v32, %v855_v50  ;;  %v799_v32 = vmul.f32 %v1419_v58, %v792_v22  ;;  %v816_v35 = vmul.f32 %v1421_v61, %v809_v30 }
  0xb4   : > { %v873_v41 = vadd.f32 %v869_v33, %v856_v37 }
  0xb5   : > { %v889_v47 = vadd.f32 %v885_v38, %v872_v54  ;;  %v860_v38 = vld [vmem:[#allocation3 + $0x41] ss:$2 sm:$0xf]  ;;  %v850_v54 = vmul.f32 %v1429_v7, %v843_v36 }
  0xb6   : > { %v890_v63 = vadd.f32 %v886_v39, %v873_v41  ;;  %v877_v41 = vld [vmem:[#allocation3 + $0x42] ss:$2 sm:$0xf] }
  0xb7   : > { %v896_v49 = vadd.f32 %v1450_v42, %v889_v47 }
  0xb8   : > { %v897_v51 = vadd.f32 %v1450_v42, %v890_v63  ;;  %v1100_v63 = vld [vmem:[%s1503_s4] ss:$0 sm:$0xff] }
  0xb9   : > { %912 = vst [vmem:[#allocation1 + $0x10] ss:$2 sm:$0xff] %v896_v49 }
  0xba   : > { %914 = vst [vmem:[#allocation1 + $0x11] ss:$2 sm:$0xff] %v897_v51 }
  0xbe   : > { %v1425_v0 = vpop.f32.mrf.mxu0 }
  0xc1   : > { %v916_v47 = vld.sshfl [vmem:[#allocation1 + $0x10] sm:$0xff pattern:$0x75316420] }
  0xc6   : > { %v679_v34 = vpop.f32.mrf.mxu0 }
  0xc7   : > { %v680_v40 = vadd.f32 %v1364_v2, %v679_v34 }
  0xc9   : > { %v703_v43 = vmax.f32 %v680_v40, 0.0 }
  0xcb   : > { %736 = vst.msk [vmem:[#allocation3 + $0x11] sm:$0xff] %vm399_vm0, %v703_v43  ;;  %v867_v43 = vmul.f32 %v1437_v27, %v860_v38 }
  0xce   : > { %v682_v55 = vpop.f32.mrf.mxu0 }
  0xcf   : > { %v683_v56 = vadd.f32 %v1364_v2, %v682_v55 }
  0xd1   : > { %v704_v59 = vmax.f32 %v683_v56, 0.0 }
  0xd2   : > { %v790_v60 = vld [vmem:[#allocation3 + $0x10] ss:$2 sm:$0xf]  ;;  %v807_v13 = vld [vmem:[#allocation3 + $0x11] ss:$2 sm:$0xf] }
  0xd3   : > { %737 = vst.msk [vmem:[#allocation3 + $0x21] sm:$0xff] %vm399_vm0, %v704_v59  ;;  %v798_v1 = vmul.f32 %v1419_v58, %v790_v60  ;;  %v815_v3 = vmul.f32 %v1421_v61, %v807_v13  ;;  %v824_v21 = vld [vmem:[#allocation3 + $0x12] ss:$2 sm:$0xf]  ;;  %v884_v61 = vmul.f32 %v1439_v28, %v877_v41 }
  0xd4   : > { %v832_v14 = vmul.f32 %v1423_v62, %v824_v21 }
  0xd5   : > { %v802_v2 = vadd.f32 %v798_v1, %v786_v12 }
  0xd7   : > { %v819_v8 = vadd.f32 %v815_v3, %v802_v2 }
  0xd9   : > { %v836_v23 = vadd.f32 %v832_v14, %v819_v8 }
  0xda   : > { %v746_v9 = vld [vmem:[#allocation3 + $0x20] ss:$2 sm:$0xf]  ;;  %v759_v10 = vld [vmem:[#allocation3 + $0x21] ss:$2 sm:$0xf] }
  0xdb   : > { %v776_v15 = vld [vmem:[#allocation3 + $0x22] ss:$2 sm:$0xf]  ;;  %v753_v17 = vmul.f32 %v1393_v19, %v746_v9  ;;  %v766_v18 = vmul.f32 %v1395_v16, %v759_v10  ;;  %v858_v25 = vld [vmem:[#allocation3 + $0x21] ss:$2 sm:$0xf] }
  0xdc   : > { %v841_v20 = vld [vmem:[#allocation3 + $0x20] ss:$2 sm:$0xf]  ;;  %v783_v26 = vmul.f32 %v1410_v48, %v776_v15  ;;  %v866_v4 = vmul.f32 %v1437_v27, %v858_v25  ;;  %v826_v19 = vld [vmem:[#allocation3 + $0x32] ss:$2 sm:$0xf] }
  0xdd   : > { %v849_v24 = vmul.f32 %v1429_v7, %v841_v20  ;;  %v770_v6 = vadd.f32 %v766_v18, %v753_v17  ;;  %v875_v29 = vld [vmem:[#allocation3 + $0x22] ss:$2 sm:$0xf]  ;;  %v833_v48 = vmul.f32 %v1423_v62, %v826_v19  ;;  %v1102_v27 = vld [vmem:[%s1509_s10] ss:$0 sm:$0xff] }
  0xde   : > { %v883_v16 = vmul.f32 %v1439_v28, %v875_v29  ;;  %v625_v28 = vadd.f32 %v1100_v63, %v1425_v0 }
  0xdf   : > { %v853_v31 = vadd.f32 %v849_v24, %v836_v23  ;;  %v787_v5 = vadd.f32 %v783_v26, %v770_v6 }
  0xe0   : > { %v630_v51 = vmax.f32 %v625_v28, 0.0 }
  0xe1   : > { %v870_v33 = vadd.f32 %v866_v4, %v853_v31  ;;  %v803_v34 = vadd.f32 %v799_v32, %v787_v5 }
  0xe3   : > { %v887_v50 = vadd.f32 %v883_v16, %v870_v33  ;;  %v820_v37 = vadd.f32 %v816_v35, %v803_v34 }
  0xe5   : > { %v894_v39 = vadd.f32 %v1450_v42, %v887_v50  ;;  %v837_v40 = vadd.f32 %v833_v48, %v820_v37 }
  0xe7   : > { %908 = vst [vmem:[#allocation1] ss:$2 sm:$0xff] %v894_v39  ;;  %v854_v58 = vadd.f32 %v850_v54, %v837_v40 }
  0xe9   : > { %v871_v44 = vadd.f32 %v867_v43, %v854_v58 }
  0xeb   : > { %v888_v45 = vadd.f32 %v884_v61, %v871_v44 }
  0xed   : > { %v895_v46 = vadd.f32 %v1450_v42, %v888_v45 }
  0xef   : > { %910 = vst [vmem:[#allocation1 + $0x1] ss:$2 sm:$0xff] %v895_v46 }
  0xf6   : > { %v915_v62 = vld.sshfl [vmem:[#allocation1] sm:$0xff pattern:$0x75316420] }
  0xf7   : > { %1077 = vmatmul.msk.f32.vlgmr.msrb.gmra.mxu2 %vm399_vm0, %v915_v62 }
  0xff   : > { %1078 = vmatmul.msk.f32.gmra.mxu2 %vm399_vm0, %v916_v47 }
 0x131   : > { %v627_v7 = vpop.f32.mrf.mxu2 }
 0x132   : > { %v628_v55 = vadd.f32 %v1100_v63, %v627_v7 }
 0x134   : > { %v631_v59 = vmax.f32 %v628_v55, 0.0 }
 0x17a   : > { %v938_v49 = vpop.f32.mrf.mxu2 }
 0x17b   : > { %v939_v42 = vadd.f32 %v1102_v27, %v938_v49 }
 0x17d   : > { %v944_v52 = vmax.f32 %v939_v42, 0.0 }
 0x17f   : > { %v946_v53 = vadd.f32 %v944_v52, %v630_v51 }
 0x181   : > { %v950_v56 = vrot.slane %v946_v53, 4  ;;  %955 = vst.msk [vmem:[%s386_s26] sm:$0xf] %vm954_vm2, %v946_v53 }
 0x182   : > { %v941_v57 = vpop.f32.mrf.mxu2 }
 0x183   : > { %956 = vst.msk [vmem:[%s386_s26 + $0x4] sm:$0xf] %vm954_vm2, %v950_v56  ;;  %v942_v11 = vadd.f32 %v1102_v27, %v941_v57 }
 0x185   : > { %v945_v12 = vmax.f32 %v942_v11, 0.0 }
 0x187   : > { %v947_v0 = vadd.f32 %v945_v12, %v631_v59 }
 0x189   : > { %v951_v60 = vrot.slane %v947_v0, 4  ;;  %957 = vst.msk [vmem:[%s386_s26 + $0x8] sm:$0xf] %vm954_vm2, %v947_v0 }
 0x18b   : > { %958 = vst.msk [vmem:[%s386_s26 + $0xc] sm:$0xf] %vm954_vm2, %v951_v60 }
 0x18c PF: > { %s21_s17 = sadd.s32 1, %s1109_s17  }
 0x18d   : > { %p18_p4 = scmp.ge.s32.totalorder %s21_s17, 4  }
 0x18f   :  { %20 = sbr.rel (!%p18_p4) target bundleno = 1 (0x1), region = 170 }

// kernel: shufflenet_forward_pallas.8
= control target key start
LH: loop header
LB: loop body
LE: loop exit
PB: predicated region body
PF: predicated region fallthrough
CT: control target
= control target key end

     0   :  { %s789_s27 = smov 0   ;;  %s935_s0 = inlined_call_operand.vmem [shape: f32[2,4,4,32], index: 0, kind: input, shape index: {}]   ;;  %s936_s1 = inlined_call_operand.vmem [shape: f32[16,32], index: 1, kind: input, shape index: {}]   ;;  %s937_s2 = inlined_call_operand.vmem [shape: f32[16,16], index: 2, kind: input, shape index: {}]   ;;  %s938_s3 = inlined_call_operand.vmem [shape: f32[1,16], index: 3, kind: input, shape index: {}]   ;;  %s939_s4 = inlined_call_operand.vmem [shape: f32[3,3,16], index: 4, kind: input, shape index: {}]   ;;  %s940_s5 = inlined_call_operand.vmem [shape: f32[1,16], index: 5, kind: input, shape index: {}]   ;;  %s941_s6 = inlined_call_operand.vmem [shape: f32[16,32], index: 6, kind: input, shape index: {}]   ;;  %s942_s7 = inlined_call_operand.vmem [shape: f32[1,32], index: 7, kind: input, shape index: {}]   ;;  %s943_s8 = inlined_call_operand.vmem [shape: f32[2,4,4,32], index: 8, kind: output, shape index: {}]  }
   0x1 LB: > { %s700_s28 = sadd.s32 4294967295, %s740_s27   ;;  %p704_p0 = scmp.ge.s32.totalorder %s740_s27, 1  ;;  %s740_s27 = sphi %s789_s27, %s18_s27  }
   0x2   : > { %p262_p1 = scmp.lt.s32.totalorder %s740_s27, 3 }
   0x4   : > { %p263_p2 = pnand %p704_p0, %p262_p1 }
   0x5   : > { %p296_p3 = scmp.lt.s32.totalorder (!%p263_p2), %s700_s28, 1  ;;  %s742_s15 = smov (!%p263_p2), 112  }
   0x6   : > { %266 = sbr.rel (%p263_p2) target bundleno = 468 (0x1d4), region = 52 }
   0xb   : > { %v313_v0 = vld [vmem:[%s937_s2 + $0x8] sm:$0xff]  ;;  %v312_v1 = vld [vmem:[%s937_s2] sm:$0xff]  ;;  %s945_s28 = smov (!%p296_p3, %s700_s28), 1  ;;  %vm335_vm0 = vcmask 130048   ;;  %vm375_vm1 = vcmask 128000   ;;  %v743_v10 = vmov 0.0  }
   0xc   : > { %354 = vmatpush.msra.mxu0 %v313_v0  ;;  %719 = vmatpush.msra.mxu3 %v313_v0  ;;  %s717_s11 = sshll.u32 %s945_s28, 4  ;;  %376 = vst.msk [vmem:[#allocation2] sm:$0x3f] %vm375_vm1, %v743_v10  ;;  %v371_v11 = vld [vmem:[%s939_s4] sm:$0x7]  ;;  %v551_v12 = vld [vmem:[%s941_s6 + $0x8] sm:$0xff] }
   0xd   : > { %s300_s14 = scalar_lea.vmem %s935_s0, %s717_s11  ;;  %377 = vst.msk [vmem:[#allocation2 + $0x8] sm:$0x3f] %vm375_vm1, %v743_v10  ;;  %v550_v13 = vld [vmem:[%s941_s6] sm:$0xff]  ;;  %587 = vmatpush.msra.mxu1 %v551_v12  ;;  %v834_v14 = vperm.slane %v371_v11, 1  ;;  %v839_v18 = vperm.slane %v371_v11, 0  ;;  %v842_v20 = vperm.slane %v371_v11, 2  ;;  %s305_s19 = scalar_lea.vmem %s943_s8, %s717_s11 }
   0xe   : > { %355 = vmatpush.msra.mxu0 %v312_v1  ;;  %720 = vmatpush.msra.mxu3 %v312_v1  ;;  %v811_v2 = vld [vmem:[%s300_s14] sm:$0xf]  ;;  %v813_v3 = vld [vmem:[%s300_s14 + $0x4] sm:$0xf]  ;;  %v815_v4 = vld [vmem:[%s300_s14 + $0x8] sm:$0xf] }
   0xf   : > { %322 = vst [vmem:[#allocation1] ss:$2 sm:$0xff] %v811_v2  ;;  %v818_v5 = vld [vmem:[%s300_s14 + $0xc] sm:$0xf]  ;;  %v731_v15 = vld [vmem:[%s938_s3] ss:$0 sm:$0xff]  ;;  %588 = vmatpush.msra.mxu1 %v550_v13 }
  0x10   : > { %324 = vst [vmem:[#allocation1 + $0x1] ss:$2 sm:$0xff] %v813_v3  ;;  %vm383_vm2 = vcmask 125952   ;;  %v372_v27 = vld [vmem:[%s939_s4 + $0x4] sm:$0x7]  ;;  %v311_v44 = vld [vmem:[%s936_s1 + $0x8] sm:$0xff] }
  0x11   : > { %326 = vst [vmem:[#allocation1 + $0x10] ss:$2 sm:$0xff] %v815_v4  ;;  %v851_v30 = vperm.slane %v372_v27, 0  ;;  %v853_v31 = vperm.slane %v372_v27, 1  ;;  %v855_v32 = vperm.slane %v372_v27, 2  ;;  %v310_v45 = vld [vmem:[%s936_s1] sm:$0xff]  ;;  %625 = vmatpush.msra.mxu2 %v311_v44 }
  0x12   : > { %328 = vst [vmem:[#allocation1 + $0x11] ss:$2 sm:$0xff] %v818_v5  ;;  %v373_v33 = vld [vmem:[%s939_s4 + $0x8] sm:$0x7]  ;;  %vm640_vm3 = vcmask 257024  }
  0x13   : > { %378 = vst.msk [vmem:[#allocation2 + $0x10] sm:$0x3f] %vm375_vm1, %v743_v10  ;;  %v388_v16 = vld [vmem:[#allocation2] sm:$0x3f]  ;;  %v865_v43 = vperm.slane %v373_v33, 1  ;;  %v874_v51 = vperm.slane %v373_v33, 0  ;;  %626 = vmatpush.msra.mxu2 %v310_v45 }
  0x14   : > { %381 = vst.msk [vmem:[#allocation2 + $0x28] sm:$0x3f] %vm375_vm1, %v743_v10  ;;  %v400_v19 = vmul.f32 %v834_v14, %v388_v16  ;;  %v395_v23 = vmul.f32 %v839_v18, %v388_v16  ;;  %v421_v25 = vmul.f32 %v842_v20, %v388_v16  ;;  %v876_v52 = vperm.slane %v373_v33, 2 }
  0x15   : > { %379 = vst.msk [vmem:[#allocation2 + $0x18] sm:$0x3f] %vm375_vm1, %v743_v10 }
  0x16   : > { %380 = vst.msk [vmem:[#allocation2 + $0x20] sm:$0x3f] %vm375_vm1, %v743_v10  ;;  %v408_v24 = vrot.slane %v400_v19, 1  ;;  %v429_v29 = vrot.slane %v421_v25, 2 }
  0x17   : > { %v329_v6 = vld.sshfl [vmem:[#allocation1] sm:$0xff pattern:$0x75316420] }
  0x18   : > { %331 = vrot.lane.b32.xlu0 %v329_v6, %s742_s15  ;;  %v416_v28 = vadd.f32 %v408_v24, %v395_v23 }
  0x19   : > { %v330_v7 = vld.sshfl [vmem:[#allocation1 + $0x10] sm:$0xff pattern:$0x75316420] }
  0x1a   : > { %v437_v35 = vadd.f32 %v429_v29, %v416_v28 }
  0x20   : > { %333 = vrot.lane.b32.xlu0 %v330_v7, %s742_s15 }
  0x8a   : > { %v332_v8 = vpop.permute.xlu0 %331 }
  0x8b   : > { %709 = vmatmul.msk.f32.vlgmr.msra.gmra.mxu0 %vm335_vm0, %v332_v8 }
  0x92   : > { %v334_v9 = vpop.permute.xlu0 %333 }
  0x93   : > { %710 = vmatmul.msk.f32.vlgmr.msra.gmra.mxu3 %vm335_vm0, %v334_v9 }
 0x108   : > { %v357_v17 = vpop.f32.mrf.mxu0 }
 0x109   : > { %v358_v21 = vadd.f32 %v731_v15, %v357_v17 }
 0x10b   : > { %v363_v22 = vmax.f32 %v358_v21, 0.0 }
 0x10d   : > { %v367_v26 = vrot.slane %v363_v22, 4  ;;  %384 = vst.msk [vmem:[#allocation2 + $0x9] sm:$0xf] %vm383_vm2, %v363_v22  ;;  %v892_v22 = vld [vmem:[%s940_s5] ss:$0 sm:$0xff] }
 0x10f   : > { %385 = vst.msk [vmem:[#allocation2 + $0x11] sm:$0xf] %vm383_vm2, %v367_v26 }
 0x114   : > { %v389_v34 = vld [vmem:[#allocation2 + $0x8] sm:$0x3f] }
 0x115   : > { %v401_v36 = vmul.f32 %v834_v14, %v389_v34  ;;  %v422_v37 = vmul.f32 %v842_v20, %v389_v34  ;;  %v442_v38 = vmul.f32 %v851_v30, %v389_v34  ;;  %v451_v41 = vmul.f32 %v853_v31, %v389_v34 }
 0x116   : > { %v360_v39 = vpop.f32.mrf.mxu3  ;;  %v390_v40 = vld [vmem:[#allocation2 + $0x10] sm:$0x3f]  ;;  %v472_v42 = vmul.f32 %v855_v32, %v389_v34  ;;  %v396_v47 = vmul.f32 %v839_v18, %v389_v34 }
 0x117   : > { %v361_v46 = vadd.f32 %v731_v15, %v360_v39  ;;  %v409_v48 = vrot.slane %v401_v36, 1  ;;  %v446_v49 = vadd.f32 %v442_v38, %v437_v35  ;;  %v459_v50 = vrot.slane %v451_v41, 1 }
 0x118   : > { %v430_v55 = vrot.slane %v422_v37, 2  ;;  %v452_v56 = vmul.f32 %v853_v31, %v390_v40  ;;  %v480_v58 = vrot.slane %v472_v42, 2  ;;  %v502_v59 = vmul.f32 %v865_v43, %v390_v40 }
 0x119   : > { %v364_v53 = vmax.f32 %v361_v46, 0.0  ;;  %v417_v54 = vadd.f32 %v409_v48, %v396_v47  ;;  %v467_v57 = vadd.f32 %v459_v50, %v446_v49  ;;  %v443_v62 = vmul.f32 %v851_v30, %v390_v40  ;;  %v393_v50 = vld [vmem:[#allocation2 + $0x28] sm:$0x3f] }
 0x11a   : > { %v473_v63 = vmul.f32 %v855_v32, %v390_v40  ;;  %v493_v1 = vmul.f32 %v874_v51, %v390_v40  ;;  %v523_v6 = vmul.f32 %v876_v52, %v390_v40  ;;  %v402_v7 = vmul.f32 %v834_v14, %v390_v40 }
 0x11b   : > { %v368_v60 = vrot.slane %v364_v53, 4  ;;  %386 = vst.msk [vmem:[#allocation2 + $0x19] sm:$0xf] %vm383_vm2, %v364_v53  ;;  %v438_v61 = vadd.f32 %v430_v55, %v417_v54  ;;  %v488_v0 = vadd.f32 %v480_v58, %v467_v57  ;;  %v460_v9 = vrot.slane %v452_v56, 1 }
 0x11c   : > { %v423_v10 = vmul.f32 %v842_v20, %v390_v40  ;;  %v510_v12 = vrot.slane %v502_v59, 1  ;;  %v397_v13 = vmul.f32 %v839_v18, %v390_v40  ;;  %v410_v15 = vrot.slane %v402_v7, 1 }
 0x11d   : > { %387 = vst.msk [vmem:[#allocation2 + $0x21] sm:$0xf] %vm383_vm2, %v368_v60  ;;  %v447_v8 = vadd.f32 %v443_v62, %v438_v61  ;;  %v497_v11 = vadd.f32 %v493_v1, %v488_v0  ;;  %v481_v17 = vrot.slane %v473_v63, 2  ;;  %v531_v21 = vrot.slane %v523_v6, 2 }
 0x11e   : > { %v418_v23 = vadd.f32 %v410_v15, %v397_v13  ;;  %v431_v24 = vrot.slane %v423_v10, 2  ;;  %v505_v63 = vmul.f32 %v865_v43, %v393_v50 }
 0x11f   : > { %v468_v16 = vadd.f32 %v460_v9, %v447_v8  ;;  %v518_v19 = vadd.f32 %v510_v12, %v497_v11 }
 0x120   : > { %v439_v34 = vadd.f32 %v431_v24, %v418_v23  ;;  %v513_v12 = vrot.slane %v505_v63, 1 }
 0x121   : > { %v489_v26 = vadd.f32 %v481_v17, %v468_v16  ;;  %v539_v27 = vadd.f32 %v531_v21, %v518_v19 }
 0x122   : > { %v391_v25 = vld [vmem:[#allocation2 + $0x18] sm:$0x3f] }
 0x123   : > { %v494_v28 = vmul.f32 %v874_v51, %v391_v25  ;;  %v503_v29 = vmul.f32 %v865_v43, %v391_v25  ;;  %v524_v33 = vmul.f32 %v876_v52, %v391_v25  ;;  %v546_v35 = vadd.f32 %v892_v22, %v539_v27 }
 0x124   : > { %v403_v36 = vmul.f32 %v834_v14, %v391_v25  ;;  %v424_v37 = vmul.f32 %v842_v20, %v391_v25  ;;  %v444_v38 = vmul.f32 %v851_v30, %v391_v25  ;;  %v392_v41 = vld [vmem:[#allocation2 + $0x20] sm:$0x3f]  ;;  %v398_v42 = vmul.f32 %v839_v18, %v391_v25 }
 0x125   : > { %v498_v39 = vadd.f32 %v494_v28, %v489_v26  ;;  %v511_v40 = vrot.slane %v503_v29, 1  ;;  %560 = vst [vmem:[#allocation1] ss:$2 sm:$0xff] %v546_v35  ;;  %v453_v46 = vmul.f32 %v853_v31, %v391_v25  ;;  %v532_v48 = vrot.slane %v524_v33, 2 }
 0x126   : > { %v411_v44 = vrot.slane %v403_v36, 1  ;;  %v448_v45 = vadd.f32 %v444_v38, %v439_v34  ;;  %v474_v49 = vmul.f32 %v855_v32, %v391_v25  ;;  %v432_v53 = vrot.slane %v424_v37, 2 }
 0x127   : > { %v519_v47 = vadd.f32 %v511_v40, %v498_v39  ;;  %v454_v20 = vmul.f32 %v853_v31, %v392_v41  ;;  %v461_v54 = vrot.slane %v453_v46, 1  ;;  %v445_v56 = vmul.f32 %v851_v30, %v392_v41 }
 0x128   : > { %v419_v14 = vadd.f32 %v411_v44, %v398_v42  ;;  %v475_v57 = vmul.f32 %v855_v32, %v392_v41  ;;  %v482_v59 = vrot.slane %v474_v49, 2  ;;  %v504_v60 = vmul.f32 %v865_v43, %v392_v41 }
 0x129   : > { %v540_v55 = vadd.f32 %v532_v48, %v519_v47  ;;  %v469_v58 = vadd.f32 %v461_v54, %v448_v45  ;;  %v495_v62 = vmul.f32 %v874_v51, %v392_v41  ;;  %v462_v1 = vrot.slane %v454_v20, 1 }
 0x12a   : > { %v440_v18 = vadd.f32 %v432_v53, %v419_v14  ;;  %v525_v6 = vmul.f32 %v876_v52, %v392_v41  ;;  %v496_v30 = vmul.f32 %v874_v51, %v393_v50  ;;  %v526_v32 = vmul.f32 %v876_v52, %v393_v50 }
 0x12b   : > { %v547_v61 = vadd.f32 %v892_v22, %v540_v55  ;;  %v490_v31 = vadd.f32 %v482_v59, %v469_v58  ;;  %v483_v8 = vrot.slane %v475_v57, 2  ;;  %v512_v10 = vrot.slane %v504_v60, 1 }
 0x12c   : > { %v449_v0 = vadd.f32 %v445_v56, %v440_v18  ;;  %v533_v15 = vrot.slane %v525_v6, 2  ;;  %v534_v43 = vrot.slane %v526_v32, 2 }
 0x12d   : > { %562 = vst [vmem:[#allocation1 + $0x1] ss:$2 sm:$0xff] %v547_v61  ;;  %v499_v9 = vadd.f32 %v495_v62, %v490_v31 }
 0x12e   : > { %v470_v7 = vadd.f32 %v462_v1, %v449_v0 }
 0x12f   : > { %v520_v13 = vadd.f32 %v512_v10, %v499_v9 }
 0x130   : > { %v491_v11 = vadd.f32 %v483_v8, %v470_v7 }
 0x131   : > { %v541_v17 = vadd.f32 %v533_v15, %v520_v13 }
 0x132   : > { %v500_v16 = vadd.f32 %v496_v30, %v491_v11 }
 0x133   : > { %v548_v23 = vadd.f32 %v892_v22, %v541_v17 }
 0x134   : > { %v567_v19 = vld.sshfl [vmem:[#allocation1] sm:$0xff pattern:$0x75316420]  ;;  %v521_v21 = vadd.f32 %v513_v12, %v500_v16 }
 0x135   : > { %711 = vmatmul.msk.f32.vlgmr.msra.gmra.mxu1 %vm335_vm0, %v567_v19  ;;  %598 = vst [vmem:[#allocation1] ss:$2 sm:$0xff] %v811_v2  ;;  %v733_v2 = vld [vmem:[%s942_s7] ss:$0 sm:$0xff] }
 0x136   : > { %600 = vst [vmem:[#allocation1 + $0x1] ss:$2 sm:$0xff] %v813_v3  ;;  %v542_v51 = vadd.f32 %v534_v43, %v521_v21 }
 0x137   : > { %564 = vst [vmem:[#allocation1 + $0x10] ss:$2 sm:$0xff] %v548_v23 }
 0x138   : > { %v549_v52 = vadd.f32 %v892_v22, %v542_v51 }
 0x13a   : > { %566 = vst [vmem:[#allocation1 + $0x11] ss:$2 sm:$0xff] %v549_v52 }
 0x13d   : > { %v605_v24 = vld.sshfl [vmem:[#allocation1] sm:$0xff pattern:$0x75316420] }
 0x13e   : > { %713 = vmatmul.msk.f32.vlgmr.msra.gmra.mxu2 %vm335_vm0, %v605_v24 }
 0x141   : > { %v568_v25 = vld.sshfl [vmem:[#allocation1 + $0x10] sm:$0xff pattern:$0x75316420] }
 0x142   : > { %712 = vmatmul.msk.f32.gmra.mxu1 %vm335_vm0, %v568_v25  ;;  %602 = vst [vmem:[#allocation1 + $0x10] ss:$2 sm:$0xff] %v815_v4 }
 0x143   : > { %604 = vst [vmem:[#allocation1 + $0x11] ss:$2 sm:$0xff] %v818_v5 }
 0x14a   : > { %v606_v26 = vld.sshfl [vmem:[#allocation1 + $0x10] sm:$0xff pattern:$0x75316420] }
 0x14b   : > { %714 = vmatmul.msk.f32.gmra.mxu2 %vm335_vm0, %v606_v26 }
 0x1b2   : > { %v590_v3 = vpop.f32.mrf.mxu1 }
 0x1b3   : > { %v591_v22 = vadd.f32 %v733_v2, %v590_v3 }
 0x1b5   : > { %v596_v27 = vmax.f32 %v591_v22, 0.0 }
 0x1bf   : > { %v593_v5 = vpop.f32.mrf.mxu1 }
 0x1c0   : > { %v594_v33 = vadd.f32 %v733_v2, %v593_v5 }
 0x1c1   : > { %v628_v28 = vpop.f32.mrf.mxu2 }
 0x1c2   : > { %v629_v4 = vadd.f32 %v628_v28, %v596_v27  ;;  %v597_v34 = vmax.f32 %v594_v33, 0.0 }
 0x1c4   : > { %v636_v29 = vrot.slane %v629_v4, 4  ;;  %641 = vst.msk [vmem:[%s305_s19] sm:$0xf] %vm640_vm3, %v629_v4 }
 0x1c6   : > { %642 = vst.msk [vmem:[%s305_s19 + $0x4] sm:$0xf] %vm640_vm3, %v636_v29 }
 0x1ce   : > { %v631_v35 = vpop.f32.mrf.mxu2 }
 0x1cf   : > { %v632_v36 = vadd.f32 %v631_v35, %v597_v34 }
 0x1d1   : > { %v637_v37 = vrot.slane %v632_v36, 4  ;;  %643 = vst.msk [vmem:[%s305_s19 + $0x8] sm:$0xf] %vm640_vm3, %v632_v36 }
 0x1d3   : > { %644 = vst.msk [vmem:[%s305_s19 + $0xc] sm:$0xf] %vm640_vm3, %v637_v37 }
 0x1d4 PF: > { %s18_s27 = sadd.s32 1, %s740_s27  }
 0x1d5   : > { %p15_p4 = scmp.ge.s32.totalorder %s18_s27, 4  }
 0x1d7   :  { %17 = sbr.rel (!%p15_p4) target bundleno = 1 (0x1), region = 92 }

// kernel: shufflenet_forward_pallas.9
= control target key start
LH: loop header
LB: loop body
LE: loop exit
PB: predicated region body
PF: predicated region fallthrough
CT: control target
= control target key end

     0   :  { %s902_s17 = smov 0   ;;  %s1048_s0 = inlined_call_operand.vmem [shape: f32[2,4,4,32], index: 0, kind: input, shape index: {}]   ;;  %s1049_s1 = inlined_call_operand.vmem [shape: f32[3,3,32], index: 1, kind: input, shape index: {}]   ;;  %s1050_s2 = inlined_call_operand.vmem [shape: f32[1,32], index: 2, kind: input, shape index: {}]   ;;  %s1051_s3 = inlined_call_operand.vmem [shape: f32[32,64], index: 3, kind: input, shape index: {}]   ;;  %s1052_s4 = inlined_call_operand.vmem [shape: f32[1,64], index: 4, kind: input, shape index: {}]   ;;  %s1053_s5 = inlined_call_operand.vmem [shape: f32[32,32], index: 5, kind: input, shape index: {}]   ;;  %s1054_s6 = inlined_call_operand.vmem [shape: f32[1,32], index: 6, kind: input, shape index: {}]   ;;  %s1055_s7 = inlined_call_operand.vmem [shape: f32[3,3,32], index: 7, kind: input, shape index: {}]   ;;  %s1056_s8 = inlined_call_operand.vmem [shape: f32[1,32], index: 8, kind: input, shape index: {}]   ;;  %s1057_s9 = inlined_call_operand.vmem [shape: f32[32,64], index: 9, kind: input, shape index: {}]   ;;  %s1058_s10 = inlined_call_operand.vmem [shape: f32[1,64], index: 10, kind: input, shape index: {}]   ;;  %s1059_s11 = inlined_call_operand.vmem [shape: f32[2,2,2,64], index: 11, kind: output, shape index: {}]  }
   0x1 LB: > { %s800_s18 = sadd.s32 4294967295, %s839_s17   ;;  %p804_p0 = scmp.ge.s32.totalorder %s839_s17, 1  ;;  %s839_s17 = sphi %s902_s17, %s21_s17  }
   0x2   : > { %p337_p1 = scmp.lt.s32.totalorder %s839_s17, 3 }
   0x4   : > { %p338_p2 = pnand %p804_p0, %p337_p1 }
   0x5   : > { %p377_p3 = scmp.lt.s32.totalorder (!%p338_p2), %s800_s18, 1 }
   0x6   : > { %341 = sbr.rel (%p338_p2) target bundleno = 372 (0x174), region = 64 }
   0xb   : > { %v531_v0 = vld [vmem:[%s1053_s5 + $0x18] sm:$0xff]  ;;  %v530_v1 = vld [vmem:[%s1053_s5 + $0x10] sm:$0xff]  ;;  %vm395_vm0 = vcmask 259072   ;;  %v529_v2 = vld [vmem:[%s1053_s5 + $0x8] sm:$0xff]  ;;  %s1061_s18 = smov (!%p377_p3, %s800_s18), 1  ;;  %v841_v4 = vmov 0.0  }
   0xc   : > { %565 = vmatpush.msra.mxu1 %v531_v0  ;;  %817 = vmatpush.msra.mxu3 %v531_v0  ;;  %v391_v3 = vld [vmem:[%s1049_s1] sm:$0x7]  ;;  %396 = vst.msk [vmem:[#allocation2] sm:$0x3f] %vm395_vm0, %v841_v4  ;;  %s815_s29 = sshll.u32 %s1061_s18, 4  ;;  %vm403_vm1 = vcmask 257024  }
   0xd   : > { %v528_v5 = vld [vmem:[%s1053_s5] sm:$0xff]  ;;  %397 = vst.msk [vmem:[#allocation2 + $0x8] sm:$0x3f] %vm395_vm0, %v841_v4  ;;  %s381_s13 = scalar_lea.vmem %s1048_s0, %s815_s29  ;;  %v411_v6 = vperm.slane %v391_v3, 0  ;;  %v418_v7 = vperm.slane %v391_v3, 1  ;;  %v427_v8 = vperm.slane %v391_v3, 2 }
   0xe   : > { %566 = vmatpush.msra.mxu1 %v530_v1  ;;  %818 = vmatpush.msra.mxu3 %v530_v1  ;;  %398 = vst.msk [vmem:[#allocation2 + $0x10] sm:$0x3f] %vm395_vm0, %v841_v4  ;;  %v937_v9 = vld [vmem:[%s381_s13] sm:$0xf]  ;;  %v941_v10 = vld [vmem:[%s381_s13 + $0x4] sm:$0xf] }
   0xf   : > { %399 = vst.msk [vmem:[#allocation2 + $0x18] sm:$0x3f] %vm395_vm0, %v841_v4  ;;  %v945_v11 = vld [vmem:[%s381_s13 + $0x8] sm:$0xf]  ;;  %v947_v12 = vld [vmem:[%s381_s13 + $0xc] sm:$0xf] }
  0x10   : > { %567 = vmatpush.msra.mxu1 %v529_v2  ;;  %819 = vmatpush.msra.mxu3 %v529_v2  ;;  %400 = vst.msk [vmem:[#allocation2 + $0x20] sm:$0x3f] %vm395_vm0, %v841_v4  ;;  %v392_v13 = vld [vmem:[%s1049_s1 + $0x4] sm:$0x7]  ;;  %v393_v19 = vld [vmem:[%s1049_s1 + $0x8] sm:$0x7] }
  0x11   : > { %404 = vst.msk [vmem:[#allocation2 + $0x9] sm:$0xf] %vm403_vm1, %v937_v9  ;;  %v435_v22 = vperm.slane %v392_v13, 0  ;;  %v444_v23 = vperm.slane %v392_v13, 1  ;;  %v453_v25 = vperm.slane %v392_v13, 2  ;;  %v462_v26 = vperm.slane %v393_v19, 0 }
  0x12   : > { %568 = vmatpush.msra.mxu1 %v528_v5  ;;  %820 = vmatpush.msra.mxu3 %v528_v5  ;;  %405 = vst.msk [vmem:[#allocation2 + $0x11] sm:$0xf] %vm403_vm1, %v941_v10  ;;  %v471_v27 = vperm.slane %v393_v19, 1  ;;  %v480_v46 = vperm.slane %v393_v19, 2  ;;  %v394_v57 = vld [vmem:[%s1050_s2] sm:$0x1] }
  0x13   : > { %v408_v14 = vld [vmem:[#allocation2] ss:$2 sm:$0x3]  ;;  %v415_v16 = vld [vmem:[#allocation2 + $0x1] ss:$2 sm:$0x3] }
  0x14   : > { %v412_v15 = vmul.f32 %v411_v6, %v408_v14  ;;  %406 = vst.msk [vmem:[#allocation2 + $0x19] sm:$0xf] %vm403_vm1, %v945_v11  ;;  %v419_v17 = vmul.f32 %v418_v7, %v415_v16  ;;  %v424_v18 = vld [vmem:[#allocation2 + $0x2] ss:$2 sm:$0x3]  ;;  %v486_v3 = vperm.slane %v394_v57, 0 }
  0x15   : > { %407 = vst.msk [vmem:[#allocation2 + $0x21] sm:$0xf] %vm403_vm1, %v947_v12  ;;  %v428_v20 = vmul.f32 %v427_v8, %v424_v18  ;;  %vm504_vm2 = vcmask 261120   ;;  %s816_s16 = sshll.u32 %s1061_s18, 2  ;;  %vm722_vm3 = vcmask 517120  }
  0x16   : > { %v421_v21 = vadd.f32 %v419_v17, %v412_v15  ;;  %588 = vst.msk [vmem:[#allocation3] sm:$0x3f] %vm395_vm0, %v841_v4  ;;  %s386_s21 = scalar_lea.vmem %s1059_s11, %s816_s16 }
  0x17   : > { %589 = vst.msk [vmem:[#allocation3 + $0x8] sm:$0x3f] %vm395_vm0, %v841_v4 }
  0x18   : > { %v430_v24 = vadd.f32 %v428_v20, %v421_v21  ;;  %v432_v28 = vld [vmem:[#allocation2 + $0x8] ss:$2 sm:$0x3]  ;;  %v441_v29 = vld [vmem:[#allocation2 + $0x9] ss:$2 sm:$0x3] }
  0x19   : > { %v410_v30 = vld [vmem:[#allocation2 + $0x10] ss:$2 sm:$0x3]  ;;  %v417_v31 = vld [vmem:[#allocation2 + $0x11] ss:$2 sm:$0x3]  ;;  %v436_v32 = vmul.f32 %v435_v22, %v432_v28  ;;  %v445_v33 = vmul.f32 %v444_v23, %v441_v29 }
  0x1a   : > { %v413_v34 = vmul.f32 %v411_v6, %v410_v30  ;;  %v420_v35 = vmul.f32 %v418_v7, %v417_v31  ;;  %v426_v36 = vld [vmem:[#allocation2 + $0x12] ss:$2 sm:$0x3]  ;;  %v450_v41 = vld [vmem:[#allocation2 + $0xa] ss:$2 sm:$0x3] }
  0x1b   : > { %v434_v37 = vld [vmem:[#allocation2 + $0x18] ss:$2 sm:$0x3]  ;;  %v429_v38 = vmul.f32 %v427_v8, %v426_v36  ;;  %v438_v39 = vadd.f32 %v436_v32, %v430_v24  ;;  %v443_v40 = vld [vmem:[#allocation2 + $0x19] ss:$2 sm:$0x3]  ;;  %v454_v44 = vmul.f32 %v453_v25, %v450_v41 }
  0x1c   : > { %v422_v42 = vadd.f32 %v420_v35, %v413_v34  ;;  %v437_v43 = vmul.f32 %v435_v22, %v434_v37  ;;  %v459_v45 = vld [vmem:[#allocation2 + $0x10] ss:$2 sm:$0x3]  ;;  %v452_v48 = vld [vmem:[#allocation2 + $0x1a] ss:$2 sm:$0x3]  ;;  %v446_v52 = vmul.f32 %v444_v23, %v443_v40 }
  0x1d   : > { %v447_v47 = vadd.f32 %v445_v33, %v438_v39  ;;  %v463_v49 = vmul.f32 %v462_v26, %v459_v45  ;;  %v468_v50 = vld [vmem:[#allocation2 + $0x11] ss:$2 sm:$0x3]  ;;  %v477_v53 = vld [vmem:[#allocation2 + $0x12] ss:$2 sm:$0x3]  ;;  %v455_v59 = vmul.f32 %v453_v25, %v452_v48 }
  0x1e   : > { %v431_v51 = vadd.f32 %v429_v38, %v422_v42  ;;  %v461_v55 = vld [vmem:[#allocation2 + $0x20] ss:$2 sm:$0x3]  ;;  %v472_v56 = vmul.f32 %v471_v27, %v468_v50  ;;  %590 = vst.msk [vmem:[#allocation3 + $0x10] sm:$0x3f] %vm395_vm0, %v841_v4  ;;  %v481_v62 = vmul.f32 %v480_v46, %v477_v53  ;;  %v684_v32 = vld [vmem:[%s1057_s9 + $0x18] sm:$0xff] }
  0x1f   : > { %v456_v54 = vadd.f32 %v454_v44, %v447_v47  ;;  %591 = vst.msk [vmem:[#allocation3 + $0x18] sm:$0x3f] %vm395_vm0, %v841_v4  ;;  %v470_v61 = vld [vmem:[#allocation2 + $0x21] ss:$2 sm:$0x3]  ;;  %v464_v0 = vmul.f32 %v462_v26, %v461_v55  ;;  %v683_v33 = vld [vmem:[%s1057_s9 + $0x10] sm:$0xff]  ;;  %709 = vmatpush.msra.mxu2 %v684_v32 }
  0x20   : > { %v439_v58 = vadd.f32 %v437_v43, %v431_v51  ;;  %592 = vst.msk [vmem:[#allocation3 + $0x20] sm:$0x3f] %vm395_vm0, %v841_v4  ;;  %v479_v2 = vld [vmem:[#allocation2 + $0x22] ss:$2 sm:$0x3]  ;;  %v473_v6 = vmul.f32 %v471_v27, %v470_v61  ;;  %v493_v35 = vld [vmem:[%s1051_s3 + $0x18] sm:$0xff] }
  0x21   : > { %v465_v60 = vadd.f32 %v463_v49, %v456_v54  ;;  %v482_v13 = vmul.f32 %v480_v46, %v479_v2  ;;  %v599_v24 = vld [vmem:[#allocation3] ss:$2 sm:$0x3]  ;;  %v682_v37 = vld [vmem:[%s1057_s9 + $0x8] sm:$0xff]  ;;  %519 = vmatpush.msra.mxu0 %v493_v35  ;;  %v585_v38 = vld [vmem:[%s1055_s7 + $0x4] sm:$0x7]  ;;  %710 = vmatpush.msra.mxu2 %v683_v33 }
  0x22   : > { %v448_v63 = vadd.f32 %v446_v52, %v439_v58  ;;  %v615_v34 = vld [vmem:[#allocation3 + $0x2] ss:$2 sm:$0x3]  ;;  %v681_v41 = vld [vmem:[%s1057_s9] sm:$0xff]  ;;  %v1015_v42 = vld [vmem:[%s1055_s7 + $0x8] sm:$0x7] }
  0x23   : > { %v474_v1 = vadd.f32 %v472_v56, %v465_v60  ;;  %711 = vmatpush.msra.mxu2 %v682_v37  ;;  %v626_v43 = vperm.slane %v585_v38, 0  ;;  %v635_v45 = vperm.slane %v585_v38, 1  ;;  %v644_v46 = vperm.slane %v585_v38, 2  ;;  %v492_v48 = vld [vmem:[%s1051_s3 + $0x10] sm:$0xff]  ;;  %v491_v49 = vld [vmem:[%s1051_s3 + $0x8] sm:$0xff] }
  0x24   : > { %v457_v5 = vadd.f32 %v455_v59, %v448_v63  ;;  %v653_v47 = vperm.slane %v1015_v42, 0  ;;  %520 = vmatpush.msra.mxu0 %v492_v48  ;;  %v662_v63 = vperm.slane %v1015_v42, 1  ;;  %v831_v38 = vld [vmem:[%s1052_s4] ss:$0 sm:$0xff] }
  0x25   : > { %v483_v7 = vadd.f32 %v481_v62, %v474_v1  ;;  %712 = vmatpush.msra.mxu2 %v681_v41  ;;  %v832_v41 = vld [vmem:[%s1058_s10] ss:$0 sm:$0xff] }
  0x26   : > { %v466_v8 = vadd.f32 %v464_v0, %v457_v5  ;;  %521 = vmatpush.msra.mxu0 %v491_v49 }
  0x27   : > { %v488_v14 = vadd.f32 %v486_v3, %v483_v7 }
  0x28   : > { %v475_v15 = vadd.f32 %v473_v6, %v466_v8  ;;  %v490_v8 = vld [vmem:[%s1051_s3] sm:$0xff] }
  0x29   : > { %500 = vst [vmem:[#allocation1] ss:$4 sm:$0xff] %v488_v14  ;;  %522 = vmatpush.msra.mxu0 %v490_v8 }
  0x2a   : > { %v484_v16 = vadd.f32 %v482_v13, %v475_v15  ;;  %544 = vst [vmem:[#allocation1 + $0x10] ss:$2 sm:$0xff] %v945_v11  ;;  %v584_v11 = vld [vmem:[%s1055_s7] sm:$0x7] }
  0x2b   : > { %v602_v21 = vperm.slane %v584_v11, 0  ;;  %v609_v22 = vperm.slane %v584_v11, 1  ;;  %v618_v27 = vperm.slane %v584_v11, 2  ;;  %v587_v13 = vld [vmem:[%s1056_s8] sm:$0x1] }
  0x2c   : > { %v489_v17 = vadd.f32 %v486_v3, %v484_v16  ;;  %v671_v16 = vperm.slane %v1015_v42, 2 }
  0x2d   : > { %v603_v29 = vmul.f32 %v602_v21, %v599_v24  ;;  %v619_v40 = vmul.f32 %v618_v27, %v615_v34 }
  0x2e   : > { %502 = vst [vmem:[#allocation1 + $0x1] ss:$4 sm:$0xff] %v489_v17 }
  0x2f   : > { %546 = vst [vmem:[#allocation1 + $0x11] ss:$2 sm:$0xff] %v947_v12  ;;  %v830_v12 = vld [vmem:[%s1054_s6] ss:$0 sm:$0xff] }
  0x35   : > { %v978_v4 = vld.sshfl [vmem:[#allocation1] sm:$0xff pattern:$0x73625140] }
  0x36   : > { %540 = vst [vmem:[#allocation1] ss:$2 sm:$0xff] %v937_v9  ;;  %v548_v18 = vld.sshfl [vmem:[#allocation1 + $0x10] sm:$0xff pattern:$0x75316420]  ;;  %809 = vmatmul.msk.f32.vlgmr.msra.gmra.mxu0 %vm504_vm2, %v978_v4 }
  0x37   : > { %542 = vst [vmem:[#allocation1 + $0x1] ss:$2 sm:$0xff] %v941_v10  ;;  %811 = vmatmul.msk.f32.vlgmr.msra.gmra.mxu3 %vm504_vm2, %v548_v18  ;;  %v606_v10 = vld [vmem:[#allocation3 + $0x1] ss:$2 sm:$0x3] }
  0x38   : > { %v610_v30 = vmul.f32 %v609_v22, %v606_v10 }
  0x3a   : > { %v612_v39 = vadd.f32 %v610_v30, %v603_v29 }
  0x3c   : > { %v621_v44 = vadd.f32 %v619_v40, %v612_v39 }
  0x3e   : > { %v547_v19 = vld.sshfl [vmem:[#allocation1] sm:$0xff pattern:$0x75316420] }
  0x3f   : > { %810 = vmatmul.msk.f32.vlgmr.msra.gmra.mxu1 %vm504_vm2, %v547_v19 }
  0xb3   : > { %v524_v39 = vpop.f32.mrf.mxu0 }
  0xb4   : > { %v525_v40 = vadd.f32 %v831_v38, %v524_v39 }
  0xba   : > { %v573_v20 = vpop.f32.mrf.mxu3 }
  0xbb   : > { %v574_v9 = vadd.f32 %v830_v12, %v573_v20 }
  0xbc   : > { %v570_v23 = vpop.f32.mrf.mxu1 }
  0xbd   : > { %v571_v25 = vadd.f32 %v830_v12, %v570_v23  ;;  %v577_v26 = vmax.f32 %v574_v9, 0.0 }
  0xbf   : > { %v576_v28 = vmax.f32 %v571_v25, 0.0  ;;  %v581_v31 = vrot.slane %v577_v26, 4  ;;  %597 = vst.msk [vmem:[#allocation3 + $0x19] sm:$0xf] %vm403_vm1, %v577_v26 }
  0xc1   : > { %v580_v36 = vrot.slane %v576_v28, 4  ;;  %595 = vst.msk [vmem:[#allocation3 + $0x9] sm:$0xf] %vm403_vm1, %v576_v28 }
  0xc2   : > { %598 = vst.msk [vmem:[#allocation3 + $0x21] sm:$0xf] %vm403_vm1, %v581_v31 }
  0xc3   : > { %596 = vst.msk [vmem:[#allocation3 + $0x11] sm:$0xf] %vm403_vm1, %v580_v36 }
  0xc6   : > { %v625_v54 = vld [vmem:[#allocation3 + $0x18] ss:$2 sm:$0x3]  ;;  %v634_v6 = vld [vmem:[#allocation3 + $0x19] ss:$2 sm:$0x3] }
  0xc7   : > { %v628_v0 = vmul.f32 %v626_v43, %v625_v54  ;;  %v643_v19 = vld [vmem:[#allocation3 + $0x1a] ss:$2 sm:$0x3] }
  0xc8   : > { %v623_v50 = vld [vmem:[#allocation3 + $0x8] ss:$2 sm:$0x3]  ;;  %v632_v51 = vld [vmem:[#allocation3 + $0x9] ss:$2 sm:$0x3]  ;;  %v646_v25 = vmul.f32 %v644_v46, %v643_v19 }
  0xc9   : > { %v627_v52 = vmul.f32 %v626_v43, %v623_v50  ;;  %v641_v53 = vld [vmem:[#allocation3 + $0xa] ss:$2 sm:$0x3]  ;;  %v636_v61 = vmul.f32 %v635_v45, %v632_v51  ;;  %v652_v9 = vld [vmem:[#allocation3 + $0x20] ss:$2 sm:$0x3] }
  0xca   : > { %v601_v55 = vld [vmem:[#allocation3 + $0x10] ss:$2 sm:$0x3]  ;;  %v608_v56 = vld [vmem:[#allocation3 + $0x11] ss:$2 sm:$0x3]  ;;  %v645_v5 = vmul.f32 %v644_v46, %v641_v53  ;;  %v655_v29 = vmul.f32 %v653_v47, %v652_v9 }
  0xcb   : > { %v604_v57 = vmul.f32 %v602_v21, %v601_v55  ;;  %v611_v58 = vmul.f32 %v609_v22, %v608_v56  ;;  %v617_v59 = vld [vmem:[#allocation3 + $0x12] ss:$2 sm:$0x3]  ;;  %v629_v60 = vadd.f32 %v627_v52, %v621_v44  ;;  %v659_v7 = vld [vmem:[#allocation3 + $0x11] ss:$2 sm:$0x3]  ;;  %v637_v21 = vmul.f32 %v635_v45, %v634_v6 }
  0xcc   : > { %v650_v62 = vld [vmem:[#allocation3 + $0x10] ss:$2 sm:$0x3]  ;;  %v620_v2 = vmul.f32 %v618_v27, %v617_v59  ;;  %v663_v12 = vmul.f32 %v662_v63, %v659_v7  ;;  %v677_v22 = vperm.slane %v587_v13, 0  ;;  %v527_v43 = vmax.f32 %v525_v40, 0.0 }
  0xcd   : > { %v613_v1 = vadd.f32 %v611_v58, %v604_v57  ;;  %v638_v3 = vadd.f32 %v636_v61, %v629_v60  ;;  %v654_v15 = vmul.f32 %v653_v47, %v650_v62  ;;  %v668_v18 = vld [vmem:[#allocation3 + $0x12] ss:$2 sm:$0x3]  ;;  %v661_v26 = vld [vmem:[#allocation3 + $0x21] ss:$2 sm:$0x3] }
  0xce   : > { %v672_v24 = vmul.f32 %v671_v16, %v668_v18  ;;  %v670_v30 = vld [vmem:[#allocation3 + $0x22] ss:$2 sm:$0x3]  ;;  %v664_v33 = vmul.f32 %v662_v63, %v661_v26 }
  0xcf   : > { %v647_v14 = vadd.f32 %v645_v5, %v638_v3  ;;  %v622_v17 = vadd.f32 %v620_v2, %v613_v1  ;;  %v673_v34 = vmul.f32 %v671_v16, %v670_v30 }
  0xd1   : > { %v656_v11 = vadd.f32 %v654_v15, %v647_v14  ;;  %v630_v20 = vadd.f32 %v628_v0, %v622_v17 }
  0xd3   : > { %v665_v23 = vadd.f32 %v663_v12, %v656_v11  ;;  %v639_v10 = vadd.f32 %v637_v21, %v630_v20 }
  0xd5   : > { %v674_v27 = vadd.f32 %v672_v24, %v665_v23  ;;  %v648_v28 = vadd.f32 %v646_v25, %v639_v10 }
  0xd7   : > { %v679_v31 = vadd.f32 %v677_v22, %v674_v27  ;;  %v657_v32 = vadd.f32 %v655_v29, %v648_v28 }
  0xd9   : > { %691 = vst [vmem:[#allocation1] ss:$4 sm:$0xff] %v679_v31  ;;  %v666_v4 = vadd.f32 %v664_v33, %v657_v32 }
  0xdb   : > { %v675_v35 = vadd.f32 %v673_v34, %v666_v4 }
  0xdd   : > { %v680_v36 = vadd.f32 %v677_v22, %v675_v35 }
  0xdf   : > { %693 = vst [vmem:[#allocation1 + $0x1] ss:$4 sm:$0xff] %v680_v36 }
  0xe6   : > { %v694_v37 = vld.sshfl [vmem:[#allocation1] sm:$0xff pattern:$0x73625140] }
  0xe7   : > { %812 = vmatmul.msk.f32.vlgmr.msra.gmra.mxu2 %vm504_vm2, %v694_v37 }
 0x16a   : > { %v714_v42 = vpop.f32.mrf.mxu2 }
 0x16b   : > { %v715_v44 = vadd.f32 %v832_v41, %v714_v42 }
 0x16d   : > { %v717_v45 = vmax.f32 %v715_v44, 0.0 }
 0x16f   : > { %v718_v46 = vadd.f32 %v717_v45, %v527_v43 }
 0x171   : > { %v720_v47 = vrot.slane %v718_v46, 2  ;;  %723 = vst.msk [vmem:[%s386_s21] sm:$0x3] %vm722_vm3, %v718_v46 }
 0x173   : > { %724 = vst.msk [vmem:[%s386_s21 + $0x2] sm:$0x3] %vm722_vm3, %v720_v47 }
 0x174 PF: > { %s21_s17 = sadd.s32 1, %s839_s17  }
 0x175   : > { %p18_p4 = scmp.ge.s32.totalorder %s21_s17, 4  }
 0x177   :  { %20 = sbr.rel (!%p18_p4) target bundleno = 1 (0x1), region = 133 }

// kernel: shufflenet_forward_pallas.11
= control target key start
LH: loop header
LB: loop body
LE: loop exit
PB: predicated region body
PF: predicated region fallthrough
CT: control target
= control target key end

     0   :  { %s301_s0 = inlined_call_operand.vmem [shape: f32[2,1,1,128], index: 0, kind: input, shape index: {}]   ;;  %s302_s1 = inlined_call_operand.vmem [shape: f32[128,128], index: 1, kind: input, shape index: {}]   ;;  %s303_s2 = inlined_call_operand.vmem [shape: f32[1,128], index: 2, kind: input, shape index: {}]   ;;  %s304_s3 = inlined_call_operand.vmem [shape: f32[128,10], index: 3, kind: input, shape index: {}]   ;;  %s305_s4 = inlined_call_operand.vmem [shape: f32[1,10], index: 4, kind: input, shape index: {}]   ;;  %s306_s5 = inlined_call_operand.hbm [shape: f32[2,10], index: 5, kind: output, shape index: {}]  }
   0x1   :  { %v38_v0 = vld [vmem:[%s302_s1 + $0x78] sm:$0xff]  ;;  %v37_v1 = vld [vmem:[%s302_s1 + $0x70] sm:$0xff]  ;;  %v36_v2 = vld [vmem:[%s302_s1 + $0x68] sm:$0xff] }
   0x2   :  { %50 = vmatpush.msra.mxu0 %v38_v0  ;;  %v35_v3 = vld [vmem:[%s302_s1 + $0x60] sm:$0xff]  ;;  %v34_v6 = vld [vmem:[%s302_s1 + $0x58] sm:$0xff]  ;;  %v86_v8 = vld [vmem:[%s304_s3 + $0x70] sm:$0xff] }
   0x3   :  { %v21_v4 = vld [vmem:[%s301_s0] sm:$0x1]  ;;  %v22_v5 = vld [vmem:[%s301_s0 + $0x1] sm:$0x1]  ;;  %v87_v7 = vld [vmem:[%s304_s3 + $0x78] sm:$0xff] }
   0x4   :  { %51 = vmatpush.msra.mxu0 %v37_v1  ;;  %45 = vst [vmem:[#allocation1] ss:$9 sm:$0xff] %v21_v4  ;;  %92 = vmatpush.msra.mxu1 %v87_v7  ;;  %v33_v9 = vld [vmem:[%s302_s1 + $0x50] sm:$0xff]  ;;  %v85_v10 = vld [vmem:[%s304_s3 + $0x68] sm:$0xff]  ;;  %v84_v12 = vld [vmem:[%s304_s3 + $0x60] sm:$0xff] }
   0x5   :  { %47 = vst [vmem:[#allocation1 + $0x1] ss:$9 sm:$0xff] %v22_v5  ;;  %v32_v11 = vld [vmem:[%s302_s1 + $0x48] sm:$0xff] }
   0x6   :  { %52 = vmatpush.msra.mxu0 %v36_v2  ;;  %93 = vmatpush.msra.mxu1 %v86_v8 }
   0x8   :  { %53 = vmatpush.msra.mxu0 %v35_v3  ;;  %94 = vmatpush.msra.mxu1 %v85_v10 }
   0xa   :  { %54 = vmatpush.msra.mxu0 %v34_v6 }
   0xc   :  { %55 = vmatpush.msra.mxu0 %v33_v9 }
   0xd   :  { %10 = vsyncpa [#allocation3], 0  ;;  %v31_v13 = vld [vmem:[%s302_s1 + $0x40] sm:$0xff]  ;;  %v83_v14 = vld [vmem:[%s304_s3 + $0x58] sm:$0xff]  ;;  %95 = vmatpush.msra.mxu1 %v84_v12  ;;  %s159_s12 = smov [#allocation2]   ;;  %s121_s15 = sshll.u32 %s306_s5, 4  ;;  %s122_s15 = int_to_ptr.hbm [resolvable:$true] %s121_s15 }
   0xe   :  { %56 = vmatpush.msra.mxu0 %v32_v11  ;;  %v30_v15 = vld [vmem:[%s302_s1 + $0x38] sm:$0xff]  ;;  %v82_v16 = vld [vmem:[%s304_s3 + $0x50] sm:$0xff]  ;;  %v81_v18 = vld [vmem:[%s304_s3 + $0x48] sm:$0xff]  ;;  %s119_s0 = sshll.u32 %s159_s12, 4  ;;  %vm112_vm0 = vcmask 74752   ;;  %s120_s0 = int_to_ptr.vmem [resolvable:$true] %s119_s0 }
   0xf   :  { %96 = vmatpush.msra.mxu1 %v83_v14  ;;  %v29_v17 = vld [vmem:[%s302_s1 + $0x30] sm:$0xff]  ;;  %v28_v19 = vld [vmem:[%s302_s1 + $0x28] sm:$0xff]  ;;  %v80_v20 = vld [vmem:[%s304_s3 + $0x40] sm:$0xff] }
  0x10   :  { %57 = vmatpush.msra.mxu0 %v31_v13  ;;  %v27_v21 = vld [vmem:[%s302_s1 + $0x20] sm:$0xff]  ;;  %v79_v22 = vld [vmem:[%s304_s3 + $0x38] sm:$0xff]  ;;  %v78_v24 = vld [vmem:[%s304_s3 + $0x30] sm:$0xff] }
  0x11   :  { %97 = vmatpush.msra.mxu1 %v82_v16  ;;  %v26_v23 = vld [vmem:[%s302_s1 + $0x18] sm:$0xff]  ;;  %v25_v25 = vld [vmem:[%s302_s1 + $0x10] sm:$0xff]  ;;  %v77_v26 = vld [vmem:[%s304_s3 + $0x28] sm:$0xff] }
  0x12   :  { %58 = vmatpush.msra.mxu0 %v30_v15  ;;  %v24_v27 = vld [vmem:[%s302_s1 + $0x8] sm:$0xff]  ;;  %v76_v28 = vld [vmem:[%s304_s3 + $0x20] sm:$0xff]  ;;  %v75_v30 = vld [vmem:[%s304_s3 + $0x18] sm:$0xff] }
  0x13   :  { %98 = vmatpush.msra.mxu1 %v81_v18  ;;  %v23_v29 = vld [vmem:[%s302_s1] sm:$0xff]  ;;  %v74_v32 = vld [vmem:[%s304_s3 + $0x10] sm:$0xff]  ;;  %v73_v33 = vld [vmem:[%s304_s3 + $0x8] sm:$0xff] }
  0x14   :  { %59 = vmatpush.msra.mxu0 %v29_v17  ;;  %v48_v31 = vld [vmem:[#allocation1] sm:$0xff] }
  0x15   :  { %99 = vmatpush.msra.mxu1 %v80_v20  ;;  %v72_v34 = vld [vmem:[%s304_s3] sm:$0xff] }
  0x16   :  { %60 = vmatpush.msra.mxu0 %v28_v19  ;;  %v131_v35 = vld [vmem:[%s303_s2] ss:$0 sm:$0xff] }
  0x17   :  { %100 = vmatpush.msra.mxu1 %v79_v22  ;;  %v132_v39 = vld [vmem:[%s305_s4] ss:$0 sm:$0xff] }
  0x18   :  { %61 = vmatpush.msra.mxu0 %v27_v21 }
  0x19   :  { %101 = vmatpush.msra.mxu1 %v78_v24 }
  0x1a   :  { %62 = vmatpush.msra.mxu0 %v26_v23 }
  0x1b   :  { %102 = vmatpush.msra.mxu1 %v77_v26 }
  0x1c   :  { %63 = vmatpush.msra.mxu0 %v25_v25 }
  0x1d   :  { %103 = vmatpush.msra.mxu1 %v76_v28 }
  0x1e   :  { %64 = vmatpush.msra.mxu0 %v24_v27 }
  0x1f   :  { %104 = vmatpush.msra.mxu1 %v75_v30 }
  0x20   :  { %65 = vmatpush.msra.mxu0 %v23_v29 }
  0x21   :  { %66 = vmatmul.f32.vlgmr.msra.gmra.mxu0 %v48_v31  ;;  %105 = vmatpush.msra.mxu1 %v74_v32 }
  0x23   :  { %106 = vmatpush.msra.mxu1 %v73_v33 }
  0x25   :  { %107 = vmatpush.msra.mxu1 %v72_v34 }
  0x9e   :  { %v67_v36 = vpop.f32.mrf.mxu0 }
  0x9f   :  { %v68_v37 = vadd.f32 %v131_v35, %v67_v36 }
  0xa1   :  { %v70_v38 = vmax.f32 %v68_v37, 0.0 }
  0xa3   :  { %108 = vmatmul.f32.vlgmr.msra.gmra.mxu1 %v70_v38 }
 0x120   :  { %v109_v40 = vpop.f32.mrf.mxu1 }
 0x121   :  { %v110_v41 = vadd.f32 %v132_v39, %v109_v40 }
 0x123   :  { %113 = vst.msk [vmem:[#allocation2] sm:$0x3] %vm112_vm0, %v110_v41 }
 0x124   :  { %124 = dma.vmem_to_hbm [thread:$0]  %s120_s0, 32, %s122_s15, [#allocation3]  }
 0x125   :  { %157 = dma.done.wait [#allocation3], 32  }
 0x126   :  { %158 = vsyncadd [#allocation3], 4294967264 }
 0x127   :  { %129 = vsyncpa [#allocation3], 1 }

// kernel: shufflenet_forward_pallas.10
= control target key start
LH: loop header
LB: loop body
LE: loop exit
PB: predicated region body
PF: predicated region fallthrough
CT: control target
= control target key end

     0   :  { %16 = vsyncpa [#allocation5], 0  ;;  %s842_s17 = smov 0   ;;  %s975_s0 = inlined_call_operand.vmem [shape: f32[2,2,2,64], index: 0, kind: input, shape index: {}]   ;;  %s976_s1 = inlined_call_operand.vmem [shape: f32[3,3,64], index: 1, kind: input, shape index: {}]   ;;  %s977_s2 = inlined_call_operand.vmem [shape: f32[1,64], index: 2, kind: input, shape index: {}]   ;;  %s978_s3 = inlined_call_operand.vmem [shape: f32[64,128], index: 3, kind: input, shape index: {}]   ;;  %s979_s4 = inlined_call_operand.vmem [shape: f32[1,128], index: 4, kind: input, shape index: {}]   ;;  %s980_s5 = inlined_call_operand.vmem [shape: f32[64,64], index: 5, kind: input, shape index: {}]   ;;  %s981_s6 = inlined_call_operand.vmem [shape: f32[1,64], index: 6, kind: input, shape index: {}]   ;;  %s982_s7 = inlined_call_operand.vmem [shape: f32[3,3,64], index: 7, kind: input, shape index: {}]   ;;  %s983_s8 = inlined_call_operand.vmem [shape: f32[1,64], index: 8, kind: input, shape index: {}]   ;;  %s984_s9 = inlined_call_operand.vmem [shape: f32[64,128], index: 9, kind: input, shape index: {}]   ;;  %s985_s10 = inlined_call_operand.hbm [shape: f32[1,128], index: 10, kind: input, shape index: {}]   ;;  %s986_s11 = inlined_call_operand.vmem [shape: f32[2,1,1,128], index: 11, kind: output, shape index: {}]  }
   0x1 LB: > { %s702_s18 = sadd.s32 4294967295, %s778_s17   ;;  %p704_p0 = scmp.ge.s32.totalorder %s778_s17, 1  ;;  %s778_s17 = sphi %s842_s17, %s22_s17  }
   0x2   : > { %p289_p1 = scmp.lt.s32.totalorder %s778_s17, 3  ;;  %s328_s21 = sshll.u32 %s985_s10, 4  ;;  %s329_s21 = int_to_ptr.hbm [resolvable:$true] %s328_s21 }
   0x3   : > { %p725_p3 = scmp.eq.s32.totalorder %s702_s18, 0  ;;  %s780_s22 = smov [#allocation4]  }
   0x4   : > { %p290_p2 = pnand %p704_p0, %p289_p1  ;;  %s330_s23 = sshll.u32 %s780_s22, 4  ;;  %s331_s23 = int_to_ptr.vmem [resolvable:$true] %s330_s23 }
   0x6   : > { %p721_p4 = pneg %p290_p2  ;;  %351 = sbr.rel (%p290_p2) target bundleno = 319 (0x13f), region = 64 }
   0x8   : > { %p722_p5 = pnand %p725_p3, %p721_p4 }
   0xa   : > { %724 = dma.hbm_to_vmem [thread:$0]  (!%p722_p5), %s329_s21, 16, %s331_s23, [#allocation5]  }
   0xb   : > { %773 = dma.done.wait (%p725_p3), [#allocation5], 16  }
   0xc   : > { %775 = vsyncadd (%p725_p3), [#allocation5], 4294967280  ;;  %p390_p6 = scmp.lt.s32.totalorder %s702_s18, 1  ;;  %vm404_vm0 = vcmask 519168   ;;  %v781_v0 = vmov 0.0   ;;  %v503_v1 = vld [vmem:[%s980_s5 + $0x38] sm:$0xff] }
   0xd   : > { %405 = vst.msk [vmem:[#allocation2] sm:$0xf] %vm404_vm0, %v781_v0  ;;  %v502_v2 = vld [vmem:[%s980_s5 + $0x30] sm:$0xff]  ;;  %524 = vmatpush.msra.mxu1 %v503_v1  ;;  %v501_v3 = vld [vmem:[%s980_s5 + $0x28] sm:$0xff]  ;;  %v500_v6 = vld [vmem:[%s980_s5 + $0x20] sm:$0xff]  ;;  %vm410_vm1 = vcmask 517120  }
   0xe   : > { %s988_s18 = smov (!%p390_p6, %s702_s18), 1  ;;  %406 = vst.msk [vmem:[#allocation2 + $0x4] sm:$0xf] %vm404_vm0, %v781_v0  ;;  %v499_v7 = vld [vmem:[%s980_s5 + $0x18] sm:$0xff]  ;;  %v498_v8 = vld [vmem:[%s980_s5 + $0x10] sm:$0xff]  ;;  %v497_v9 = vld [vmem:[%s980_s5 + $0x8] sm:$0xff] }
   0xf   : > { %407 = vst.msk [vmem:[#allocation2 + $0x8] sm:$0xf] %vm404_vm0, %v781_v0  ;;  %s716_s24 = sshll.u32 %s988_s18, 2  ;;  %525 = vmatpush.msra.mxu1 %v502_v2  ;;  %v496_v10 = vld [vmem:[%s980_s5] sm:$0xff]  ;;  %vm471_vm2 = vcmask 523264   ;;  %v607_v12 = vld [vmem:[%s984_s9 + $0x38] sm:$0xff]  ;;  %s397_s30 = scalar_lea.vmem %s986_s11, %s988_s18 }
  0x10   : > { %544 = vst.msk [vmem:[#allocation3] sm:$0xf] %vm404_vm0, %v781_v0  ;;  %s394_s27 = scalar_lea.vmem %s975_s0, %s716_s24  ;;  %v606_v13 = vld [vmem:[%s984_s9 + $0x30] sm:$0xff]  ;;  %620 = vmatpush.msra.mxu2 %v607_v12  ;;  %v469_v14 = vld [vmem:[%s978_s3 + $0x38] sm:$0xff]  ;;  %v605_v16 = vld [vmem:[%s984_s9 + $0x28] sm:$0xff] }
  0x11   : > { %545 = vst.msk [vmem:[#allocation3 + $0x4] sm:$0xf] %vm404_vm0, %v781_v0  ;;  %v398_v4 = vld [vmem:[%s394_s27] sm:$0x3]  ;;  %v399_v5 = vld [vmem:[%s394_s27 + $0x2] sm:$0x3]  ;;  %526 = vmatpush.msra.mxu1 %v501_v3  ;;  %483 = vmatpush.msra.mxu0 %v469_v14 }
  0x12   : > { %546 = vst.msk [vmem:[#allocation3 + $0x8] sm:$0xf] %vm404_vm0, %v781_v0  ;;  %v468_v15 = vld [vmem:[%s978_s3 + $0x30] sm:$0xff]  ;;  %621 = vmatpush.msra.mxu2 %v606_v13  ;;  %v467_v17 = vld [vmem:[%s978_s3 + $0x28] sm:$0xff]  ;;  %v604_v18 = vld [vmem:[%s984_s9 + $0x20] sm:$0xff] }
  0x13   : > { %510 = vst [vmem:[#allocation1] ss:$4 sm:$0xff] %v398_v4  ;;  %527 = vmatpush.msra.mxu1 %v500_v6  ;;  %484 = vmatpush.msra.mxu0 %v468_v15  ;;  %v466_v19 = vld [vmem:[%s978_s3 + $0x20] sm:$0xff]  ;;  %v603_v20 = vld [vmem:[%s984_s9 + $0x18] sm:$0xff]  ;;  %v602_v24 = vld [vmem:[%s984_s9 + $0x10] sm:$0xff] }
  0x14   : > { %512 = vst [vmem:[#allocation1 + $0x1] ss:$4 sm:$0xff] %v399_v5  ;;  %622 = vmatpush.msra.mxu2 %v605_v16  ;;  %v465_v21 = vld [vmem:[%s978_s3 + $0x18] sm:$0xff]  ;;  %v400_v22 = vld [vmem:[%s976_s1] sm:$0x7]  ;;  %v601_v29 = vld [vmem:[%s984_s9 + $0x8] sm:$0xff] }
  0x15   : > { %411 = vst.msk [vmem:[#allocation2 + $0x5] sm:$0x3] %vm410_vm1, %v398_v4  ;;  %528 = vmatpush.msra.mxu1 %v499_v7  ;;  %485 = vmatpush.msra.mxu0 %v467_v17  ;;  %v413_v23 = vld [vmem:[#allocation2] ss:$2 sm:$0x1]  ;;  %v418_v27 = vrot.slane %v400_v22, 1 }
  0x16   : > { %412 = vst.msk [vmem:[#allocation2 + $0x9] sm:$0x3] %vm410_vm1, %v399_v5  ;;  %623 = vmatpush.msra.mxu2 %v604_v18  ;;  %v414_v25 = vmul.f32 %v413_v23, %v400_v22  ;;  %v416_v26 = vld [vmem:[#allocation2 + $0x1] ss:$2 sm:$0x1]  ;;  %v424_v28 = vrot.slane %v400_v22, 2 }
  0x17   : > { %529 = vmatpush.msra.mxu1 %v498_v8  ;;  %486 = vmatpush.msra.mxu0 %v466_v19  ;;  %v401_v30 = vld [vmem:[%s976_s1 + $0x4] sm:$0x7]  ;;  %v420_v31 = vmul.f32 %v418_v27, %v416_v26  ;;  %v423_v32 = vld [vmem:[#allocation2 + $0x2] ss:$2 sm:$0x1]  ;;  %v464_v56 = vld [vmem:[%s978_s3 + $0x10] sm:$0xff] }
  0x18   : > { %624 = vmatpush.msra.mxu2 %v603_v20  ;;  %v428_v33 = vld [vmem:[#allocation2 + $0x4] ss:$2 sm:$0x1]  ;;  %v426_v34 = vmul.f32 %v424_v28, %v423_v32  ;;  %v434_v36 = vrot.slane %v401_v30, 1  ;;  %v600_v37 = vld [vmem:[%s984_s9] sm:$0xff]  ;;  %v440_v40 = vrot.slane %v401_v30, 2 }
  0x19   : > { %530 = vmatpush.msra.mxu1 %v497_v9  ;;  %487 = vmatpush.msra.mxu0 %v465_v21  ;;  %v421_v38 = vadd.f32 %v420_v31, %v414_v25  ;;  %v429_v39 = vmul.f32 %v428_v33, %v401_v30  ;;  %v402_v44 = vld [vmem:[%s976_s1 + $0x8] sm:$0x7]  ;;  %v445_v45 = vld [vmem:[#allocation2 + $0x8] ss:$2 sm:$0x1]  ;;  %v462_v63 = vld [vmem:[%s978_s3] sm:$0xff] }
  0x1a   : > { %625 = vmatpush.msra.mxu2 %v602_v24  ;;  %v451_v48 = vrot.slane %v402_v44, 1  ;;  %v540_v49 = vld [vmem:[%s982_s7] sm:$0x7]  ;;  %v446_v52 = vmul.f32 %v445_v45, %v402_v44  ;;  %v457_v53 = vrot.slane %v402_v44, 2  ;;  %v463_v57 = vld [vmem:[%s978_s3 + $0x8] sm:$0xff] }
  0x1b   : > { %v513_v11 = vld.sshfl [vmem:[#allocation1] sm:$0xff pattern:$0x73625140]  ;;  %531 = vmatpush.msra.mxu1 %v496_v10  ;;  %v427_v42 = vadd.f32 %v426_v34, %v421_v38  ;;  %v556_v55 = vrot.slane %v540_v49, 1  ;;  %488 = vmatpush.msra.mxu0 %v464_v56  ;;  %v562_v4 = vrot.slane %v540_v49, 2 }
  0x1c   : > { %712 = vmatmul.msk.f32.vlgmr.msra.gmra.mxu1 %vm471_vm2, %v513_v11  ;;  %v432_v35 = vld [vmem:[#allocation2 + $0x5] ss:$2 sm:$0x1]  ;;  %626 = vmatpush.msra.mxu2 %v601_v29  ;;  %v439_v41 = vld [vmem:[#allocation2 + $0x6] ss:$2 sm:$0x1] }
  0x1d   : > { %v436_v43 = vmul.f32 %v434_v36, %v432_v35  ;;  %v430_v46 = vadd.f32 %v429_v39, %v427_v42  ;;  %v442_v47 = vmul.f32 %v440_v40, %v439_v41  ;;  %v449_v50 = vld [vmem:[#allocation2 + $0x9] ss:$2 sm:$0x1]  ;;  %v456_v54 = vld [vmem:[#allocation2 + $0xa] ss:$2 sm:$0x1]  ;;  %489 = vmatpush.msra.mxu0 %v463_v57 }
  0x1e   : > { %627 = vmatpush.msra.mxu2 %v600_v37  ;;  %v453_v59 = vmul.f32 %v451_v48, %v449_v50  ;;  %v551_v60 = vld [vmem:[#allocation3] ss:$2 sm:$0x1]  ;;  %v554_v61 = vld [vmem:[#allocation3 + $0x1] ss:$2 sm:$0x1]  ;;  %v459_v1 = vmul.f32 %v457_v53, %v456_v54 }
  0x1f   : > { %v437_v51 = vadd.f32 %v436_v43, %v430_v46  ;;  %v737_v62 = vld [vmem:[%s981_s6] ss:$0 sm:$0xff]  ;;  %v552_v2 = vmul.f32 %v551_v60, %v540_v49  ;;  %v558_v3 = vmul.f32 %v556_v55, %v554_v61  ;;  %v561_v7 = vld [vmem:[#allocation3 + $0x2] ss:$2 sm:$0x1]  ;;  %490 = vmatpush.msra.mxu0 %v462_v63 }
  0x20   : > { %v403_v8 = vld [vmem:[%s977_s2] sm:$0x1]  ;;  %v564_v13 = vmul.f32 %v562_v4, %v561_v7  ;;  %v541_v15 = vld [vmem:[%s982_s7 + $0x4] sm:$0x7]  ;;  %v542_v21 = vld [vmem:[%s982_s7 + $0x8] sm:$0x7] }
  0x21   : > { %v443_v58 = vadd.f32 %v442_v47, %v437_v51  ;;  %v559_v12 = vadd.f32 %v558_v3, %v552_v2  ;;  %v566_v16 = vld [vmem:[#allocation3 + $0x4] ss:$2 sm:$0x1]  ;;  %v572_v20 = vrot.slane %v541_v15, 1  ;;  %v578_v23 = vrot.slane %v541_v15, 2 }
  0x22   : > { %v567_v19 = vmul.f32 %v566_v16, %v541_v15  ;;  %v583_v24 = vld [vmem:[#allocation3 + $0x8] ss:$2 sm:$0x1]  ;;  %v589_v31 = vrot.slane %v542_v21, 1  ;;  %v595_v34 = vrot.slane %v542_v21, 2 }
  0x23   : > { %v447_v0 = vadd.f32 %v446_v52, %v443_v58  ;;  %v565_v18 = vadd.f32 %v564_v13, %v559_v12  ;;  %v584_v30 = vmul.f32 %v583_v24, %v542_v21  ;;  %v543_v40 = vld [vmem:[%s983_s8] sm:$0x1]  ;;  %v608_v46 = vld [vmem:[#allocation4] sm:$0x1] }
  0x24   : > { %v470_v43 = vld [vmem:[%s979_s4] sm:$0x1] }
  0x25   : > { %v454_v5 = vadd.f32 %v453_v59, %v447_v0  ;;  %v568_v22 = vadd.f32 %v567_v19, %v565_v18 }
  0x27   : > { %v460_v10 = vadd.f32 %v459_v1, %v454_v5 }
  0x29   : > { %v461_v14 = vadd.f32 %v460_v10, %v403_v8 }
  0x2b   : > { %711 = vmatmul.msk.f32.vlgmr.msra.gmra.mxu0 %vm471_vm2, %v461_v14 }
  0x99   : > { %v533_v6 = vpop.f32.mrf.mxu1 }
  0x9a   : > { %v534_v9 = vadd.f32 %v737_v62, %v533_v6 }
  0x9c   : > { %v536_v11 = vmax.f32 %v534_v9, 0.0 }
  0x9e   : > { %v538_v17 = vrot.slane %v536_v11, 2  ;;  %549 = vst.msk [vmem:[#allocation3 + $0x5] sm:$0x3] %vm410_vm1, %v536_v11 }
  0xa0   : > { %550 = vst.msk [vmem:[#allocation3 + $0x9] sm:$0x3] %vm410_vm1, %v538_v17 }
  0xa5   : > { %v570_v25 = vld [vmem:[#allocation3 + $0x5] ss:$2 sm:$0x1]  ;;  %v577_v26 = vld [vmem:[#allocation3 + $0x6] ss:$2 sm:$0x1] }
  0xa6   : > { %v574_v27 = vmul.f32 %v572_v20, %v570_v25  ;;  %v580_v29 = vmul.f32 %v578_v23, %v577_v26 }
  0xa7   : > { %v587_v32 = vld [vmem:[#allocation3 + $0x9] ss:$2 sm:$0x1]  ;;  %v594_v35 = vld [vmem:[#allocation3 + $0xa] ss:$2 sm:$0x1] }
  0xa8   : > { %v575_v28 = vadd.f32 %v574_v27, %v568_v22  ;;  %v591_v37 = vmul.f32 %v589_v31, %v587_v32  ;;  %v597_v39 = vmul.f32 %v595_v34, %v594_v35  ;;  %v492_v44 = vpop.f32.mrf.mxu0 }
  0xa9   : > { %v493_v45 = vadd.f32 %v492_v44, %v470_v43 }
  0xaa   : > { %v581_v33 = vadd.f32 %v580_v29, %v575_v28 }
  0xab   : > { %v495_v48 = vmax.f32 %v493_v45, 0.0 }
  0xac   : > { %v585_v36 = vadd.f32 %v584_v30, %v581_v33 }
  0xae   : > { %v592_v38 = vadd.f32 %v591_v37, %v585_v36 }
  0xb0   : > { %v598_v41 = vadd.f32 %v597_v39, %v592_v38 }
  0xb2   : > { %v599_v42 = vadd.f32 %v598_v41, %v543_v40 }
  0xb4   : > { %713 = vmatmul.msk.f32.vlgmr.msra.gmra.mxu2 %vm471_vm2, %v599_v42 }
 0x137   : > { %v629_v47 = vpop.f32.mrf.mxu2 }
 0x138   : > { %v630_v49 = vadd.f32 %v629_v47, %v608_v46 }
 0x13a   : > { %v632_v50 = vmax.f32 %v630_v49, 0.0 }
 0x13c   : > { %v633_v51 = vadd.f32 %v632_v50, %v495_v48 }
 0x13e   : > { %634 = vst [vmem:[%s397_s30] sm:$0x1] %v633_v51 }
 0x13f PF: > { %s22_s17 = sadd.s32 1, %s778_s17  }
 0x140   : > { %p19_p7 = scmp.ge.s32.totalorder %s22_s17, 4  }
 0x142   :  { %21 = sbr.rel (!%p19_p7) target bundleno = 1 (0x1), region = 116 }
 0x147   :  { %652 = vsyncpa [#allocation5], 1 }
 0x148   :  { %654 = vsyncpa [#allocation5 + $0x1], 1 }

// kernel: shufflenet_forward_pallas.6
= control target key start
LH: loop header
LB: loop body
LE: loop exit
PB: predicated region body
PF: predicated region fallthrough
CT: control target
= control target key end

     0   :  { %s4349_s12 = smov 0   ;;  %s5671_s0 = inlined_call_operand.vmem [shape: f32[2,32,32,3], index: 0, kind: input, shape index: {}]   ;;  %s5672_s1 = inlined_call_operand.vmem [shape: f32[9,3,16], index: 1, kind: input, shape index: {}]   ;;  %s5673_s2 = inlined_call_operand.vmem [shape: f32[1,16], index: 2, kind: input, shape index: {}]   ;;  %s5674_s3 = inlined_call_operand.vmem [shape: f32[2,8,8,16], index: 3, kind: output, shape index: {}]  }
   0x1 LB: > { %s3986_s13 = sadd.s32 4294967295, %s4325_s12   ;;  %p3990_p0 = scmp.ge.s32.totalorder %s4325_s12, 1  ;;  %s4325_s12 = sphi %s4349_s12, %s13_s12  }
   0x2   : > { %p137_p1 = scmp.lt.s32.totalorder %s4325_s12, 3 }
   0x4   : > { %p138_p2 = pnand %p3990_p0, %p137_p1 }
   0x5   : > { %p161_p3 = scmp.lt.s32.totalorder (!%p138_p2), %s3986_s13, 1 }
   0x6   : > { %141 = sbr.rel (%p138_p2) target bundleno = 911 (0x38f), region = 32 }
   0xb   : > { %v3995_v0 = vld [vmem:[%s5672_s1 + $0x4] sm:$0x7]  ;;  %vm826_vm0 = vcmask 1042432   ;;  %vm171_vm1 = vcmask 23552   ;;  %v4327_v1 = vmov 0.0   ;;  %s5676_s13 = smov (!%p161_p3, %s3986_s13), 1 }
   0xc   : > { %4304 = vmatpush.msk.msra.mxu1 %vm826_vm0, %v3995_v0  ;;  %4305 = vmatpush.msk.msra.mxu2 %vm826_vm0, %v3995_v0  ;;  %213 = vst.msk [vmem:[#allocation2 + $0x140] sm:$0xff] %vm171_vm1, %v4327_v1  ;;  %s4302_s16 = sshll.u32 %s5676_s13, 10  ;;  %v4062_v5 = vld [vmem:[%s5672_s1 + $0x8] sm:$0x7]  ;;  %v4096_v6 = vld [vmem:[%s5672_s1 + $0xc] sm:$0x7] }
   0xd   : > { %214 = vst.msk [vmem:[#allocation2 + $0x148] sm:$0xff] %vm171_vm1, %v4327_v1  ;;  %4306 = vmatpush.msk.msra.mxu3 %vm826_vm0, %v3995_v0  ;;  %3996 = vmatpush.msk.msra.mxu0 %vm826_vm0, %v3995_v0  ;;  %s4378_s19 = scalar_lea.vmem %s5671_s0, %s4302_s16  ;;  %v663_v7 = vld [vmem:[%s5672_s1] sm:$0x7]  ;;  %vm176_vm2 = vcmask 17408   ;;  %v4130_v18 = vld [vmem:[%s5672_s1 + $0x10] sm:$0x7] }
   0xe   : > { %215 = vst.msk [vmem:[#allocation2 + $0x150] sm:$0xff] %vm171_vm1, %v4327_v1  ;;  %v371_v2 = vld [vmem:[%s4378_s19 + $0xe0] sm:$0xff]  ;;  %v372_v3 = vld [vmem:[%s4378_s19 + $0xe8] sm:$0xff]  ;;  %4063 = vmatpush.msk.msrb.mxu2 %vm826_vm0, %v4062_v5  ;;  %4029 = vmatpush.msk.msrb.mxu1 %vm826_vm0, %v663_v7  ;;  %v373_v12 = vld [vmem:[%s4378_s19 + $0xf0] sm:$0xff]  ;;  %vm3392_vm3 = vcmask 130048   ;;  %vm3395_vm4 = vcmask 123904  }
   0xf   : > { %172 = vst.msk [vmem:[#allocation2] sm:$0xff] %vm171_vm1, %v4327_v1  ;;  %4097 = vmatpush.msk.msrb.mxu3 %vm826_vm0, %v4096_v6  ;;  %v403_v8 = vld [vmem:[%s4378_s19 + $0x1e0] sm:$0xff]  ;;  %v404_v9 = vld [vmem:[%s4378_s19 + $0x1e8] sm:$0xff]  ;;  %v374_v13 = vld [vmem:[%s4378_s19 + $0xf8] sm:$0xff]  ;;  %4131 = vmatpush.msk.msrb.mxu0 %vm826_vm0, %v4130_v18  ;;  %s4303_s11 = sshll.u32 %s5676_s13, 6 }
  0x10   : > { %173 = vst.msk [vmem:[#allocation2 + $0x8] sm:$0xff] %vm171_vm1, %v4327_v1  ;;  %v435_v10 = vld [vmem:[%s4378_s19 + $0x2e0] sm:$0xff]  ;;  %v436_v11 = vld [vmem:[%s4378_s19 + $0x2e8] sm:$0xff]  ;;  %v405_v20 = vld [vmem:[%s4378_s19 + $0x1f0] sm:$0xff]  ;;  %s5522_s13 = scalar_lea.vmem %s5674_s3, %s4303_s11 }
  0x11   : > { %174 = vst.msk [vmem:[#allocation2 + $0x10] sm:$0xff] %vm171_vm1, %v4327_v1  ;;  %v406_v21 = vld [vmem:[%s4378_s19 + $0x1f8] sm:$0xff]  ;;  %v437_v22 = vld [vmem:[%s4378_s19 + $0x2f0] sm:$0xff]  ;;  %v379_v24 = vld [vmem:[%s4378_s19 + $0x120] sm:$0xff] }
  0x12   : > { %500 = vst.msk [vmem:[#allocation2 + $0x141] sm:$0xff] %vm171_vm1, %v371_v2  ;;  %v438_v23 = vld [vmem:[%s4378_s19 + $0x2f8] sm:$0xff]  ;;  %v380_v25 = vld [vmem:[%s4378_s19 + $0x128] sm:$0xff]  ;;  %v411_v26 = vld [vmem:[%s4378_s19 + $0x220] sm:$0xff] }
  0x13   : > { %501 = vst.msk [vmem:[#allocation2 + $0x149] sm:$0xff] %vm171_vm1, %v372_v3  ;;  %v412_v27 = vld [vmem:[%s4378_s19 + $0x228] sm:$0xff]  ;;  %v443_v28 = vld [vmem:[%s4378_s19 + $0x320] sm:$0xff]  ;;  %v381_v30 = vld [vmem:[%s4378_s19 + $0x130] sm:$0xff] }
  0x14   : > { %175 = vst.msk [vmem:[#allocation2 + $0x18] sm:$0xff] %vm171_vm1, %v4327_v1  ;;  %v444_v29 = vld [vmem:[%s4378_s19 + $0x328] sm:$0xff]  ;;  %v382_v32 = vld [vmem:[%s4378_s19 + $0x138] sm:$0xff]  ;;  %v413_v33 = vld [vmem:[%s4378_s19 + $0x230] sm:$0xff] }
  0x15   : > { %178 = vst.msk [vmem:[#allocation2 + $0x28] sm:$0xff] %vm171_vm1, %v4327_v1  ;;  %v414_v35 = vld [vmem:[%s4378_s19 + $0x238] sm:$0xff]  ;;  %v347_v36 = vld [vmem:[%s4378_s19 + $0x20] sm:$0xff]  ;;  %v348_v38 = vld [vmem:[%s4378_s19 + $0x28] sm:$0xff] }
  0x16   : > { %179 = vst.msk [vmem:[#allocation2 + $0x30] sm:$0xff] %vm171_vm1, %v4327_v1  ;;  %v445_v39 = vld [vmem:[%s4378_s19 + $0x330] sm:$0xff]  ;;  %v446_v41 = vld [vmem:[%s4378_s19 + $0x338] sm:$0xff]  ;;  %v387_v42 = vld [vmem:[%s4378_s19 + $0x160] sm:$0xff] }
  0x17   : > { %180 = vst.msk [vmem:[#allocation2 + $0x38] sm:$0xff] %vm171_vm1, %v4327_v1  ;;  %v665_v17 = vld [vmem:[#allocation2 + $0x1] ss:$2 sm:$0xff]  ;;  %v349_v48 = vld [vmem:[%s4378_s19 + $0x30] sm:$0xff]  ;;  %v350_v49 = vld [vmem:[%s4378_s19 + $0x38] sm:$0xff] }
  0x18   : > { %181 = vst.msk [vmem:[#allocation2 + $0x40] sm:$0xff] %vm171_vm1, %v4327_v1  ;;  %3997 = vmatmul.msk.f32.vlgmr.msra.gmra.mxu0 %vm171_vm1, %v665_v17  ;;  %v388_v44 = vld [vmem:[%s4378_s19 + $0x168] sm:$0xff]  ;;  %v419_v45 = vld [vmem:[%s4378_s19 + $0x260] sm:$0xff]  ;;  %v389_v54 = vld [vmem:[%s4378_s19 + $0x170] sm:$0xff] }
  0x19   : > { %183 = vst.msk [vmem:[#allocation2 + $0x50] sm:$0xff] %vm171_vm1, %v4327_v1  ;;  %v420_v47 = vld [vmem:[%s4378_s19 + $0x268] sm:$0xff]  ;;  %v451_v50 = vld [vmem:[%s4378_s19 + $0x360] sm:$0xff]  ;;  %v390_v56 = vld [vmem:[%s4378_s19 + $0x178] sm:$0xff] }
  0x1a   : > { %v681_v4 = vld [vmem:[#allocation2 + $0x141] ss:$2 sm:$0xff]  ;;  %184 = vst.msk [vmem:[#allocation2 + $0x58] sm:$0xff] %vm171_vm1, %v4327_v1  ;;  %v421_v57 = vld [vmem:[%s4378_s19 + $0x270] sm:$0xff]  ;;  %v422_v59 = vld [vmem:[%s4378_s19 + $0x278] sm:$0xff] }
  0x1b   : > { %4005 = vmatmul.msk.f32.vlgmr.msra.gmra.mxu1 %vm171_vm1, %v681_v4  ;;  %185 = vst.msk [vmem:[#allocation2 + $0x60] sm:$0xff] %vm171_vm1, %v4327_v1  ;;  %v667_v19 = vld [vmem:[#allocation2 + $0x11] ss:$2 sm:$0xff]  ;;  %v452_v53 = vld [vmem:[%s4378_s19 + $0x368] sm:$0xff]  ;;  %v355_v60 = vld [vmem:[%s4378_s19 + $0x60] sm:$0xff] }
  0x1c   : > { %186 = vst.msk [vmem:[#allocation2 + $0x68] sm:$0xff] %vm171_vm1, %v4327_v1  ;;  %v356_v61 = vld [vmem:[%s4378_s19 + $0x68] sm:$0xff]  ;;  %v453_v62 = vld [vmem:[%s4378_s19 + $0x370] sm:$0xff]  ;;  %v395_v2 = vld [vmem:[%s4378_s19 + $0x1a0] sm:$0xff] }
  0x1d   : > { %188 = vst.msk [vmem:[#allocation2 + $0x78] sm:$0xff] %vm171_vm1, %v4327_v1  ;;  %v396_v4 = vld [vmem:[%s4378_s19 + $0x1a8] sm:$0xff]  ;;  %v427_v5 = vld [vmem:[%s4378_s19 + $0x2a0] sm:$0xff]  ;;  %v4198_v6 = vld [vmem:[%s5672_s1 + $0x18] sm:$0x7] }
  0x1e   : > { %189 = vst.msk [vmem:[#allocation2 + $0x80] sm:$0xff] %vm171_vm1, %v4327_v1  ;;  %v397_v17 = vld [vmem:[%s4378_s19 + $0x1b0] sm:$0xff] }
  0x1f   : > { %190 = vst.msk [vmem:[#allocation2 + $0x88] sm:$0xff] %vm171_vm1, %v4327_v1 }
  0x20   : > { %191 = vst.msk [vmem:[#allocation2 + $0x90] sm:$0xff] %vm171_vm1, %v4327_v1  ;;  %3998 = vmatmul.msk.f32.gmra.mxu0 %vm171_vm1, %v667_v19  ;;  %v398_v19 = vld [vmem:[%s4378_s19 + $0x1b8] sm:$0xff] }
  0x21   : > { %193 = vst.msk [vmem:[#allocation2 + $0xa0] sm:$0xff] %vm171_vm1, %v4327_v1 }
  0x22   : > { %194 = vst.msk [vmem:[#allocation2 + $0xa8] sm:$0xff] %vm171_vm1, %v4327_v1 }
  0x23   : > { %195 = vst.msk [vmem:[#allocation2 + $0xb0] sm:$0xff] %vm171_vm1, %v4327_v1 }
  0x24   : > { %196 = vst.msk [vmem:[#allocation2 + $0xb8] sm:$0xff] %vm171_vm1, %v4327_v1 }
  0x25   : > { %198 = vst.msk [vmem:[#allocation2 + $0xc8] sm:$0xff] %vm171_vm1, %v4327_v1 }
  0x26   : > { %199 = vst.msk [vmem:[#allocation2 + $0xd0] sm:$0xff] %vm171_vm1, %v4327_v1 }
  0x27   : > { %200 = vst.msk [vmem:[#allocation2 + $0xd8] sm:$0xff] %vm171_vm1, %v4327_v1 }
  0x28   : > { %201 = vst.msk [vmem:[#allocation2 + $0xe0] sm:$0xff] %vm171_vm1, %v4327_v1 }
  0x29   : > { %203 = vst.msk [vmem:[#allocation2 + $0xf0] sm:$0xff] %vm171_vm1, %v4327_v1 }
  0x2a   : > { %204 = vst.msk [vmem:[#allocation2 + $0xf8] sm:$0xff] %vm171_vm1, %v4327_v1 }
  0x2b   : > { %205 = vst.msk [vmem:[#allocation2 + $0x100] sm:$0xff] %vm171_vm1, %v4327_v1 }
  0x2c   : > { %206 = vst.msk [vmem:[#allocation2 + $0x108] sm:$0xff] %vm171_vm1, %v4327_v1 }
  0x2d   : > { %208 = vst.msk [vmem:[#allocation2 + $0x118] sm:$0xff] %vm171_vm1, %v4327_v1 }
  0x2e   : > { %209 = vst.msk [vmem:[#allocation2 + $0x120] sm:$0xff] %vm171_vm1, %v4327_v1 }
  0x2f   : > { %210 = vst.msk [vmem:[#allocation2 + $0x128] sm:$0xff] %vm171_vm1, %v4327_v1 }
  0x30   : > { %211 = vst.msk [vmem:[#allocation2 + $0x130] sm:$0xff] %vm171_vm1, %v4327_v1 }
  0x31   : > { %216 = vst.msk [vmem:[#allocation2 + $0x158] sm:$0xff] %vm171_vm1, %v4327_v1 }
  0x32   : > { %218 = vst.msk [vmem:[#allocation2 + $0x168] sm:$0xff] %vm171_vm1, %v4327_v1 }
  0x33   : > { %219 = vst.msk [vmem:[#allocation2 + $0x170] sm:$0xff] %vm171_vm1, %v4327_v1 }
  0x34   : > { %220 = vst.msk [vmem:[#allocation2 + $0x178] sm:$0xff] %vm171_vm1, %v4327_v1 }
  0x35   : > { %221 = vst.msk [vmem:[#allocation2 + $0x180] sm:$0xff] %vm171_vm1, %v4327_v1 }
  0x36   : > { %223 = vst.msk [vmem:[#allocation2 + $0x190] sm:$0xff] %vm171_vm1, %v4327_v1 }
  0x37   : > { %224 = vst.msk [vmem:[#allocation2 + $0x198] sm:$0xff] %vm171_vm1, %v4327_v1 }
  0x38   : > { %225 = vst.msk [vmem:[#allocation2 + $0x1a0] sm:$0xff] %vm171_vm1, %v4327_v1 }
  0x39   : > { %226 = vst.msk [vmem:[#allocation2 + $0x1a8] sm:$0xff] %vm171_vm1, %v4327_v1 }
  0x3a   : > { %228 = vst.msk [vmem:[#allocation2 + $0x1b8] sm:$0xff] %vm171_vm1, %v4327_v1 }
  0x3b   : > { %229 = vst.msk [vmem:[#allocation2 + $0x1c0] sm:$0xff] %vm171_vm1, %v4327_v1 }
  0x3c   : > { %230 = vst.msk [vmem:[#allocation2 + $0x1c8] sm:$0xff] %vm171_vm1, %v4327_v1 }
  0x3d   : > { %231 = vst.msk [vmem:[#allocation2 + $0x1d0] sm:$0xff] %vm171_vm1, %v4327_v1 }
  0x3e   : > { %233 = vst.msk [vmem:[#allocation2 + $0x1e0] sm:$0xff] %vm171_vm1, %v4327_v1 }
  0x3f   : > { %234 = vst.msk [vmem:[#allocation2 + $0x1e8] sm:$0xff] %vm171_vm1, %v4327_v1 }
  0x40   : > { %235 = vst.msk [vmem:[#allocation2 + $0x1f0] sm:$0xff] %vm171_vm1, %v4327_v1 }
  0x41   : > { %236 = vst.msk [vmem:[#allocation2 + $0x1f8] sm:$0xff] %vm171_vm1, %v4327_v1 }
  0x42   : > { %238 = vst.msk [vmem:[#allocation2 + $0x208] sm:$0xff] %vm171_vm1, %v4327_v1 }
  0x43   : > { %239 = vst.msk [vmem:[#allocation2 + $0x210] sm:$0xff] %vm171_vm1, %v4327_v1 }
  0x44   : > { %240 = vst.msk [vmem:[#allocation2 + $0x218] sm:$0xff] %vm171_vm1, %v4327_v1 }
  0x45   : > { %241 = vst.msk [vmem:[#allocation2 + $0x220] sm:$0xff] %vm171_vm1, %v4327_v1 }
  0x46   : > { %243 = vst.msk [vmem:[#allocation2 + $0x230] sm:$0xff] %vm171_vm1, %v4327_v1 }
  0x47   : > { %244 = vst.msk [vmem:[#allocation2 + $0x238] sm:$0xff] %vm171_vm1, %v4327_v1 }
  0x48   : > { %245 = vst.msk [vmem:[#allocation2 + $0x240] sm:$0xff] %vm171_vm1, %v4327_v1 }
  0x49   : > { %246 = vst.msk [vmem:[#allocation2 + $0x248] sm:$0xff] %vm171_vm1, %v4327_v1 }
  0x4a   : > { %248 = vst.msk [vmem:[#allocation2 + $0x258] sm:$0xff] %vm171_vm1, %v4327_v1 }
  0x4b   : > { %249 = vst.msk [vmem:[#allocation2 + $0x260] sm:$0xff] %vm171_vm1, %v4327_v1 }
  0x4c   : > { %250 = vst.msk [vmem:[#allocation2 + $0x268] sm:$0xff] %vm171_vm1, %v4327_v1 }
  0x4d   : > { %251 = vst.msk [vmem:[#allocation2 + $0x270] sm:$0xff] %vm171_vm1, %v4327_v1 }
  0x4e   : > { %253 = vst.msk [vmem:[#allocation2 + $0x280] sm:$0xff] %vm171_vm1, %v4327_v1 }
  0x4f   : > { %254 = vst.msk [vmem:[#allocation2 + $0x288] sm:$0xff] %vm171_vm1, %v4327_v1 }
  0x50   : > { %255 = vst.msk [vmem:[#allocation2 + $0x290] sm:$0xff] %vm171_vm1, %v4327_v1 }
  0x51   : > { %256 = vst.msk [vmem:[#allocation2 + $0x298] sm:$0xff] %vm171_vm1, %v4327_v1 }
  0x52   : > { %258 = vst.msk [vmem:[#allocation2 + $0x2a8] sm:$0xff] %vm171_vm1, %v4327_v1 }
  0x53   : > { %259 = vst.msk [vmem:[#allocation2 + $0x2b0] sm:$0xff] %vm171_vm1, %v4327_v1 }
  0x54   : > { %260 = vst.msk [vmem:[#allocation2 + $0x2b8] sm:$0xff] %vm171_vm1, %v4327_v1 }
  0x55   : > { %261 = vst.msk [vmem:[#allocation2 + $0x2c0] sm:$0xff] %vm171_vm1, %v4327_v1 }
  0x56   : > { %263 = vst.msk [vmem:[#allocation2 + $0x2d0] sm:$0xff] %vm171_vm1, %v4327_v1 }
  0x57   : > { %264 = vst.msk [vmem:[#allocation2 + $0x2d8] sm:$0xff] %vm171_vm1, %v4327_v1 }
  0x58   : > { %265 = vst.msk [vmem:[#allocation2 + $0x2e0] sm:$0xff] %vm171_vm1, %v4327_v1 }
  0x59   : > { %266 = vst.msk [vmem:[#allocation2 + $0x2e8] sm:$0xff] %vm171_vm1, %v4327_v1 }
  0x5a   : > { %268 = vst.msk [vmem:[#allocation2 + $0x2f8] sm:$0xff] %vm171_vm1, %v4327_v1 }
  0x5b   : > { %269 = vst.msk [vmem:[#allocation2 + $0x300] sm:$0xff] %vm171_vm1, %v4327_v1 }
  0x5c   : > { %270 = vst.msk [vmem:[#allocation2 + $0x308] sm:$0xff] %vm171_vm1, %v4327_v1 }
  0x5d   : > { %271 = vst.msk [vmem:[#allocation2 + $0x310] sm:$0xff] %vm171_vm1, %v4327_v1 }
  0x5e   : > { %273 = vst.msk [vmem:[#allocation2 + $0x320] sm:$0xff] %vm171_vm1, %v4327_v1 }
  0x5f   : > { %274 = vst.msk [vmem:[#allocation2 + $0x328] sm:$0xff] %vm171_vm1, %v4327_v1 }
  0x60   : > { %275 = vst.msk [vmem:[#allocation2 + $0x330] sm:$0xff] %vm171_vm1, %v4327_v1 }
  0x61   : > { %276 = vst.msk [vmem:[#allocation2 + $0x338] sm:$0xff] %vm171_vm1, %v4327_v1 }
  0x62   : > { %278 = vst.msk [vmem:[#allocation2 + $0x348] sm:$0xff] %vm171_vm1, %v4327_v1 }
  0x63   : > { %279 = vst.msk [vmem:[#allocation2 + $0x350] sm:$0xff] %vm171_vm1, %v4327_v1 }
  0x64   : > { %280 = vst.msk [vmem:[#allocation2 + $0x358] sm:$0xff] %vm171_vm1, %v4327_v1 }
  0x65   : > { %281 = vst.msk [vmem:[#allocation2 + $0x360] sm:$0xff] %vm171_vm1, %v4327_v1 }
  0x66   : > { %283 = vst.msk [vmem:[#allocation2 + $0x370] sm:$0xff] %vm171_vm1, %v4327_v1 }
  0x67   : > { %284 = vst.msk [vmem:[#allocation2 + $0x378] sm:$0xff] %vm171_vm1, %v4327_v1 }
  0x68   : > { %285 = vst.msk [vmem:[#allocation2 + $0x380] sm:$0xff] %vm171_vm1, %v4327_v1 }
  0x69   : > { %286 = vst.msk [vmem:[#allocation2 + $0x388] sm:$0xff] %vm171_vm1, %v4327_v1 }
  0x6a   : > { %288 = vst.msk [vmem:[#allocation2 + $0x398] sm:$0xff] %vm171_vm1, %v4327_v1 }
  0x6b   : > { %289 = vst.msk [vmem:[#allocation2 + $0x3a0] sm:$0xff] %vm171_vm1, %v4327_v1 }
  0x6c   : > { %290 = vst.msk [vmem:[#allocation2 + $0x3a8] sm:$0xff] %vm171_vm1, %v4327_v1 }
  0x6d   : > { %291 = vst.msk [vmem:[#allocation2 + $0x3b0] sm:$0xff] %vm171_vm1, %v4327_v1 }
  0x6e   : > { %293 = vst.msk [vmem:[#allocation2 + $0x3c0] sm:$0xff] %vm171_vm1, %v4327_v1 }
  0x6f   : > { %294 = vst.msk [vmem:[#allocation2 + $0x3c8] sm:$0xff] %vm171_vm1, %v4327_v1 }
  0x70   : > { %295 = vst.msk [vmem:[#allocation2 + $0x3d0] sm:$0xff] %vm171_vm1, %v4327_v1 }
  0x71   : > { %296 = vst.msk [vmem:[#allocation2 + $0x3d8] sm:$0xff] %vm171_vm1, %v4327_v1 }
  0x72   : > { %298 = vst.msk [vmem:[#allocation2 + $0x3e8] sm:$0xff] %vm171_vm1, %v4327_v1 }
  0x73   : > { %299 = vst.msk [vmem:[#allocation2 + $0x3f0] sm:$0xff] %vm171_vm1, %v4327_v1 }
  0x74   : > { %300 = vst.msk [vmem:[#allocation2 + $0x3f8] sm:$0xff] %vm171_vm1, %v4327_v1 }
  0x75   : > { %301 = vst.msk [vmem:[#allocation2 + $0x400] sm:$0xff] %vm171_vm1, %v4327_v1 }
  0x76   : > { %303 = vst.msk [vmem:[#allocation2 + $0x410] sm:$0xff] %vm171_vm1, %v4327_v1 }
  0x77   : > { %304 = vst.msk [vmem:[#allocation2 + $0x418] sm:$0xff] %vm171_vm1, %v4327_v1 }
  0x78   : > { %305 = vst.msk [vmem:[#allocation2 + $0x420] sm:$0xff] %vm171_vm1, %v4327_v1 }
  0x79   : > { %306 = vst.msk [vmem:[#allocation2 + $0x428] sm:$0xff] %vm171_vm1, %v4327_v1 }
  0x7a   : > { %308 = vst.msk [vmem:[#allocation2 + $0x438] sm:$0xff] %vm171_vm1, %v4327_v1 }
  0x7b   : > { %309 = vst.msk [vmem:[#allocation2 + $0x440] sm:$0xff] %vm171_vm1, %v4327_v1 }
  0x7c   : > { %310 = vst.msk [vmem:[#allocation2 + $0x448] sm:$0xff] %vm171_vm1, %v4327_v1 }
  0x7d   : > { %311 = vst.msk [vmem:[#allocation2 + $0x450] sm:$0xff] %vm171_vm1, %v4327_v1 }
  0x7e   : > { %313 = vst.msk [vmem:[#allocation2 + $0x460] sm:$0xff] %vm171_vm1, %v4327_v1 }
  0x7f   : > { %314 = vst.msk [vmem:[#allocation2 + $0x468] sm:$0xff] %vm171_vm1, %v4327_v1 }
  0x80   : > { %315 = vst.msk [vmem:[#allocation2 + $0x470] sm:$0xff] %vm171_vm1, %v4327_v1 }
  0x81   : > { %316 = vst.msk [vmem:[#allocation2 + $0x478] sm:$0xff] %vm171_vm1, %v4327_v1 }
  0x82   : > { %318 = vst.msk [vmem:[#allocation2 + $0x488] sm:$0xff] %vm171_vm1, %v4327_v1 }
  0x83   : > { %319 = vst.msk [vmem:[#allocation2 + $0x490] sm:$0xff] %vm171_vm1, %v4327_v1 }
  0x84   : > { %320 = vst.msk [vmem:[#allocation2 + $0x498] sm:$0xff] %vm171_vm1, %v4327_v1 }
  0x85   : > { %321 = vst.msk [vmem:[#allocation2 + $0x4a0] sm:$0xff] %vm171_vm1, %v4327_v1 }
  0x86   : > { %323 = vst.msk [vmem:[#allocation2 + $0x4b0] sm:$0xff] %vm171_vm1, %v4327_v1 }
  0x87   : > { %324 = vst.msk [vmem:[#allocation2 + $0x4b8] sm:$0xff] %vm171_vm1, %v4327_v1 }
  0x88   : > { %325 = vst.msk [vmem:[#allocation2 + $0x4c0] sm:$0xff] %vm171_vm1, %v4327_v1 }
  0x89   : > { %326 = vst.msk [vmem:[#allocation2 + $0x4c8] sm:$0xff] %vm171_vm1, %v4327_v1 }
  0x8a   : > { %328 = vst.msk [vmem:[#allocation2 + $0x4d8] sm:$0xff] %vm171_vm1, %v4327_v1 }
  0x8b   : > { %329 = vst.msk [vmem:[#allocation2 + $0x4e0] sm:$0xff] %vm171_vm1, %v4327_v1 }
  0x8c   : > { %330 = vst.msk [vmem:[#allocation2 + $0x4e8] sm:$0xff] %vm171_vm1, %v4327_v1 }
  0x8d   : > { %331 = vst.msk [vmem:[#allocation2 + $0x4f0] sm:$0xff] %vm171_vm1, %v4327_v1 }
  0x8e   : > { %333 = vst.msk [vmem:[#allocation2 + $0x500] sm:$0xff] %vm171_vm1, %v4327_v1 }
  0x8f   : > { %334 = vst.msk [vmem:[#allocation2 + $0x508] sm:$0xff] %vm171_vm1, %v4327_v1 }
  0x90   : > { %335 = vst.msk [vmem:[#allocation2 + $0x510] sm:$0xff] %vm171_vm1, %v4327_v1 }
  0x91   : > { %336 = vst.msk [vmem:[#allocation2 + $0x518] sm:$0xff] %vm171_vm1, %v4327_v1 }
  0x92   : > { %532 = vst.msk [vmem:[#allocation2 + $0x281] sm:$0xff] %vm171_vm1, %v403_v8  ;;  %v428_v8 = vld [vmem:[%s4378_s19 + $0x2a8] sm:$0xff] }
  0x93   : > { %533 = vst.msk [vmem:[#allocation2 + $0x289] sm:$0xff] %vm171_vm1, %v404_v9  ;;  %v357_v9 = vld [vmem:[%s4378_s19 + $0x70] sm:$0xff] }
  0x94   : > { %564 = vst.msk [vmem:[#allocation2 + $0x3c1] sm:$0xff] %vm171_vm1, %v435_v10  ;;  %v4232_v10 = vld [vmem:[%s5672_s1 + $0x1c] sm:$0x7] }
  0x95   : > { %565 = vst.msk [vmem:[#allocation2 + $0x3c9] sm:$0xff] %vm171_vm1, %v436_v11  ;;  %v4164_v11 = vld [vmem:[%s5672_s1 + $0x14] sm:$0x7] }
  0x96   : > { %217 = vst.msk [vmem:[#allocation2 + $0x160] sm:$0x3] %vm176_vm2, %v4327_v1  ;;  %4165 = vmatpush.msk.msra.mxu1 %vm826_vm0, %v4164_v11 }
  0x97   : > { %502 = vst.msk [vmem:[#allocation2 + $0x151] sm:$0xff] %vm171_vm1, %v373_v12  ;;  %v358_v12 = vld [vmem:[%s4378_s19 + $0x78] sm:$0xff] }
  0x98   : > { %503 = vst.msk [vmem:[#allocation2 + $0x159] sm:$0xff] %vm171_vm1, %v374_v13  ;;  %v459_v13 = vld [vmem:[%s4378_s19 + $0x3a0] sm:$0xff] }
  0x99   : > { %177 = vst.msk [vmem:[#allocation2 + $0x20] sm:$0x3] %vm176_vm2, %v4327_v1 }
  0x9a   : > { %v697_v14 = vld [vmem:[#allocation2 + $0x281] ss:$2 sm:$0xff]  ;;  %182 = vst.msk [vmem:[#allocation2 + $0x48] sm:$0x3] %vm176_vm2, %v4327_v1 }
  0x9b   : > { %4013 = vmatmul.msk.f32.vlgmr.msra.gmra.mxu2 %vm171_vm1, %v697_v14  ;;  %187 = vst.msk [vmem:[#allocation2 + $0x70] sm:$0x3] %vm176_vm2, %v4327_v1 }
  0x9c   : > { %v713_v15 = vld [vmem:[#allocation2 + $0x3c1] ss:$2 sm:$0xff]  ;;  %192 = vst.msk [vmem:[#allocation2 + $0x98] sm:$0x3] %vm176_vm2, %v4327_v1  ;;  %4199 = vmatpush.msk.msra.mxu2 %vm826_vm0, %v4198_v6 }
  0x9d   : > { %4021 = vmatmul.msk.f32.vlgmr.msra.gmra.mxu3 %vm171_vm1, %v713_v15  ;;  %197 = vst.msk [vmem:[#allocation2 + $0xc0] sm:$0x3] %vm176_vm2, %v4327_v1  ;;  %v375_v6 = vld [vmem:[%s4378_s19 + $0x100] sm:$0xff] }
  0x9e   : > { %202 = vst.msk [vmem:[#allocation2 + $0xe8] sm:$0x3] %vm176_vm2, %v4327_v1  ;;  %4233 = vmatpush.msk.msra.mxu3 %vm826_vm0, %v4232_v10 }
  0x9f   : > { %v683_v16 = vld [vmem:[#allocation2 + $0x151] ss:$2 sm:$0xff]  ;;  %207 = vst.msk [vmem:[#allocation2 + $0x110] sm:$0x3] %vm176_vm2, %v4327_v1 }
  0xa0   : > { %4006 = vmatmul.msk.f32.gmra.mxu1 %vm171_vm1, %v683_v16  ;;  %212 = vst.msk [vmem:[#allocation2 + $0x138] sm:$0x3] %vm176_vm2, %v4327_v1  ;;  %v460_v16 = vld [vmem:[%s4378_s19 + $0x3a8] sm:$0xff] }
  0xa1   : > { %222 = vst.msk [vmem:[#allocation2 + $0x188] sm:$0x3] %vm176_vm2, %v4327_v1 }
  0xa2   : > { %227 = vst.msk [vmem:[#allocation2 + $0x1b0] sm:$0x3] %vm176_vm2, %v4327_v1 }
  0xa3   : > { %232 = vst.msk [vmem:[#allocation2 + $0x1d8] sm:$0x3] %vm176_vm2, %v4327_v1 }
  0xa4   : > { %237 = vst.msk [vmem:[#allocation2 + $0x200] sm:$0x3] %vm176_vm2, %v4327_v1 }
  0xa5   : > { %242 = vst.msk [vmem:[#allocation2 + $0x228] sm:$0x3] %vm176_vm2, %v4327_v1 }
  0xa6   : > { %247 = vst.msk [vmem:[#allocation2 + $0x250] sm:$0x3] %vm176_vm2, %v4327_v1 }
  0xa7   : > { %252 = vst.msk [vmem:[#allocation2 + $0x278] sm:$0x3] %vm176_vm2, %v4327_v1 }
  0xa8   : > { %257 = vst.msk [vmem:[#allocation2 + $0x2a0] sm:$0x3] %vm176_vm2, %v4327_v1 }
  0xa9   : > { %262 = vst.msk [vmem:[#allocation2 + $0x2c8] sm:$0x3] %vm176_vm2, %v4327_v1 }
  0xaa   : > { %267 = vst.msk [vmem:[#allocation2 + $0x2f0] sm:$0x3] %vm176_vm2, %v4327_v1 }
  0xab   : > { %272 = vst.msk [vmem:[#allocation2 + $0x318] sm:$0x3] %vm176_vm2, %v4327_v1 }
  0xac   : > { %277 = vst.msk [vmem:[#allocation2 + $0x340] sm:$0x3] %vm176_vm2, %v4327_v1 }
  0xad   : > { %282 = vst.msk [vmem:[#allocation2 + $0x368] sm:$0x3] %vm176_vm2, %v4327_v1 }
  0xae   : > { %287 = vst.msk [vmem:[#allocation2 + $0x390] sm:$0x3] %vm176_vm2, %v4327_v1 }
  0xaf   : > { %292 = vst.msk [vmem:[#allocation2 + $0x3b8] sm:$0x3] %vm176_vm2, %v4327_v1 }
  0xb0   : > { %297 = vst.msk [vmem:[#allocation2 + $0x3e0] sm:$0x3] %vm176_vm2, %v4327_v1 }
  0xb1   : > { %302 = vst.msk [vmem:[#allocation2 + $0x408] sm:$0x3] %vm176_vm2, %v4327_v1 }
  0xb2   : > { %307 = vst.msk [vmem:[#allocation2 + $0x430] sm:$0x3] %vm176_vm2, %v4327_v1 }
  0xb3   : > { %312 = vst.msk [vmem:[#allocation2 + $0x458] sm:$0x3] %vm176_vm2, %v4327_v1 }
  0xb4   : > { %317 = vst.msk [vmem:[#allocation2 + $0x480] sm:$0x3] %vm176_vm2, %v4327_v1 }
  0xb5   : > { %322 = vst.msk [vmem:[#allocation2 + $0x4a8] sm:$0x3] %vm176_vm2, %v4327_v1 }
  0xb6   : > { %327 = vst.msk [vmem:[#allocation2 + $0x4d0] sm:$0x3] %vm176_vm2, %v4327_v1 }
  0xb7   : > { %332 = vst.msk [vmem:[#allocation2 + $0x4f8] sm:$0x3] %vm176_vm2, %v4327_v1 }
  0xb8   : > { %337 = vst.msk [vmem:[#allocation2 + $0x520] sm:$0x3] %vm176_vm2, %v4327_v1  ;;  %v454_v1 = vld [vmem:[%s4378_s19 + $0x378] sm:$0xff] }
  0xb9   : > { %534 = vst.msk [vmem:[#allocation2 + $0x291] sm:$0xff] %vm171_vm1, %v405_v20  ;;  %v429_v20 = vld [vmem:[%s4378_s19 + $0x2b0] sm:$0xff] }
  0xba   : > { %535 = vst.msk [vmem:[#allocation2 + $0x299] sm:$0xff] %vm171_vm1, %v406_v21 }
  0xbb   : > { %566 = vst.msk [vmem:[#allocation2 + $0x3d1] sm:$0xff] %vm171_vm1, %v437_v22  ;;  %v430_v22 = vld [vmem:[%s4378_s19 + $0x2b8] sm:$0xff] }
  0xbc   : > { %567 = vst.msk [vmem:[#allocation2 + $0x3d9] sm:$0xff] %vm171_vm1, %v438_v23  ;;  %v363_v23 = vld [vmem:[%s4378_s19 + $0xa0] sm:$0xff] }
  0xbd   : > { %508 = vst.msk [vmem:[#allocation2 + $0x191] sm:$0xff] %vm171_vm1, %v379_v24  ;;  %v4266_v24 = vld [vmem:[%s5672_s1 + $0x20] sm:$0x7] }
  0xbe   : > { %509 = vst.msk [vmem:[#allocation2 + $0x199] sm:$0xff] %vm171_vm1, %v380_v25  ;;  %v364_v25 = vld [vmem:[%s4378_s19 + $0xa8] sm:$0xff]  ;;  %4267 = vmatpush.msk.msra.mxu0 %vm826_vm0, %v4266_v24  ;;  %v385_v24 = vld [vmem:[%s4378_s19 + $0x150] sm:$0xff] }
  0xbf   : > { %540 = vst.msk [vmem:[#allocation2 + $0x2d1] sm:$0xff] %vm171_vm1, %v411_v26  ;;  %v461_v26 = vld [vmem:[%s4378_s19 + $0x3b0] sm:$0xff] }
  0xc0   : > { %541 = vst.msk [vmem:[#allocation2 + $0x2d9] sm:$0xff] %vm171_vm1, %v412_v27 }
  0xc1   : > { %v699_v31 = vld [vmem:[#allocation2 + $0x291] ss:$2 sm:$0xff]  ;;  %572 = vst.msk [vmem:[#allocation2 + $0x411] sm:$0xff] %vm171_vm1, %v443_v28 }
  0xc2   : > { %4014 = vmatmul.msk.f32.gmra.mxu2 %vm171_vm1, %v699_v31  ;;  %573 = vst.msk [vmem:[#allocation2 + $0x419] sm:$0xff] %vm171_vm1, %v444_v29  ;;  %v462_v29 = vld [vmem:[%s4378_s19 + $0x3b8] sm:$0xff] }
  0xc3   : > { %v715_v34 = vld [vmem:[#allocation2 + $0x3d1] ss:$2 sm:$0xff]  ;;  %510 = vst.msk [vmem:[#allocation2 + $0x1a1] sm:$0xff] %vm171_vm1, %v381_v30 }
  0xc4   : > { %4022 = vmatmul.msk.f32.gmra.mxu3 %vm171_vm1, %v715_v34  ;;  %511 = vst.msk [vmem:[#allocation2 + $0x1a9] sm:$0xff] %vm171_vm1, %v382_v32  ;;  %v365_v30 = vld [vmem:[%s4378_s19 + $0xb0] sm:$0xff]  ;;  %v366_v32 = vld [vmem:[%s4378_s19 + $0xb8] sm:$0xff] }
  0xc5   : > { %v685_v37 = vld [vmem:[#allocation2 + $0x191] ss:$2 sm:$0xff]  ;;  %542 = vst.msk [vmem:[#allocation2 + $0x2e1] sm:$0xff] %vm171_vm1, %v413_v33  ;;  %v343_v33 = vld [vmem:[%s4378_s19] sm:$0xff] }
  0xc6   : > { %4007 = vmatmul.msk.f32.gmra.mxu1 %vm171_vm1, %v685_v37  ;;  %543 = vst.msk [vmem:[#allocation2 + $0x2e9] sm:$0xff] %vm171_vm1, %v414_v35  ;;  %v344_v35 = vld [vmem:[%s4378_s19 + $0x8] sm:$0xff]  ;;  %v346_v37 = vld [vmem:[%s4378_s19 + $0x18] sm:$0xff] }
  0xc7   : > { %v701_v40 = vld [vmem:[#allocation2 + $0x2d1] ss:$2 sm:$0xff]  ;;  %476 = vst.msk [vmem:[#allocation2 + $0x51] sm:$0xff] %vm171_vm1, %v347_v36 }
  0xc8   : > { %477 = vst.msk [vmem:[#allocation2 + $0x59] sm:$0xff] %vm171_vm1, %v348_v38  ;;  %v345_v36 = vld [vmem:[%s4378_s19 + $0x10] sm:$0xff]  ;;  %v351_v38 = vld [vmem:[%s4378_s19 + $0x40] sm:$0xff] }
  0xc9   : > { %v717_v43 = vld [vmem:[#allocation2 + $0x411] ss:$2 sm:$0xff]  ;;  %574 = vst.msk [vmem:[#allocation2 + $0x421] sm:$0xff] %vm171_vm1, %v445_v39 }
  0xca   : > { %4015 = vmatmul.msk.f32.gmra.mxu2 %vm171_vm1, %v701_v40  ;;  %575 = vst.msk [vmem:[#allocation2 + $0x429] sm:$0xff] %vm171_vm1, %v446_v41  ;;  %v352_v41 = vld [vmem:[%s4378_s19 + $0x48] sm:$0xff] }
  0xcb   : > { %v687_v46 = vld [vmem:[#allocation2 + $0x1a1] ss:$2 sm:$0xff]  ;;  %516 = vst.msk [vmem:[#allocation2 + $0x1e1] sm:$0xff] %vm171_vm1, %v387_v42  ;;  %v353_v42 = vld [vmem:[%s4378_s19 + $0x50] sm:$0xff] }
  0xcc   : > { %4023 = vmatmul.msk.f32.gmra.mxu3 %vm171_vm1, %v717_v43  ;;  %517 = vst.msk [vmem:[#allocation2 + $0x1e9] sm:$0xff] %vm171_vm1, %v388_v44  ;;  %v354_v44 = vld [vmem:[%s4378_s19 + $0x58] sm:$0xff] }
  0xcd   : > { %548 = vst.msk [vmem:[#allocation2 + $0x321] sm:$0xff] %vm171_vm1, %v419_v45  ;;  %v703_v51 = vld [vmem:[#allocation2 + $0x2e1] ss:$2 sm:$0xff]  ;;  %v600_v45 = vld [vmem:[#allocation2] ss:$2 sm:$0xff] }
  0xce   : > { %4008 = vmatmul.msk.f32.gmra.mxu1 %vm171_vm1, %v687_v46  ;;  %549 = vst.msk [vmem:[#allocation2 + $0x329] sm:$0xff] %vm171_vm1, %v420_v47  ;;  %v359_v46 = vld [vmem:[%s4378_s19 + $0x80] sm:$0xff]  ;;  %v360_v47 = vld [vmem:[%s4378_s19 + $0x88] sm:$0xff] }
  0xcf   : > { %v669_v52 = vld [vmem:[#allocation2 + $0x51] ss:$2 sm:$0xff]  ;;  %478 = vst.msk [vmem:[#allocation2 + $0x61] sm:$0xff] %vm171_vm1, %v349_v48 }
  0xd0   : > { %3999 = vmatmul.msk.f32.gmra.mxu0 %vm171_vm1, %v669_v52  ;;  %479 = vst.msk [vmem:[#allocation2 + $0x69] sm:$0xff] %vm171_vm1, %v350_v49  ;;  %v1156_v49 = vld [vmem:[#allocation2 + $0x2] ss:$2 sm:$0xff] }
  0xd1   : > { %v719_v55 = vld [vmem:[#allocation2 + $0x421] ss:$2 sm:$0xff]  ;;  %580 = vst.msk [vmem:[#allocation2 + $0x461] sm:$0xff] %vm171_vm1, %v451_v50  ;;  %v361_v52 = vld [vmem:[%s4378_s19 + $0x90] sm:$0xff] }
  0xd2   : > { %4016 = vmatmul.msk.f32.gmra.mxu2 %vm171_vm1, %v703_v51  ;;  %581 = vst.msk [vmem:[#allocation2 + $0x469] sm:$0xff] %vm171_vm1, %v452_v53  ;;  %v602_v51 = vld [vmem:[#allocation2 + $0x10] ss:$2 sm:$0xff] }
  0xd3   : > { %v689_v58 = vld [vmem:[#allocation2 + $0x1e1] ss:$2 sm:$0xff]  ;;  %518 = vst.msk [vmem:[#allocation2 + $0x1f1] sm:$0xff] %vm171_vm1, %v389_v54  ;;  %v362_v53 = vld [vmem:[%s4378_s19 + $0x98] sm:$0xff] }
  0xd4   : > { %4024 = vmatmul.msk.f32.gmra.mxu3 %vm171_vm1, %v719_v55  ;;  %519 = vst.msk [vmem:[#allocation2 + $0x1f9] sm:$0xff] %vm171_vm1, %v390_v56  ;;  %v1158_v55 = vld [vmem:[#allocation2 + $0x12] ss:$2 sm:$0xff] }
  0xd5   : > { %550 = vst.msk [vmem:[#allocation2 + $0x331] sm:$0xff] %vm171_vm1, %v421_v57  ;;  %v705_v63 = vld [vmem:[#allocation2 + $0x321] ss:$2 sm:$0xff]  ;;  %v604_v57 = vld [vmem:[#allocation2 + $0x50] ss:$2 sm:$0xff] }
  0xd6   : > { %4009 = vmatmul.msk.f32.gmra.mxu1 %vm171_vm1, %v689_v58  ;;  %551 = vst.msk [vmem:[#allocation2 + $0x339] sm:$0xff] %vm171_vm1, %v422_v59  ;;  %v367_v58 = vld [vmem:[%s4378_s19 + $0xc0] sm:$0xff]  ;;  %v368_v59 = vld [vmem:[%s4378_s19 + $0xc8] sm:$0xff] }
  0xd7   : > { %v671_v0 = vld [vmem:[#allocation2 + $0x61] ss:$2 sm:$0xff]  ;;  %484 = vst.msk [vmem:[#allocation2 + $0xa1] sm:$0xff] %vm171_vm1, %v355_v60 }
  0xd8   : > { %4000 = vmatmul.msk.f32.gmra.mxu0 %vm171_vm1, %v671_v0  ;;  %485 = vst.msk [vmem:[#allocation2 + $0xa9] sm:$0xff] %vm171_vm1, %v356_v61  ;;  %v1160_v61 = vld [vmem:[#allocation2 + $0x52] ss:$2 sm:$0xff] }
  0xd9   : > { %v721_v3 = vld [vmem:[#allocation2 + $0x461] ss:$2 sm:$0xff]  ;;  %582 = vst.msk [vmem:[#allocation2 + $0x471] sm:$0xff] %vm171_vm1, %v453_v62  ;;  %v369_v0 = vld [vmem:[%s4378_s19 + $0xd0] sm:$0xff] }
  0xda   : > { %4017 = vmatmul.msk.f32.gmra.mxu2 %vm171_vm1, %v705_v63  ;;  %583 = vst.msk [vmem:[#allocation2 + $0x479] sm:$0xff] %vm171_vm1, %v454_v1  ;;  %v606_v63 = vld [vmem:[#allocation2 + $0x60] ss:$2 sm:$0xff]  ;;  %v370_v1 = vld [vmem:[%s4378_s19 + $0xd8] sm:$0xff] }
  0xdb   : > { %v691_v7 = vld [vmem:[#allocation2 + $0x1f1] ss:$2 sm:$0xff]  ;;  %524 = vst.msk [vmem:[#allocation2 + $0x231] sm:$0xff] %vm171_vm1, %v395_v2 }
  0xdc   : > { %4025 = vmatmul.msk.f32.gmra.mxu3 %vm171_vm1, %v721_v3  ;;  %525 = vst.msk [vmem:[#allocation2 + $0x239] sm:$0xff] %vm171_vm1, %v396_v4  ;;  %v1162_v3 = vld [vmem:[#allocation2 + $0x62] ss:$2 sm:$0xff] }
  0xdd   : > { %556 = vst.msk [vmem:[#allocation2 + $0x371] sm:$0xff] %vm171_vm1, %v427_v5  ;;  %v707_v14 = vld [vmem:[#allocation2 + $0x331] ss:$2 sm:$0xff] }
  0xde   : > { %4010 = vmatmul.msk.f32.gmra.mxu1 %vm171_vm1, %v691_v7  ;;  %557 = vst.msk [vmem:[#allocation2 + $0x379] sm:$0xff] %vm171_vm1, %v428_v8  ;;  %v376_v7 = vld [vmem:[%s4378_s19 + $0x108] sm:$0xff] }
  0xdf   : > { %v673_v15 = vld [vmem:[#allocation2 + $0xa1] ss:$2 sm:$0xff]  ;;  %486 = vst.msk [vmem:[#allocation2 + $0xb1] sm:$0xff] %vm171_vm1, %v357_v9  ;;  %v608_v5 = vld [vmem:[#allocation2 + $0xa0] ss:$2 sm:$0xff] }
  0xe0   : > { %4001 = vmatmul.msk.f32.gmra.mxu0 %vm171_vm1, %v673_v15  ;;  %487 = vst.msk [vmem:[#allocation2 + $0xb9] sm:$0xff] %vm171_vm1, %v358_v12  ;;  %v1164_v9 = vld [vmem:[#allocation2 + $0xa2] ss:$2 sm:$0xff] }
  0xe1   : > { %v723_v18 = vld [vmem:[#allocation2 + $0x471] ss:$2 sm:$0xff]  ;;  %588 = vst.msk [vmem:[#allocation2 + $0x4b1] sm:$0xff] %vm171_vm1, %v459_v13 }
  0xe2   : > { %4018 = vmatmul.msk.f32.gmra.mxu2 %vm171_vm1, %v707_v14  ;;  %589 = vst.msk [vmem:[#allocation2 + $0x4b9] sm:$0xff] %vm171_vm1, %v460_v16  ;;  %v377_v12 = vld [vmem:[%s4378_s19 + $0x110] sm:$0xff]  ;;  %v378_v13 = vld [vmem:[%s4378_s19 + $0x118] sm:$0xff] }
  0xe3   : > { %v693_v21 = vld [vmem:[#allocation2 + $0x231] ss:$2 sm:$0xff]  ;;  %526 = vst.msk [vmem:[#allocation2 + $0x241] sm:$0xff] %vm171_vm1, %v397_v17 }
  0xe4   : > { %4026 = vmatmul.msk.f32.gmra.mxu3 %vm171_vm1, %v723_v18  ;;  %527 = vst.msk [vmem:[#allocation2 + $0x249] sm:$0xff] %vm171_vm1, %v398_v19  ;;  %v383_v18 = vld [vmem:[%s4378_s19 + $0x140] sm:$0xff]  ;;  %v384_v19 = vld [vmem:[%s4378_s19 + $0x148] sm:$0xff] }
  0xe5   : > { %558 = vst.msk [vmem:[#allocation2 + $0x381] sm:$0xff] %vm171_vm1, %v429_v20  ;;  %v709_v27 = vld [vmem:[#allocation2 + $0x371] ss:$2 sm:$0xff] }
  0xe6   : > { %4011 = vmatmul.msk.f32.gmra.mxu1 %vm171_vm1, %v693_v21  ;;  %559 = vst.msk [vmem:[#allocation2 + $0x389] sm:$0xff] %vm171_vm1, %v430_v22 }
  0xe7   : > { %v675_v28 = vld [vmem:[#allocation2 + $0xb1] ss:$2 sm:$0xff]  ;;  %492 = vst.msk [vmem:[#allocation2 + $0xf1] sm:$0xff] %vm171_vm1, %v363_v23  ;;  %v610_v11 = vld [vmem:[#allocation2 + $0xb0] ss:$2 sm:$0xff] }
  0xe8   : > { %4002 = vmatmul.msk.f32.gmra.mxu0 %vm171_vm1, %v675_v28  ;;  %493 = vst.msk [vmem:[#allocation2 + $0xf9] sm:$0xff] %vm171_vm1, %v364_v25  ;;  %v1166_v15 = vld [vmem:[#allocation2 + $0xb2] ss:$2 sm:$0xff]  ;;  %v4962_v28 = vpop.f32.mrf.mxu1 }
  0xe9   : > { %v725_v31 = vld [vmem:[#allocation2 + $0x4b1] ss:$2 sm:$0xff]  ;;  %590 = vst.msk [vmem:[#allocation2 + $0x4c1] sm:$0xff] %vm171_vm1, %v461_v26 }
  0xea   : > { %4019 = vmatmul.msk.f32.gmra.mxu2 %vm171_vm1, %v709_v27  ;;  %591 = vst.msk [vmem:[#allocation2 + $0x4c9] sm:$0xff] %vm171_vm1, %v462_v29  ;;  %v386_v25 = vld [vmem:[%s4378_s19 + $0x158] sm:$0xff] }
  0xeb   : > { %v695_v34 = vld [vmem:[#allocation2 + $0x241] ss:$2 sm:$0xff]  ;;  %494 = vst.msk [vmem:[#allocation2 + $0x101] sm:$0xff] %vm171_vm1, %v365_v30  ;;  %v616_v30 = vld [vmem:[#allocation2 + $0x140] ss:$2 sm:$0xff] }
  0xec   : > { %4027 = vmatmul.msk.f32.gmra.mxu3 %vm171_vm1, %v725_v31  ;;  %495 = vst.msk [vmem:[#allocation2 + $0x109] sm:$0xff] %vm171_vm1, %v366_v32  ;;  %v391_v31 = vld [vmem:[%s4378_s19 + $0x180] sm:$0xff]  ;;  %v392_v32 = vld [vmem:[%s4378_s19 + $0x188] sm:$0xff] }
  0xed   : > { %472 = vst.msk [vmem:[#allocation2 + $0x29] sm:$0xff] %vm171_vm1, %v343_v33  ;;  %v711_v39 = vld [vmem:[#allocation2 + $0x381] ss:$2 sm:$0xff] }
  0xee   : > { %4012 = vmatmul.msk.f32.gmra.mxu1 %vm171_vm1, %v695_v34  ;;  %473 = vst.msk [vmem:[#allocation2 + $0x31] sm:$0xff] %vm171_vm1, %v344_v35  ;;  %v1172_v34 = vld [vmem:[#allocation2 + $0x142] ss:$2 sm:$0xff] }
  0xef   : > { %v677_v40 = vld [vmem:[#allocation2 + $0xf1] ss:$2 sm:$0xff]  ;;  %474 = vst.msk [vmem:[#allocation2 + $0x39] sm:$0xff] %vm171_vm1, %v345_v36  ;;  %v612_v17 = vld [vmem:[#allocation2 + $0xf0] ss:$2 sm:$0xff] }
  0xf0   : > { %4003 = vmatmul.msk.f32.gmra.mxu0 %vm171_vm1, %v677_v40  ;;  %475 = vst.msk [vmem:[#allocation2 + $0x41] sm:$0xff] %vm171_vm1, %v346_v37  ;;  %v1168_v21 = vld [vmem:[#allocation2 + $0xf2] ss:$2 sm:$0xff]  ;;  %v4975_v37 = vpop.f32.mrf.mxu0 }
  0xf1   : > { %v727_v43 = vld [vmem:[#allocation2 + $0x4c1] ss:$2 sm:$0xff]  ;;  %480 = vst.msk [vmem:[#allocation2 + $0x79] sm:$0xff] %vm171_vm1, %v351_v38  ;;  %v393_v40 = vld [vmem:[%s4378_s19 + $0x190] sm:$0xff] }
  0xf2   : > { %4020 = vmatmul.msk.f32.gmra.mxu2 %vm171_vm1, %v711_v39  ;;  %481 = vst.msk [vmem:[#allocation2 + $0x81] sm:$0xff] %vm171_vm1, %v352_v41  ;;  %v618_v39 = vld [vmem:[#allocation2 + $0x150] ss:$2 sm:$0xff] }
  0xf3   : > { %482 = vst.msk [vmem:[#allocation2 + $0x89] sm:$0xff] %vm171_vm1, %v353_v42  ;;  %v679_v48 = vld [vmem:[#allocation2 + $0x101] ss:$2 sm:$0xff]  ;;  %v614_v23 = vld [vmem:[#allocation2 + $0x100] ss:$2 sm:$0xff]  ;;  %v394_v41 = vld [vmem:[%s4378_s19 + $0x198] sm:$0xff] }
  0xf4   : > { %4028 = vmatmul.msk.f32.gmra.mxu3 %vm171_vm1, %v727_v43  ;;  %483 = vst.msk [vmem:[#allocation2 + $0x91] sm:$0xff] %vm171_vm1, %v354_v44  ;;  %v1170_v27 = vld [vmem:[#allocation2 + $0x102] ss:$2 sm:$0xff]  ;;  %v1174_v44 = vld [vmem:[#allocation2 + $0x152] ss:$2 sm:$0xff] }
  0xf5   : > { %488 = vst.msk [vmem:[#allocation2 + $0xc9] sm:$0xff] %vm171_vm1, %v359_v46  ;;  %v1465_v50 = vld [vmem:[#allocation2 + $0x28] ss:$2 sm:$0xff]  ;;  %v1775_v54 = vld [vmem:[#allocation2 + $0x29] ss:$2 sm:$0xff] }
  0xf6   : > { %4030 = vmatmul.msk.f32.vlgmr.msrb.gmra.mxu1 %vm171_vm1, %v600_v45  ;;  %489 = vst.msk [vmem:[#allocation2 + $0xd1] sm:$0xff] %vm171_vm1, %v360_v47 }
  0xf7   : > { %490 = vst.msk [vmem:[#allocation2 + $0xd9] sm:$0xff] %vm171_vm1, %v361_v52  ;;  %v1467_v56 = vld [vmem:[#allocation2 + $0x38] ss:$2 sm:$0xff]  ;;  %v1777_v60 = vld [vmem:[#allocation2 + $0x39] ss:$2 sm:$0xff] }
  0xf8   : > { %4004 = vmatmul.msk.f32.gmra.mxu0 %vm171_vm1, %v679_v48  ;;  %491 = vst.msk [vmem:[#allocation2 + $0xe1] sm:$0xff] %vm171_vm1, %v362_v53  ;;  %v4992_v47 = vpop.f32.mrf.mxu0  ;;  %v620_v48 = vld [vmem:[#allocation2 + $0x190] ss:$2 sm:$0xff] }
  0xf9   : > { %496 = vst.msk [vmem:[#allocation2 + $0x119] sm:$0xff] %vm171_vm1, %v367_v58  ;;  %v1469_v62 = vld [vmem:[#allocation2 + $0x78] ss:$2 sm:$0xff]  ;;  %v1779_v2 = vld [vmem:[#allocation2 + $0x79] ss:$2 sm:$0xff]  ;;  %v401_v58 = vld [vmem:[%s4378_s19 + $0x1d0] sm:$0xff] }
  0xfa   : > { %4064 = vmatmul.msk.f32.vlgmr.msrb.gmra.mxu2 %vm171_vm1, %v1156_v49  ;;  %497 = vst.msk [vmem:[#allocation2 + $0x121] sm:$0xff] %vm171_vm1, %v368_v59  ;;  %v399_v49 = vld [vmem:[%s4378_s19 + $0x1c0] sm:$0xff]  ;;  %v402_v59 = vld [vmem:[%s4378_s19 + $0x1d8] sm:$0xff] }
  0xfb   : > { %498 = vst.msk [vmem:[#allocation2 + $0x129] sm:$0xff] %vm171_vm1, %v369_v0  ;;  %v1471_v4 = vld [vmem:[#allocation2 + $0x88] ss:$2 sm:$0xff]  ;;  %v1781_v8 = vld [vmem:[#allocation2 + $0x89] ss:$2 sm:$0xff] }
  0xfc   : > { %4098 = vmatmul.msk.f32.vlgmr.msrb.gmra.mxu3 %vm171_vm1, %v1465_v50  ;;  %499 = vst.msk [vmem:[#allocation2 + $0x131] sm:$0xff] %vm171_vm1, %v370_v1  ;;  %v400_v50 = vld [vmem:[%s4378_s19 + $0x1c8] sm:$0xff] }
  0xfd   : > { %504 = vst.msk [vmem:[#allocation2 + $0x169] sm:$0xff] %vm171_vm1, %v375_v6  ;;  %v1473_v10 = vld [vmem:[#allocation2 + $0xc8] ss:$2 sm:$0xff]  ;;  %v1783_v14 = vld [vmem:[#allocation2 + $0xc9] ss:$2 sm:$0xff] }
  0xfe   : > { %4031 = vmatmul.msk.f32.gmra.mxu1 %vm171_vm1, %v602_v51  ;;  %505 = vst.msk [vmem:[#allocation2 + $0x171] sm:$0xff] %vm171_vm1, %v376_v7  ;;  %v1178_v0 = vld [vmem:[#allocation2 + $0x1a2] ss:$2 sm:$0xff] }
  0xff   : > { %506 = vst.msk [vmem:[#allocation2 + $0x179] sm:$0xff] %vm171_vm1, %v377_v12  ;;  %v1475_v16 = vld [vmem:[#allocation2 + $0xd8] ss:$2 sm:$0xff]  ;;  %v1785_v20 = vld [vmem:[#allocation2 + $0xd9] ss:$2 sm:$0xff] }
 0x100   : > { %4132 = vmatmul.msk.f32.vlgmr.msrb.gmra.mxu0 %vm171_vm1, %v1775_v54  ;;  %507 = vst.msk [vmem:[#allocation2 + $0x181] sm:$0xff] %vm171_vm1, %v378_v13  ;;  %v1176_v54 = vld [vmem:[#allocation2 + $0x192] ss:$2 sm:$0xff] }
 0x101   : > { %512 = vst.msk [vmem:[#allocation2 + $0x1b9] sm:$0xff] %vm171_vm1, %v383_v18  ;;  %v1477_v22 = vld [vmem:[#allocation2 + $0x118] ss:$2 sm:$0xff]  ;;  %v1787_v26 = vld [vmem:[#allocation2 + $0x119] ss:$2 sm:$0xff] }
 0x102   : > { %4065 = vmatmul.msk.f32.gmra.mxu2 %vm171_vm1, %v1158_v55  ;;  %513 = vst.msk [vmem:[#allocation2 + $0x1c1] sm:$0xff] %vm171_vm1, %v384_v19  ;;  %v626_v13 = vld [vmem:[#allocation2 + $0x1f0] ss:$2 sm:$0xff] }
 0x103   : > { %514 = vst.msk [vmem:[#allocation2 + $0x1c9] sm:$0xff] %vm171_vm1, %v385_v24  ;;  %v1479_v29 = vld [vmem:[#allocation2 + $0x128] ss:$2 sm:$0xff]  ;;  %v1789_v33 = vld [vmem:[#allocation2 + $0x129] ss:$2 sm:$0xff]  ;;  %v415_v24 = vld [vmem:[%s4378_s19 + $0x240] sm:$0xff] }
 0x104   : > { %4099 = vmatmul.msk.f32.gmra.mxu3 %vm171_vm1, %v1467_v56  ;;  %515 = vst.msk [vmem:[#allocation2 + $0x1d1] sm:$0xff] %vm171_vm1, %v386_v25  ;;  %v416_v25 = vld [vmem:[%s4378_s19 + $0x248] sm:$0xff] }
 0x105   : > { %520 = vst.msk [vmem:[#allocation2 + $0x209] sm:$0xff] %vm171_vm1, %v391_v31  ;;  %v1481_v35 = vld [vmem:[#allocation2 + $0x168] ss:$2 sm:$0xff]  ;;  %v1791_v43 = vld [vmem:[#allocation2 + $0x169] ss:$2 sm:$0xff] }
 0x106   : > { %4032 = vmatmul.msk.f32.gmra.mxu1 %vm171_vm1, %v604_v57  ;;  %521 = vst.msk [vmem:[#allocation2 + $0x211] sm:$0xff] %vm171_vm1, %v392_v32  ;;  %v622_v57 = vld [vmem:[#allocation2 + $0x1a0] ss:$2 sm:$0xff] }
 0x107   : > { %522 = vst.msk [vmem:[#allocation2 + $0x219] sm:$0xff] %vm171_vm1, %v393_v40  ;;  %v1483_v45 = vld [vmem:[#allocation2 + $0x178] ss:$2 sm:$0xff]  ;;  %v1793_v52 = vld [vmem:[#allocation2 + $0x179] ss:$2 sm:$0xff] }
 0x108   : > { %4133 = vmatmul.msk.f32.gmra.mxu0 %vm171_vm1, %v1777_v60  ;;  %523 = vst.msk [vmem:[#allocation2 + $0x221] sm:$0xff] %vm171_vm1, %v394_v41  ;;  %v1184_v31 = vld [vmem:[#allocation2 + $0x232] ss:$2 sm:$0xff] }
 0x109   : > { %528 = vst.msk [vmem:[#allocation2 + $0x259] sm:$0xff] %vm171_vm1, %v399_v49  ;;  %v1485_v55 = vld [vmem:[#allocation2 + $0x1b8] ss:$2 sm:$0xff] }
 0x10a   : > { %4066 = vmatmul.msk.f32.gmra.mxu2 %vm171_vm1, %v1160_v61  ;;  %529 = vst.msk [vmem:[#allocation2 + $0x261] sm:$0xff] %vm171_vm1, %v400_v50  ;;  %v632_v50 = vld [vmem:[#allocation2 + $0x280] ss:$2 sm:$0xff] }
 0x10b   : > { %530 = vst.msk [vmem:[#allocation2 + $0x269] sm:$0xff] %vm171_vm1, %v401_v58  ;;  %v1487_v1 = vld [vmem:[#allocation2 + $0x1c8] ss:$2 sm:$0xff] }
 0x10c   : > { %4100 = vmatmul.msk.f32.gmra.mxu3 %vm171_vm1, %v1469_v62  ;;  %v1795_v62 = vld [vmem:[#allocation2 + $0x1b9] ss:$2 sm:$0xff]  ;;  %531 = vst.msk [vmem:[#allocation2 + $0x271] sm:$0xff] %vm171_vm1, %v402_v59 }
 0x10d   : > { %v1799_v18 = vld [vmem:[#allocation2 + $0x209] ss:$2 sm:$0xff]  ;;  %544 = vst.msk [vmem:[#allocation2 + $0x2f9] sm:$0xff] %vm171_vm1, %v415_v24  ;;  %v636_v24 = vld [vmem:[#allocation2 + $0x2d0] ss:$2 sm:$0xff] }
 0x10e   : > { %4033 = vmatmul.msk.f32.gmra.mxu1 %vm171_vm1, %v606_v63  ;;  %545 = vst.msk [vmem:[#allocation2 + $0x301] sm:$0xff] %vm171_vm1, %v416_v25  ;;  %v431_v25 = vld [vmem:[%s4378_s19 + $0x2c0] sm:$0xff] }
 0x10f   : > { %560 = vst.msk [vmem:[#allocation2 + $0x399] sm:$0xff] %vm171_vm1, %v431_v25 }
 0x110   : > { %4134 = vmatmul.msk.f32.gmra.mxu0 %vm171_vm1, %v1779_v2 }
 0x111   : > { %v1493_v32 = vld [vmem:[#allocation2 + $0x258] ss:$2 sm:$0xff] }
 0x112   : > { %4067 = vmatmul.msk.f32.gmra.mxu2 %vm171_vm1, %v1162_v3  ;;  %v624_v3 = vld [vmem:[#allocation2 + $0x1e0] ss:$2 sm:$0xff] }
 0x113   : > { %v1805_v58 = vld [vmem:[#allocation2 + $0x269] ss:$2 sm:$0xff] }
 0x114   : > { %4101 = vmatmul.msk.f32.gmra.mxu3 %vm171_vm1, %v1471_v4  ;;  %v407_v4 = vld [vmem:[%s4378_s19 + $0x200] sm:$0xff] }
 0x115   : > { %536 = vst.msk [vmem:[#allocation2 + $0x2a9] sm:$0xff] %vm171_vm1, %v407_v4  ;;  %v425_v4 = vld [vmem:[%s4378_s19 + $0x290] sm:$0xff] }
 0x116   : > { %4034 = vmatmul.msk.f32.gmra.mxu1 %vm171_vm1, %v608_v5  ;;  %v408_v5 = vld [vmem:[%s4378_s19 + $0x208] sm:$0xff]  ;;  %554 = vst.msk [vmem:[#allocation2 + $0x359] sm:$0xff] %vm171_vm1, %v425_v4 }
 0x117   : > { %537 = vst.msk [vmem:[#allocation2 + $0x2b1] sm:$0xff] %vm171_vm1, %v408_v5  ;;  %v426_v5 = vld [vmem:[%s4378_s19 + $0x298] sm:$0xff] }
 0x118   : > { %4135 = vmatmul.msk.f32.gmra.mxu0 %vm171_vm1, %v1781_v8  ;;  %v1797_v8 = vld [vmem:[#allocation2 + $0x1c9] ss:$2 sm:$0xff]  ;;  %555 = vst.msk [vmem:[#allocation2 + $0x361] sm:$0xff] %vm171_vm1, %v426_v5 }
 0x11a   : > { %4068 = vmatmul.msk.f32.gmra.mxu2 %vm171_vm1, %v1164_v9 }
 0x11c   : > { %4102 = vmatmul.msk.f32.gmra.mxu3 %vm171_vm1, %v1473_v10  ;;  %v1180_v10 = vld [vmem:[#allocation2 + $0x1e2] ss:$2 sm:$0xff] }
 0x11d   : > { %v4973_v36 = vpop.f32.mrf.mxu1 }
 0x11e   : > { %4035 = vmatmul.msk.f32.gmra.mxu1 %vm171_vm1, %v610_v11  ;;  %v4978_v38 = vpop.f32.mrf.mxu2  ;;  %v1489_v11 = vld [vmem:[#allocation2 + $0x208] ss:$2 sm:$0xff] }
 0x120   : > { %4136 = vmatmul.msk.f32.gmra.mxu0 %vm171_vm1, %v1783_v14  ;;  %v4984_v42 = vpop.f32.mrf.mxu3  ;;  %v409_v14 = vld [vmem:[%s4378_s19 + $0x210] sm:$0xff] }
 0x121   : > { %538 = vst.msk [vmem:[#allocation2 + $0x2b9] sm:$0xff] %vm171_vm1, %v409_v14 }
 0x122   : > { %4069 = vmatmul.msk.f32.gmra.mxu2 %vm171_vm1, %v1166_v15  ;;  %v410_v15 = vld [vmem:[%s4378_s19 + $0x218] sm:$0xff] }
 0x123   : > { %539 = vst.msk [vmem:[#allocation2 + $0x2c1] sm:$0xff] %vm171_vm1, %v410_v15 }
 0x124   : > { %4103 = vmatmul.msk.f32.gmra.mxu3 %vm171_vm1, %v1475_v16 }
 0x126   : > { %4036 = vmatmul.msk.f32.gmra.mxu1 %vm171_vm1, %v612_v17 }
 0x128   : > { %4137 = vmatmul.msk.f32.gmra.mxu0 %vm171_vm1, %v1785_v20  ;;  %v1182_v20 = vld [vmem:[#allocation2 + $0x1f2] ss:$2 sm:$0xff] }
 0x12a   : > { %4070 = vmatmul.msk.f32.gmra.mxu2 %vm171_vm1, %v1168_v21  ;;  %v1491_v21 = vld [vmem:[#allocation2 + $0x218] ss:$2 sm:$0xff] }
 0x12c   : > { %4104 = vmatmul.msk.f32.gmra.mxu3 %vm171_vm1, %v1477_v22 }
 0x12e   : > { %4037 = vmatmul.msk.f32.gmra.mxu1 %vm171_vm1, %v614_v23  ;;  %v628_v23 = vld [vmem:[#allocation2 + $0x230] ss:$2 sm:$0xff] }
 0x130   : > { %4138 = vmatmul.msk.f32.gmra.mxu0 %vm171_vm1, %v1787_v26 }
 0x132   : > { %4071 = vmatmul.msk.f32.gmra.mxu2 %vm171_vm1, %v1170_v27 }
 0x134   : > { %4105 = vmatmul.msk.f32.gmra.mxu3 %vm171_vm1, %v1479_v29  ;;  %v1801_v29 = vld [vmem:[#allocation2 + $0x219] ss:$2 sm:$0xff] }
 0x136   : > { %4038 = vmatmul.msk.f32.gmra.mxu1 %vm171_vm1, %v616_v30 }
 0x138   : > { %4139 = vmatmul.msk.f32.gmra.mxu0 %vm171_vm1, %v1789_v33 }
 0x13a   : > { %4072 = vmatmul.msk.f32.gmra.mxu2 %vm171_vm1, %v1172_v34  ;;  %v630_v34 = vld [vmem:[#allocation2 + $0x240] ss:$2 sm:$0xff] }
 0x13c   : > { %4106 = vmatmul.msk.f32.gmra.mxu3 %vm171_vm1, %v1481_v35  ;;  %v417_v35 = vld [vmem:[%s4378_s19 + $0x250] sm:$0xff] }
 0x13d   : > { %546 = vst.msk [vmem:[#allocation2 + $0x309] sm:$0xff] %vm171_vm1, %v417_v35  ;;  %v1809_v35 = vld [vmem:[#allocation2 + $0x2b9] ss:$2 sm:$0xff] }
 0x13e   : > { %4039 = vmatmul.msk.f32.gmra.mxu1 %vm171_vm1, %v618_v39  ;;  %v418_v39 = vld [vmem:[%s4378_s19 + $0x258] sm:$0xff] }
 0x13f   : > { %547 = vst.msk [vmem:[#allocation2 + $0x311] sm:$0xff] %vm171_vm1, %v418_v39 }
 0x140   : > { %4140 = vmatmul.msk.f32.gmra.mxu0 %vm171_vm1, %v1791_v43  ;;  %v1803_v43 = vld [vmem:[#allocation2 + $0x259] ss:$2 sm:$0xff] }
 0x142   : > { %4073 = vmatmul.msk.f32.gmra.mxu2 %vm171_vm1, %v1174_v44 }
 0x143   : > { %v4990_v46 = vpop.f32.mrf.mxu1 }
 0x144   : > { %4107 = vmatmul.msk.f32.gmra.mxu3 %vm171_vm1, %v1483_v45  ;;  %v1186_v45 = vld [vmem:[#allocation2 + $0x242] ss:$2 sm:$0xff] }
 0x145   : > { %v4998_v51 = vpop.f32.mrf.mxu2 }
 0x146   : > { %4040 = vmatmul.msk.f32.gmra.mxu1 %vm171_vm1, %v620_v48  ;;  %v1495_v48 = vld [vmem:[#allocation2 + $0x268] ss:$2 sm:$0xff] }
 0x147   : > { %v5002_v53 = vpop.f32.mrf.mxu3 }
 0x148   : > { %4141 = vmatmul.msk.f32.gmra.mxu0 %vm171_vm1, %v1793_v52  ;;  %v423_v52 = vld [vmem:[%s4378_s19 + $0x280] sm:$0xff] }
 0x149   : > { %552 = vst.msk [vmem:[#allocation2 + $0x349] sm:$0xff] %vm171_vm1, %v423_v52  ;;  %v638_v52 = vld [vmem:[#allocation2 + $0x2e0] ss:$2 sm:$0xff] }
 0x14a   : > { %4074 = vmatmul.msk.f32.gmra.mxu2 %vm171_vm1, %v1176_v54  ;;  %v424_v54 = vld [vmem:[%s4378_s19 + $0x288] sm:$0xff] }
 0x14b   : > { %v5006_v56 = vpop.f32.mrf.mxu1  ;;  %553 = vst.msk [vmem:[#allocation2 + $0x351] sm:$0xff] %vm171_vm1, %v424_v54  ;;  %v433_v54 = vld [vmem:[%s4378_s19 + $0x2d0] sm:$0xff] }
 0x14c   : > { %4108 = vmatmul.msk.f32.gmra.mxu3 %vm171_vm1, %v1485_v55  ;;  %562 = vst.msk [vmem:[#allocation2 + $0x3a9] sm:$0xff] %vm171_vm1, %v433_v54 }
 0x14d   : > { %v5012_v60 = vpop.f32.mrf.mxu2  ;;  %v5014_v61 = vpop.f32.mrf.mxu0 }
 0x14e   : > { %4041 = vmatmul.msk.f32.gmra.mxu1 %vm171_vm1, %v622_v57 }
 0x14f   : > { %v5018_v63 = vpop.f32.mrf.mxu3 }
 0x150   : > { %4142 = vmatmul.msk.f32.gmra.mxu0 %vm171_vm1, %v1795_v62  ;;  %v1188_v62 = vld [vmem:[#allocation2 + $0x282] ss:$2 sm:$0xff] }
 0x152   : > { %4075 = vmatmul.msk.f32.gmra.mxu2 %vm171_vm1, %v1178_v0  ;;  %v1497_v0 = vld [vmem:[#allocation2 + $0x2a8] ss:$2 sm:$0xff] }
 0x153   : > { %v5022_v2 = vpop.f32.mrf.mxu1 }
 0x154   : > { %4109 = vmatmul.msk.f32.gmra.mxu3 %vm171_vm1, %v1487_v1 }
 0x155   : > { %v5028_v6 = vpop.f32.mrf.mxu2  ;;  %v5030_v7 = vpop.f32.mrf.mxu0 }
 0x156   : > { %4042 = vmatmul.msk.f32.gmra.mxu1 %vm171_vm1, %v624_v3  ;;  %v634_v3 = vld [vmem:[#allocation2 + $0x290] ss:$2 sm:$0xff] }
 0x157   : > { %v5034_v9 = vpop.f32.mrf.mxu3 }
 0x158   : > { %4143 = vmatmul.msk.f32.gmra.mxu0 %vm171_vm1, %v1797_v8 }
 0x15a   : > { %4076 = vmatmul.msk.f32.gmra.mxu2 %vm171_vm1, %v1180_v10 }
 0x15b   : > { %v5038_v12 = vpop.f32.mrf.mxu1 }
 0x15c   : > { %4110 = vmatmul.msk.f32.gmra.mxu3 %vm171_vm1, %v1489_v11 }
 0x15d   : > { %v5044_v16 = vpop.f32.mrf.mxu2  ;;  %v5046_v17 = vpop.f32.mrf.mxu0 }
 0x15e   : > { %4043 = vmatmul.msk.f32.gmra.mxu1 %vm171_vm1, %v626_v13  ;;  %v1807_v13 = vld [vmem:[#allocation2 + $0x2a9] ss:$2 sm:$0xff] }
 0x15f   : > { %v5050_v19 = vpop.f32.mrf.mxu3 }
 0x160   : > { %4144 = vmatmul.msk.f32.gmra.mxu0 %vm171_vm1, %v1799_v18  ;;  %v1190_v18 = vld [vmem:[#allocation2 + $0x292] ss:$2 sm:$0xff] }
 0x162   : > { %4077 = vmatmul.msk.f32.gmra.mxu2 %vm171_vm1, %v1182_v20 }
 0x163   : > { %v5054_v22 = vpop.f32.mrf.mxu1 }
 0x164   : > { %4111 = vmatmul.msk.f32.gmra.mxu3 %vm171_vm1, %v1491_v21 }
 0x165   : > { %v5060_v26 = vpop.f32.mrf.mxu2  ;;  %v5062_v27 = vpop.f32.mrf.mxu0 }
 0x166   : > { %4044 = vmatmul.msk.f32.gmra.mxu1 %vm171_vm1, %v628_v23 }
 0x167   : > { %v5066_v30 = vpop.f32.mrf.mxu3 }
 0x168   : > { %4145 = vmatmul.msk.f32.gmra.mxu0 %vm171_vm1, %v1801_v29  ;;  %v432_v29 = vld [vmem:[%s4378_s19 + $0x2c8] sm:$0xff] }
 0x169   : > { %561 = vst.msk [vmem:[#allocation2 + $0x3a1] sm:$0xff] %vm171_vm1, %v432_v29 }
 0x16a   : > { %4078 = vmatmul.msk.f32.gmra.mxu2 %vm171_vm1, %v1184_v31 }
 0x16b   : > { %v5070_v33 = vpop.f32.mrf.mxu1 }
 0x16c   : > { %4112 = vmatmul.msk.f32.gmra.mxu3 %vm171_vm1, %v1493_v32 }
 0x16d   : > { %v5076_v40 = vpop.f32.mrf.mxu2  ;;  %v5078_v41 = vpop.f32.mrf.mxu0 }
 0x16e   : > { %4045 = vmatmul.msk.f32.gmra.mxu1 %vm171_vm1, %v630_v34 }
 0x16f   : > { %v5082_v44 = vpop.f32.mrf.mxu3 }
 0x170   : > { %4146 = vmatmul.msk.f32.gmra.mxu0 %vm171_vm1, %v1803_v43 }
 0x172   : > { %4079 = vmatmul.msk.f32.gmra.mxu2 %vm171_vm1, %v1186_v45  ;;  %v1192_v45 = vld [vmem:[#allocation2 + $0x2d2] ss:$2 sm:$0xff] }
 0x173   : > { %v1059_v49 = vpop.f32.mrf.mxu1 }
 0x174   : > { %4113 = vmatmul.msk.f32.gmra.mxu3 %vm171_vm1, %v1495_v48  ;;  %v1060_v8 = vadd.f32 %v1059_v49, %v4975_v37  ;;  %v1499_v37 = vld [vmem:[#allocation2 + $0x2b8] ss:$2 sm:$0xff] }
 0x175   : > { %v5090_v55 = vpop.f32.mrf.mxu2  ;;  %v5092_v57 = vpop.f32.mrf.mxu0 }
 0x176   : > { %4046 = vmatmul.msk.f32.gmra.mxu1 %vm171_vm1, %v632_v50 }
 0x177   : > { %v5096_v59 = vpop.f32.mrf.mxu3 }
 0x178   : > { %4147 = vmatmul.msk.f32.gmra.mxu0 %vm171_vm1, %v1805_v58  ;;  %v434_v58 = vld [vmem:[%s4378_s19 + $0x2d8] sm:$0xff] }
 0x179   : > { %563 = vst.msk [vmem:[#allocation2 + $0x3b1] sm:$0xff] %vm171_vm1, %v434_v58 }
 0x17a   : > { %4080 = vmatmul.msk.f32.gmra.mxu2 %vm171_vm1, %v1188_v62 }
 0x17b   : > { %v1062_v1 = vpop.f32.mrf.mxu1 }
 0x17c   : > { %4114 = vmatmul.msk.f32.gmra.mxu3 %vm171_vm1, %v1497_v0  ;;  %v1063_v31 = vadd.f32 %v1062_v1, %v4992_v47  ;;  %v1501_v47 = vld [vmem:[#allocation2 + $0x2f8] ss:$2 sm:$0xff] }
 0x17d   : > { %v1337_v10 = vpop.f32.mrf.mxu2  ;;  %v1956_v11 = vpop.f32.mrf.mxu0 }
 0x17e   : > { %v1433_v14 = vadd.f32 %v1337_v10, %v1060_v8  ;;  %4047 = vmatmul.msk.f32.gmra.mxu1 %vm171_vm1, %v634_v3  ;;  %v1811_v3 = vld [vmem:[#allocation2 + $0x2f9] ss:$2 sm:$0xff]  ;;  %v1194_v8 = vld [vmem:[#allocation2 + $0x2e2] ss:$2 sm:$0xff] }
 0x17f   : > { %v1646_v15 = vpop.f32.mrf.mxu3 }
 0x180   : > { %v1742_v20 = vadd.f32 %v1646_v15, %v1433_v14  ;;  %4148 = vmatmul.msk.f32.gmra.mxu0 %vm171_vm1, %v1807_v13  ;;  %v640_v14 = vld [vmem:[#allocation2 + $0x320] ss:$2 sm:$0xff] }
 0x181   : > { %v439_v15 = vld [vmem:[%s4378_s19 + $0x300] sm:$0xff] }
 0x182   : > { %v5108_v21 = vadd.f32 %v1956_v11, %v1742_v20  ;;  %4081 = vmatmul.msk.f32.gmra.mxu2 %vm171_vm1, %v1190_v18  ;;  %v440_v18 = vld [vmem:[%s4378_s19 + $0x308] sm:$0xff]  ;;  %568 = vst.msk [vmem:[#allocation2 + $0x3e9] sm:$0xff] %vm171_vm1, %v439_v15 }
 0x183   : > { %v1065_v23 = vpop.f32.mrf.mxu1  ;;  %569 = vst.msk [vmem:[#allocation2 + $0x3f1] sm:$0xff] %vm171_vm1, %v440_v18 }
 0x184   : > { %4115 = vmatmul.msk.f32.gmra.mxu3 %vm171_vm1, %v1499_v37  ;;  %v1066_v62 = vadd.f32 %v1065_v23, %v5014_v61  ;;  %v1503_v61 = vld [vmem:[#allocation2 + $0x308] ss:$2 sm:$0xff] }
 0x185   : > { %v1340_v32 = vpop.f32.mrf.mxu2  ;;  %v1959_v34 = vpop.f32.mrf.mxu0 }
 0x186   : > { %v1434_v39 = vadd.f32 %v1340_v32, %v1063_v31  ;;  %4048 = vmatmul.msk.f32.gmra.mxu1 %vm171_vm1, %v636_v24  ;;  %v1813_v24 = vld [vmem:[#allocation2 + $0x309] ss:$2 sm:$0xff]  ;;  %v1196_v31 = vld [vmem:[#allocation2 + $0x322] ss:$2 sm:$0xff] }
 0x187   : > { %v1649_v43 = vpop.f32.mrf.mxu3 }
 0x188   : > { %v1743_v48 = vadd.f32 %v1649_v43, %v1434_v39  ;;  %4149 = vmatmul.msk.f32.gmra.mxu0 %vm171_vm1, %v1809_v35  ;;  %v642_v39 = vld [vmem:[#allocation2 + $0x330] ss:$2 sm:$0xff] }
 0x189   : > { %v441_v43 = vld [vmem:[%s4378_s19 + $0x310] sm:$0xff] }
 0x18a   : > { %v5119_v49 = vadd.f32 %v1959_v34, %v1743_v48  ;;  %4082 = vmatmul.msk.f32.gmra.mxu2 %vm171_vm1, %v1192_v45  ;;  %v442_v45 = vld [vmem:[%s4378_s19 + $0x318] sm:$0xff]  ;;  %570 = vst.msk [vmem:[#allocation2 + $0x3f9] sm:$0xff] %vm171_vm1, %v441_v43 }
 0x18b   : > { %v1068_v50 = vpop.f32.mrf.mxu1  ;;  %571 = vst.msk [vmem:[#allocation2 + $0x401] sm:$0xff] %vm171_vm1, %v442_v45 }
 0x18c   : > { %4116 = vmatmul.msk.f32.gmra.mxu3 %vm171_vm1, %v1501_v47  ;;  %v1069_v20 = vadd.f32 %v1068_v50, %v5030_v7  ;;  %v1505_v7 = vld [vmem:[#allocation2 + $0x348] ss:$2 sm:$0xff] }
 0x18d   : > { %v1343_v0 = vpop.f32.mrf.mxu2  ;;  %v1962_v1 = vpop.f32.mrf.mxu0 }
 0x18e   : > { %v1435_v4 = vadd.f32 %v1343_v0, %v1066_v62  ;;  %4049 = vmatmul.msk.f32.gmra.mxu1 %vm171_vm1, %v638_v52  ;;  %v1815_v52 = vld [vmem:[#allocation2 + $0x349] ss:$2 sm:$0xff]  ;;  %v1198_v62 = vld [vmem:[#allocation2 + $0x332] ss:$2 sm:$0xff] }
 0x18f   : > { %v1652_v5 = vpop.f32.mrf.mxu3 }
 0x190   : > { %v1744_v10 = vadd.f32 %v1652_v5, %v1435_v4  ;;  %4150 = vmatmul.msk.f32.gmra.mxu0 %vm171_vm1, %v1811_v3  ;;  %v644_v4 = vld [vmem:[#allocation2 + $0x370] ss:$2 sm:$0xff]  ;;  %v447_v5 = vld [vmem:[%s4378_s19 + $0x340] sm:$0xff] }
 0x191   : > { %576 = vst.msk [vmem:[#allocation2 + $0x439] sm:$0xff] %vm171_vm1, %v447_v5 }
 0x192   : > { %v5130_v11 = vadd.f32 %v1962_v1, %v1744_v10  ;;  %4083 = vmatmul.msk.f32.gmra.mxu2 %vm171_vm1, %v1194_v8  ;;  %v448_v8 = vld [vmem:[%s4378_s19 + $0x348] sm:$0xff] }
 0x193   : > { %v1071_v13 = vpop.f32.mrf.mxu1  ;;  %577 = vst.msk [vmem:[#allocation2 + $0x441] sm:$0xff] %vm171_vm1, %v448_v8 }
 0x194   : > { %4117 = vmatmul.msk.f32.gmra.mxu3 %vm171_vm1, %v1503_v61  ;;  %v1072_v48 = vadd.f32 %v1071_v13, %v5046_v17  ;;  %v1507_v17 = vld [vmem:[#allocation2 + $0x358] ss:$2 sm:$0xff] }
 0x195   : > { %v1346_v37 = vpop.f32.mrf.mxu2  ;;  %v1965_v23 = vpop.f32.mrf.mxu0 }
 0x196   : > { %v1436_v25 = vadd.f32 %v1346_v37, %v1069_v20  ;;  %4050 = vmatmul.msk.f32.gmra.mxu1 %vm171_vm1, %v640_v14  ;;  %v1817_v14 = vld [vmem:[#allocation2 + $0x359] ss:$2 sm:$0xff]  ;;  %v1200_v20 = vld [vmem:[#allocation2 + $0x372] ss:$2 sm:$0xff] }
 0x197   : > { %v1655_v29 = vpop.f32.mrf.mxu3 }
 0x198   : > { %v1745_v32 = vadd.f32 %v1655_v29, %v1436_v25  ;;  %4151 = vmatmul.msk.f32.gmra.mxu0 %vm171_vm1, %v1813_v24  ;;  %v646_v25 = vld [vmem:[#allocation2 + $0x380] ss:$2 sm:$0xff]  ;;  %v449_v29 = vld [vmem:[%s4378_s19 + $0x350] sm:$0xff] }
 0x199   : > { %578 = vst.msk [vmem:[#allocation2 + $0x449] sm:$0xff] %vm171_vm1, %v449_v29 }
 0x19a   : > { %v5141_v34 = vadd.f32 %v1965_v23, %v1745_v32  ;;  %4084 = vmatmul.msk.f32.gmra.mxu2 %vm171_vm1, %v1196_v31  ;;  %v450_v31 = vld [vmem:[%s4378_s19 + $0x358] sm:$0xff] }
 0x19b   : > { %v1074_v35 = vpop.f32.mrf.mxu1  ;;  %579 = vst.msk [vmem:[#allocation2 + $0x451] sm:$0xff] %vm171_vm1, %v450_v31 }
 0x19c   : > { %4118 = vmatmul.msk.f32.gmra.mxu3 %vm171_vm1, %v1505_v7  ;;  %v1075_v10 = vadd.f32 %v1074_v35, %v5062_v27  ;;  %v1509_v27 = vld [vmem:[#allocation2 + $0x398] ss:$2 sm:$0xff] }
 0x19d   : > { %v1349_v47 = vpop.f32.mrf.mxu2  ;;  %v1968_v50 = vpop.f32.mrf.mxu0 }
 0x19e   : > { %v1437_v54 = vadd.f32 %v1349_v47, %v1072_v48  ;;  %4051 = vmatmul.msk.f32.gmra.mxu1 %vm171_vm1, %v642_v39  ;;  %v1819_v39 = vld [vmem:[#allocation2 + $0x399] ss:$2 sm:$0xff]  ;;  %v1202_v48 = vld [vmem:[#allocation2 + $0x382] ss:$2 sm:$0xff] }
 0x19f   : > { %v1658_v58 = vpop.f32.mrf.mxu3 }
 0x1a0   : > { %v1746_v0 = vadd.f32 %v1658_v58, %v1437_v54  ;;  %4152 = vmatmul.msk.f32.gmra.mxu0 %vm171_vm1, %v1815_v52  ;;  %v648_v54 = vld [vmem:[#allocation2 + $0x3c0] ss:$2 sm:$0xff] }
 0x1a1   : > { %v455_v58 = vld [vmem:[%s4378_s19 + $0x380] sm:$0xff] }
 0x1a2   : > { %v5152_v1 = vadd.f32 %v1968_v50, %v1746_v0  ;;  %4085 = vmatmul.msk.f32.gmra.mxu2 %vm171_vm1, %v1198_v62  ;;  %v456_v62 = vld [vmem:[%s4378_s19 + $0x388] sm:$0xff]  ;;  %584 = vst.msk [vmem:[#allocation2 + $0x489] sm:$0xff] %vm171_vm1, %v455_v58 }
 0x1a3   : > { %v1077_v3 = vpop.f32.mrf.mxu1  ;;  %585 = vst.msk [vmem:[#allocation2 + $0x491] sm:$0xff] %vm171_vm1, %v456_v62 }
 0x1a4   : > { %4119 = vmatmul.msk.f32.gmra.mxu3 %vm171_vm1, %v1507_v17  ;;  %v1078_v32 = vadd.f32 %v1077_v3, %v5078_v41  ;;  %v1511_v41 = vld [vmem:[#allocation2 + $0x3a8] ss:$2 sm:$0xff] }
 0x1a5   : > { %v1352_v61 = vpop.f32.mrf.mxu2  ;;  %v1971_v13 = vpop.f32.mrf.mxu0 }
 0x1a6   : > { %v1438_v15 = vadd.f32 %v1352_v61, %v1075_v10  ;;  %4052 = vmatmul.msk.f32.gmra.mxu1 %vm171_vm1, %v644_v4  ;;  %v1821_v4 = vld [vmem:[#allocation2 + $0x3a9] ss:$2 sm:$0xff]  ;;  %v1204_v10 = vld [vmem:[#allocation2 + $0x3c2] ss:$2 sm:$0xff] }
 0x1a7   : > { %v1661_v18 = vpop.f32.mrf.mxu3 }
 0x1a8   : > { %v1747_v37 = vadd.f32 %v1661_v18, %v1438_v15  ;;  %4153 = vmatmul.msk.f32.gmra.mxu0 %vm171_vm1, %v1817_v14  ;;  %v650_v15 = vld [vmem:[#allocation2 + $0x3d0] ss:$2 sm:$0xff] }
 0x1a9   : > { %v457_v18 = vld [vmem:[%s4378_s19 + $0x390] sm:$0xff] }
 0x1aa   : > { %v5163_v23 = vadd.f32 %v1971_v13, %v1747_v37  ;;  %4086 = vmatmul.msk.f32.gmra.mxu2 %vm171_vm1, %v1200_v20  ;;  %v458_v20 = vld [vmem:[%s4378_s19 + $0x398] sm:$0xff]  ;;  %586 = vst.msk [vmem:[#allocation2 + $0x499] sm:$0xff] %vm171_vm1, %v457_v18 }
 0x1ab   : > { %v1080_v24 = vpop.f32.mrf.mxu1  ;;  %587 = vst.msk [vmem:[#allocation2 + $0x4a1] sm:$0xff] %vm171_vm1, %v458_v20 }
 0x1ac   : > { %4120 = vmatmul.msk.f32.gmra.mxu3 %vm171_vm1, %v1509_v27  ;;  %v1081_v0 = vadd.f32 %v1080_v24, %v5092_v57  ;;  %v1513_v57 = vld [vmem:[#allocation2 + $0x3e8] ss:$2 sm:$0xff] }
 0x1ad   : > { %v1355_v7 = vpop.f32.mrf.mxu2  ;;  %v1974_v35 = vpop.f32.mrf.mxu0 }
 0x1ae   : > { %v1439_v43 = vadd.f32 %v1355_v7, %v1078_v32  ;;  %4053 = vmatmul.msk.f32.gmra.mxu1 %vm171_vm1, %v646_v25  ;;  %v1823_v25 = vld [vmem:[#allocation2 + $0x3e9] ss:$2 sm:$0xff]  ;;  %v1206_v32 = vld [vmem:[#allocation2 + $0x3d2] ss:$2 sm:$0xff] }
 0x1af   : > { %v1664_v45 = vpop.f32.mrf.mxu3 }
 0x1b0   : > { %v1748_v47 = vadd.f32 %v1664_v45, %v1439_v43  ;;  %4154 = vmatmul.msk.f32.gmra.mxu0 %vm171_vm1, %v1819_v39  ;;  %v652_v43 = vld [vmem:[#allocation2 + $0x410] ss:$2 sm:$0xff]  ;;  %v463_v45 = vld [vmem:[%s4378_s19 + $0x3c0] sm:$0xff] }
 0x1b1   : > { %592 = vst.msk [vmem:[#allocation2 + $0x4d9] sm:$0xff] %vm171_vm1, %v463_v45  ;;  %v1212_v45 = vld [vmem:[#allocation2 + $0x462] ss:$2 sm:$0xff] }
 0x1b2   : > { %v5174_v50 = vadd.f32 %v1974_v35, %v1748_v47  ;;  %4087 = vmatmul.msk.f32.gmra.mxu2 %vm171_vm1, %v1202_v48  ;;  %v464_v48 = vld [vmem:[%s4378_s19 + $0x3c8] sm:$0xff] }
 0x1b3   : > { %v1083_v52 = vpop.f32.mrf.mxu1  ;;  %593 = vst.msk [vmem:[#allocation2 + $0x4e1] sm:$0xff] %vm171_vm1, %v464_v48 }
 0x1b4   : > { %4121 = vmatmul.msk.f32.gmra.mxu3 %vm171_vm1, %v1511_v41  ;;  %v1084_v37 = vadd.f32 %v1083_v52, %v4962_v28  ;;  %v1515_v28 = vld [vmem:[#allocation2 + $0x3f8] ss:$2 sm:$0xff] }
 0x1b5   : > { %v1358_v17 = vpop.f32.mrf.mxu2  ;;  %v1977_v3 = vpop.f32.mrf.mxu0 }
 0x1b6   : > { %v1440_v5 = vadd.f32 %v1358_v17, %v1081_v0  ;;  %4054 = vmatmul.msk.f32.gmra.mxu1 %vm171_vm1, %v648_v54  ;;  %v1825_v54 = vld [vmem:[#allocation2 + $0x3f9] ss:$2 sm:$0xff]  ;;  %v1208_v0 = vld [vmem:[#allocation2 + $0x412] ss:$2 sm:$0xff] }
 0x1b7   : > { %v1667_v8 = vpop.f32.mrf.mxu3 }
 0x1b8   : > { %v1749_v61 = vadd.f32 %v1667_v8, %v1440_v5  ;;  %4155 = vmatmul.msk.f32.gmra.mxu0 %vm171_vm1, %v1821_v4  ;;  %v654_v5 = vld [vmem:[#allocation2 + $0x420] ss:$2 sm:$0xff]  ;;  %v465_v8 = vld [vmem:[%s4378_s19 + $0x3d0] sm:$0xff] }
 0x1b9   : > { %594 = vst.msk [vmem:[#allocation2 + $0x4e9] sm:$0xff] %vm171_vm1, %v465_v8  ;;  %v1523_v8 = vld [vmem:[#allocation2 + $0x498] ss:$2 sm:$0xff] }
 0x1ba   : > { %v5185_v13 = vadd.f32 %v1977_v3, %v1749_v61  ;;  %4088 = vmatmul.msk.f32.gmra.mxu2 %vm171_vm1, %v1204_v10  ;;  %v466_v10 = vld [vmem:[%s4378_s19 + $0x3d8] sm:$0xff] }
 0x1bb   : > { %v1086_v14 = vpop.f32.mrf.mxu1  ;;  %595 = vst.msk [vmem:[#allocation2 + $0x4f1] sm:$0xff] %vm171_vm1, %v466_v10 }
 0x1bc   : > { %4122 = vmatmul.msk.f32.gmra.mxu3 %vm171_vm1, %v1513_v57  ;;  %v1087_v47 = vadd.f32 %v1086_v14, %v4973_v36  ;;  %v1517_v36 = vld [vmem:[#allocation2 + $0x438] ss:$2 sm:$0xff] }
 0x1bd   : > { %v1361_v27 = vpop.f32.mrf.mxu2  ;;  %v1980_v24 = vpop.f32.mrf.mxu0 }
 0x1be   : > { %v1441_v29 = vadd.f32 %v1361_v27, %v1084_v37  ;;  %4055 = vmatmul.msk.f32.gmra.mxu1 %vm171_vm1, %v650_v15  ;;  %v1827_v15 = vld [vmem:[#allocation2 + $0x439] ss:$2 sm:$0xff]  ;;  %v1210_v37 = vld [vmem:[#allocation2 + $0x422] ss:$2 sm:$0xff] }
 0x1bf   : > { %v1670_v31 = vpop.f32.mrf.mxu3 }
 0x1c0   : > { %v1750_v7 = vadd.f32 %v1670_v31, %v1441_v29  ;;  %4156 = vmatmul.msk.f32.gmra.mxu0 %vm171_vm1, %v1823_v25  ;;  %v656_v29 = vld [vmem:[#allocation2 + $0x460] ss:$2 sm:$0xff] }
 0x1c2   : > { %v5196_v35 = vadd.f32 %v1980_v24, %v1750_v7  ;;  %4089 = vmatmul.msk.f32.gmra.mxu2 %vm171_vm1, %v1206_v32  ;;  %v1519_v24 = vld [vmem:[#allocation2 + $0x448] ss:$2 sm:$0xff] }
 0x1c3   : > { %v1089_v39 = vpop.f32.mrf.mxu1 }
 0x1c4   : > { %4123 = vmatmul.msk.f32.gmra.mxu3 %vm171_vm1, %v1515_v28  ;;  %v1090_v61 = vadd.f32 %v1089_v39, %v4990_v46  ;;  %v1829_v28 = vld [vmem:[#allocation2 + $0x449] ss:$2 sm:$0xff] }
 0x1c5   : > { %v1364_v41 = vpop.f32.mrf.mxu2  ;;  %v1983_v52 = vpop.f32.mrf.mxu0 }
 0x1c6   : > { %v1442_v58 = vadd.f32 %v1364_v41, %v1087_v47  ;;  %4056 = vmatmul.msk.f32.gmra.mxu1 %vm171_vm1, %v652_v43  ;;  %v1521_v47 = vld [vmem:[#allocation2 + $0x488] ss:$2 sm:$0xff] }
 0x1c7   : > { %v1673_v62 = vpop.f32.mrf.mxu3 }
 0x1c8   : > { %v1751_v17 = vadd.f32 %v1673_v62, %v1442_v58  ;;  %4157 = vmatmul.msk.f32.gmra.mxu0 %vm171_vm1, %v1825_v54 }
 0x1ca   : > { %v5207_v3 = vadd.f32 %v1983_v52, %v1751_v17  ;;  %4090 = vmatmul.msk.f32.gmra.mxu2 %vm171_vm1, %v1208_v0  ;;  %v1831_v0 = vld [vmem:[#allocation2 + $0x489] ss:$2 sm:$0xff] }
 0x1cb   : > { %v1092_v4 = vpop.f32.mrf.mxu1 }
 0x1cc   : > { %4124 = vmatmul.msk.f32.gmra.mxu3 %vm171_vm1, %v1517_v36  ;;  %v1093_v31 = vadd.f32 %v1092_v4, %v5006_v56  ;;  %v658_v56 = vld [vmem:[#allocation2 + $0x470] ss:$2 sm:$0xff] }
 0x1cd   : > { %v1367_v57 = vpop.f32.mrf.mxu2  ;;  %v1986_v14 = vpop.f32.mrf.mxu0  ;;  %v1214_v4 = vld [vmem:[#allocation2 + $0x472] ss:$2 sm:$0xff] }
 0x1ce   : > { %v1443_v18 = vadd.f32 %v1367_v57, %v1090_v61  ;;  %4057 = vmatmul.msk.f32.gmra.mxu1 %vm171_vm1, %v654_v5 }
 0x1cf   : > { %v1676_v20 = vpop.f32.mrf.mxu3 }
 0x1d0   : > { %v1752_v27 = vadd.f32 %v1676_v20, %v1443_v18  ;;  %4158 = vmatmul.msk.f32.gmra.mxu0 %vm171_vm1, %v1827_v15  ;;  %v1833_v18 = vld [vmem:[#allocation2 + $0x499] ss:$2 sm:$0xff] }
 0x1d2   : > { %v5218_v25 = vadd.f32 %v1986_v14, %v1752_v27  ;;  %4091 = vmatmul.msk.f32.gmra.mxu2 %vm171_vm1, %v1210_v37  ;;  %v1216_v27 = vld [vmem:[#allocation2 + $0x4b2] ss:$2 sm:$0xff] }
 0x1d3   : > { %v1095_v46 = vpop.f32.mrf.mxu1 }
 0x1d4   : > { %4125 = vmatmul.msk.f32.gmra.mxu3 %vm171_vm1, %v1519_v24  ;;  %v1096_v54 = vadd.f32 %v1095_v46, %v5022_v2  ;;  %v660_v2 = vld [vmem:[#allocation2 + $0x4b0] ss:$2 sm:$0xff] }
 0x1d5   : > { %v1370_v32 = vpop.f32.mrf.mxu2  ;;  %v1989_v7 = vpop.f32.mrf.mxu0  ;;  %v1525_v46 = vld [vmem:[#allocation2 + $0x4d8] ss:$2 sm:$0xff] }
 0x1d6   : > { %v1444_v39 = vadd.f32 %v1370_v32, %v1093_v31  ;;  %4058 = vmatmul.msk.f32.gmra.mxu1 %vm171_vm1, %v656_v29 }
 0x1d7   : > { %v1679_v43 = vpop.f32.mrf.mxu3 }
 0x1d8   : > { %v1753_v48 = vadd.f32 %v1679_v43, %v1444_v39  ;;  %4159 = vmatmul.msk.f32.gmra.mxu0 %vm171_vm1, %v1829_v28  ;;  %v1835_v39 = vld [vmem:[#allocation2 + $0x4d9] ss:$2 sm:$0xff] }
 0x1da   : > { %v5225_v41 = vadd.f32 %v1989_v7, %v1753_v48  ;;  %4092 = vmatmul.msk.f32.gmra.mxu2 %vm171_vm1, %v1212_v45  ;;  %v1218_v48 = vld [vmem:[#allocation2 + $0x4c2] ss:$2 sm:$0xff] }
 0x1db   : > { %v1098_v52 = vpop.f32.mrf.mxu1 }
 0x1dc   : > { %4126 = vmatmul.msk.f32.gmra.mxu3 %vm171_vm1, %v1521_v47  ;;  %v1099_v57 = vadd.f32 %v1098_v52, %v5038_v12  ;;  %v662_v12 = vld [vmem:[#allocation2 + $0x4c0] ss:$2 sm:$0xff] }
 0x1dd   : > { %v1373_v58 = vpop.f32.mrf.mxu2  ;;  %v1992_v62 = vpop.f32.mrf.mxu0  ;;  %v1527_v52 = vld [vmem:[#allocation2 + $0x4e8] ss:$2 sm:$0xff] }
 0x1de   : > { %v1445_v17 = vadd.f32 %v1373_v58, %v1096_v54  ;;  %4059 = vmatmul.msk.f32.gmra.mxu1 %vm171_vm1, %v658_v56 }
 0x1df   : > { %v1682_v36 = vpop.f32.mrf.mxu3 }
 0x1e0   : > { %v1754_v5 = vadd.f32 %v1682_v36, %v1445_v17  ;;  %4160 = vmatmul.msk.f32.gmra.mxu0 %vm171_vm1, %v1831_v0  ;;  %v1837_v17 = vld [vmem:[#allocation2 + $0x4e9] ss:$2 sm:$0xff] }
 0x1e2   : > { %v5232_v10 = vadd.f32 %v1992_v62, %v1754_v5  ;;  %4093 = vmatmul.msk.f32.gmra.mxu2 %vm171_vm1, %v1214_v4  ;;  %v2395_v5 = vld [vmem:[#allocation2 + $0x50] ss:$2 sm:$0xff] }
 0x1e3   : > { %v1101_v61 = vpop.f32.mrf.mxu1 }
 0x1e4   : > { %4127 = vmatmul.msk.f32.gmra.mxu3 %vm171_vm1, %v1523_v8  ;;  %v1102_v32 = vadd.f32 %v1101_v61, %v5054_v22  ;;  %v2085_v22 = vld [vmem:[#allocation2 + $0x2a] ss:$2 sm:$0xff]  ;;  %v2705_v61 = vld [vmem:[#allocation2 + $0x51] ss:$2 sm:$0xff] }
 0x1e5   : > { %v1376_v14 = vpop.f32.mrf.mxu2  ;;  %v1995_v15 = vpop.f32.mrf.mxu0 }
 0x1e6   : > { %v1446_v20 = vadd.f32 %v1376_v14, %v1099_v57  ;;  %4060 = vmatmul.msk.f32.gmra.mxu1 %vm171_vm1, %v660_v2 }
 0x1e7   : > { %v1685_v37 = vpop.f32.mrf.mxu3 }
 0x1e8   : > { %v1755_v24 = vadd.f32 %v1685_v37, %v1446_v20  ;;  %4161 = vmatmul.msk.f32.gmra.mxu0 %vm171_vm1, %v1833_v18  ;;  %v3015_v20 = vld [vmem:[#allocation2 + $0x52] ss:$2 sm:$0xff] }
 0x1ea   : > { %v5239_v29 = vadd.f32 %v1995_v15, %v1755_v24  ;;  %4094 = vmatmul.msk.f32.gmra.mxu2 %vm171_vm1, %v1216_v27  ;;  %v2397_v24 = vld [vmem:[#allocation2 + $0x60] ss:$2 sm:$0xff] }
 0x1eb   : > { %v1104_v31 = vpop.f32.mrf.mxu1 }
 0x1ec   : > { %4128 = vmatmul.msk.f32.gmra.mxu3 %vm171_vm1, %v1525_v46  ;;  %v1105_v58 = vadd.f32 %v1104_v31, %v5070_v33  ;;  %v2087_v33 = vld [vmem:[#allocation2 + $0x3a] ss:$2 sm:$0xff]  ;;  %v2707_v31 = vld [vmem:[#allocation2 + $0x61] ss:$2 sm:$0xff] }
 0x1ed   : > { %v1379_v7 = vpop.f32.mrf.mxu2  ;;  %v1998_v28 = vpop.f32.mrf.mxu0 }
 0x1ee   : > { %v1447_v43 = vadd.f32 %v1379_v7, %v1102_v32  ;;  %4061 = vmatmul.msk.f32.gmra.mxu1 %vm171_vm1, %v662_v12 }
 0x1ef   : > { %v1688_v45 = vpop.f32.mrf.mxu3 }
 0x1f0   : > { %v1756_v47 = vadd.f32 %v1688_v45, %v1447_v43  ;;  %4162 = vmatmul.msk.f32.gmra.mxu0 %vm171_vm1, %v1835_v39  ;;  %v3017_v43 = vld [vmem:[#allocation2 + $0x62] ss:$2 sm:$0xff] }
 0x1f2   : > { %v5246_v56 = vadd.f32 %v1998_v28, %v1756_v47  ;;  %4095 = vmatmul.msk.f32.gmra.mxu2 %vm171_vm1, %v1218_v48  ;;  %v2399_v47 = vld [vmem:[#allocation2 + $0xa0] ss:$2 sm:$0xff] }
 0x1f3   : > { %v1107_v54 = vpop.f32.mrf.mxu1 }
 0x1f4   : > { %4129 = vmatmul.msk.f32.gmra.mxu3 %vm171_vm1, %v1527_v52  ;;  %v1108_v14 = vadd.f32 %v1107_v54, %v4978_v38  ;;  %v2089_v38 = vld [vmem:[#allocation2 + $0x7a] ss:$2 sm:$0xff]  ;;  %v2709_v54 = vld [vmem:[#allocation2 + $0xa1] ss:$2 sm:$0xff] }
 0x1f5   : > { %v1382_v62 = vpop.f32.mrf.mxu2  ;;  %v2001_v0 = vpop.f32.mrf.mxu0 }
 0x1f6   : > { %v1448_v36 = vadd.f32 %v1382_v62, %v1105_v58  ;;  %4166 = vmatmul.msk.f32.vlgmr.msra.gmra.mxu1 %vm171_vm1, %v2085_v22 }
 0x1f7   : > { %v1691_v4 = vpop.f32.mrf.mxu3 }
 0x1f8   : > { %v1757_v8 = vadd.f32 %v1691_v4, %v1448_v36  ;;  %4163 = vmatmul.msk.f32.gmra.mxu0 %vm171_vm1, %v1837_v17  ;;  %v3019_v36 = vld [vmem:[#allocation2 + $0xa2] ss:$2 sm:$0xff] }
 0x1fa   : > { %v5253_v2 = vadd.f32 %v2001_v0, %v1757_v8  ;;  %4200 = vmatmul.msk.f32.vlgmr.msra.gmra.mxu2 %vm171_vm1, %v2395_v5  ;;  %v2401_v8 = vld [vmem:[#allocation2 + $0xb0] ss:$2 sm:$0xff] }
 0x1fb   : > { %v1110_v57 = vpop.f32.mrf.mxu1 }
 0x1fc   : > { %4234 = vmatmul.msk.f32.vlgmr.msra.gmra.mxu3 %vm171_vm1, %v2705_v61  ;;  %v1111_v7 = vadd.f32 %v1110_v57, %v4998_v51  ;;  %v2091_v51 = vld [vmem:[#allocation2 + $0x8a] ss:$2 sm:$0xff]  ;;  %v2711_v57 = vld [vmem:[#allocation2 + $0xb1] ss:$2 sm:$0xff] }
 0x1fd   : > { %v1385_v15 = vpop.f32.mrf.mxu2  ;;  %v2004_v18 = vpop.f32.mrf.mxu0 }
 0x1fe   : > { %v1449_v37 = vadd.f32 %v1385_v15, %v1108_v14  ;;  %4167 = vmatmul.msk.f32.gmra.mxu1 %vm171_vm1, %v2087_v33 }
 0x1ff   : > { %v1694_v27 = vpop.f32.mrf.mxu3 }
 0x200   : > { %v1758_v46 = vadd.f32 %v1694_v27, %v1449_v37  ;;  %4268 = vmatmul.msk.f32.vlgmr.msra.gmra.mxu0 %vm171_vm1, %v3015_v20  ;;  %v3021_v37 = vld [vmem:[#allocation2 + $0xb2] ss:$2 sm:$0xff] }
 0x202   : > { %v5260_v12 = vadd.f32 %v2004_v18, %v1758_v46  ;;  %4201 = vmatmul.msk.f32.gmra.mxu2 %vm171_vm1, %v2397_v24  ;;  %v2403_v46 = vld [vmem:[#allocation2 + $0xf0] ss:$2 sm:$0xff] }
 0x203   : > { %v1113_v32 = vpop.f32.mrf.mxu1 }
 0x204   : > { %4235 = vmatmul.msk.f32.gmra.mxu3 %vm171_vm1, %v2707_v31  ;;  %v1114_v62 = vadd.f32 %v1113_v32, %v5012_v60  ;;  %v2093_v60 = vld [vmem:[#allocation2 + $0xca] ss:$2 sm:$0xff]  ;;  %v2713_v32 = vld [vmem:[#allocation2 + $0xf1] ss:$2 sm:$0xff] }
 0x205   : > { %v1388_v28 = vpop.f32.mrf.mxu2  ;;  %v2007_v39 = vpop.f32.mrf.mxu0 }
 0x206   : > { %v1450_v45 = vadd.f32 %v1388_v28, %v1111_v7  ;;  %4168 = vmatmul.msk.f32.gmra.mxu1 %vm171_vm1, %v2089_v38 }
 0x207   : > { %v1697_v48 = vpop.f32.mrf.mxu3 }
 0x208   : > { %v1759_v52 = vadd.f32 %v1697_v48, %v1450_v45  ;;  %4269 = vmatmul.msk.f32.gmra.mxu0 %vm171_vm1, %v3017_v43  ;;  %v3023_v45 = vld [vmem:[#allocation2 + $0xf2] ss:$2 sm:$0xff] }
 0x20a   : > { %v5267_v22 = vadd.f32 %v2007_v39, %v1759_v52  ;;  %4202 = vmatmul.msk.f32.gmra.mxu2 %vm171_vm1, %v2399_v47  ;;  %v2405_v52 = vld [vmem:[#allocation2 + $0x100] ss:$2 sm:$0xff] }
 0x20b   : > { %v1116_v58 = vpop.f32.mrf.mxu1 }
 0x20c   : > { %4236 = vmatmul.msk.f32.gmra.mxu3 %vm171_vm1, %v2709_v54  ;;  %v1117_v15 = vadd.f32 %v1116_v58, %v5028_v6  ;;  %v2095_v6 = vld [vmem:[#allocation2 + $0xda] ss:$2 sm:$0xff]  ;;  %v2715_v58 = vld [vmem:[#allocation2 + $0x101] ss:$2 sm:$0xff] }
 0x20d   : > { %v1391_v0 = vpop.f32.mrf.mxu2  ;;  %v2010_v17 = vpop.f32.mrf.mxu0 }
 0x20e   : > { %v1451_v4 = vadd.f32 %v1391_v0, %v1114_v62  ;;  %4169 = vmatmul.msk.f32.gmra.mxu1 %vm171_vm1, %v2091_v51 }
 0x20f   : > { %v1700_v5 = vpop.f32.mrf.mxu3 }
 0x210   : > { %v1760_v61 = vadd.f32 %v1700_v5, %v1451_v4  ;;  %4270 = vmatmul.msk.f32.gmra.mxu0 %vm171_vm1, %v3019_v36  ;;  %v3025_v4 = vld [vmem:[#allocation2 + $0x102] ss:$2 sm:$0xff] }
 0x212   : > { %v5274_v33 = vadd.f32 %v2010_v17, %v1760_v61  ;;  %4203 = vmatmul.msk.f32.gmra.mxu2 %vm171_vm1, %v2401_v8  ;;  %v2407_v61 = vld [vmem:[#allocation2 + $0x140] ss:$2 sm:$0xff] }
 0x213   : > { %v1119_v14 = vpop.f32.mrf.mxu1 }
 0x214   : > { %4237 = vmatmul.msk.f32.gmra.mxu3 %vm171_vm1, %v2711_v57  ;;  %v1120_v28 = vadd.f32 %v1119_v14, %v5044_v16  ;;  %v2097_v16 = vld [vmem:[#allocation2 + $0x11a] ss:$2 sm:$0xff]  ;;  %v2717_v14 = vld [vmem:[#allocation2 + $0x141] ss:$2 sm:$0xff] }
 0x215   : > { %v1394_v18 = vpop.f32.mrf.mxu2  ;;  %v2013_v20 = vpop.f32.mrf.mxu0 }
 0x216   : > { %v1452_v27 = vadd.f32 %v1394_v18, %v1117_v15  ;;  %4170 = vmatmul.msk.f32.gmra.mxu1 %vm171_vm1, %v2093_v60 }
 0x217   : > { %v1703_v24 = vpop.f32.mrf.mxu3 }
 0x218   : > { %v1761_v31 = vadd.f32 %v1703_v24, %v1452_v27  ;;  %4271 = vmatmul.msk.f32.gmra.mxu0 %vm171_vm1, %v3021_v37  ;;  %v3027_v27 = vld [vmem:[#allocation2 + $0x142] ss:$2 sm:$0xff] }
 0x21a   : > { %v5281_v38 = vadd.f32 %v2013_v20, %v1761_v31  ;;  %4204 = vmatmul.msk.f32.gmra.mxu2 %vm171_vm1, %v2403_v46  ;;  %v2409_v31 = vld [vmem:[#allocation2 + $0x150] ss:$2 sm:$0xff] }
 0x21b   : > { %v1122_v7 = vpop.f32.mrf.mxu1 }
 0x21c   : > { %4238 = vmatmul.msk.f32.gmra.mxu3 %vm171_vm1, %v2713_v32  ;;  %v1123_v0 = vadd.f32 %v1122_v7, %v5060_v26  ;;  %v2099_v26 = vld [vmem:[#allocation2 + $0x12a] ss:$2 sm:$0xff]  ;;  %v2719_v7 = vld [vmem:[#allocation2 + $0x151] ss:$2 sm:$0xff] }
 0x21d   : > { %v1397_v39 = vpop.f32.mrf.mxu2  ;;  %v2016_v43 = vpop.f32.mrf.mxu0 }
 0x21e   : > { %v1453_v48 = vadd.f32 %v1397_v39, %v1120_v28  ;;  %4171 = vmatmul.msk.f32.gmra.mxu1 %vm171_vm1, %v2095_v6 }
 0x21f   : > { %v1706_v47 = vpop.f32.mrf.mxu3 }
 0x220   : > { %v1762_v54 = vadd.f32 %v1706_v47, %v1453_v48  ;;  %4272 = vmatmul.msk.f32.gmra.mxu0 %vm171_vm1, %v3023_v45  ;;  %v3029_v48 = vld [vmem:[#allocation2 + $0x152] ss:$2 sm:$0xff] }
 0x222   : > { %v5288_v51 = vadd.f32 %v2016_v43, %v1762_v54  ;;  %4205 = vmatmul.msk.f32.gmra.mxu2 %vm171_vm1, %v2405_v52  ;;  %v2411_v54 = vld [vmem:[#allocation2 + $0x190] ss:$2 sm:$0xff] }
 0x223   : > { %v1125_v62 = vpop.f32.mrf.mxu1 }
 0x224   : > { %4239 = vmatmul.msk.f32.gmra.mxu3 %vm171_vm1, %v2715_v58  ;;  %v1126_v18 = vadd.f32 %v1125_v62, %v5076_v40  ;;  %v2101_v40 = vld [vmem:[#allocation2 + $0x16a] ss:$2 sm:$0xff]  ;;  %v2721_v62 = vld [vmem:[#allocation2 + $0x191] ss:$2 sm:$0xff] }
 0x225   : > { %v1400_v17 = vpop.f32.mrf.mxu2  ;;  %v2019_v36 = vpop.f32.mrf.mxu0 }
 0x226   : > { %v1454_v5 = vadd.f32 %v1400_v17, %v1123_v0  ;;  %4172 = vmatmul.msk.f32.gmra.mxu1 %vm171_vm1, %v2097_v16 }
 0x227   : > { %v1709_v8 = vpop.f32.mrf.mxu3 }
 0x228   : > { %v1763_v57 = vadd.f32 %v1709_v8, %v1454_v5  ;;  %4273 = vmatmul.msk.f32.gmra.mxu0 %vm171_vm1, %v3025_v4  ;;  %v3031_v5 = vld [vmem:[#allocation2 + $0x192] ss:$2 sm:$0xff] }
 0x22a   : > { %v5295_v60 = vadd.f32 %v2019_v36, %v1763_v57  ;;  %4206 = vmatmul.msk.f32.gmra.mxu2 %vm171_vm1, %v2407_v61  ;;  %v2413_v57 = vld [vmem:[#allocation2 + $0x1a0] ss:$2 sm:$0xff] }
 0x22b   : > { %v1128_v15 = vpop.f32.mrf.mxu1 }
 0x22c   : > { %4240 = vmatmul.msk.f32.gmra.mxu3 %vm171_vm1, %v2717_v14  ;;  %v1129_v39 = vadd.f32 %v1128_v15, %v5090_v55  ;;  %v2103_v55 = vld [vmem:[#allocation2 + $0x17a] ss:$2 sm:$0xff]  ;;  %v2723_v15 = vld [vmem:[#allocation2 + $0x1a1] ss:$2 sm:$0xff] }
 0x22d   : > { %v1403_v20 = vpop.f32.mrf.mxu2  ;;  %v2022_v37 = vpop.f32.mrf.mxu0 }
 0x22e   : > { %v1455_v24 = vadd.f32 %v1403_v20, %v1126_v18  ;;  %4173 = vmatmul.msk.f32.gmra.mxu1 %vm171_vm1, %v2099_v26 }
 0x22f   : > { %v1712_v46 = vpop.f32.mrf.mxu3 }
 0x230   : > { %v1764_v32 = vadd.f32 %v1712_v46, %v1455_v24  ;;  %4274 = vmatmul.msk.f32.gmra.mxu0 %vm171_vm1, %v3027_v27  ;;  %v3033_v24 = vld [vmem:[#allocation2 + $0x1a2] ss:$2 sm:$0xff] }
 0x232   : > { %v5302_v6 = vadd.f32 %v2022_v37, %v1764_v32  ;;  %4207 = vmatmul.msk.f32.gmra.mxu2 %vm171_vm1, %v2409_v31  ;;  %v2415_v32 = vld [vmem:[#allocation2 + $0x1e0] ss:$2 sm:$0xff] }
 0x233   : > { %v1131_v28 = vpop.f32.mrf.mxu1 }
 0x234   : > { %4241 = vmatmul.msk.f32.gmra.mxu3 %vm171_vm1, %v2719_v7  ;;  %v1132_v17 = vadd.f32 %v1131_v28, %v4984_v42  ;;  %v2105_v42 = vld [vmem:[#allocation2 + $0x1ba] ss:$2 sm:$0xff]  ;;  %v2725_v28 = vld [vmem:[#allocation2 + $0x1e1] ss:$2 sm:$0xff] }
 0x235   : > { %v1406_v43 = vpop.f32.mrf.mxu2  ;;  %v2025_v45 = vpop.f32.mrf.mxu0 }
 0x236   : > { %v1456_v47 = vadd.f32 %v1406_v43, %v1129_v39  ;;  %4174 = vmatmul.msk.f32.gmra.mxu1 %vm171_vm1, %v2101_v40 }
 0x237   : > { %v1715_v52 = vpop.f32.mrf.mxu3 }
 0x238   : > { %v1765_v58 = vadd.f32 %v1715_v52, %v1456_v47  ;;  %4275 = vmatmul.msk.f32.gmra.mxu0 %vm171_vm1, %v3029_v48  ;;  %v3035_v47 = vld [vmem:[#allocation2 + $0x1e2] ss:$2 sm:$0xff] }
 0x23a   : > { %v5309_v16 = vadd.f32 %v2025_v45, %v1765_v58  ;;  %4208 = vmatmul.msk.f32.gmra.mxu2 %vm171_vm1, %v2411_v54  ;;  %v2417_v58 = vld [vmem:[#allocation2 + $0x1f0] ss:$2 sm:$0xff] }
 0x23b   : > { %v1134_v0 = vpop.f32.mrf.mxu1 }
 0x23c   : > { %4242 = vmatmul.msk.f32.gmra.mxu3 %vm171_vm1, %v2721_v62  ;;  %v1135_v20 = vadd.f32 %v1134_v0, %v5002_v53  ;;  %v2107_v53 = vld [vmem:[#allocation2 + $0x1ca] ss:$2 sm:$0xff]  ;;  %v2727_v0 = vld [vmem:[#allocation2 + $0x1f1] ss:$2 sm:$0xff] }
 0x23d   : > { %v1409_v36 = vpop.f32.mrf.mxu2  ;;  %v2028_v4 = vpop.f32.mrf.mxu0 }
 0x23e   : > { %v1457_v8 = vadd.f32 %v1409_v36, %v1132_v17  ;;  %4175 = vmatmul.msk.f32.gmra.mxu1 %vm171_vm1, %v2103_v55 }
 0x23f   : > { %v1718_v61 = vpop.f32.mrf.mxu3 }
 0x240   : > { %v1766_v14 = vadd.f32 %v1718_v61, %v1457_v8  ;;  %4276 = vmatmul.msk.f32.gmra.mxu0 %vm171_vm1, %v3031_v5  ;;  %v3037_v8 = vld [vmem:[#allocation2 + $0x1f2] ss:$2 sm:$0xff] }
 0x242   : > { %v5316_v26 = vadd.f32 %v2028_v4, %v1766_v14  ;;  %4209 = vmatmul.msk.f32.gmra.mxu2 %vm171_vm1, %v2413_v57  ;;  %v2419_v14 = vld [vmem:[#allocation2 + $0x230] ss:$2 sm:$0xff] }
 0x243   : > { %v1137_v18 = vpop.f32.mrf.mxu1 }
 0x244   : > { %4243 = vmatmul.msk.f32.gmra.mxu3 %vm171_vm1, %v2723_v15  ;;  %v1138_v43 = vadd.f32 %v1137_v18, %v5018_v63  ;;  %v2109_v63 = vld [vmem:[#allocation2 + $0x20a] ss:$2 sm:$0xff]  ;;  %v2729_v18 = vld [vmem:[#allocation2 + $0x231] ss:$2 sm:$0xff] }
 0x245   : > { %v1412_v37 = vpop.f32.mrf.mxu2  ;;  %v2031_v27 = vpop.f32.mrf.mxu0 }
 0x246   : > { %v1458_v46 = vadd.f32 %v1412_v37, %v1135_v20  ;;  %4176 = vmatmul.msk.f32.gmra.mxu1 %vm171_vm1, %v2105_v42 }
 0x247   : > { %v1721_v31 = vpop.f32.mrf.mxu3 }
 0x248   : > { %v1767_v7 = vadd.f32 %v1721_v31, %v1458_v46  ;;  %4277 = vmatmul.msk.f32.gmra.mxu0 %vm171_vm1, %v3033_v24  ;;  %v3039_v46 = vld [vmem:[#allocation2 + $0x232] ss:$2 sm:$0xff] }
 0x24a   : > { %v5323_v40 = vadd.f32 %v2031_v27, %v1767_v7  ;;  %4210 = vmatmul.msk.f32.gmra.mxu2 %vm171_vm1, %v2415_v32  ;;  %v2421_v7 = vld [vmem:[#allocation2 + $0x240] ss:$2 sm:$0xff] }
 0x24b   : > { %v1140_v39 = vpop.f32.mrf.mxu1 }
 0x24c   : > { %4244 = vmatmul.msk.f32.gmra.mxu3 %vm171_vm1, %v2725_v28  ;;  %v1141_v36 = vadd.f32 %v1140_v39, %v5034_v9  ;;  %v2111_v9 = vld [vmem:[#allocation2 + $0x21a] ss:$2 sm:$0xff]  ;;  %v2731_v39 = vld [vmem:[#allocation2 + $0x241] ss:$2 sm:$0xff] }
 0x24d   : > { %v1415_v45 = vpop.f32.mrf.mxu2  ;;  %v2034_v48 = vpop.f32.mrf.mxu0 }
 0x24e   : > { %v1459_v52 = vadd.f32 %v1415_v45, %v1138_v43  ;;  %4177 = vmatmul.msk.f32.gmra.mxu1 %vm171_vm1, %v2107_v53 }
 0x24f   : > { %v1724_v54 = vpop.f32.mrf.mxu3 }
 0x250   : > { %v1768_v62 = vadd.f32 %v1724_v54, %v1459_v52  ;;  %4278 = vmatmul.msk.f32.gmra.mxu0 %vm171_vm1, %v3035_v47  ;;  %v3041_v52 = vld [vmem:[#allocation2 + $0x242] ss:$2 sm:$0xff] }
 0x252   : > { %v5330_v55 = vadd.f32 %v2034_v48, %v1768_v62  ;;  %4211 = vmatmul.msk.f32.gmra.mxu2 %vm171_vm1, %v2417_v58  ;;  %v2423_v62 = vld [vmem:[#allocation2 + $0x280] ss:$2 sm:$0xff] }
 0x253   : > { %v1143_v17 = vpop.f32.mrf.mxu1 }
 0x254   : > { %4245 = vmatmul.msk.f32.gmra.mxu3 %vm171_vm1, %v2727_v0  ;;  %v1144_v37 = vadd.f32 %v1143_v17, %v5050_v19  ;;  %v2113_v19 = vld [vmem:[#allocation2 + $0x25a] ss:$2 sm:$0xff]  ;;  %v4328_v0 = vmov -inf  }
 0x255   : > { %v1418_v4 = vpop.f32.mrf.mxu2  ;;  %v2037_v5 = vpop.f32.mrf.mxu0  ;;  %3397 = vst.msk [vmem:[#allocation3 + $0x18] sm:$0xff] %vm3392_vm3, %v4328_v0 }
 0x256   : > { %v1460_v61 = vadd.f32 %v1418_v4, %v1141_v36  ;;  %4178 = vmatmul.msk.f32.gmra.mxu1 %vm171_vm1, %v2109_v63  ;;  %3398 = vst.msk [vmem:[#allocation3 + $0x20] sm:$0xff] %vm3392_vm3, %v4328_v0  ;;  %v2115_v4 = vld [vmem:[#allocation2 + $0x26a] ss:$2 sm:$0xff] }
 0x257   : > { %v1727_v57 = vpop.f32.mrf.mxu3  ;;  %3393 = vst.msk [vmem:[#allocation3] sm:$0xff] %vm3392_vm3, %v4328_v0 }
 0x258   : > { %v1769_v15 = vadd.f32 %v1727_v57, %v1460_v61  ;;  %4279 = vmatmul.msk.f32.gmra.mxu0 %vm171_vm1, %v3037_v8  ;;  %3394 = vst.msk [vmem:[#allocation3 + $0x8] sm:$0xff] %vm3392_vm3, %v4328_v0  ;;  %v3043_v57 = vld [vmem:[#allocation2 + $0x282] ss:$2 sm:$0xff] }
 0x259   : > { %3400 = vst.msk [vmem:[#allocation3 + $0x30] sm:$0xff] %vm3392_vm3, %v4328_v0 }
 0x25a   : > { %v5337_v42 = vadd.f32 %v2037_v5, %v1769_v15  ;;  %4212 = vmatmul.msk.f32.gmra.mxu2 %vm171_vm1, %v2419_v14  ;;  %3401 = vst.msk [vmem:[#allocation3 + $0x38] sm:$0xff] %vm3392_vm3, %v4328_v0 }
 0x25b   : > { %v1146_v20 = vpop.f32.mrf.mxu1  ;;  %3403 = vst.msk [vmem:[#allocation3 + $0x48] sm:$0xff] %vm3392_vm3, %v4328_v0 }
 0x25c   : > { %4246 = vmatmul.msk.f32.gmra.mxu3 %vm171_vm1, %v2729_v18  ;;  %v1147_v45 = vadd.f32 %v1146_v20, %v5066_v30  ;;  %v2733_v30 = vld [vmem:[#allocation2 + $0x281] ss:$2 sm:$0xff]  ;;  %3404 = vst.msk [vmem:[#allocation3 + $0x50] sm:$0xff] %vm3392_vm3, %v4328_v0  ;;  %v2425_v18 = vld [vmem:[#allocation2 + $0x290] ss:$2 sm:$0xff] }
 0x25d   : > { %v1421_v27 = vpop.f32.mrf.mxu2  ;;  %v2040_v24 = vpop.f32.mrf.mxu0  ;;  %3406 = vst.msk [vmem:[#allocation3 + $0x60] sm:$0xff] %vm3392_vm3, %v4328_v0  ;;  %v2735_v20 = vld [vmem:[#allocation2 + $0x291] ss:$2 sm:$0xff] }
 0x25e   : > { %v1461_v31 = vadd.f32 %v1421_v27, %v1144_v37  ;;  %4179 = vmatmul.msk.f32.gmra.mxu1 %vm171_vm1, %v2111_v9  ;;  %3407 = vst.msk [vmem:[#allocation3 + $0x68] sm:$0xff] %vm3392_vm3, %v4328_v0  ;;  %v2117_v27 = vld [vmem:[#allocation2 + $0x2aa] ss:$2 sm:$0xff] }
 0x25f   : > { %v1730_v32 = vpop.f32.mrf.mxu3  ;;  %3409 = vst.msk [vmem:[#allocation3 + $0x78] sm:$0xff] %vm3392_vm3, %v4328_v0 }
 0x260   : > { %v1770_v28 = vadd.f32 %v1730_v32, %v1461_v31  ;;  %4280 = vmatmul.msk.f32.gmra.mxu0 %vm171_vm1, %v3039_v46  ;;  %3410 = vst.msk [vmem:[#allocation3 + $0x80] sm:$0xff] %vm3392_vm3, %v4328_v0  ;;  %v3045_v32 = vld [vmem:[#allocation2 + $0x292] ss:$2 sm:$0xff] }
 0x261   : > { %3412 = vst.msk [vmem:[#allocation3 + $0x90] sm:$0xff] %vm3392_vm3, %v4328_v0 }
 0x262   : > { %v5344_v53 = vadd.f32 %v2040_v24, %v1770_v28  ;;  %4213 = vmatmul.msk.f32.gmra.mxu2 %vm171_vm1, %v2421_v7  ;;  %3413 = vst.msk [vmem:[#allocation3 + $0x98] sm:$0xff] %vm3392_vm3, %v4328_v0 }
 0x263   : > { %v1149_v43 = vpop.f32.mrf.mxu1  ;;  %3415 = vst.msk [vmem:[#allocation3 + $0xa8] sm:$0xff] %vm3392_vm3, %v4328_v0 }
 0x264   : > { %4247 = vmatmul.msk.f32.gmra.mxu3 %vm171_vm1, %v2731_v39  ;;  %v1150_v5 = vadd.f32 %v1149_v43, %v5082_v44  ;;  %3416 = vst.msk [vmem:[#allocation3 + $0xb0] sm:$0xff] %vm3392_vm3, %v4328_v0  ;;  %v2427_v39 = vld [vmem:[#allocation2 + $0x2d0] ss:$2 sm:$0xff]  ;;  %v2737_v43 = vld [vmem:[#allocation2 + $0x2d1] ss:$2 sm:$0xff] }
 0x265   : > { %v1424_v48 = vpop.f32.mrf.mxu2  ;;  %v2043_v47 = vpop.f32.mrf.mxu0  ;;  %3418 = vst.msk [vmem:[#allocation3 + $0xc0] sm:$0xff] %vm3392_vm3, %v4328_v0 }
 0x266   : > { %v1462_v54 = vadd.f32 %v1424_v48, %v1147_v45  ;;  %4180 = vmatmul.msk.f32.gmra.mxu1 %vm171_vm1, %v2113_v19  ;;  %3419 = vst.msk [vmem:[#allocation3 + $0xc8] sm:$0xff] %vm3392_vm3, %v4328_v0  ;;  %v2119_v48 = vld [vmem:[#allocation2 + $0x2ba] ss:$2 sm:$0xff] }
 0x267   : > { %v1733_v58 = vpop.f32.mrf.mxu3  ;;  %3421 = vst.msk [vmem:[#allocation3 + $0xd8] sm:$0xff] %vm3392_vm3, %v4328_v0 }
 0x268   : > { %v1771_v17 = vadd.f32 %v1733_v58, %v1462_v54  ;;  %4281 = vmatmul.msk.f32.gmra.mxu0 %vm171_vm1, %v3041_v52  ;;  %3422 = vst.msk [vmem:[#allocation3 + $0xe0] sm:$0xff] %vm3392_vm3, %v4328_v0  ;;  %v3047_v58 = vld [vmem:[#allocation2 + $0x2d2] ss:$2 sm:$0xff] }
 0x269   : > { %3424 = vst.msk [vmem:[#allocation3 + $0xf0] sm:$0xff] %vm3392_vm3, %v4328_v0 }
 0x26a   : > { %v5357_v63 = vadd.f32 %v2043_v47, %v1771_v17  ;;  %4214 = vmatmul.msk.f32.gmra.mxu2 %vm171_vm1, %v2423_v62  ;;  %3425 = vst.msk [vmem:[#allocation3 + $0xf8] sm:$0xff] %vm3392_vm3, %v4328_v0 }
 0x26b   : > { %v1152_v36 = vpop.f32.mrf.mxu1  ;;  %3427 = vst.msk [vmem:[#allocation3 + $0x108] sm:$0xff] %vm3392_vm3, %v4328_v0 }
 0x26c   : > { %4248 = vmatmul.msk.f32.gmra.mxu3 %vm171_vm1, %v2733_v30  ;;  %v1153_v24 = vadd.f32 %v1152_v36, %v5096_v59  ;;  %3428 = vst.msk [vmem:[#allocation3 + $0x110] sm:$0xff] %vm3392_vm3, %v4328_v0  ;;  %v5424_v36 = vld [vmem:[%s5673_s2] ss:$0 sm:$0xff] }
 0x26d   : > { %v1427_v8 = vpop.f32.mrf.mxu2  ;;  %v2046_v61 = vpop.f32.mrf.mxu0  ;;  %3430 = vst.msk [vmem:[#allocation3 + $0x120] sm:$0xff] %vm3392_vm3, %v4328_v0 }
 0x26e   : > { %v1463_v14 = vadd.f32 %v1427_v8, %v1150_v5  ;;  %4181 = vmatmul.msk.f32.gmra.mxu1 %vm171_vm1, %v2115_v4  ;;  %3431 = vst.msk [vmem:[#allocation3 + $0x128] sm:$0xff] %vm3392_vm3, %v4328_v0  ;;  %v2739_v4 = vld [vmem:[#allocation2 + $0x2e1] ss:$2 sm:$0xff] }
 0x26f   : > { %v1736_v15 = vpop.f32.mrf.mxu3  ;;  %3433 = vst.msk [vmem:[#allocation3 + $0x138] sm:$0xff] %vm3392_vm3, %v4328_v0 }
 0x270   : > { %v1772_v44 = vadd.f32 %v1736_v15, %v1463_v14  ;;  %4282 = vmatmul.msk.f32.gmra.mxu0 %vm171_vm1, %v3043_v57  ;;  %3434 = vst.msk [vmem:[#allocation3 + $0x140] sm:$0xff] %vm3392_vm3, %v4328_v0 }
 0x271   : > { %3436 = vst.msk [vmem:[#allocation3 + $0x150] sm:$0xff] %vm3392_vm3, %v4328_v0 }
 0x272   : > { %v5380_v9 = vadd.f32 %v2046_v61, %v1772_v44  ;;  %4215 = vmatmul.msk.f32.gmra.mxu2 %vm171_vm1, %v2425_v18  ;;  %v2121_v61 = vld [vmem:[#allocation2 + $0x2fa] ss:$2 sm:$0xff]  ;;  %3437 = vst.msk [vmem:[#allocation3 + $0x158] sm:$0xff] %vm3392_vm3, %v4328_v0 }
 0x273   : > { %v2266_v37 = vpop.f32.mrf.mxu1  ;;  %3439 = vst.msk [vmem:[#allocation3 + $0x168] sm:$0xff] %vm3392_vm3, %v4328_v0  ;;  %v3049_v44 = vld [vmem:[#allocation2 + $0x2e2] ss:$2 sm:$0xff] }
 0x274   : > { %4249 = vmatmul.msk.f32.gmra.mxu3 %vm171_vm1, %v2735_v20  ;;  %v2362_v47 = vadd.f32 %v2266_v37, %v5108_v21  ;;  %v2429_v21 = vld [vmem:[#allocation2 + $0x2e0] ss:$2 sm:$0xff]  ;;  %3440 = vst.msk [vmem:[#allocation3 + $0x170] sm:$0xff] %vm3392_vm3, %v4328_v0 }
 0x275   : > { %v1430_v46 = vpop.f32.mrf.mxu2  ;;  %v2049_v31 = vpop.f32.mrf.mxu0  ;;  %3442 = vst.msk [vmem:[#allocation3 + $0x180] sm:$0xff] %vm3392_vm3, %v4328_v0 }
 0x276   : > { %v1464_v7 = vadd.f32 %v1430_v46, %v1153_v24  ;;  %4182 = vmatmul.msk.f32.gmra.mxu1 %vm171_vm1, %v2117_v27  ;;  %v2431_v27 = vld [vmem:[#allocation2 + $0x320] ss:$2 sm:$0xff]  ;;  %3443 = vst.msk [vmem:[#allocation3 + $0x188] sm:$0xff] %vm3392_vm3, %v4328_v0  ;;  %v2741_v46 = vld [vmem:[#allocation2 + $0x321] ss:$2 sm:$0xff] }
 0x277   : > { %v1739_v28 = vpop.f32.mrf.mxu3  ;;  %3396 = vst.msk [vmem:[#allocation3 + $0x10] sm:$0x3] %vm3395_vm4, %v4328_v0 }
 0x278   : > { %v1773_v59 = vadd.f32 %v1739_v28, %v1464_v7  ;;  %4283 = vmatmul.msk.f32.gmra.mxu0 %vm171_vm1, %v3045_v32  ;;  %v2123_v7 = vld [vmem:[#allocation2 + $0x30a] ss:$2 sm:$0xff]  ;;  %3399 = vst.msk [vmem:[#allocation3 + $0x28] sm:$0x3] %vm3395_vm4, %v4328_v0 }
 0x279   : > { %3402 = vst.msk [vmem:[#allocation3 + $0x40] sm:$0x3] %vm3395_vm4, %v4328_v0 }
 0x27a   : > { %v5403_v19 = vadd.f32 %v2049_v31, %v1773_v59  ;;  %4216 = vmatmul.msk.f32.gmra.mxu2 %vm171_vm1, %v2427_v39  ;;  %3405 = vst.msk [vmem:[#allocation3 + $0x58] sm:$0x3] %vm3395_vm4, %v4328_v0 }
 0x27b   : > { %v2269_v45 = vpop.f32.mrf.mxu1  ;;  %3408 = vst.msk [vmem:[#allocation3 + $0x70] sm:$0x3] %vm3395_vm4, %v4328_v0 }
 0x27c   : > { %4250 = vmatmul.msk.f32.gmra.mxu3 %vm171_vm1, %v2737_v43  ;;  %v2363_v57 = vadd.f32 %v2269_v45, %v5119_v49  ;;  %v3051_v45 = vld [vmem:[#allocation2 + $0x322] ss:$2 sm:$0xff]  ;;  %3411 = vst.msk [vmem:[#allocation3 + $0x88] sm:$0x3] %vm3395_vm4, %v4328_v0 }
 0x27d   : > { %v2576_v52 = vpop.f32.mrf.mxu2  ;;  %v3196_v54 = vpop.f32.mrf.mxu0  ;;  %3414 = vst.msk [vmem:[#allocation3 + $0xa0] sm:$0x3] %vm3395_vm4, %v4328_v0 }
 0x27e   : > { %v2672_v62 = vadd.f32 %v2576_v52, %v2362_v47  ;;  %4183 = vmatmul.msk.f32.gmra.mxu1 %vm171_vm1, %v2119_v48  ;;  %v2433_v52 = vld [vmem:[#allocation2 + $0x330] ss:$2 sm:$0xff]  ;;  %3417 = vst.msk [vmem:[#allocation3 + $0xb8] sm:$0x3] %vm3395_vm4, %v4328_v0 }
 0x27f   : > { %v2886_v17 = vpop.f32.mrf.mxu3  ;;  %3420 = vst.msk [vmem:[#allocation3 + $0xd0] sm:$0x3] %vm3395_vm4, %v4328_v0 }
 0x280   : > { %v2982_v30 = vadd.f32 %v2886_v17, %v2672_v62  ;;  %4284 = vmatmul.msk.f32.gmra.mxu0 %vm171_vm1, %v3047_v58  ;;  %v2743_v58 = vld [vmem:[#allocation2 + $0x331] ss:$2 sm:$0xff]  ;;  %v2125_v17 = vld [vmem:[#allocation2 + $0x34a] ss:$2 sm:$0xff]  ;;  %3423 = vst.msk [vmem:[#allocation3 + $0xe8] sm:$0x3] %vm3395_vm4, %v4328_v0 }
 0x281   : > { %3426 = vst.msk [vmem:[#allocation3 + $0x100] sm:$0x3] %vm3395_vm4, %v4328_v0 }
 0x282   : > { %v3292_v5 = vadd.f32 %v3196_v54, %v2982_v30  ;;  %4217 = vmatmul.msk.f32.gmra.mxu2 %vm171_vm1, %v2429_v21  ;;  %v3481_v21 = vld [vmem:[#allocation3] ss:$2 sm:$0xff]  ;;  %3429 = vst.msk [vmem:[#allocation3 + $0x118] sm:$0x3] %vm3395_vm4, %v4328_v0 }
 0x283   : > { %v2272_v8 = vpop.f32.mrf.mxu1  ;;  %3432 = vst.msk [vmem:[#allocation3 + $0x130] sm:$0x3] %vm3395_vm4, %v4328_v0 }
 0x284   : > { %v3328_v14 = vadd.f32 %v5424_v36, %v3292_v5  ;;  %4251 = vmatmul.msk.f32.gmra.mxu3 %vm171_vm1, %v2739_v4  ;;  %v2364_v28 = vadd.f32 %v2272_v8, %v5130_v11  ;;  %v3497_v5 = vld [vmem:[#allocation3 + $0x1] ss:$2 sm:$0xff]  ;;  %3435 = vst.msk [vmem:[#allocation3 + $0x148] sm:$0x3] %vm3395_vm4, %v4328_v0 }
 0x285   : > { %v2579_v15 = vpop.f32.mrf.mxu2  ;;  %v3199_v18 = vpop.f32.mrf.mxu0  ;;  %3438 = vst.msk [vmem:[#allocation3 + $0x160] sm:$0x3] %vm3395_vm4, %v4328_v0 }
 0x286   : > { %v3360_v20 = vmax.f32 %v3328_v14, 0.0  ;;  %v2673_v37 = vadd.f32 %v2579_v15, %v2363_v57  ;;  %4184 = vmatmul.msk.f32.gmra.mxu1 %vm171_vm1, %v2121_v61  ;;  %v3053_v57 = vld [vmem:[#allocation2 + $0x332] ss:$2 sm:$0xff]  ;;  %3441 = vst.msk [vmem:[#allocation3 + $0x178] sm:$0x3] %vm3395_vm4, %v4328_v0 }
 0x287   : > { %v2889_v49 = vpop.f32.mrf.mxu3  ;;  %3444 = vst.msk [vmem:[#allocation3 + $0x190] sm:$0x3] %vm3395_vm4, %v4328_v0 }
 0x288   : > { %3449 = vst.msk [vmem:[#allocation3 + $0x19] sm:$0xff] %vm3392_vm3, %v3360_v20  ;;  %v2983_v24 = vadd.f32 %v2889_v49, %v2673_v37  ;;  %4285 = vmatmul.msk.f32.gmra.mxu0 %vm171_vm1, %v3049_v44  ;;  %v3512_v44 = vmax.f32 %v3481_v21, %v3497_v5  ;;  %v3521_v37 = vld [vmem:[#allocation3 + $0x2] ss:$2 sm:$0xff]  ;;  %v2745_v49 = vld [vmem:[#allocation2 + $0x371] ss:$2 sm:$0xff] }
 0x28a   : > { %v3293_v31 = vadd.f32 %v3199_v18, %v2983_v24  ;;  %4218 = vmatmul.msk.f32.gmra.mxu2 %vm171_vm1, %v2431_v27  ;;  %v2435_v18 = vld [vmem:[#allocation2 + $0x370] ss:$2 sm:$0xff] }
 0x28b   : > { %v2275_v32 = vpop.f32.mrf.mxu1 }
 0x28c   : > { %v3329_v39 = vadd.f32 %v5424_v36, %v3293_v31  ;;  %4252 = vmatmul.msk.f32.gmra.mxu3 %vm171_vm1, %v2741_v46  ;;  %v2365_v30 = vadd.f32 %v2275_v32, %v5141_v34  ;;  %v2127_v46 = vld [vmem:[#allocation2 + $0x35a] ss:$2 sm:$0xff]  ;;  %v3536_v31 = vmax.f32 %v3512_v44, %v3521_v37 }
 0x28d   : > { %v2582_v59 = vpop.f32.mrf.mxu2  ;;  %v3202_v43 = vpop.f32.mrf.mxu0 }
 0x28e   : > { %v3361_v48 = vmax.f32 %v3329_v39, 0.0  ;;  %v2674_v47 = vadd.f32 %v2582_v59, %v2364_v28  ;;  %4185 = vmatmul.msk.f32.gmra.mxu1 %vm171_vm1, %v2123_v7 }
 0x28f   : > { %v2892_v11 = vpop.f32.mrf.mxu3 }
 0x290   : > { %3450 = vst.msk [vmem:[#allocation3 + $0x21] sm:$0xff] %vm3392_vm3, %v3361_v48  ;;  %v2984_v54 = vadd.f32 %v2892_v11, %v2674_v47  ;;  %4286 = vmatmul.msk.f32.gmra.mxu0 %vm171_vm1, %v3051_v45  ;;  %v3055_v45 = vld [vmem:[#allocation2 + $0x372] ss:$2 sm:$0xff] }
 0x291   : > { %v2437_v11 = vld [vmem:[#allocation2 + $0x380] ss:$2 sm:$0xff] }
 0x292   : > { %4219 = vmatmul.msk.f32.gmra.mxu2 %vm171_vm1, %v2433_v52  ;;  %v3294_v4 = vadd.f32 %v3202_v43, %v2984_v54 }
 0x293   : > { %v2278_v62 = vpop.f32.mrf.mxu1 }
 0x294   : > { %4253 = vmatmul.msk.f32.gmra.mxu3 %vm171_vm1, %v2743_v58  ;;  %v3330_v34 = vadd.f32 %v5424_v36, %v3294_v4  ;;  %v2366_v7 = vadd.f32 %v2278_v62, %v5152_v1  ;;  %v2747_v58 = vld [vmem:[#allocation2 + $0x381] ss:$2 sm:$0xff] }
 0x295   : > { %v2585_v8 = vpop.f32.mrf.mxu2  ;;  %v3205_v61 = vpop.f32.mrf.mxu0 }
 0x296   : > { %v2675_v14 = vadd.f32 %v2585_v8, %v2365_v30  ;;  %4186 = vmatmul.msk.f32.gmra.mxu1 %vm171_vm1, %v2125_v17  ;;  %v3362_v32 = vmax.f32 %v3330_v34, 0.0  ;;  %v2129_v30 = vld [vmem:[#allocation2 + $0x39a] ss:$2 sm:$0xff] }
 0x297   : > { %v2895_v15 = vpop.f32.mrf.mxu3  ;;  %v3544_v39 = vld [vmem:[#allocation3 + $0x18] ss:$2 sm:$0xff]  ;;  %v3568_v17 = vld [vmem:[#allocation3 + $0x19] ss:$2 sm:$0xff] }
 0x298   : > { %v2985_v20 = vadd.f32 %v2895_v15, %v2675_v14  ;;  %4287 = vmatmul.msk.f32.gmra.mxu0 %vm171_vm1, %v3053_v57  ;;  %v3559_v52 = vmax.f32 %v3536_v31, %v3544_v39  ;;  %3451 = vst.msk [vmem:[#allocation3 + $0x31] sm:$0xff] %vm3392_vm3, %v3362_v32  ;;  %v3057_v57 = vld [vmem:[#allocation2 + $0x382] ss:$2 sm:$0xff] }
 0x299   : > { %v2439_v34 = vld [vmem:[#allocation2 + $0x3c0] ss:$2 sm:$0xff] }
 0x29a   : > { %v3295_v27 = vadd.f32 %v3205_v61, %v2985_v20  ;;  %4220 = vmatmul.msk.f32.gmra.mxu2 %vm171_vm1, %v2435_v18  ;;  %v3583_v4 = vmax.f32 %v3559_v52, %v3568_v17  ;;  %v3592_v18 = vld [vmem:[#allocation3 + $0x1a] ss:$2 sm:$0xff] }
 0x29b   : > { %v2281_v24 = vpop.f32.mrf.mxu1  ;;  %v2131_v32 = vld [vmem:[#allocation2 + $0x3aa] ss:$2 sm:$0xff] }
 0x29c   : > { %v3331_v28 = vadd.f32 %v5424_v36, %v3295_v27  ;;  %4254 = vmatmul.msk.f32.gmra.mxu3 %vm171_vm1, %v2745_v49  ;;  %v2367_v0 = vadd.f32 %v2281_v24, %v5163_v23  ;;  %v3607_v20 = vmax.f32 %v3583_v4, %v3592_v18  ;;  %v2749_v49 = vld [vmem:[#allocation2 + $0x3c1] ss:$2 sm:$0xff]  ;;  %v2441_v52 = vld [vmem:[#allocation2 + $0x3d0] ss:$2 sm:$0xff] }
 0x29d   : > { %v2588_v59 = vpop.f32.mrf.mxu2  ;;  %v3208_v43 = vpop.f32.mrf.mxu0 }
 0x29e   : > { %v3363_v48 = vmax.f32 %v3331_v28, 0.0  ;;  %v2676_v47 = vadd.f32 %v2588_v59, %v2366_v7  ;;  %4187 = vmatmul.msk.f32.gmra.mxu1 %vm171_vm1, %v2127_v46 }
 0x29f   : > { %v2898_v1 = vpop.f32.mrf.mxu3 }
 0x2a0   : > { %v2986_v54 = vadd.f32 %v2898_v1, %v2676_v47  ;;  %4288 = vmatmul.msk.f32.gmra.mxu0 %vm171_vm1, %v3055_v45  ;;  %3452 = vst.msk [vmem:[#allocation3 + $0x39] sm:$0xff] %vm3392_vm3, %v3363_v48  ;;  %v3059_v48 = vld [vmem:[#allocation2 + $0x3c2] ss:$2 sm:$0xff] }
 0x2a2   : > { %v3296_v62 = vadd.f32 %v3208_v43, %v2986_v54  ;;  %4221 = vmatmul.msk.f32.gmra.mxu2 %vm171_vm1, %v2437_v11 }
 0x2a3   : > { %v2284_v21 = vpop.f32.mrf.mxu1 }
 0x2a4   : > { %v3332_v5 = vadd.f32 %v5424_v36, %v3296_v62  ;;  %4255 = vmatmul.msk.f32.gmra.mxu3 %vm171_vm1, %v2747_v58  ;;  %v2368_v28 = vadd.f32 %v2284_v21, %v5174_v50  ;;  %v2751_v58 = vld [vmem:[#allocation2 + $0x3d1] ss:$2 sm:$0xff]  ;;  %v2133_v21 = vld [vmem:[#allocation2 + $0x3ea] ss:$2 sm:$0xff] }
 0x2a5   : > { %v2591_v8 = vpop.f32.mrf.mxu2  ;;  %v3211_v61 = vpop.f32.mrf.mxu0 }
 0x2a6   : > { %v3364_v14 = vmax.f32 %v3332_v5, 0.0  ;;  %v2677_v15 = vadd.f32 %v2591_v8, %v2367_v0  ;;  %4188 = vmatmul.msk.f32.gmra.mxu1 %vm171_vm1, %v2129_v30  ;;  %v3061_v8 = vld [vmem:[#allocation2 + $0x3d2] ss:$2 sm:$0xff] }
 0x2a7   : > { %v2901_v44 = vpop.f32.mrf.mxu3  ;;  %v3616_v23 = vld [vmem:[#allocation3 + $0x30] ss:$2 sm:$0xff]  ;;  %v3640_v46 = vld [vmem:[#allocation3 + $0x31] ss:$2 sm:$0xff] }
 0x2a8   : > { %v2987_v37 = vadd.f32 %v2901_v44, %v2677_v15  ;;  %4289 = vmatmul.msk.f32.gmra.mxu0 %vm171_vm1, %v3057_v57  ;;  %v3631_v27 = vmax.f32 %v3607_v20, %v3616_v23  ;;  %3453 = vst.msk [vmem:[#allocation3 + $0x49] sm:$0xff] %vm3392_vm3, %v3364_v14  ;;  %v3664_v59 = vld [vmem:[#allocation3 + $0x32] ss:$2 sm:$0xff]  ;;  %v3499_v57 = vld [vmem:[#allocation3 + $0x31] ss:$2 sm:$0xff] }
 0x2a9   : > { %v2443_v44 = vld [vmem:[#allocation2 + $0x410] ss:$2 sm:$0xff] }
 0x2aa   : > { %v3297_v24 = vadd.f32 %v3211_v61, %v2987_v37  ;;  %4222 = vmatmul.msk.f32.gmra.mxu2 %vm171_vm1, %v2439_v34  ;;  %v3655_v7 = vmax.f32 %v3631_v27, %v3640_v46  ;;  %v3483_v61 = vld [vmem:[#allocation3 + $0x30] ss:$2 sm:$0xff] }
 0x2ab   : > { %v2287_v31 = vpop.f32.mrf.mxu1  ;;  %v3513_v20 = vmax.f32 %v3483_v61, %v3499_v57  ;;  %v3523_v27 = vld [vmem:[#allocation3 + $0x32] ss:$2 sm:$0xff] }
 0x2ac   : > { %v3333_v39 = vadd.f32 %v5424_v36, %v3297_v24  ;;  %4256 = vmatmul.msk.f32.gmra.mxu3 %vm171_vm1, %v2749_v49  ;;  %v3679_v47 = vmax.f32 %v3655_v7, %v3664_v59  ;;  %v2369_v30 = vadd.f32 %v2287_v31, %v5185_v13  ;;  %v2753_v13 = vld [vmem:[#allocation2 + $0x411] ss:$2 sm:$0xff]  ;;  %v2135_v49 = vld [vmem:[#allocation2 + $0x3fa] ss:$2 sm:$0xff] }
 0x2ad   : > { %v2594_v43 = vpop.f32.mrf.mxu2  ;;  %v3214_v45 = vpop.f32.mrf.mxu0 }
 0x2ae   : > { %v3365_v1 = vmax.f32 %v3333_v39, 0.0  ;;  %v2678_v11 = vadd.f32 %v2594_v43, %v2368_v28  ;;  %4189 = vmatmul.msk.f32.gmra.mxu1 %vm171_vm1, %v2131_v32  ;;  %3687 = vst.msk [vmem:[%s5522_s13] sm:$0xff] %vm3392_vm3, %v3679_v47  ;;  %v3537_v32 = vmax.f32 %v3513_v20, %v3523_v27  ;;  %v3063_v39 = vld [vmem:[#allocation2 + $0x412] ss:$2 sm:$0xff] }
 0x2af   : > { %v2904_v50 = vpop.f32.mrf.mxu3  ;;  %v2445_v47 = vld [vmem:[#allocation2 + $0x420] ss:$2 sm:$0xff] }
 0x2b0   : > { %v2988_v54 = vadd.f32 %v2904_v50, %v2678_v11  ;;  %4290 = vmatmul.msk.f32.gmra.mxu0 %vm171_vm1, %v3059_v48  ;;  %3454 = vst.msk [vmem:[#allocation3 + $0x51] sm:$0xff] %vm3392_vm3, %v3365_v1  ;;  %v2139_v27 = vld [vmem:[#allocation2 + $0x44a] ss:$2 sm:$0xff] }
 0x2b2   : > { %v3298_v62 = vadd.f32 %v3214_v45, %v2988_v54  ;;  %4223 = vmatmul.msk.f32.gmra.mxu2 %vm171_vm1, %v2441_v52 }
 0x2b3   : > { %v2290_v17 = vpop.f32.mrf.mxu1 }
 0x2b4   : > { %v3334_v4 = vadd.f32 %v5424_v36, %v3298_v62  ;;  %4257 = vmatmul.msk.f32.gmra.mxu3 %vm171_vm1, %v2751_v58  ;;  %v2370_v46 = vadd.f32 %v2290_v17, %v5196_v35  ;;  %v2755_v35 = vld [vmem:[#allocation2 + $0x421] ss:$2 sm:$0xff]  ;;  %v2137_v58 = vld [vmem:[#allocation2 + $0x43a] ss:$2 sm:$0xff] }
 0x2b5   : > { %v2597_v0 = vpop.f32.mrf.mxu2  ;;  %v3217_v5 = vpop.f32.mrf.mxu0 }
 0x2b6   : > { %v3366_v14 = vmax.f32 %v3334_v4, 0.0  ;;  %v2679_v15 = vadd.f32 %v2597_v0, %v2369_v30  ;;  %4190 = vmatmul.msk.f32.gmra.mxu1 %vm171_vm1, %v2133_v21  ;;  %v3065_v4 = vld [vmem:[#allocation2 + $0x422] ss:$2 sm:$0xff] }
 0x2b7   : > { %v2907_v18 = vpop.f32.mrf.mxu3  ;;  %v3546_v24 = vld [vmem:[#allocation3 + $0x48] ss:$2 sm:$0xff]  ;;  %v3570_v11 = vld [vmem:[#allocation3 + $0x49] ss:$2 sm:$0xff] }
 0x2b8   : > { %v2989_v34 = vadd.f32 %v2907_v18, %v2679_v15  ;;  %4291 = vmatmul.msk.f32.gmra.mxu0 %vm171_vm1, %v3061_v8  ;;  %3455 = vst.msk [vmem:[#allocation3 + $0x61] sm:$0xff] %vm3392_vm3, %v3366_v14  ;;  %v3560_v45 = vmax.f32 %v3537_v32, %v3546_v24  ;;  %v3594_v0 = vld [vmem:[#allocation3 + $0x4a] ss:$2 sm:$0xff] }
 0x2b9   : > { %v2447_v14 = vld [vmem:[#allocation2 + $0x460] ss:$2 sm:$0xff] }
 0x2ba   : > { %v3299_v37 = vadd.f32 %v3217_v5, %v2989_v34  ;;  %4224 = vmatmul.msk.f32.gmra.mxu2 %vm171_vm1, %v2443_v44  ;;  %v3584_v52 = vmax.f32 %v3560_v45, %v3570_v11  ;;  %v2757_v44 = vld [vmem:[#allocation2 + $0x461] ss:$2 sm:$0xff] }
 0x2bb   : > { %v2293_v23 = vpop.f32.mrf.mxu1  ;;  %v467_v34 = vld [vmem:[%s4378_s19 + $0x3e0] sm:$0xff] }
 0x2bc   : > { %v3335_v31 = vadd.f32 %v5424_v36, %v3299_v37  ;;  %4258 = vmatmul.msk.f32.gmra.mxu3 %vm171_vm1, %v2753_v13  ;;  %v2371_v62 = vadd.f32 %v2293_v23, %v5207_v3  ;;  %v3608_v61 = vmax.f32 %v3584_v52, %v3594_v0  ;;  %v468_v37 = vld [vmem:[%s4378_s19 + $0x3e8] sm:$0xff]  ;;  %596 = vst.msk [vmem:[#allocation2 + $0x501] sm:$0xff] %vm171_vm1, %v467_v34 }
 0x2bd   : > { %v2600_v7 = vpop.f32.mrf.mxu2  ;;  %v3220_v28 = vpop.f32.mrf.mxu0  ;;  %597 = vst.msk [vmem:[#allocation2 + $0x509] sm:$0xff] %vm171_vm1, %v468_v37  ;;  %v2141_v52 = vld [vmem:[#allocation2 + $0x48a] ss:$2 sm:$0xff] }
 0x2be   : > { %v3367_v59 = vmax.f32 %v3335_v31, 0.0  ;;  %v2680_v43 = vadd.f32 %v2600_v7, %v2370_v46  ;;  %4191 = vmatmul.msk.f32.gmra.mxu1 %vm171_vm1, %v2135_v49 }
 0x2bf   : > { %v2910_v48 = vpop.f32.mrf.mxu3 }
 0x2c0   : > { %3456 = vst.msk [vmem:[#allocation3 + $0x69] sm:$0xff] %vm3392_vm3, %v3367_v59  ;;  %v2990_v1 = vadd.f32 %v2910_v48, %v2680_v43  ;;  %4292 = vmatmul.msk.f32.gmra.mxu0 %vm171_vm1, %v3063_v39  ;;  %v3067_v39 = vld [vmem:[#allocation2 + $0x462] ss:$2 sm:$0xff] }
 0x2c1   : > { %v2449_v48 = vld [vmem:[#allocation2 + $0x470] ss:$2 sm:$0xff] }
 0x2c2   : > { %v3300_v50 = vadd.f32 %v3220_v28, %v2990_v1  ;;  %4225 = vmatmul.msk.f32.gmra.mxu2 %vm171_vm1, %v2445_v47  ;;  %v2759_v47 = vld [vmem:[#allocation2 + $0x471] ss:$2 sm:$0xff] }
 0x2c3   : > { %v2296_v54 = vpop.f32.mrf.mxu1  ;;  %v469_v1 = vld [vmem:[%s4378_s19 + $0x3f0] sm:$0xff] }
 0x2c4   : > { %v3336_v17 = vadd.f32 %v5424_v36, %v3300_v50  ;;  %4259 = vmatmul.msk.f32.gmra.mxu3 %vm171_vm1, %v2755_v35  ;;  %v2372_v46 = vadd.f32 %v2296_v54, %v5218_v25  ;;  %v470_v35 = vld [vmem:[%s4378_s19 + $0x3f8] sm:$0xff]  ;;  %598 = vst.msk [vmem:[#allocation2 + $0x511] sm:$0xff] %vm171_vm1, %v469_v1 }
 0x2c5   : > { %v2603_v21 = vpop.f32.mrf.mxu2  ;;  %v3223_v30 = vpop.f32.mrf.mxu0  ;;  %599 = vst.msk [vmem:[#allocation2 + $0x519] sm:$0xff] %vm171_vm1, %v470_v35 }
 0x2c6   : > { %v3368_v5 = vmax.f32 %v3336_v17, 0.0  ;;  %v2681_v8 = vadd.f32 %v2603_v21, %v2371_v62  ;;  %4192 = vmatmul.msk.f32.gmra.mxu1 %vm171_vm1, %v2137_v58  ;;  %v3069_v21 = vld [vmem:[#allocation2 + $0x472] ss:$2 sm:$0xff] }
 0x2c7   : > { %v2913_v57 = vpop.f32.mrf.mxu3  ;;  %v3618_v15 = vld [vmem:[#allocation3 + $0x60] ss:$2 sm:$0xff]  ;;  %v3642_v20 = vld [vmem:[#allocation3 + $0x61] ss:$2 sm:$0xff] }
 0x2c8   : > { %v2991_v18 = vadd.f32 %v2913_v57, %v2681_v8  ;;  %4293 = vmatmul.msk.f32.gmra.mxu0 %vm171_vm1, %v3065_v4  ;;  %v3632_v3 = vmax.f32 %v3608_v61, %v3618_v15  ;;  %3457 = vst.msk [vmem:[#allocation3 + $0x79] sm:$0xff] %vm3392_vm3, %v3368_v5  ;;  %v3666_v24 = vld [vmem:[#allocation3 + $0x62] ss:$2 sm:$0xff]  ;;  %v3501_v4 = vld [vmem:[#allocation3 + $0x61] ss:$2 sm:$0xff] }
 0x2c9   : > { %v2451_v61 = vld [vmem:[#allocation2 + $0x4b0] ss:$2 sm:$0xff] }
 0x2ca   : > { %v3301_v13 = vadd.f32 %v3223_v30, %v2991_v18  ;;  %4226 = vmatmul.msk.f32.gmra.mxu2 %vm171_vm1, %v2447_v14  ;;  %v3656_v23 = vmax.f32 %v3632_v3, %v3642_v20  ;;  %v3485_v30 = vld [vmem:[#allocation3 + $0x60] ss:$2 sm:$0xff]  ;;  %v2761_v14 = vld [vmem:[#allocation2 + $0x4b1] ss:$2 sm:$0xff] }
 0x2cb   : > { %v2299_v49 = vpop.f32.mrf.mxu1  ;;  %v2143_v3 = vld [vmem:[#allocation2 + $0x49a] ss:$2 sm:$0xff] }
 0x2cc   : > { %v3337_v31 = vadd.f32 %v5424_v36, %v3301_v13  ;;  %4260 = vmatmul.msk.f32.gmra.mxu3 %vm171_vm1, %v2757_v44  ;;  %v3680_v32 = vmax.f32 %v3656_v23, %v3666_v24  ;;  %v2373_v54 = vadd.f32 %v2299_v49, %v5225_v41  ;;  %v3514_v41 = vmax.f32 %v3485_v30, %v3501_v4  ;;  %v3525_v44 = vld [vmem:[#allocation3 + $0x62] ss:$2 sm:$0xff]  ;;  %v2765_v4 = vld [vmem:[#allocation2 + $0x501] ss:$2 sm:$0xff] }
 0x2cd   : > { %v2606_v7 = vpop.f32.mrf.mxu2  ;;  %v3226_v28 = vpop.f32.mrf.mxu0 }
 0x2ce   : > { %v3369_v59 = vmax.f32 %v3337_v31, 0.0  ;;  %v2682_v43 = vadd.f32 %v2606_v7, %v2372_v46  ;;  %4193 = vmatmul.msk.f32.gmra.mxu1 %vm171_vm1, %v2139_v27  ;;  %3688 = vst.msk [vmem:[%s5522_s13 + $0x8] sm:$0xff] %vm3392_vm3, %v3680_v32  ;;  %v3538_v37 = vmax.f32 %v3514_v41, %v3525_v44  ;;  %v3071_v27 = vld [vmem:[#allocation2 + $0x4b2] ss:$2 sm:$0xff] }
 0x2cf   : > { %v2916_v45 = vpop.f32.mrf.mxu3  ;;  %v2453_v7 = vld [vmem:[#allocation2 + $0x4c0] ss:$2 sm:$0xff] }
 0x2d0   : > { %3458 = vst.msk [vmem:[#allocation3 + $0x81] sm:$0xff] %vm3392_vm3, %v3369_v59  ;;  %v2992_v25 = vadd.f32 %v2916_v45, %v2682_v43  ;;  %4294 = vmatmul.msk.f32.gmra.mxu0 %vm171_vm1, %v3067_v39 }
 0x2d2   : > { %v3302_v11 = vadd.f32 %v3226_v28, %v2992_v25  ;;  %4227 = vmatmul.msk.f32.gmra.mxu2 %vm171_vm1, %v2449_v48  ;;  %v2145_v48 = vld [vmem:[#allocation2 + $0x4da] ss:$2 sm:$0xff] }
 0x2d3   : > { %v2302_v50 = vpop.f32.mrf.mxu1 }
 0x2d4   : > { %v3338_v58 = vadd.f32 %v5424_v36, %v3302_v11  ;;  %4261 = vmatmul.msk.f32.gmra.mxu3 %vm171_vm1, %v2759_v47  ;;  %v2374_v20 = vadd.f32 %v2302_v50, %v5232_v10  ;;  %v2763_v10 = vld [vmem:[#allocation2 + $0x4c1] ss:$2 sm:$0xff]  ;;  %v3073_v11 = vld [vmem:[#allocation2 + $0x4c2] ss:$2 sm:$0xff] }
 0x2d5   : > { %v2609_v62 = vpop.f32.mrf.mxu2  ;;  %v3229_v17 = vpop.f32.mrf.mxu0 }
 0x2d6   : > { %v3370_v0 = vmax.f32 %v3338_v58, 0.0  ;;  %v2683_v5 = vadd.f32 %v2609_v62, %v2373_v54  ;;  %4194 = vmatmul.msk.f32.gmra.mxu1 %vm171_vm1, %v2141_v52 }
 0x2d7   : > { %v2919_v8 = vpop.f32.mrf.mxu3  ;;  %v3548_v34 = vld [vmem:[#allocation3 + $0x78] ss:$2 sm:$0xff]  ;;  %v3572_v39 = vld [vmem:[#allocation3 + $0x79] ss:$2 sm:$0xff] }
 0x2d8   : > { %3459 = vst.msk [vmem:[#allocation3 + $0x91] sm:$0xff] %vm3392_vm3, %v3370_v0  ;;  %v2993_v57 = vadd.f32 %v2919_v8, %v2683_v5  ;;  %4295 = vmatmul.msk.f32.gmra.mxu0 %vm171_vm1, %v3069_v21  ;;  %v3561_v31 = vmax.f32 %v3538_v37, %v3548_v34  ;;  %v3596_v50 = vld [vmem:[#allocation3 + $0x7a] ss:$2 sm:$0xff] }
 0x2d9   : > { %v3075_v34 = vld [vmem:[#allocation2 + $0x502] ss:$2 sm:$0xff] }
 0x2da   : > { %v3303_v15 = vadd.f32 %v3229_v17, %v2993_v57  ;;  %4228 = vmatmul.msk.f32.gmra.mxu2 %vm171_vm1, %v2451_v61  ;;  %v3585_v43 = vmax.f32 %v3561_v31, %v3572_v39  ;;  %v2455_v17 = vld [vmem:[#allocation2 + $0x500] ss:$2 sm:$0xff] }
 0x2db   : > { %v2305_v18 = vpop.f32.mrf.mxu1  ;;  %v2147_v57 = vld [vmem:[#allocation2 + $0x4ea] ss:$2 sm:$0xff] }
 0x2dc   : > { %v3339_v13 = vadd.f32 %v5424_v36, %v3303_v15  ;;  %4262 = vmatmul.msk.f32.gmra.mxu3 %vm171_vm1, %v2761_v14  ;;  %v2375_v25 = vadd.f32 %v2305_v18, %v5239_v29  ;;  %v3609_v58 = vmax.f32 %v3585_v43, %v3596_v50 }
 0x2dd   : > { %v2612_v23 = vpop.f32.mrf.mxu2  ;;  %v3232_v49 = vpop.f32.mrf.mxu0 }
 0x2de   : > { %v3371_v24 = vmax.f32 %v3339_v13, 0.0  ;;  %v2684_v46 = vadd.f32 %v2612_v23, %v2374_v20  ;;  %4195 = vmatmul.msk.f32.gmra.mxu1 %vm171_vm1, %v2143_v3  ;;  %v2457_v23 = vld [vmem:[#allocation2 + $0x510] ss:$2 sm:$0xff] }
 0x2df   : > { %v2922_v32 = vpop.f32.mrf.mxu3 }
 0x2e0   : > { %3460 = vst.msk [vmem:[#allocation3 + $0x99] sm:$0xff] %vm3392_vm3, %v3371_v24  ;;  %v2994_v28 = vadd.f32 %v2922_v32, %v2684_v46  ;;  %4296 = vmatmul.msk.f32.gmra.mxu0 %vm171_vm1, %v3071_v27 }
 0x2e2   : > { %v3304_v59 = vadd.f32 %v3232_v49, %v2994_v28  ;;  %4229 = vmatmul.msk.f32.gmra.mxu2 %vm171_vm1, %v2453_v7  ;;  %v3077_v28 = vld [vmem:[#allocation2 + $0x512] ss:$2 sm:$0xff] }
 0x2e3   : > { %v2308_v45 = vpop.f32.mrf.mxu1 }
 0x2e4   : > { %v3340_v47 = vadd.f32 %v5424_v36, %v3304_v59  ;;  %4263 = vmatmul.msk.f32.gmra.mxu3 %vm171_vm1, %v2763_v10  ;;  %v2376_v14 = vadd.f32 %v2308_v45, %v5246_v56  ;;  %v2767_v56 = vld [vmem:[#allocation2 + $0x511] ss:$2 sm:$0xff] }
 0x2e5   : > { %v2615_v1 = vpop.f32.mrf.mxu2  ;;  %v3235_v35 = vpop.f32.mrf.mxu0 }
 0x2e6   : > { %v3372_v52 = vmax.f32 %v3340_v47, 0.0  ;;  %v2685_v54 = vadd.f32 %v2615_v1, %v2375_v25  ;;  %4196 = vmatmul.msk.f32.gmra.mxu1 %vm171_vm1, %v2145_v48 }
 0x2e7   : > { %v2925_v62 = vpop.f32.mrf.mxu3  ;;  %v3620_v21 = vld [vmem:[#allocation3 + $0x90] ss:$2 sm:$0xff]  ;;  %v3644_v0 = vld [vmem:[#allocation3 + $0x91] ss:$2 sm:$0xff] }
 0x2e8   : > { %v2995_v30 = vadd.f32 %v2925_v62, %v2685_v54  ;;  %4297 = vmatmul.msk.f32.gmra.mxu0 %vm171_vm1, %v3073_v11  ;;  %v3633_v29 = vmax.f32 %v3609_v58, %v3620_v21  ;;  %3461 = vst.msk [vmem:[#allocation3 + $0xa9] sm:$0xff] %vm3392_vm3, %v3372_v52  ;;  %v3668_v41 = vld [vmem:[#allocation3 + $0x92] ss:$2 sm:$0xff]  ;;  %v3503_v39 = vld [vmem:[#allocation3 + $0x91] ss:$2 sm:$0xff] }
 0x2e9   : > { %v3487_v10 = vld [vmem:[#allocation3 + $0x90] ss:$2 sm:$0xff] }
 0x2ea   : > { %v3305_v5 = vadd.f32 %v3235_v35, %v2995_v30  ;;  %4230 = vmatmul.msk.f32.gmra.mxu2 %vm171_vm1, %v2455_v17  ;;  %v3657_v8 = vmax.f32 %v3633_v29, %v3644_v0  ;;  %v3515_v25 = vmax.f32 %v3487_v10, %v3503_v39  ;;  %v3527_v1 = vld [vmem:[#allocation3 + $0x92] ss:$2 sm:$0xff] }
 0x2eb   : > { %v2311_v61 = vpop.f32.mrf.mxu1 }
 0x2ec   : > { %v3341_v15 = vadd.f32 %v5424_v36, %v3305_v5  ;;  %4264 = vmatmul.msk.f32.gmra.mxu3 %vm171_vm1, %v2765_v4  ;;  %v3681_v18 = vmax.f32 %v3657_v8, %v3668_v41  ;;  %v2377_v46 = vadd.f32 %v2311_v61, %v5253_v2  ;;  %v3539_v52 = vmax.f32 %v3515_v25, %v3527_v1 }
 0x2ed   : > { %v2618_v3 = vpop.f32.mrf.mxu2  ;;  %v3238_v44 = vpop.f32.mrf.mxu0 }
 0x2ee   : > { %v3373_v20 = vmax.f32 %v3341_v15, 0.0  ;;  %v2686_v13 = vadd.f32 %v2618_v3, %v2376_v14  ;;  %4197 = vmatmul.msk.f32.gmra.mxu1 %vm171_vm1, %v2147_v57  ;;  %3689 = vst.msk [vmem:[%s5522_s13 + $0x10] sm:$0xff] %vm3392_vm3, %v3681_v18 }
 0x2ef   : > { %v2928_v37 = vpop.f32.mrf.mxu3 }
 0x2f0   : > { %3462 = vst.msk [vmem:[#allocation3 + $0xb1] sm:$0xff] %vm3392_vm3, %v3373_v20  ;;  %v2996_v49 = vadd.f32 %v2928_v37, %v2686_v13  ;;  %4298 = vmatmul.msk.f32.gmra.mxu0 %vm171_vm1, %v3075_v34 }
 0x2f2   : > { %v3306_v27 = vadd.f32 %v3238_v44, %v2996_v49  ;;  %4231 = vmatmul.msk.f32.gmra.mxu2 %vm171_vm1, %v2457_v23 }
 0x2f3   : > { %v2314_v24 = vpop.f32.mrf.mxu1 }
 0x2f4   : > { %v3342_v31 = vadd.f32 %v5424_v36, %v3306_v27  ;;  %4265 = vmatmul.msk.f32.gmra.mxu3 %vm171_vm1, %v2767_v56  ;;  %v2378_v11 = vadd.f32 %v2314_v24, %v5260_v12 }
 0x2f5   : > { %v2621_v32 = vpop.f32.mrf.mxu2  ;;  %v3241_v7 = vpop.f32.mrf.mxu0 }
 0x2f6   : > { %v3374_v59 = vmax.f32 %v3342_v31, 0.0  ;;  %v2687_v43 = vadd.f32 %v2621_v32, %v2377_v46 }
 0x2f7   : > { %v2931_v45 = vpop.f32.mrf.mxu3  ;;  %v3550_v35 = vld [vmem:[#allocation3 + $0xa8] ss:$2 sm:$0xff]  ;;  %v3574_v4 = vld [vmem:[#allocation3 + $0xa9] ss:$2 sm:$0xff] }
 0x2f8   : > { %3463 = vst.msk [vmem:[#allocation3 + $0xc1] sm:$0xff] %vm3392_vm3, %v3374_v59  ;;  %v2997_v48 = vadd.f32 %v2931_v45, %v2687_v43  ;;  %4299 = vmatmul.msk.f32.gmra.mxu0 %vm171_vm1, %v3077_v28  ;;  %v3562_v21 = vmax.f32 %v3539_v52, %v3550_v35  ;;  %v3598_v14 = vld [vmem:[#allocation3 + $0xaa] ss:$2 sm:$0xff] }
 0x2fa   : > { %v3307_v47 = vadd.f32 %v3241_v7, %v2997_v48  ;;  %v3586_v5 = vmax.f32 %v3562_v21, %v3574_v4 }
 0x2fb   : > { %v2317_v2 = vpop.f32.mrf.mxu1 }
 0x2fc   : > { %v3343_v50 = vadd.f32 %v5424_v36, %v3307_v47  ;;  %v2379_v61 = vadd.f32 %v2317_v2, %v5267_v22  ;;  %v3610_v3 = vmax.f32 %v3586_v5, %v3598_v14 }
 0x2fd   : > { %v2624_v54 = vpop.f32.mrf.mxu2  ;;  %v3244_v58 = vpop.f32.mrf.mxu0 }
 0x2fe   : > { %v3375_v62 = vmax.f32 %v3343_v50, 0.0  ;;  %v2688_v17 = vadd.f32 %v2624_v54, %v2378_v11 }
 0x2ff   : > { %v2934_v30 = vpop.f32.mrf.mxu3 }
 0x300   : > { %3464 = vst.msk [vmem:[#allocation3 + $0xc9] sm:$0xff] %vm3392_vm3, %v3375_v62  ;;  %v2998_v29 = vadd.f32 %v2934_v30, %v2688_v17 }
 0x302   : > { %v3308_v0 = vadd.f32 %v3244_v58, %v2998_v29 }
 0x303   : > { %v2320_v8 = vpop.f32.mrf.mxu1 }
 0x304   : > { %v3344_v12 = vadd.f32 %v5424_v36, %v3308_v0  ;;  %v2380_v27 = vadd.f32 %v2320_v8, %v5274_v33 }
 0x305   : > { %v2627_v57 = vpop.f32.mrf.mxu2  ;;  %v3247_v41 = vpop.f32.mrf.mxu0 }
 0x306   : > { %v3376_v15 = vmax.f32 %v3344_v12, 0.0  ;;  %v2689_v18 = vadd.f32 %v2627_v57, %v2379_v61 }
 0x307   : > { %v2937_v44 = vpop.f32.mrf.mxu3  ;;  %v3622_v34 = vld [vmem:[#allocation3 + $0xc0] ss:$2 sm:$0xff]  ;;  %v3646_v37 = vld [vmem:[#allocation3 + $0xc1] ss:$2 sm:$0xff] }
 0x308   : > { %v2999_v20 = vadd.f32 %v2937_v44, %v2689_v18  ;;  %v3634_v13 = vmax.f32 %v3610_v3, %v3622_v34  ;;  %3465 = vst.msk [vmem:[#allocation3 + $0xd9] sm:$0xff] %vm3392_vm3, %v3376_v15  ;;  %v3670_v22 = vld [vmem:[#allocation3 + $0xc2] ss:$2 sm:$0xff]  ;;  %v3505_v2 = vld [vmem:[#allocation3 + $0xc1] ss:$2 sm:$0xff] }
 0x309   : > { %v3489_v47 = vld [vmem:[#allocation3 + $0xc0] ss:$2 sm:$0xff] }
 0x30a   : > { %v3309_v23 = vadd.f32 %v3247_v41, %v2999_v20  ;;  %v3658_v49 = vmax.f32 %v3634_v13, %v3646_v37  ;;  %v3516_v52 = vmax.f32 %v3489_v47, %v3505_v2  ;;  %v3529_v62 = vld [vmem:[#allocation3 + $0xc2] ss:$2 sm:$0xff] }
 0x30b   : > { %v2323_v56 = vpop.f32.mrf.mxu1 }
 0x30c   : > { %v3345_v24 = vadd.f32 %v5424_v36, %v3309_v23  ;;  %v3682_v46 = vmax.f32 %v3658_v49, %v3670_v22  ;;  %v2381_v45 = vadd.f32 %v2323_v56, %v5281_v38  ;;  %v3540_v30 = vmax.f32 %v3516_v52, %v3529_v62 }
 0x30d   : > { %v2630_v31 = vpop.f32.mrf.mxu2  ;;  %v3250_v32 = vpop.f32.mrf.mxu0 }
 0x30e   : > { %v3377_v7 = vmax.f32 %v3345_v24, 0.0  ;;  %v2690_v28 = vadd.f32 %v2630_v31, %v2380_v27  ;;  %3690 = vst.msk [vmem:[%s5522_s13 + $0x18] sm:$0xff] %vm3392_vm3, %v3682_v46 }
 0x30f   : > { %v2940_v10 = vpop.f32.mrf.mxu3 }
 0x310   : > { %3466 = vst.msk [vmem:[#allocation3 + $0xe1] sm:$0xff] %vm3392_vm3, %v3377_v7  ;;  %v3000_v39 = vadd.f32 %v2940_v10, %v2690_v28 }
 0x312   : > { %v3310_v59 = vadd.f32 %v3250_v32, %v3000_v39 }
 0x313   : > { %v2326_v43 = vpop.f32.mrf.mxu1 }
 0x314   : > { %v3346_v48 = vadd.f32 %v5424_v36, %v3310_v59  ;;  %v2382_v21 = vadd.f32 %v2326_v43, %v5288_v51 }
 0x315   : > { %v2633_v33 = vpop.f32.mrf.mxu2  ;;  %v3253_v25 = vpop.f32.mrf.mxu0 }
 0x316   : > { %v3378_v1 = vmax.f32 %v3346_v48, 0.0  ;;  %v2691_v35 = vadd.f32 %v2633_v33, %v2381_v45 }
 0x317   : > { %v2943_v11 = vpop.f32.mrf.mxu3  ;;  %v3552_v17 = vld [vmem:[#allocation3 + $0xd8] ss:$2 sm:$0xff]  ;;  %v3576_v57 = vld [vmem:[#allocation3 + $0xd9] ss:$2 sm:$0xff] }
 0x318   : > { %3467 = vst.msk [vmem:[#allocation3 + $0xf1] sm:$0xff] %vm3392_vm3, %v3378_v1  ;;  %v3001_v50 = vadd.f32 %v2943_v11, %v2691_v35  ;;  %v3563_v8 = vmax.f32 %v3540_v30, %v3552_v17  ;;  %v3600_v34 = vld [vmem:[#allocation3 + $0xda] ss:$2 sm:$0xff] }
 0x31a   : > { %v3311_v54 = vadd.f32 %v3253_v25, %v3001_v50  ;;  %v3587_v14 = vmax.f32 %v3563_v8, %v3576_v57 }
 0x31b   : > { %v2329_v58 = vpop.f32.mrf.mxu1 }
 0x31c   : > { %v3347_v38 = vadd.f32 %v5424_v36, %v3311_v54  ;;  %v2383_v18 = vadd.f32 %v2329_v58, %v5295_v60  ;;  %v3611_v37 = vmax.f32 %v3587_v14, %v3600_v34 }
 0x31d   : > { %v2636_v29 = vpop.f32.mrf.mxu2  ;;  %v3256_v4 = vpop.f32.mrf.mxu0 }
 0x31e   : > { %v3379_v0 = vmax.f32 %v3347_v38, 0.0  ;;  %v2692_v5 = vadd.f32 %v2636_v29, %v2382_v21 }
 0x31f   : > { %v2946_v61 = vpop.f32.mrf.mxu3 }
 0x320   : > { %3468 = vst.msk [vmem:[#allocation3 + $0xf9] sm:$0xff] %vm3392_vm3, %v3379_v0  ;;  %v3002_v12 = vadd.f32 %v2946_v61, %v2692_v5 }
 0x322   : > { %v3312_v41 = vadd.f32 %v3256_v4, %v3002_v12 }
 0x323   : > { %v2332_v15 = vpop.f32.mrf.mxu1 }
 0x324   : > { %v3348_v51 = vadd.f32 %v5424_v36, %v3312_v41  ;;  %v2384_v32 = vadd.f32 %v2332_v15, %v5302_v6 }
 0x325   : > { %v2639_v3 = vpop.f32.mrf.mxu2  ;;  %v3259_v44 = vpop.f32.mrf.mxu0 }
 0x326   : > { %v3380_v20 = vmax.f32 %v3348_v51, 0.0  ;;  %v2693_v13 = vadd.f32 %v2639_v3, %v2383_v18 }
 0x327   : > { %v2949_v23 = vpop.f32.mrf.mxu3  ;;  %v3624_v49 = vld [vmem:[#allocation3 + $0xf0] ss:$2 sm:$0xff]  ;;  %v3648_v27 = vld [vmem:[#allocation3 + $0xf1] ss:$2 sm:$0xff] }
 0x328   : > { %v3003_v56 = vadd.f32 %v2949_v23, %v2693_v13  ;;  %v3635_v22 = vmax.f32 %v3611_v37, %v3624_v49  ;;  %3469 = vst.msk [vmem:[#allocation3 + $0x109] sm:$0xff] %vm3392_vm3, %v3380_v20  ;;  %v3672_v60 = vld [vmem:[#allocation3 + $0xf2] ss:$2 sm:$0xff]  ;;  %v3507_v11 = vld [vmem:[#allocation3 + $0xf1] ss:$2 sm:$0xff] }
 0x329   : > { %v3491_v35 = vld [vmem:[#allocation3 + $0xf0] ss:$2 sm:$0xff] }
 0x32a   : > { %v3313_v24 = vadd.f32 %v3259_v44, %v3003_v56  ;;  %v3659_v46 = vmax.f32 %v3635_v22, %v3648_v27  ;;  %v3517_v62 = vmax.f32 %v3491_v35, %v3507_v11  ;;  %v3531_v38 = vld [vmem:[#allocation3 + $0xf2] ss:$2 sm:$0xff] }
 0x32b   : > { %v2335_v31 = vpop.f32.mrf.mxu1 }
 0x32c   : > { %v3349_v7 = vadd.f32 %v5424_v36, %v3313_v24  ;;  %v3683_v28 = vmax.f32 %v3659_v46, %v3672_v60  ;;  %v2385_v47 = vadd.f32 %v2335_v31, %v5309_v16  ;;  %v3541_v4 = vmax.f32 %v3517_v62, %v3531_v38 }
 0x32d   : > { %v2642_v10 = vpop.f32.mrf.mxu2  ;;  %v3262_v39 = vpop.f32.mrf.mxu0 }
 0x32e   : > { %v3381_v59 = vmax.f32 %v3349_v7, 0.0  ;;  %v2694_v43 = vadd.f32 %v2642_v10, %v2384_v32  ;;  %3691 = vst.msk [vmem:[%s5522_s13 + $0x20] sm:$0xff] %vm3392_vm3, %v3683_v28 }
 0x32f   : > { %v2952_v45 = vpop.f32.mrf.mxu3 }
 0x330   : > { %3470 = vst.msk [vmem:[#allocation3 + $0x111] sm:$0xff] %vm3392_vm3, %v3381_v59  ;;  %v3004_v48 = vadd.f32 %v2952_v45, %v2694_v43 }
 0x332   : > { %v3314_v33 = vadd.f32 %v3262_v39, %v3004_v48 }
 0x333   : > { %v2338_v25 = vpop.f32.mrf.mxu1 }
 0x334   : > { %v3350_v2 = vadd.f32 %v5424_v36, %v3314_v33  ;;  %v2386_v29 = vadd.f32 %v2338_v25, %v5316_v26  ;;  %v5638_v26 = vld [vmem:[%s5673_s2] ss:$0 sm:$0xff] }
 0x335   : > { %v2645_v6 = vpop.f32.mrf.mxu2  ;;  %v3265_v1 = vpop.f32.mrf.mxu0 }
 0x336   : > { %v3382_v50 = vmax.f32 %v3350_v2, 0.0  ;;  %v2695_v52 = vadd.f32 %v2645_v6, %v2385_v47 }
 0x337   : > { %v2955_v54 = vpop.f32.mrf.mxu3  ;;  %v3554_v30 = vld [vmem:[#allocation3 + $0x108] ss:$2 sm:$0xff]  ;;  %v3578_v14 = vld [vmem:[#allocation3 + $0x109] ss:$2 sm:$0xff] }
 0x338   : > { %3471 = vst.msk [vmem:[#allocation3 + $0x121] sm:$0xff] %vm3392_vm3, %v3382_v50  ;;  %v3005_v58 = vadd.f32 %v2955_v54, %v2695_v52  ;;  %v3564_v12 = vmax.f32 %v3541_v4, %v3554_v30  ;;  %v3602_v20 = vld [vmem:[#allocation3 + $0x10a] ss:$2 sm:$0xff] }
 0x33a   : > { %v3315_v17 = vadd.f32 %v3265_v1, %v3005_v58  ;;  %v3588_v18 = vmax.f32 %v3564_v12, %v3578_v14 }
 0x33b   : > { %v2341_v21 = vpop.f32.mrf.mxu1 }
 0x33c   : > { %v3351_v16 = vadd.f32 %v5424_v36, %v3315_v17  ;;  %v2387_v3 = vadd.f32 %v2341_v21, %v5323_v40  ;;  %v3612_v23 = vmax.f32 %v3588_v18, %v3602_v20 }
 0x33d   : > { %v2648_v0 = vpop.f32.mrf.mxu2  ;;  %v3268_v5 = vpop.f32.mrf.mxu0 }
 0x33e   : > { %v3383_v8 = vmax.f32 %v3351_v16, 0.0  ;;  %v2696_v61 = vadd.f32 %v2648_v0, %v2386_v29 }
 0x33f   : > { %v2958_v57 = vpop.f32.mrf.mxu3 }
 0x340   : > { %3472 = vst.msk [vmem:[#allocation3 + $0x129] sm:$0xff] %vm3392_vm3, %v3383_v8  ;;  %v3006_v41 = vadd.f32 %v2958_v57, %v2696_v61 }
 0x342   : > { %v3316_v15 = vadd.f32 %v3268_v5, %v3006_v41 }
 0x343   : > { %v2344_v51 = vpop.f32.mrf.mxu1 }
 0x344   : > { %v3352_v36 = vadd.f32 %v5638_v26, %v3316_v15  ;;  %v2388_v32 = vadd.f32 %v2344_v51, %v5330_v55 }
 0x345   : > { %v2651_v44 = vpop.f32.mrf.mxu2  ;;  %v3271_v34 = vpop.f32.mrf.mxu0 }
 0x346   : > { %v3384_v13 = vmax.f32 %v3352_v36, 0.0  ;;  %v2697_v37 = vadd.f32 %v2651_v44, %v2387_v3 }
 0x347   : > { %v2961_v49 = vpop.f32.mrf.mxu3  ;;  %v3626_v56 = vld [vmem:[#allocation3 + $0x120] ss:$2 sm:$0xff]  ;;  %v3650_v40 = vld [vmem:[#allocation3 + $0x121] ss:$2 sm:$0xff] }
 0x348   : > { %v3007_v22 = vadd.f32 %v2961_v49, %v2697_v37  ;;  %v3636_v27 = vmax.f32 %v3612_v23, %v3626_v56  ;;  %3473 = vst.msk [vmem:[#allocation3 + $0x139] sm:$0xff] %vm3392_vm3, %v3384_v13  ;;  %v3674_v60 = vld [vmem:[#allocation3 + $0x122] ss:$2 sm:$0xff]  ;;  %v3509_v35 = vld [vmem:[#allocation3 + $0x121] ss:$2 sm:$0xff] }
 0x349   : > { %v3493_v1 = vld [vmem:[#allocation3 + $0x120] ss:$2 sm:$0xff] }
 0x34a   : > { %v3317_v24 = vadd.f32 %v3271_v34, %v3007_v22  ;;  %v3660_v46 = vmax.f32 %v3636_v27, %v3650_v40  ;;  %v3518_v58 = vmax.f32 %v3493_v1, %v3509_v35  ;;  %v3533_v17 = vld [vmem:[#allocation3 + $0x122] ss:$2 sm:$0xff] }
 0x34b   : > { %v2347_v31 = vpop.f32.mrf.mxu1 }
 0x34c   : > { %v3353_v7 = vadd.f32 %v5638_v26, %v3317_v24  ;;  %v3684_v28 = vmax.f32 %v3660_v46, %v3674_v60  ;;  %v2389_v47 = vadd.f32 %v2347_v31, %v5337_v42  ;;  %v3542_v29 = vmax.f32 %v3518_v58, %v3533_v17 }
 0x34d   : > { %v2654_v10 = vpop.f32.mrf.mxu2  ;;  %v3274_v39 = vpop.f32.mrf.mxu0 }
 0x34e   : > { %v3385_v59 = vmax.f32 %v3353_v7, 0.0  ;;  %v2698_v43 = vadd.f32 %v2654_v10, %v2388_v32  ;;  %3692 = vst.msk [vmem:[%s5522_s13 + $0x28] sm:$0xff] %vm3392_vm3, %v3684_v28 }
 0x34f   : > { %v2964_v45 = vpop.f32.mrf.mxu3 }
 0x350   : > { %3474 = vst.msk [vmem:[#allocation3 + $0x141] sm:$0xff] %vm3392_vm3, %v3385_v59  ;;  %v3008_v48 = vadd.f32 %v2964_v45, %v2698_v43 }
 0x352   : > { %v3318_v33 = vadd.f32 %v3274_v39, %v3008_v48 }
 0x353   : > { %v2350_v25 = vpop.f32.mrf.mxu1 }
 0x354   : > { %v3354_v2 = vadd.f32 %v5638_v26, %v3318_v33  ;;  %v2390_v38 = vadd.f32 %v2350_v25, %v5344_v53 }
 0x355   : > { %v2657_v55 = vpop.f32.mrf.mxu2  ;;  %v3277_v6 = vpop.f32.mrf.mxu0 }
 0x356   : > { %v3386_v11 = vmax.f32 %v3354_v2, 0.0  ;;  %v2699_v50 = vadd.f32 %v2657_v55, %v2389_v47 }
 0x357   : > { %v2967_v52 = vpop.f32.mrf.mxu3  ;;  %v3556_v21 = vld [vmem:[#allocation3 + $0x138] ss:$2 sm:$0xff]  ;;  %v3580_v57 = vld [vmem:[#allocation3 + $0x139] ss:$2 sm:$0xff] }
 0x358   : > { %3475 = vst.msk [vmem:[#allocation3 + $0x151] sm:$0xff] %vm3392_vm3, %v3386_v11  ;;  %v3009_v54 = vadd.f32 %v2967_v52, %v2699_v50  ;;  %v3565_v8 = vmax.f32 %v3542_v29, %v3556_v21  ;;  %v3604_v3 = vld [vmem:[#allocation3 + $0x13a] ss:$2 sm:$0xff] }
 0x35a   : > { %v3319_v62 = vadd.f32 %v3277_v6, %v3009_v54  ;;  %v3589_v14 = vmax.f32 %v3565_v8, %v3580_v57 }
 0x35b   : > { %v2353_v30 = vpop.f32.mrf.mxu1 }
 0x35c   : > { %v3355_v42 = vadd.f32 %v5638_v26, %v3319_v62  ;;  %v2391_v15 = vadd.f32 %v2353_v30, %v5357_v63  ;;  %v3613_v34 = vmax.f32 %v3589_v14, %v3604_v3 }
 0x35d   : > { %v2660_v16 = vpop.f32.mrf.mxu2  ;;  %v3280_v4 = vpop.f32.mrf.mxu0 }
 0x35e   : > { %v3387_v0 = vmax.f32 %v3355_v42, 0.0  ;;  %v2700_v5 = vadd.f32 %v2660_v16, %v2390_v38 }
 0x35f   : > { %v2970_v61 = vpop.f32.mrf.mxu3 }
 0x360   : > { %3476 = vst.msk [vmem:[#allocation3 + $0x159] sm:$0xff] %vm3392_vm3, %v3387_v0  ;;  %v3010_v12 = vadd.f32 %v2970_v61, %v2700_v5 }
 0x362   : > { %v3320_v41 = vadd.f32 %v3280_v4, %v3010_v12 }
 0x363   : > { %v2356_v20 = vpop.f32.mrf.mxu1 }
 0x364   : > { %v3356_v53 = vadd.f32 %v5638_v26, %v3320_v41  ;;  %v2392_v40 = vadd.f32 %v2356_v20, %v5380_v9 }
 0x365   : > { %v2663_v18 = vpop.f32.mrf.mxu2  ;;  %v3283_v51 = vpop.f32.mrf.mxu0 }
 0x366   : > { %v3388_v36 = vmax.f32 %v3356_v53, 0.0  ;;  %v2701_v44 = vadd.f32 %v2663_v18, %v2391_v15 }
 0x367   : > { %v2973_v13 = vpop.f32.mrf.mxu3  ;;  %v3628_v37 = vld [vmem:[#allocation3 + $0x150] ss:$2 sm:$0xff]  ;;  %v3652_v56 = vld [vmem:[#allocation3 + $0x151] ss:$2 sm:$0xff] }
 0x368   : > { %v3011_v23 = vadd.f32 %v2973_v13, %v2701_v44  ;;  %v3637_v49 = vmax.f32 %v3613_v34, %v3628_v37  ;;  %3477 = vst.msk [vmem:[#allocation3 + $0x169] sm:$0xff] %vm3392_vm3, %v3388_v36  ;;  %v3676_v63 = vld [vmem:[#allocation3 + $0x152] ss:$2 sm:$0xff]  ;;  %v3511_v48 = vld [vmem:[#allocation3 + $0x151] ss:$2 sm:$0xff] }
 0x369   : > { %v3495_v9 = vld [vmem:[#allocation3 + $0x150] ss:$2 sm:$0xff] }
 0x36a   : > { %v3321_v22 = vadd.f32 %v3283_v51, %v3011_v23  ;;  %v3661_v27 = vmax.f32 %v3637_v49, %v3652_v56  ;;  %v3519_v6 = vmax.f32 %v3495_v9, %v3511_v48  ;;  %v3535_v11 = vld [vmem:[#allocation3 + $0x152] ss:$2 sm:$0xff] }
 0x36b   : > { %v2359_v39 = vpop.f32.mrf.mxu1 }
 0x36c   : > { %v3357_v24 = vadd.f32 %v5638_v26, %v3321_v22  ;;  %v3685_v46 = vmax.f32 %v3661_v27, %v3676_v63  ;;  %v2393_v43 = vadd.f32 %v2359_v39, %v5403_v19  ;;  %v3543_v52 = vmax.f32 %v3519_v6, %v3535_v11 }
 0x36d   : > { %v2666_v31 = vpop.f32.mrf.mxu2  ;;  %v3286_v60 = vpop.f32.mrf.mxu0 }
 0x36e   : > { %v3389_v32 = vmax.f32 %v3357_v24, 0.0  ;;  %v2702_v7 = vadd.f32 %v2666_v31, %v2392_v40  ;;  %3693 = vst.msk [vmem:[%s5522_s13 + $0x30] sm:$0xff] %vm3392_vm3, %v3685_v46 }
 0x36f   : > { %v2976_v28 = vpop.f32.mrf.mxu3 }
 0x370   : > { %3478 = vst.msk [vmem:[#allocation3 + $0x171] sm:$0xff] %vm3392_vm3, %v3389_v32  ;;  %v3012_v10 = vadd.f32 %v2976_v28, %v2702_v7 }
 0x372   : > { %v3322_v59 = vadd.f32 %v3286_v60, %v3012_v10 }
 0x374   : > { %v3358_v45 = vadd.f32 %v5638_v26, %v3322_v59 }
 0x375   : > { %v2669_v33 = vpop.f32.mrf.mxu2  ;;  %v3289_v55 = vpop.f32.mrf.mxu0 }
 0x376   : > { %v3390_v25 = vmax.f32 %v3358_v45, 0.0  ;;  %v2703_v47 = vadd.f32 %v2669_v33, %v2393_v43 }
 0x377   : > { %v2979_v2 = vpop.f32.mrf.mxu3  ;;  %v3558_v50 = vld [vmem:[#allocation3 + $0x168] ss:$2 sm:$0xff]  ;;  %v3582_v62 = vld [vmem:[#allocation3 + $0x169] ss:$2 sm:$0xff] }
 0x378   : > { %3479 = vst.msk [vmem:[#allocation3 + $0x181] sm:$0xff] %vm3392_vm3, %v3390_v25  ;;  %v3013_v1 = vadd.f32 %v2979_v2, %v2703_v47  ;;  %v3566_v54 = vmax.f32 %v3543_v52, %v3558_v50  ;;  %v3606_v21 = vld [vmem:[#allocation3 + $0x16a] ss:$2 sm:$0xff] }
 0x37a   : > { %v3323_v35 = vadd.f32 %v3289_v55, %v3013_v1  ;;  %v3590_v17 = vmax.f32 %v3566_v54, %v3582_v62 }
 0x37c   : > { %v3359_v19 = vadd.f32 %v5638_v26, %v3323_v35  ;;  %v3614_v38 = vmax.f32 %v3590_v17, %v3606_v21 }
 0x37e   : > { %v3391_v58 = vmax.f32 %v3359_v19, 0.0 }
 0x380   : > { %3480 = vst.msk [vmem:[#allocation3 + $0x189] sm:$0xff] %vm3392_vm3, %v3391_v58 }
 0x387   : > { %v3630_v42 = vld [vmem:[#allocation3 + $0x180] ss:$2 sm:$0xff]  ;;  %v3654_v29 = vld [vmem:[#allocation3 + $0x181] ss:$2 sm:$0xff] }
 0x388   : > { %v3638_v30 = vmax.f32 %v3614_v38, %v3630_v42  ;;  %v3678_v4 = vld [vmem:[#allocation3 + $0x182] ss:$2 sm:$0xff] }
 0x38a   : > { %v3662_v16 = vmax.f32 %v3638_v30, %v3654_v29 }
 0x38c   : > { %v3686_v0 = vmax.f32 %v3662_v16, %v3678_v4 }
 0x38e   : > { %3694 = vst.msk [vmem:[%s5522_s13 + $0x38] sm:$0xff] %vm3392_vm3, %v3686_v0 }
 0x38f PF: > { %s13_s12 = sadd.s32 1, %s4325_s12  }
 0x390   : > { %p10_p4 = scmp.ge.s32.totalorder %s13_s12, 4  }
 0x392   :  { %12 = sbr.rel (!%p10_p4) target bundleno = 1 (0x1), region = 428 }

</bundles_post_ra>
